<compile_context>
chip_gen: v6e
topology: v6e:2x2x1
jax: 0.10.0
libtpu: 0.0.40
codegen_flags: <defaults>
</compile_context>

<pallas_src>
import functools

import numpy as np
import jax
import jax.numpy as jnp
from jax.experimental import pallas as pl
from jax.experimental.pallas import tpu as pltpu

LANE = 256          # per-parity lane stride (multiple of 128 -> aligned slicing)
C1, C2 = 20, 50     # conv1 / conv2 output channels
K1 = 5 * 28         # conv1 packed contraction depth (5 row taps x 28 columns)
FC1 = 512           # fc1 width padded 500 -> 512
NCLS = 10
NOUT = 128          # lane-dense padded logits width


# ---------------- fused whole-network kernel ----------------

def _net_kernel(x_ref, k1_ref, b1_ref, k2_ref, b2_ref, w3_ref, b3_ref,
                w4_ref, b4_ref, o_ref, p1_ref):
    tb = x_ref.shape[0]
    f32 = jnp.float32
    bf16 = jnp.bfloat16

    # ---- conv1 (5x5 valid) + bias + relu: ONE packed im2row dot, K=140 ----
    # x_ref[b, r, di*28 + j] = image[b, r+di, j]
    # k1 output lane L = (ow%2)*256 + (ow//2)*20 + oc
    lhs1 = x_ref[...].reshape(tb * 24, K1)                          # bf16
    a1 = jnp.dot(lhs1, k1_ref[...], preferred_element_type=f32)
    a1 = jnp.maximum(a1 + b1_ref[...], 0.0)                         # [tb*24, 512]

    # ---- 2x2 max-pool #1: width pairs = lane halves, height pairs = sublane pairs ----
    p1w = jnp.maximum(a1[:, :LANE], a1[:, LANE:]).reshape(tb, 24, LANE)
    p1_ref[...] = jnp.max(p1w.reshape(tb, 12, 2, LANE), axis=2).astype(bf16)
    # p1_ref[b, t, s*20+ic] = pooled conv1 activation (pad lanes 240..255 are 0)

    # ---- conv2 (5x5 valid) + bias + relu: ONE packed dot, K = 5*256 = 1280 ----
    # lane-aligned concat (offsets 0,256,...,1024) of the 5 row taps.
    lhs2 = jnp.concatenate([p1_ref[:, di:di + 8, :] for di in range(5)],
                           axis=-1).reshape(tb * 8, 5 * LANE)
    a2 = jnp.dot(lhs2, k2_ref[...], preferred_element_type=f32)
    a2 = jnp.maximum(a2 + b2_ref[...], 0.0)                         # [tb*8, 512]

    # ---- 2x2 max-pool #2 + fc1 + relu (4 pooled-row taps, each full K=256) ----
    p2w = jnp.maximum(a2[:, :LANE], a2[:, LANE:]).reshape(tb, 8, LANE)
    acc = None
    for t in range(4):
        p2t = jnp.maximum(p2w[:, 2 * t, :], p2w[:, 2 * t + 1, :])   # [tb, 256]
        part = jnp.dot(p2t.astype(bf16), w3_ref[t], preferred_element_type=f32)
        acc = part if acc is None else acc + part
    h = jnp.maximum(acc + b3_ref[...], 0.0)                         # [tb, 512]

    # ---- fc2 + log_softmax over 128 padded lanes (pad bias = -1e9) ----
    z = jnp.dot(h.astype(bf16), w4_ref[...], preferred_element_type=f32) + b4_ref[...]
    m = jnp.max(z, axis=-1, keepdims=True)
    lse = jnp.log(jnp.sum(jnp.exp(z - m), axis=-1, keepdims=True)) + m
    o_ref[...] = z - lse


# ---------------- host-side weight packing (once per params) ----------------

def prepare_params(params):
    w1 = np.asarray(params["conv1_w"], np.float32)   # [20, 1, 5, 5]
    b1 = np.asarray(params["conv1_b"], np.float32)   # [20]
    w2 = np.asarray(params["conv2_w"], np.float32)   # [50, 20, 5, 5]
    b2 = np.asarray(params["conv2_b"], np.float32)   # [50]
    fw1 = np.asarray(params["fc1_w"], np.float32)    # [800, 500]  (in, out)
    fb1 = np.asarray(params["fc1_b"], np.float32)    # [500]
    fw2 = np.asarray(params["fc2_w"], np.float32)    # [500, 10]   (in, out)
    fb2 = np.asarray(params["fc2_b"], np.float32)    # [10]

    # conv1 packed K-matrix: row = di*28 + (ow+dj); output lane = (ow%2)*256+(ow//2)*20+oc.
    k1 = np.zeros((K1, 2 * LANE), np.float32)
    b1t = np.zeros((1, 2 * LANE), np.float32)
    for ow in range(24):
        lo = (ow % 2) * LANE + (ow // 2) * C1
        b1t[0, lo:lo + C1] = b1
        for di in range(5):
            for dj in range(5):
                k1[di * 28 + ow + dj, lo:lo + C1] = w1[:, 0, di, dj]

    # conv2 packed K-matrix: row = di*256 + s_in*20 + ic; output lane = (ow%2)*256+(ow//2)*50+oc.
    k2 = np.zeros((5, LANE, 2 * LANE), np.float32)
    b2t = np.zeros((1, 2 * LANE), np.float32)
    for ow in range(8):
        lo = (ow % 2) * LANE + (ow // 2) * C2
        b2t[0, lo:lo + C2] = b2
        for di in range(5):
            for dj in range(5):
                s_in = ow + dj
                k2[di, s_in * C1:(s_in + 1) * C1, lo:lo + C2] = w2[:, :, di, dj].T
    k2 = k2.reshape(5 * LANE, 2 * LANE)

    # fc1: permute rows from PyTorch NCHW flatten (oc*16 + t*4 + s) to [t, s*50+oc], pad.
    w3 = np.zeros((4, LANE, FC1), np.float32)
    w3_core = fw1.reshape(C2, 4, 4, 500).transpose(1, 2, 0, 3).reshape(4, 4 * C2, 500)
    w3[:, :4 * C2, :500] = w3_core
    b3 = np.zeros((1, FC1), np.float32)
    b3[0, :500] = fb1

    # fc2 padded to 128 lane-dense logits; pad bias is very negative so the
    # padded lanes never contribute to the log-sum-exp normalizer.
    w4 = np.zeros((FC1, NOUT), np.float32)
    w4[:500, :NCLS] = fw2
    b4 = np.full((1, NOUT), -1e9, np.float32)
    b4[0, :NCLS] = fb2

    bf = jnp.bfloat16
    return dict(k1=jnp.asarray(k1, bf), b1=jnp.asarray(b1t),
                k2=jnp.asarray(k2, bf), b2=jnp.asarray(b2t),
                w3=jnp.asarray(w3, bf), b3=jnp.asarray(b3),
                w4=jnp.asarray(w4, bf), b4=jnp.asarray(b4))


# ---------------- forward ----------------

def _round_up(n, m):
    return ((n + m - 1) // m) * m


@functools.partial(jax.jit, static_argnames=("tb",))
def _net_forward_impl(x_nchw, kp, tb):
    B = x_nchw.shape[0]
    bp = _round_up(B, tb)
    x3 = x_nchw.reshape(B, 28, 28).astype(jnp.bfloat16)
    # conv1 im2row view (built by XLA, fused with the cast/pad):
    #   xp[b, r, di*28 + j] = x[b, r+di, j]    (K = 5*28 = 140)
    xp = jnp.concatenate([x3[:, di:di + 24, :] for di in range(5)], axis=-1)
    if bp != B:
        xp = jnp.pad(xp, ((0, bp - B), (0, 0), (0, 0)))

    out = pl.pallas_call(
        _net_kernel,
        out_shape=jax.ShapeDtypeStruct((bp, NOUT), jnp.float32),
        grid=(bp // tb,),
        in_specs=[
            pl.BlockSpec((tb, 24, K1), lambda i: (i, 0, 0)),          # x patches (stream)
            pl.BlockSpec((K1, 2 * LANE), lambda i: (0, 0)),            # conv1 K (resident)
            pl.BlockSpec((1, 2 * LANE), lambda i: (0, 0)),
            pl.BlockSpec((5 * LANE, 2 * LANE), lambda i: (0, 0)),      # conv2 K (resident)
            pl.BlockSpec((1, 2 * LANE), lambda i: (0, 0)),
            pl.BlockSpec((4, LANE, FC1), lambda i: (0, 0, 0)),         # fc1 (resident)
            pl.BlockSpec((1, FC1), lambda i: (0, 0)),
            pl.BlockSpec((FC1, NOUT), lambda i: (0, 0)),               # fc2
            pl.BlockSpec((1, NOUT), lambda i: (0, 0)),
        ],
        out_specs=pl.BlockSpec((tb, NOUT), lambda i: (i, 0)),
        scratch_shapes=[pltpu.VMEM((tb, 12, LANE), jnp.bfloat16)],     # pooled conv1 act
        compiler_params=pltpu.CompilerParams(
            dimension_semantics=("parallel",),
            vmem_limit_bytes=48 * 1024 * 1024),
    )(xp, kp["k1"], kp["b1"], kp["k2"], kp["b2"],
      kp["w3"], kp["b3"], kp["w4"], kp["b4"])
    return out[:B, :NCLS]


def net_forward(x_nchw, kp, tb=128):
    """Forward pass. tb = batch tile; sweep 64-256 per generation (keep
    tb <= ~128 and the VMEM limit <= ~48 MiB on v7x's 64 MiB VMEM)."""
    B = x_nchw.shape[0]
    bp8 = _round_up(max(B, 1), 8)
    tb_eff = min(tb, bp8)
    # Prefer >=2 grid steps when the batch allows it (v7x megacore sharding of
    # the 'parallel' batch axis; also enables x/logits pipelining).
    if bp8 > 8 and bp8 // tb_eff < 2:
        tb_eff = min(tb_eff, _round_up((bp8 + 1) // 2, 8))
    return _net_forward_impl(x_nchw, kp, tb_eff)


# ---------------- parameters & pure-JAX reference ----------------

def init_params(key):
    ks = jax.random.split(key, 8)

    def u(k, shape, fan_in):
        bound = 1.0 / (fan_in ** 0.5)
        return jax.random.uniform(k, shape, jnp.float32, -bound, bound)

    return dict(
        conv1_w=u(ks[0], (20, 1, 5, 5), 1 * 5 * 5),
        conv1_b=u(ks[1], (20,), 1 * 5 * 5),
        conv2_w=u(ks[2], (50, 20, 5, 5), 20 * 5 * 5),
        conv2_b=u(ks[3], (50,), 20 * 5 * 5),
        fc1_w=u(ks[4], (800, 500), 800),   # stored as [in, out]
        fc1_b=u(ks[5], (500,), 800),
        fc2_w=u(ks[6], (500, 10), 500),    # stored as [in, out]
        fc2_b=u(ks[7], (10,), 500),
    )


@jax.jit
def reference_forward(x_nchw, params):
    dn = ("NCHW", "OIHW", "NCHW")
    y = jax.lax.conv_general_dilated(x_nchw, params["conv1_w"], (1, 1), "VALID",
                                     dimension_numbers=dn)
    y = jax.nn.relu(y + params["conv1_b"][None, :, None, None])
    B, C, H, W = y.shape
    y = y.reshape(B, C, H // 2, 2, W // 2, 2).max(axis=(3, 5))
    y = jax.lax.conv_general_dilated(y, params["conv2_w"], (1, 1), "VALID",
                                     dimension_numbers=dn)
    y = jax.nn.relu(y + params["conv2_b"][None, :, None, None])
    B, C, H, W = y.shape
    y = y.reshape(B, C, H // 2, 2, W // 2, 2).max(axis=(3, 5))
    y = y.reshape(B, -1)                                    # NCHW flatten, like torch .view
    y = jax.nn.relu(y @ params["fc1_w"] + params["fc1_b"])
    z = y @ params["fc2_w"] + params["fc2_b"]
    return jax.nn.log_softmax(z, axis=-1)


if __name__ == "__main__":
    key = jax.random.PRNGKey(0)
    pkey, xkey = jax.random.split(key)
    params = init_params(pkey)
    kp = prepare_params(params)

    # The module's fixed 800-dim flatten implies 28x28 single-channel input.
    x = jax.random.normal(xkey, (2, 1, 28, 28), dtype=jnp.float32)

    out = net_forward(x, kp)
    jax.block_until_ready(out)

    assert out.shape == (2, 10)
    assert bool(jnp.all(jnp.isfinite(out)))
    # log_softmax rows must exp-sum to 1
    assert bool(jnp.allclose(jnp.sum(jnp.exp(out), axis=1), 1.0, atol=1e-3))
    # match the pure-JAX f32 reference of the PyTorch module (bf16 MXU tolerance)
    ref = reference_forward(x, params)
    err = float(jnp.max(jnp.abs(out - ref)))
    assert err < 5e-2, f"mismatch vs reference: {err}"
    print("KERNEL_OK")
</pallas_src>

<mosaic_0001>
module attributes {stable_mosaic.version = 11 : i64} {
  func.func @_net_kernel(%arg0: i32, %arg1: memref<8x24x140xbf16, #tpu.memory_space<vmem>>, %arg2: memref<140x512xbf16, #tpu.memory_space<vmem>>, %arg3: memref<1x512xf32, #tpu.memory_space<vmem>>, %arg4: memref<1280x512xbf16, #tpu.memory_space<vmem>>, %arg5: memref<1x512xf32, #tpu.memory_space<vmem>>, %arg6: memref<4x256x512xbf16, #tpu.memory_space<vmem>>, %arg7: memref<1x512xf32, #tpu.memory_space<vmem>>, %arg8: memref<512x128xbf16, #tpu.memory_space<vmem>>, %arg9: memref<1x128xf32, #tpu.memory_space<vmem>>, %arg10: memref<8x128xf32, #tpu.memory_space<vmem>>, %arg11: memref<8x12x256xbf16, #tpu.memory_space<vmem>>) attributes {dimension_semantics = [#tpu.dimension_semantics<parallel>], iteration_bounds = array<i64: 1>, scalar_prefetch = 0 : i64, scratch_operands = 1 : i64, tpu.core_type = #tpu.core_type<tc>, window_params = [{transform_indices = @transform_0, window_bounds = array<i64: 8, 24, 140>}, {pipeline_mode = #tpu.pipeline_mode<synchronous>, transform_indices = @transform_1, window_bounds = array<i64: 140, 512>}, {pipeline_mode = #tpu.pipeline_mode<synchronous>, transform_indices = @transform_2, window_bounds = array<i64: 1, 512>}, {pipeline_mode = #tpu.pipeline_mode<synchronous>, transform_indices = @transform_3, window_bounds = array<i64: 1280, 512>}, {pipeline_mode = #tpu.pipeline_mode<synchronous>, transform_indices = @transform_4, window_bounds = array<i64: 1, 512>}, {pipeline_mode = #tpu.pipeline_mode<synchronous>, transform_indices = @transform_5, window_bounds = array<i64: 4, 256, 512>}, {pipeline_mode = #tpu.pipeline_mode<synchronous>, transform_indices = @transform_6, window_bounds = array<i64: 1, 512>}, {pipeline_mode = #tpu.pipeline_mode<synchronous>, transform_indices = @transform_7, window_bounds = array<i64: 512, 128>}, {pipeline_mode = #tpu.pipeline_mode<synchronous>, transform_indices = @transform_8, window_bounds = array<i64: 1, 128>}, {transform_indices = @transform_9, window_bounds = array<i64: 8, 128>}]} {
    %c0 = arith.constant 0 : index
    %c0_0 = arith.constant 0 : index
    %c0_1 = arith.constant 0 : index
    %0 = vector.load %arg1[%c0, %c0_0, %c0_1] : memref<8x24x140xbf16, #tpu.memory_space<vmem>>, vector<8x24x140xbf16>
    %1 = vector.shape_cast %0 : vector<8x24x140xbf16> to vector<192x140xbf16>
    %c0_2 = arith.constant 0 : index
    %c0_3 = arith.constant 0 : index
    %2 = vector.load %arg2[%c0_2, %c0_3] : memref<140x512xbf16, #tpu.memory_space<vmem>>, vector<140x512xbf16>
    %cst = arith.constant dense<0.000000e+00> : vector<192x512xf32>
    %3 = tpu.matmul %1, %2, %cst {dimension_numbers = #tpu.dot_dimension_numbers<[1], [0], [0], [1], [0, 0, 1, 1], [], []>} : vector<192x140xbf16>, vector<140x512xbf16>, vector<192x512xf32> -> vector<192x512xf32>
    %c0_4 = arith.constant 0 : index
    %c0_5 = arith.constant 0 : index
    %4 = vector.load %arg3[%c0_4, %c0_5] : memref<1x512xf32, #tpu.memory_space<vmem>>, vector<1x512xf32>
    %5 = vector.broadcast %4 : vector<1x512xf32> to vector<192x512xf32>
    %6 = arith.addf %3, %5 : vector<192x512xf32>
    %cst_6 = arith.constant 0.000000e+00 : f32
    %7 = vector.broadcast %cst_6 : f32 to vector<192x512xf32>
    %8 = arith.maximumf %6, %7 : vector<192x512xf32>
    %9 = vector.extract_strided_slice %8 {offsets = [0, 0], sizes = [192, 256], strides = [1, 1]} : vector<192x512xf32> to vector<192x256xf32>
    %10 = vector.extract_strided_slice %8 {offsets = [0, 256], sizes = [192, 256], strides = [1, 1]} : vector<192x512xf32> to vector<192x256xf32>
    %11 = arith.maximumf %9, %10 : vector<192x256xf32>
    %12 = vector.shape_cast %11 : vector<192x256xf32> to vector<8x24x256xf32>
    %13 = vector.shape_cast %12 : vector<8x24x256xf32> to vector<8x12x2x256xf32>
    %cst_7 = arith.constant dense<0xFF800000> : vector<8x12x256xf32>
    %14 = vector.multi_reduction <maximumf>, %13, %cst_7 [2] : vector<8x12x2x256xf32> to vector<8x12x256xf32>
    %15 = arith.truncf %14 : vector<8x12x256xf32> to vector<8x12x256xbf16>
    %c0_8 = arith.constant 0 : index
    %c0_9 = arith.constant 0 : index
    %c0_10 = arith.constant 0 : index
    %16 = vector.load %arg11[%c0_8, %c0_9, %c0_10] : memref<8x12x256xbf16, #tpu.memory_space<vmem>>, vector<8x12x256xbf16>
    tpu.vector_store %arg11[%c0_8, %c0_9, %c0_10], %15 {strides = array<i32>} : memref<8x12x256xbf16, #tpu.memory_space<vmem>>, vector<8x12x256xbf16>,
    %c0_11 = arith.constant 0 : index
    %c0_12 = arith.constant 0 : index
    %c0_13 = arith.constant 0 : index
    %17 = vector.load %arg11[%c0_11, %c0_12, %c0_13] : memref<8x12x256xbf16, #tpu.memory_space<vmem>>, vector<8x8x256xbf16>
    %c0_14 = arith.constant 0 : index
    %c1 = arith.constant 1 : index
    %c0_15 = arith.constant 0 : index
    %18 = vector.load %arg11[%c0_14, %c1, %c0_15] : memref<8x12x256xbf16, #tpu.memory_space<vmem>>, vector<8x8x256xbf16>
    %c0_16 = arith.constant 0 : index
    %c2 = arith.constant 2 : index
    %c0_17 = arith.constant 0 : index
    %19 = vector.load %arg11[%c0_16, %c2, %c0_17] : memref<8x12x256xbf16, #tpu.memory_space<vmem>>, vector<8x8x256xbf16>
    %c0_18 = arith.constant 0 : index
    %c3 = arith.constant 3 : index
    %c0_19 = arith.constant 0 : index
    %20 = vector.load %arg11[%c0_18, %c3, %c0_19] : memref<8x12x256xbf16, #tpu.memory_space<vmem>>, vector<8x8x256xbf16>
    %c0_20 = arith.constant 0 : index
    %c4 = arith.constant 4 : index
    %c0_21 = arith.constant 0 : index
    %21 = vector.load %arg11[%c0_20, %c4, %c0_21] : memref<8x12x256xbf16, #tpu.memory_space<vmem>>, vector<8x8x256xbf16>
    %22 = tpu.concatenate %17, %18, %19, %20, %21 in 2 : vector<8x8x256xbf16>, vector<8x8x256xbf16>, vector<8x8x256xbf16>, vector<8x8x256xbf16>, vector<8x8x256xbf16> -> vector<8x8x1280xbf16>
    %23 = vector.shape_cast %22 : vector<8x8x1280xbf16> to vector<64x1280xbf16>
    %c0_22 = arith.constant 0 : index
    %c0_23 = arith.constant 0 : index
    %24 = vector.load %arg4[%c0_22, %c0_23] : memref<1280x512xbf16, #tpu.memory_space<vmem>>, vector<1280x512xbf16>
    %cst_24 = arith.constant dense<0.000000e+00> : vector<64x512xf32>
    %25 = tpu.matmul %23, %24, %cst_24 {dimension_numbers = #tpu.dot_dimension_numbers<[1], [0], [0], [1], [0, 0, 1, 1], [], []>} : vector<64x1280xbf16>, vector<1280x512xbf16>, vector<64x512xf32> -> vector<64x512xf32>
    %c0_25 = arith.constant 0 : index
    %c0_26 = arith.constant 0 : index
    %26 = vector.load %arg5[%c0_25, %c0_26] : memref<1x512xf32, #tpu.memory_space<vmem>>, vector<1x512xf32>
    %27 = vector.broadcast %26 : vector<1x512xf32> to vector<64x512xf32>
    %28 = arith.addf %25, %27 : vector<64x512xf32>
    %cst_27 = arith.constant 0.000000e+00 : f32
    %29 = vector.broadcast %cst_27 : f32 to vector<64x512xf32>
    %30 = arith.maximumf %28, %29 : vector<64x512xf32>
    %31 = vector.extract_strided_slice %30 {offsets = [0, 0], sizes = [64, 256], strides = [1, 1]} : vector<64x512xf32> to vector<64x256xf32>
    %32 = vector.extract_strided_slice %30 {offsets = [0, 256], sizes = [64, 256], strides = [1, 1]} : vector<64x512xf32> to vector<64x256xf32>
    %33 = arith.maximumf %31, %32 : vector<64x256xf32>
    %34 = vector.shape_cast %33 : vector<64x256xf32> to vector<8x8x256xf32>
    %35 = vector.extract_strided_slice %34 {offsets = [0, 0, 0], sizes = [8, 1, 256], strides = [1, 1, 1]} : vector<8x8x256xf32> to vector<8x1x256xf32>
    %36 = vector.shape_cast %35 : vector<8x1x256xf32> to vector<8x256xf32>
    %37 = vector.extract_strided_slice %34 {offsets = [0, 1, 0], sizes = [8, 1, 256], strides = [1, 1, 1]} : vector<8x8x256xf32> to vector<8x1x256xf32>
    %38 = vector.shape_cast %37 : vector<8x1x256xf32> to vector<8x256xf32>
    %39 = arith.maximumf %36, %38 : vector<8x256xf32>
    %40 = arith.truncf %39 : vector<8x256xf32> to vector<8x256xbf16>
    %c0_28 = arith.constant 0 : index
    %c0_29 = arith.constant 0 : index
    %c0_30 = arith.constant 0 : index
    %41 = vector.load %arg6[%c0_28, %c0_29, %c0_30] : memref<4x256x512xbf16, #tpu.memory_space<vmem>>, vector<1x256x512xbf16>
    %42 = vector.shape_cast %41 : vector<1x256x512xbf16> to vector<256x512xbf16>
    %cst_31 = arith.constant dense<0.000000e+00> : vector<8x512xf32>
    %43 = tpu.matmul %40, %42, %cst_31 {dimension_numbers = #tpu.dot_dimension_numbers<[1], [0], [0], [1], [0, 0, 1, 1], [], []>} : vector<8x256xbf16>, vector<256x512xbf16>, vector<8x512xf32> -> vector<8x512xf32>
    %44 = vector.extract_strided_slice %34 {offsets = [0, 2, 0], sizes = [8, 1, 256], strides = [1, 1, 1]} : vector<8x8x256xf32> to vector<8x1x256xf32>
    %45 = vector.shape_cast %44 : vector<8x1x256xf32> to vector<8x256xf32>
    %46 = vector.extract_strided_slice %34 {offsets = [0, 3, 0], sizes = [8, 1, 256], strides = [1, 1, 1]} : vector<8x8x256xf32> to vector<8x1x256xf32>
    %47 = vector.shape_cast %46 : vector<8x1x256xf32> to vector<8x256xf32>
    %48 = arith.maximumf %45, %47 : vector<8x256xf32>
    %49 = arith.truncf %48 : vector<8x256xf32> to vector<8x256xbf16>
    %c1_32 = arith.constant 1 : index
    %c0_33 = arith.constant 0 : index
    %c0_34 = arith.constant 0 : index
    %50 = vector.load %arg6[%c1_32, %c0_33, %c0_34] : memref<4x256x512xbf16, #tpu.memory_space<vmem>>, vector<1x256x512xbf16>
    %51 = vector.shape_cast %50 : vector<1x256x512xbf16> to vector<256x512xbf16>
    %cst_35 = arith.constant dense<0.000000e+00> : vector<8x512xf32>
    %52 = tpu.matmul %49, %51, %cst_35 {dimension_numbers = #tpu.dot_dimension_numbers<[1], [0], [0], [1], [0, 0, 1, 1], [], []>} : vector<8x256xbf16>, vector<256x512xbf16>, vector<8x512xf32> -> vector<8x512xf32>
    %53 = arith.addf %43, %52 : vector<8x512xf32>
    %54 = vector.extract_strided_slice %34 {offsets = [0, 4, 0], sizes = [8, 1, 256], strides = [1, 1, 1]} : vector<8x8x256xf32> to vector<8x1x256xf32>
    %55 = vector.shape_cast %54 : vector<8x1x256xf32> to vector<8x256xf32>
    %56 = vector.extract_strided_slice %34 {offsets = [0, 5, 0], sizes = [8, 1, 256], strides = [1, 1, 1]} : vector<8x8x256xf32> to vector<8x1x256xf32>
    %57 = vector.shape_cast %56 : vector<8x1x256xf32> to vector<8x256xf32>
    %58 = arith.maximumf %55, %57 : vector<8x256xf32>
    %59 = arith.truncf %58 : vector<8x256xf32> to vector<8x256xbf16>
    %c2_36 = arith.constant 2 : index
    %c0_37 = arith.constant 0 : index
    %c0_38 = arith.constant 0 : index
    %60 = vector.load %arg6[%c2_36, %c0_37, %c0_38] : memref<4x256x512xbf16, #tpu.memory_space<vmem>>, vector<1x256x512xbf16>
    %61 = vector.shape_cast %60 : vector<1x256x512xbf16> to vector<256x512xbf16>
    %cst_39 = arith.constant dense<0.000000e+00> : vector<8x512xf32>
    %62 = tpu.matmul %59, %61, %cst_39 {dimension_numbers = #tpu.dot_dimension_numbers<[1], [0], [0], [1], [0, 0, 1, 1], [], []>} : vector<8x256xbf16>, vector<256x512xbf16>, vector<8x512xf32> -> vector<8x512xf32>
    %63 = arith.addf %53, %62 : vector<8x512xf32>
    %64 = vector.extract_strided_slice %34 {offsets = [0, 6, 0], sizes = [8, 1, 256], strides = [1, 1, 1]} : vector<8x8x256xf32> to vector<8x1x256xf32>
    %65 = vector.shape_cast %64 : vector<8x1x256xf32> to vector<8x256xf32>
    %66 = vector.extract_strided_slice %34 {offsets = [0, 7, 0], sizes = [8, 1, 256], strides = [1, 1, 1]} : vector<8x8x256xf32> to vector<8x1x256xf32>
    %67 = vector.shape_cast %66 : vector<8x1x256xf32> to vector<8x256xf32>
    %68 = arith.maximumf %65, %67 : vector<8x256xf32>
    %69 = arith.truncf %68 : vector<8x256xf32> to vector<8x256xbf16>
    %c3_40 = arith.constant 3 : index
    %c0_41 = arith.constant 0 : index
    %c0_42 = arith.constant 0 : index
    %70 = vector.load %arg6[%c3_40, %c0_41, %c0_42] : memref<4x256x512xbf16, #tpu.memory_space<vmem>>, vector<1x256x512xbf16>
    %71 = vector.shape_cast %70 : vector<1x256x512xbf16> to vector<256x512xbf16>
    %cst_43 = arith.constant dense<0.000000e+00> : vector<8x512xf32>
    %72 = tpu.matmul %69, %71, %cst_43 {dimension_numbers = #tpu.dot_dimension_numbers<[1], [0], [0], [1], [0, 0, 1, 1], [], []>} : vector<8x256xbf16>, vector<256x512xbf16>, vector<8x512xf32> -> vector<8x512xf32>
    %73 = arith.addf %63, %72 : vector<8x512xf32>
    %c0_44 = arith.constant 0 : index
    %c0_45 = arith.constant 0 : index
    %74 = vector.load %arg7[%c0_44, %c0_45] : memref<1x512xf32, #tpu.memory_space<vmem>>, vector<1x512xf32>
    %75 = vector.broadcast %74 : vector<1x512xf32> to vector<8x512xf32>
    %76 = arith.addf %73, %75 : vector<8x512xf32>
    %cst_46 = arith.constant 0.000000e+00 : f32
    %77 = vector.broadcast %cst_46 : f32 to vector<8x512xf32>
    %78 = arith.maximumf %76, %77 : vector<8x512xf32>
    %79 = arith.truncf %78 : vector<8x512xf32> to vector<8x512xbf16>
    %c0_47 = arith.constant 0 : index
    %c0_48 = arith.constant 0 : index
    %80 = vector.load %arg8[%c0_47, %c0_48] : memref<512x128xbf16, #tpu.memory_space<vmem>>, vector<512x128xbf16>
    %cst_49 = arith.constant dense<0.000000e+00> : vector<8x128xf32>
    %81 = tpu.matmul %79, %80, %cst_49 {dimension_numbers = #tpu.dot_dimension_numbers<[1], [0], [0], [1], [0, 0, 1, 1], [], []>} : vector<8x512xbf16>, vector<512x128xbf16>, vector<8x128xf32> -> vector<8x128xf32>
    %c0_50 = arith.constant 0 : index
    %c0_51 = arith.constant 0 : index
    %82 = vector.load %arg9[%c0_50, %c0_51] : memref<1x128xf32, #tpu.memory_space<vmem>>, vector<1x128xf32>
    %83 = vector.broadcast %82 : vector<1x128xf32> to vector<8x128xf32>
    %84 = arith.addf %81, %83 : vector<8x128xf32>
    %cst_52 = arith.constant dense<0xFF800000> : vector<8xf32>
    %85 = vector.multi_reduction <maximumf>, %84, %cst_52 [1] : vector<8x128xf32> to vector<8xf32>
    %86 = vector.shape_cast %85 : vector<8xf32> to vector<8x1xf32>
    %87 = vector.broadcast %86 : vector<8x1xf32> to vector<8x128xf32>
    %88 = arith.subf %84, %87 : vector<8x128xf32>
    %89 = math.exp %88 : vector<8x128xf32>
    %cst_53 = arith.constant dense<0.000000e+00> : vector<8xf32>
    %90 = vector.multi_reduction <add>, %89, %cst_53 [1] : vector<8x128xf32> to vector<8xf32>
    %91 = vector.shape_cast %90 : vector<8xf32> to vector<8x1xf32>
    %92 = math.log %91 : vector<8x1xf32>
    %93 = arith.addf %92, %86 : vector<8x1xf32>
    %94 = vector.broadcast %93 : vector<8x1xf32> to vector<8x128xf32>
    %95 = arith.subf %84, %94 : vector<8x128xf32>
    %c0_54 = arith.constant 0 : index
    %c0_55 = arith.constant 0 : index
    %96 = vector.load %arg10[%c0_54, %c0_55] : memref<8x128xf32, #tpu.memory_space<vmem>>, vector<8x128xf32>
    tpu.vector_store %arg10[%c0_54, %c0_55], %95 {strides = array<i32>} : memref<8x128xf32, #tpu.memory_space<vmem>>, vector<8x128xf32>,
    return
  }
  func.func @transform_0(%arg0: i32) -> (i32, i32, i32) {
    %c0_i32 = arith.constant 0 : i32
    %c0_i32_0 = arith.constant 0 : i32
    %c0_i32_1 = arith.constant 0 : i32
    return %arg0, %c0_i32, %c0_i32_0 : i32, i32, i32
  }
  func.func @transform_1(%arg0: i32) -> (i32, i32) {
    %c0_i32 = arith.constant 0 : i32
    %c0_i32_0 = arith.constant 0 : i32
    %c0_i32_1 = arith.constant 0 : i32
    return %c0_i32, %c0_i32_0 : i32, i32
  }
  func.func @transform_2(%arg0: i32) -> (i32, i32) {
    %c0_i32 = arith.constant 0 : i32
    %c0_i32_0 = arith.constant 0 : i32
    %c0_i32_1 = arith.constant 0 : i32
    return %c0_i32, %c0_i32_0 : i32, i32
  }
  func.func @transform_3(%arg0: i32) -> (i32, i32) {
    %c0_i32 = arith.constant 0 : i32
    %c0_i32_0 = arith.constant 0 : i32
    %c0_i32_1 = arith.constant 0 : i32
    return %c0_i32, %c0_i32_0 : i32, i32
  }
  func.func @transform_4(%arg0: i32) -> (i32, i32) {
    %c0_i32 = arith.constant 0 : i32
    %c0_i32_0 = arith.constant 0 : i32
    %c0_i32_1 = arith.constant 0 : i32
    return %c0_i32, %c0_i32_0 : i32, i32
  }
  func.func @transform_5(%arg0: i32) -> (i32, i32, i32) {
    %c0_i32 = arith.constant 0 : i32
    %c0_i32_0 = arith.constant 0 : i32
    %c0_i32_1 = arith.constant 0 : i32
    %c0_i32_2 = arith.constant 0 : i32
    return %c0_i32, %c0_i32_0, %c0_i32_1 : i32, i32, i32
  }
  func.func @transform_6(%arg0: i32) -> (i32, i32) {
    %c0_i32 = arith.constant 0 : i32
    %c0_i32_0 = arith.constant 0 : i32
    %c0_i32_1 = arith.constant 0 : i32
    return %c0_i32, %c0_i32_0 : i32, i32
  }
  func.func @transform_7(%arg0: i32) -> (i32, i32) {
    %c0_i32 = arith.constant 0 : i32
    %c0_i32_0 = arith.constant 0 : i32
    %c0_i32_1 = arith.constant 0 : i32
    return %c0_i32, %c0_i32_0 : i32, i32
  }
  func.func @transform_8(%arg0: i32) -> (i32, i32) {
    %c0_i32 = arith.constant 0 : i32
    %c0_i32_0 = arith.constant 0 : i32
    %c0_i32_1 = arith.constant 0 : i32
    return %c0_i32, %c0_i32_0 : i32, i32
  }
  func.func @transform_9(%arg0: i32) -> (i32, i32) {
    %c0_i32 = arith.constant 0 : i32
    %c0_i32_0 = arith.constant 0 : i32
    return %arg0, %c0_i32 : i32, i32
  }
}

</mosaic_0001>

<bundles_post_ra>
// kernel: _net_forward_impl.1
= control target key start
LH: loop header
LB: loop body
LE: loop exit
PB: predicated region body
PF: predicated region fallthrough
CT: control target
= control target key end

     0   :  { %14 = vsyncpa [#allocation4], 0  ;;  %s15017_s0 = inlined_call_operand.vmem [shape: bf16[8,24,140], index: 0, kind: input, shape index: {}]   ;;  %s15018_s1 = inlined_call_operand.hbm [shape: bf16[140,512], index: 1, kind: input, shape index: {}]   ;;  %s15019_s2 = inlined_call_operand.hbm [shape: f32[1,512], index: 2, kind: input, shape index: {}]   ;;  %s15020_s3 = inlined_call_operand.hbm [shape: bf16[1280,512], index: 3, kind: input, shape index: {}]   ;;  %s15021_s4 = inlined_call_operand.hbm [shape: f32[1,512], index: 4, kind: input, shape index: {}]   ;;  %s15022_s5 = inlined_call_operand.hbm [shape: bf16[4,256,512], index: 5, kind: input, shape index: {}]   ;;  %s15023_s6 = inlined_call_operand.hbm [shape: f32[1,512], index: 6, kind: input, shape index: {}]   ;;  %s15024_s7 = inlined_call_operand.hbm [shape: bf16[512,128], index: 7, kind: input, shape index: {}]   ;;  %s15025_s8 = inlined_call_operand.hbm [shape: f32[1,128], index: 8, kind: input, shape index: {}]   ;;  %s15026_s9 = inlined_call_operand.vmem [shape: f32[8,128], index: 9, kind: output, shape index: {}]  }
   0x1   :  { %15 = vsyncpa [#allocation6], 0 }
   0x2   :  { %16 = vsyncpa [#allocation9], 0 }
   0x3   :  { %17 = vsyncpa [#allocation12], 0 }
   0x4   :  { %18 = vsyncpa [#allocation15], 0  ;;  %s12992_s30 = smov [#allocation5]   ;;  %s12993_s11 = smov [#allocation8]  }
   0x5   :  { %s39_s10 = sshll.u32 %s12992_s30, 4  ;;  %s61_s12 = sshll.u32 %s12993_s11, 4  ;;  %s40_s10 = int_to_ptr.vmem [resolvable:$true] %s39_s10  ;;  %s62_s12 = int_to_ptr.vmem [resolvable:$true] %s61_s12 }
   0x6   :  { %s12830_s13 = scalar_lea.vmem %s40_s10, 64  ;;  %p12835_p1 = scmp.lt.s32.totalorder %s40_s10, %s40_s10 }
   0x7   :  { %p12831_p0 = scmp.ne.s32.totalorder %s40_s10, %s12830_s13  ;;  %p12836_p2 = scmp.lt.s32.totalorder %s12830_s13, %s12830_s13 }
   0x9   :  { %p12837_p3 = por %p12836_p2, %p12835_p1 }
   0xb   :  { %p12838_p4 = pnand %p12837_p3, %p12831_p0 }
   0xd   :  { %12841 = shalt.err (!%p12838_p4)
}
   0xe   :  { %42 = dma.hbm_to_vmem [thread:$0]  %s15019_s2, 64, %s40_s10, [#allocation6]  }
   0xf   :  { %s12850_s16 = scalar_lea.vmem %s62_s12, 64  ;;  %p12855_p6 = scmp.lt.s32.totalorder %s62_s12, %s62_s12 }
  0x10   :  { %p12851_p5 = scmp.ne.s32.totalorder %s62_s12, %s12850_s16  ;;  %p12856_p7 = scmp.lt.s32.totalorder %s12850_s16, %s12850_s16 }
  0x12   :  { %p12857_p8 = por %p12856_p7, %p12855_p6 }
  0x14   :  { %p12858_p9 = pnand %p12857_p8, %p12851_p5 }
  0x16   :  { %12861 = shalt.err (!%p12858_p9)
}
  0x17   :  { %64 = dma.hbm_to_vmem [thread:$0]  %s15021_s4, 64, %s62_s12, [#allocation9]  }
  0x18   :  { %s12994_s19 = smov [#allocation11]   ;;  %s12995_s21 = smov [#allocation3]  }
  0x19   :  { %s83_s20 = sshll.u32 %s12994_s19, 4  ;;  %s26_s22 = sshll.u32 %s12995_s21, 4  ;;  %s84_s20 = int_to_ptr.vmem [resolvable:$true] %s83_s20  ;;  %s27_s22 = int_to_ptr.vmem [resolvable:$true] %s26_s22 }
  0x1a   :  { %s12870_s23 = scalar_lea.vmem %s84_s20, 64  ;;  %p12875_p11 = scmp.lt.s32.totalorder %s84_s20, %s84_s20 }
  0x1b   :  { %p12871_p10 = scmp.ne.s32.totalorder %s84_s20, %s12870_s23  ;;  %p12876_p12 = scmp.lt.s32.totalorder %s12870_s23, %s12870_s23 }
  0x1d   :  { %p12877_p13 = por %p12876_p12, %p12875_p11 }
  0x1f   :  { %p12878_p0 = pnand %p12877_p13, %p12871_p10 }
  0x21   :  { %12881 = shalt.err (!%p12878_p0)
}
  0x22   :  { %86 = dma.hbm_to_vmem [thread:$0]  %s15023_s6, 64, %s84_s20, [#allocation12]  }
  0x23   :  { %s12890_s25 = scalar_lea.vmem %s27_s22, 4608  ;;  %p12895_p2 = scmp.lt.s32.totalorder %s27_s22, %s27_s22 }
  0x24   :  { %p12891_p1 = scmp.ne.s32.totalorder %s27_s22, %s12890_s25  ;;  %p12896_p3 = scmp.lt.s32.totalorder %s12890_s25, %s12890_s25 }
  0x26   :  { %p12897_p4 = por %p12896_p3, %p12895_p2 }
  0x28   :  { %p12898_p5 = pnand %p12897_p4, %p12891_p1 }
  0x2a   :  { %12901 = shalt.err (!%p12898_p5)
}
  0x2b   :  { %s12996_s4 = smov 256   ;;  %s12997_s26 = smov 16  }
  0x2c   :  { %32 = dma.hbm_to_vmem [thread:$0]  %s15018_s1, 4608, %s27_s22, [#allocation4], %s12996_s4, %s12996_s4, %s12997_s26  }
  0x2d   :  { %s12998_s29 = smov [#allocation7]   ;;  %s12999_s10 = smov [#allocation10]  }
  0x2e   :  { %s48_s30 = sshll.u32 %s12998_s29, 4  ;;  %s70_s11 = sshll.u32 %s12999_s10, 4  ;;  %s49_s30 = int_to_ptr.vmem [resolvable:$true] %s48_s30  ;;  %s71_s11 = int_to_ptr.vmem [resolvable:$true] %s70_s11 }
  0x2f   :  { %s12910_s6 = scalar_lea.vmem %s49_s30, 40960  ;;  %p12915_p7 = scmp.lt.s32.totalorder %s49_s30, %s49_s30 }
  0x30   :  { %p12911_p6 = scmp.ne.s32.totalorder %s49_s30, %s12910_s6  ;;  %p12916_p8 = scmp.lt.s32.totalorder %s12910_s6, %s12910_s6 }
  0x32   :  { %p12917_p9 = por %p12916_p8, %p12915_p7 }
  0x34   :  { %p12918_p10 = pnand %p12917_p9, %p12911_p6 }
  0x36   :  { %12921 = shalt.err (!%p12918_p10)
}
  0x37   :  { %54 = dma.hbm_to_vmem [thread:$0]  %s15020_s3, 40960, %s49_s30, [#allocation6], %s12996_s4, %s12996_s4, %s12997_s26  }
  0x38   :  { %s12930_s14 = scalar_lea.vmem %s71_s11, 32768  ;;  %p12935_p12 = scmp.lt.s32.totalorder %s71_s11, %s71_s11 }
  0x39   :  { %p12931_p11 = scmp.ne.s32.totalorder %s71_s11, %s12930_s14  ;;  %p12936_p13 = scmp.lt.s32.totalorder %s12930_s14, %s12930_s14 }
  0x3b   :  { %p12937_p0 = por %p12936_p13, %p12935_p12 }
  0x3d   :  { %p12938_p1 = pnand %p12937_p0, %p12931_p11 }
  0x3f   :  { %12941 = shalt.err (!%p12938_p1)
}
  0x40   :  { %76 = dma.hbm_to_vmem [thread:$0]  %s15022_s5, 32768, %s71_s11, [#allocation9], %s12996_s4, %s12996_s4, %s12997_s26  }
  0x41   :  { %s13000_s16 = smov [#allocation13]  }
  0x42   :  { %s92_s17 = sshll.u32 %s13000_s16, 4  ;;  %s93_s17 = int_to_ptr.vmem [resolvable:$true] %s92_s17 }
  0x43   :  { %s12950_s18 = scalar_lea.vmem %s93_s17, 4096  ;;  %p12955_p3 = scmp.lt.s32.totalorder %s93_s17, %s93_s17 }
  0x44   :  { %p12951_p2 = scmp.ne.s32.totalorder %s93_s17, %s12950_s18  ;;  %p12956_p4 = scmp.lt.s32.totalorder %s12950_s18, %s12950_s18 }
  0x46   :  { %p12957_p5 = por %p12956_p4, %p12955_p3 }
  0x48   :  { %p12958_p6 = pnand %p12957_p5, %p12951_p2 }
  0x4a   :  { %12961 = shalt.err (!%p12958_p6)
}
  0x4b   :  { %s13001_s3 = smov 64   ;;  %s13002_s19 = smov 4  }
  0x4c   :  { %98 = dma.hbm_to_vmem [thread:$0]  %s15024_s7, 4096, %s93_s17, [#allocation12], %s13001_s3, %s13001_s3, %s13002_s19  }
  0x4d   :  { %s13003_s22 = smov [#allocation14]  }
  0x4e   :  { %s105_s23 = sshll.u32 %s13003_s22, 4  ;;  %s106_s23 = int_to_ptr.vmem [resolvable:$true] %s105_s23 }
  0x4f   :  { %s12970_s5 = scalar_lea.vmem %s106_s23, 16  ;;  %s12974_s2 = scalar_lea.vmem %s106_s23, 32 }
  0x50   :  { %p12971_p7 = scmp.ne.s32.totalorder %s106_s23, %s12970_s5  ;;  %p12975_p8 = scmp.lt.s32.totalorder %s106_s23, %s106_s23 }
  0x51   :  { %p12976_p9 = scmp.lt.s32.totalorder %s12974_s2, %s12970_s5 }
  0x53   :  { %p12977_p10 = por %p12976_p9, %p12975_p8 }
  0x55   :  { %p12978_p11 = pnand %p12977_p10, %p12971_p7 }
  0x57   :  { %12981 = shalt.err (!%p12978_p11)
}
  0x58   :  { %108 = dma.hbm_to_vmem [thread:$0]  %s15025_s8, 16, %s106_s23, [#allocation15]  }
  0x59   :  { %12982 = dma.done.wait [#allocation4], 4608  }
  0x5a   :  { %12983 = vsyncadd [#allocation4], 4294962688 }
  0x5b   :  { %12984 = dma.done.wait [#allocation6], 41024  }
  0x5c   :  { %12985 = vsyncadd [#allocation6], 4294926272 }
  0x5d   :  { %12986 = dma.done.wait [#allocation9], 32832  }
  0x5e   :  { %12987 = vsyncadd [#allocation9], 4294934464 }
  0x5f   :  { %12988 = dma.done.wait [#allocation12], 4160  }
  0x60   :  { %12989 = vsyncadd [#allocation12], 4294963136 }
  0x61   :  { %12990 = dma.done.wait [#allocation15], 16  }
  0x62   :  { %12991 = vsyncadd [#allocation15], 4294967280  ;;  %v11785_v0 = vld [vmem:[#allocation3 + $0xe4] ss:$16 sps:$4 sm:$0xff]   ;;  %v11787_v1 = vld [vmem:[#allocation3 + $0xec] ss:$16 sps:$4 sm:$0xff]  }
  0x63   :  { %550 = vmatprep.subr.bf16.mxu0 %v11785_v0  ;;  %v11789_v2 = vld [vmem:[#allocation3 + $0xe0] ss:$16 sps:$4 sm:$0xff]   ;;  %v11790_v3 = vld [vmem:[#allocation3 + $0xe8] ss:$16 sps:$4 sm:$0xff]   ;;  %703 = vmatprep.subr.bf16.mxu1 %v11787_v1  ;;  %v11791_v4 = vld [vmem:[#allocation3 + $0xc4] ss:$16 sps:$4 sm:$0xff]  }
  0x64   :  { %551 = vmatpush1.bf16.msra.mxu0 %v11789_v2  ;;  %704 = vmatpush1.bf16.msra.mxu1 %v11790_v3  ;;  %v11793_v5 = vld [vmem:[#allocation3 + $0xcc] ss:$16 sps:$4 sm:$0xff]   ;;  %v11795_v6 = vld [vmem:[#allocation3 + $0xc0] ss:$16 sps:$4 sm:$0xff]   ;;  %v11796_v7 = vld [vmem:[#allocation3 + $0xc8] ss:$16 sps:$4 sm:$0xff]  }
  0x65   :  { %552 = vmatprep.subr.bf16.mxu0 %v11791_v4  ;;  %705 = vmatprep.subr.bf16.mxu1 %v11793_v5  ;;  %v11797_v8 = vld [vmem:[#allocation3 + $0xa4] ss:$16 sps:$4 sm:$0xff]   ;;  %v11799_v9 = vld [vmem:[#allocation3 + $0xac] ss:$16 sps:$4 sm:$0xff]   ;;  %v11801_v10 = vld [vmem:[#allocation3 + $0xa0] ss:$16 sps:$4 sm:$0xff]  }
  0x66   :  { %v11802_v11 = vld [vmem:[#allocation3 + $0xa8] ss:$16 sps:$4 sm:$0xff]   ;;  %v11803_v12 = vld [vmem:[#allocation3 + $0x84] ss:$16 sps:$4 sm:$0xff]   ;;  %v11805_v13 = vld [vmem:[#allocation3 + $0x8c] ss:$16 sps:$4 sm:$0xff]  }
  0x67   :  { %v11807_v14 = vld [vmem:[#allocation3 + $0x80] ss:$16 sps:$4 sm:$0xff]   ;;  %v11808_v15 = vld [vmem:[#allocation3 + $0x88] ss:$16 sps:$4 sm:$0xff]   ;;  %v11809_v16 = vld [vmem:[#allocation3 + $0x64] ss:$16 sps:$4 sm:$0xff]  }
  0x68   :  { %553 = vmatpush1.bf16.msra.mxu0 %v11795_v6  ;;  %706 = vmatpush1.bf16.msra.mxu1 %v11796_v7  ;;  %v11811_v17 = vld [vmem:[#allocation3 + $0x6c] ss:$16 sps:$4 sm:$0xff]   ;;  %v11813_v18 = vld [vmem:[#allocation3 + $0x60] ss:$16 sps:$4 sm:$0xff]   ;;  %v11814_v19 = vld [vmem:[#allocation3 + $0x68] ss:$16 sps:$4 sm:$0xff]  }
  0x69   :  { %554 = vmatprep.subr.bf16.mxu0 %v11797_v8  ;;  %707 = vmatprep.subr.bf16.mxu1 %v11799_v9  ;;  %v11815_v20 = vld [vmem:[#allocation3 + $0x44] ss:$16 sps:$4 sm:$0xff]   ;;  %v11817_v21 = vld [vmem:[#allocation3 + $0x4c] ss:$16 sps:$4 sm:$0xff]   ;;  %v11819_v22 = vld [vmem:[#allocation3 + $0x40] ss:$16 sps:$4 sm:$0xff]  }
  0x6a   :  { %v11820_v23 = vld [vmem:[#allocation3 + $0x48] ss:$16 sps:$4 sm:$0xff]   ;;  %v11821_v24 = vld [vmem:[#allocation3 + $0x24] ss:$16 sps:$4 sm:$0xff]   ;;  %v11823_v25 = vld [vmem:[#allocation3 + $0x2c] ss:$16 sps:$4 sm:$0xff]  }
  0x6b   :  { %v11825_v26 = vld [vmem:[#allocation3 + $0x20] ss:$16 sps:$4 sm:$0xff]   ;;  %v11826_v27 = vld [vmem:[#allocation3 + $0x28] ss:$16 sps:$4 sm:$0xff]   ;;  %v11827_v28 = vld [vmem:[#allocation3 + $0x4] ss:$16 sps:$4 sm:$0xff]  }
  0x6c   :  { %555 = vmatpush1.bf16.msra.mxu0 %v11801_v10  ;;  %708 = vmatpush1.bf16.msra.mxu1 %v11802_v11  ;;  %vm500_vm0 = vcmask 97280   ;;  %v11829_v29 = vld [vmem:[#allocation3 + $0xc] ss:$16 sps:$4 sm:$0xff]   ;;  %v11831_v31 = vld [vmem:[#allocation3] ss:$16 sps:$4 sm:$0xff]   ;;  %vm537_vm1 = vcmask 1045504  }
  0x6d   :  { %556 = vmatprep.subr.bf16.mxu0 %v11803_v12  ;;  %709 = vmatprep.subr.bf16.mxu1 %v11805_v13  ;;  %v11841_v30 = vld [vmem:[%s15017_s0 + $0x4] ss:$8 sps:$4 sm:$0xff]   ;;  %v11832_v32 = vld [vmem:[#allocation3 + $0x8] ss:$16 sps:$4 sm:$0xff]   ;;  %v11842_v40 = vld [vmem:[%s15017_s0 + $0x14] ss:$8 sps:$4 sm:$0xff]  }
  0x6e   :  { %v11833_v33 = vld [vmem:[#allocation3 + $0x104] ss:$16 sps:$4 sm:$0x3f]   ;;  %v11835_v34 = vld [vmem:[#allocation3 + $0x10c] ss:$16 sps:$4 sm:$0x3f]   ;;  %10798 = vmatprep.mubr.msk.bf16.mxu0 %vm500_vm0, %v11841_v30  ;;  %10811 = vmatprep.mubr.msk.bf16.mxu1 %vm500_vm0, %v11841_v30 }
  0x6f   :  { %v11837_v35 = vld [vmem:[#allocation3 + $0x100] ss:$16 sps:$4 sm:$0x3f]   ;;  %v11838_v36 = vld [vmem:[#allocation3 + $0x108] ss:$16 sps:$4 sm:$0x3f]  }
  0x70   :  { %557 = vmatpush1.bf16.msra.mxu0 %v11807_v14  ;;  %710 = vmatpush1.bf16.msra.mxu1 %v11808_v15  ;;  %v539_v37 = vsel %vm537_vm1, %v11837_v35, 0  ;;  %v545_v38 = vsel %vm537_vm1, %v11838_v36, 0  ;;  %v11839_v39 = vld [vmem:[%s15017_s0] ss:$8 sps:$4 sm:$0xff]   ;;  %v11844_v41 = vld [vmem:[%s15017_s0 + $0x10] ss:$8 sps:$4 sm:$0xff]  }
  0x71   :  { %558 = vmatprep.subr.bf16.mxu0 %v11809_v16  ;;  %711 = vmatprep.subr.bf16.mxu1 %v11811_v17  ;;  %v11875_v42 = vld [vmem:[#allocation7 + $0xe0] ss:$16 sps:$4 sm:$0xff]   ;;  %v11877_v43 = vld [vmem:[#allocation7 + $0xe4] ss:$16 sps:$4 sm:$0xff]   ;;  %v196_v16 = vlaneseq  ;;  %vm2440_vm2 = vcmask 1041408   ;;  %vm4649_vm3 = vcmask 1041409  }
  0x72   :  { %v11878_v44 = vld [vmem:[#allocation7 + $0x2e0] ss:$16 sps:$4 sm:$0xff]   ;;  %v11880_v45 = vld [vmem:[#allocation7 + $0x2e4] ss:$16 sps:$4 sm:$0xff]   ;;  %vm4651_vm4 = vcmask 1042434   ;;  %vm4653_vm5 = vcmask 1043459  }
  0x73   :  { %v11845_v46 = vld [vmem:[%s15017_s0 + $0x24] ss:$8 sps:$4 sm:$0xff]   ;;  %v11847_v47 = vld [vmem:[%s15017_s0 + $0x20] ss:$8 sps:$4 sm:$0xff]   ;;  %v11848_v48 = vld [vmem:[%s15017_s0 + $0x34] ss:$8 sps:$4 sm:$0xff]  }
  0x74   :  { %559 = vmatpush1.bf16.msra.mxu0 %v11813_v18  ;;  %712 = vmatpush1.bf16.msra.mxu1 %v11814_v19  ;;  %v11850_v49 = vld [vmem:[%s15017_s0 + $0x30] ss:$8 sps:$4 sm:$0xff]   ;;  %v11851_v50 = vld [vmem:[%s15017_s0 + $0x44] ss:$8 sps:$4 sm:$0xff]   ;;  %v11853_v51 = vld [vmem:[%s15017_s0 + $0x40] ss:$8 sps:$4 sm:$0xff]  }
  0x75   :  { %560 = vmatprep.subr.bf16.mxu0 %v11815_v20  ;;  %713 = vmatprep.subr.bf16.mxu1 %v11817_v21  ;;  %v11854_v52 = vld [vmem:[%s15017_s0 + $0x54] ss:$8 sps:$4 sm:$0xff]   ;;  %v11856_v53 = vld [vmem:[%s15017_s0 + $0x50] ss:$8 sps:$4 sm:$0xff]   ;;  %v11857_v54 = vld [vmem:[%s15017_s0 + $0x64] ss:$8 sps:$4 sm:$0xff]  }
  0x76   :  { %v11859_v55 = vld [vmem:[%s15017_s0 + $0x60] ss:$8 sps:$4 sm:$0xff]   ;;  %v11860_v56 = vld [vmem:[%s15017_s0 + $0x74] ss:$8 sps:$4 sm:$0xff]   ;;  %v11862_v57 = vld [vmem:[%s15017_s0 + $0x70] ss:$8 sps:$4 sm:$0xff]  }
  0x77   :  { %v11863_v58 = vld [vmem:[%s15017_s0 + $0x84] ss:$8 sps:$4 sm:$0xff]   ;;  %v11865_v59 = vld [vmem:[%s15017_s0 + $0x80] ss:$8 sps:$4 sm:$0xff]   ;;  %v11866_v60 = vld [vmem:[%s15017_s0 + $0x94] ss:$8 sps:$4 sm:$0xff]  }
  0x78   :  { %561 = vmatpush1.bf16.msra.mxu0 %v11819_v22  ;;  %714 = vmatpush1.bf16.msra.mxu1 %v11820_v23  ;;  %v11868_v61 = vld [vmem:[%s15017_s0 + $0x90] ss:$8 sps:$4 sm:$0xff]   ;;  %v11869_v62 = vld [vmem:[%s15017_s0 + $0xa4] ss:$8 sps:$4 sm:$0xff]   ;;  %v11871_v63 = vld [vmem:[%s15017_s0 + $0xa0] ss:$8 sps:$4 sm:$0xff]  }
  0x79   :  { %562 = vmatprep.subr.bf16.mxu0 %v11821_v24  ;;  %715 = vmatprep.subr.bf16.mxu1 %v11823_v25  ;;  %v11883_v0 = vld [vmem:[#allocation7 + $0xc4] ss:$16 sps:$4 sm:$0xff]   ;;  %v11872_v1 = vld [vmem:[%s15017_s0 + $0xb4] ss:$8 sps:$4 sm:$0xff]   ;;  %v197_v17 = vshrl.u32 %v196_v16, 7  ;;  %vm4655_vm6 = vcmask 1044484  }
  0x7a   :  { %v11881_v2 = vld [vmem:[#allocation7 + $0xc0] ss:$16 sps:$4 sm:$0xff]   ;;  %v11874_v3 = vld [vmem:[%s15017_s0 + $0xb0] ss:$8 sps:$4 sm:$0xff]   ;;  %v194_v18 = vld [vmem:[#allocation5] sm:$0xf] }
  0x7b   :  { %v11886_v4 = vld [vmem:[#allocation7 + $0x2c4] ss:$16 sps:$4 sm:$0xff]   ;;  %v11884_v5 = vld [vmem:[#allocation7 + $0x2c0] ss:$16 sps:$4 sm:$0xff]   ;;  %v13175_v19 = vsub.s32 0, %v197_v17  ;;  %v13177_v20 = vsub.s32 2, %v197_v17 }
  0x7c   :  { %563 = vmatpush1.bf16.msra.mxu0 %v11825_v26  ;;  %716 = vmatpush1.bf16.msra.mxu1 %v11826_v27  ;;  %v11889_v6 = vld [vmem:[#allocation7 + $0xa4] ss:$16 sps:$4 sm:$0xff]   ;;  %v11887_v7 = vld [vmem:[#allocation7 + $0xa0] ss:$16 sps:$4 sm:$0xff]   ;;  %v13179_v21 = vsub.s32 1, %v197_v17  ;;  %v13181_v22 = vsub.s32 3, %v197_v17 }
  0x7d   :  { %564 = vmatprep.subr.bf16.mxu0 %v11827_v28  ;;  %717 = vmatprep.subr.bf16.mxu1 %v11829_v29  ;;  %v11892_v8 = vld [vmem:[#allocation7 + $0x2a4] ss:$16 sps:$4 sm:$0xff]   ;;  %v11890_v9 = vld [vmem:[#allocation7 + $0x2a0] ss:$16 sps:$4 sm:$0xff]   ;;  %15045 = vst [vmem:[#allocation21_spill] sm:$0xff] %v13175_v19  ;;  %15046 = vst [vmem:[#allocation22_spill] sm:$0xff] %v13177_v20  ;;  %v13184_v23 = vrot.slane %v194_v18, %v13175_v19  ;;  %v13187_v24 = vrot.slane %v194_v18, %v13177_v20 }
  0x7e   :  { %v11895_v10 = vld [vmem:[#allocation7 + $0x84] ss:$16 sps:$4 sm:$0xff]   ;;  %v11893_v11 = vld [vmem:[#allocation7 + $0x80] ss:$16 sps:$4 sm:$0xff]   ;;  %15047 = vst [vmem:[#allocation23_spill] sm:$0xff] %v13179_v21  ;;  %15048 = vst [vmem:[#allocation24_spill] sm:$0xff] %v13181_v22  ;;  %v13190_v27 = vrot.slane %v194_v18, %v13179_v21  ;;  %v13193_v28 = vrot.slane %v194_v18, %v13181_v22 }
  0x7f   :  { %v11898_v12 = vld [vmem:[#allocation7 + $0x284] ss:$16 sps:$4 sm:$0xff]   ;;  %v11896_v13 = vld [vmem:[#allocation7 + $0x280] ss:$16 sps:$4 sm:$0xff]   ;;  %v13004_v25 = vmov 1983009808  }
  0x80   :  { %565 = vmatpush1.bf16.msra.mxu0 %v11831_v31  ;;  %718 = vmatpush1.bf16.msra.mxu1 %v11832_v32  ;;  %v11901_v14 = vld [vmem:[#allocation7 + $0x64] ss:$16 sps:$4 sm:$0xff]   ;;  %v11899_v15 = vld [vmem:[#allocation7 + $0x60] ss:$16 sps:$4 sm:$0xff]   ;;  %v1051_v26 = vunpack.c.l.s4 %v13004_v25  ;;  %vm4657_vm7 = vcmask 1045509   ;;  %vm4659_vm8 = vcmask 1046534  }
  0x81   :  { %10797 = vmatprep.subr.msk.bf16.mxu0 %vm537_vm1, %v11833_v33  ;;  %10810 = vmatprep.subr.msk.bf16.mxu1 %vm537_vm1, %v11835_v34  ;;  %v11907_v33 = vld [vmem:[#allocation7 + $0x44] ss:$16 sps:$4 sm:$0xff]   ;;  %vm4661_vm9 = vcmask 1047559  }
  0x82   :  { %v1052_v36 = vunpack.c.0.s8 %v1051_v26 }
  0x84   :  { %581 = vmatpush2.bf16.msra.mxu0 %v539_v37  ;;  %734 = vmatpush2.bf16.msra.mxu1 %v545_v38  ;;  %v11905_v37 = vld [vmem:[#allocation7 + $0x40] ss:$16 sps:$4 sm:$0xff]  }
  0x85   :  { %7446 = vmatprep.subr.bf16.mxu0 %v11877_v43  ;;  %7519 = vmatprep.subr.bf16.mxu1 %v11880_v45 }
  0x87   :  { %583 = vmatmul.mubr.bf16.vlgmr.msra.gmra.mxu0 %v11839_v39  ;;  %736 = vmatmul.mubr.bf16.vlgmr.msra.gmra.mxu1 %v11839_v39 }
  0x88   :  { %10799 = vmatprep.mubr.msk.bf16.mxu0 %vm500_vm0, %v11842_v40  ;;  %10812 = vmatprep.mubr.msk.bf16.mxu1 %vm500_vm0, %v11842_v40 }
  0x89   :  { %7447 = vmatpush1.bf16.msra.mxu0 %v11875_v42  ;;  %7520 = vmatpush1.bf16.msra.mxu1 %v11878_v44 }
  0x8a   :  { %7448 = vmatprep.subr.bf16.mxu0 %v11883_v0  ;;  %7521 = vmatprep.subr.bf16.mxu1 %v11886_v4  ;;  %v11902_v4 = vld [vmem:[#allocation7 + $0x260] ss:$16 sps:$4 sm:$0xff]  }
  0x8d   :  { %7449 = vmatpush1.bf16.msra.mxu0 %v11881_v2  ;;  %7522 = vmatpush1.bf16.msra.mxu1 %v11884_v5 }
  0x8e   :  { %7450 = vmatprep.subr.bf16.mxu0 %v11889_v6  ;;  %7523 = vmatprep.subr.bf16.mxu1 %v11892_v8 }
  0x8f   :  { %593 = vmatmul.mubr.bf16.gmra.mxu0 %v11844_v41  ;;  %746 = vmatmul.mubr.bf16.gmra.mxu1 %v11844_v41 }
  0x90   :  { %10800 = vmatprep.mubr.msk.bf16.mxu0 %vm500_vm0, %v11845_v46  ;;  %10813 = vmatprep.mubr.msk.bf16.mxu1 %vm500_vm0, %v11845_v46 }
  0x91   :  { %7451 = vmatpush1.bf16.msra.mxu0 %v11887_v7  ;;  %7524 = vmatpush1.bf16.msra.mxu1 %v11890_v9 }
  0x92   :  { %7452 = vmatprep.subr.bf16.mxu0 %v11895_v10  ;;  %7525 = vmatprep.subr.bf16.mxu1 %v11898_v12 }
  0x95   :  { %7453 = vmatpush1.bf16.msra.mxu0 %v11893_v11  ;;  %7526 = vmatpush1.bf16.msra.mxu1 %v11896_v13 }
  0x96   :  { %7454 = vmatprep.subr.bf16.mxu0 %v11901_v14 }
  0x97   :  { %603 = vmatmul.mubr.bf16.gmra.mxu0 %v11847_v47  ;;  %756 = vmatmul.mubr.bf16.gmra.mxu1 %v11847_v47  ;;  %v13200_v47 = vsub.s32 %v1052_v36, %v197_v17 }
  0x98   :  { %10801 = vmatprep.mubr.msk.bf16.mxu0 %vm500_vm0, %v11848_v48  ;;  %10814 = vmatprep.mubr.msk.bf16.mxu1 %vm500_vm0, %v11848_v48 }
  0x99   :  { %7455 = vmatpush1.bf16.msra.mxu0 %v11899_v15 }
  0x9a   :  { %7456 = vmatprep.subr.bf16.mxu0 %v11907_v33 }
  0x9d   :  { %7457 = vmatpush1.bf16.msra.mxu0 %v11905_v37 }
  0x9f   :  { %613 = vmatmul.mubr.bf16.gmra.mxu0 %v11850_v49  ;;  %766 = vmatmul.mubr.bf16.gmra.mxu1 %v11850_v49 }
  0xa0   :  { %10802 = vmatprep.mubr.msk.bf16.mxu0 %vm500_vm0, %v11851_v50  ;;  %10815 = vmatprep.mubr.msk.bf16.mxu1 %vm500_vm0, %v11851_v50 }
  0xa7   :  { %623 = vmatmul.mubr.bf16.gmra.mxu0 %v11853_v51  ;;  %776 = vmatmul.mubr.bf16.gmra.mxu1 %v11853_v51 }
  0xa8   :  { %10803 = vmatprep.mubr.msk.bf16.mxu0 %vm500_vm0, %v11854_v52  ;;  %10816 = vmatprep.mubr.msk.bf16.mxu1 %vm500_vm0, %v11854_v52 }
  0xaf   :  { %633 = vmatmul.mubr.bf16.gmra.mxu0 %v11856_v53  ;;  %786 = vmatmul.mubr.bf16.gmra.mxu1 %v11856_v53 }
  0xb0   :  { %10804 = vmatprep.mubr.msk.bf16.mxu0 %vm500_vm0, %v11857_v54  ;;  %10817 = vmatprep.mubr.msk.bf16.mxu1 %vm500_vm0, %v11857_v54 }
  0xb7   :  { %643 = vmatmul.mubr.bf16.gmra.mxu0 %v11859_v55  ;;  %796 = vmatmul.mubr.bf16.gmra.mxu1 %v11859_v55 }
  0xb8   :  { %10805 = vmatprep.mubr.msk.bf16.mxu0 %vm500_vm0, %v11860_v56  ;;  %10818 = vmatprep.mubr.msk.bf16.mxu1 %vm500_vm0, %v11860_v56 }
  0xbf   :  { %653 = vmatmul.mubr.bf16.gmra.mxu0 %v11862_v57  ;;  %806 = vmatmul.mubr.bf16.gmra.mxu1 %v11862_v57 }
  0xc0   :  { %10806 = vmatprep.mubr.msk.bf16.mxu0 %vm500_vm0, %v11863_v58  ;;  %10819 = vmatprep.mubr.msk.bf16.mxu1 %vm500_vm0, %v11863_v58 }
  0xc7   :  { %663 = vmatmul.mubr.bf16.gmra.mxu0 %v11865_v59  ;;  %816 = vmatmul.mubr.bf16.gmra.mxu1 %v11865_v59 }
  0xc8   :  { %10807 = vmatprep.mubr.msk.bf16.mxu0 %vm500_vm0, %v11866_v60  ;;  %10820 = vmatprep.mubr.msk.bf16.mxu1 %vm500_vm0, %v11866_v60 }
  0xcf   :  { %673 = vmatmul.mubr.bf16.gmra.mxu0 %v11868_v61  ;;  %826 = vmatmul.mubr.bf16.gmra.mxu1 %v11868_v61 }
  0xd0   :  { %10808 = vmatprep.mubr.msk.bf16.mxu0 %vm500_vm0, %v11869_v62  ;;  %10821 = vmatprep.mubr.msk.bf16.mxu1 %vm500_vm0, %v11869_v62 }
  0xd7   :  { %683 = vmatmul.mubr.bf16.gmra.mxu0 %v11871_v63  ;;  %836 = vmatmul.mubr.bf16.gmra.mxu1 %v11871_v63  ;;  %v11904_v63 = vld [vmem:[#allocation7 + $0x264] ss:$16 sps:$4 sm:$0xff]  }
  0xd8   :  { %10809 = vmatprep.mubr.msk.bf16.mxu0 %vm500_vm0, %v11872_v1  ;;  %10822 = vmatprep.mubr.msk.bf16.mxu1 %vm500_vm0, %v11872_v1 }
  0xd9   :  { %7527 = vmatprep.subr.bf16.mxu1 %v11904_v63 }
  0xda   :  { %7528 = vmatpush1.bf16.msra.mxu1 %v11902_v4 }
  0xdf   :  { %693 = vmatmul.mubr.bf16.gmra.mxu0 %v11874_v3  ;;  %846 = vmatmul.mubr.bf16.gmra.mxu1 %v11874_v3 }
 0x147   :  { %v584_v29 = vpop.f32.mrf.mxu0  ;;  %v737_v30 = vpop.f32.mrf.mxu1 }
 0x148   :  { %v585_v31 = vadd.f32 %v584_v29, %v13184_v23  ;;  %v738_v32 = vadd.f32 %v737_v30, %v13187_v24 }
 0x149   :  { %v586_v34 = vpop.f32.mrf.mxu0  ;;  %v739_v35 = vpop.f32.mrf.mxu1 }
 0x14a   :  { %v856_v38 = vmax.f32 %v585_v31, 0.0  ;;  %v858_v39 = vmax.f32 %v738_v32, 0.0  ;;  %v587_v40 = vadd.f32 %v586_v34, %v13190_v27  ;;  %v740_v41 = vadd.f32 %v739_v35, %v13193_v28 }
 0x14b   :  { %v588_v42 = vpop.f32.mrf.mxu0  ;;  %v741_v43 = vpop.f32.mrf.mxu1 }
 0x14c   :  { %v857_v44 = vmax.f32 %v587_v40, 0.0  ;;  %v859_v45 = vmax.f32 %v740_v41, 0.0  ;;  %v589_v46 = vadd.f32 %v588_v42, %v13184_v23  ;;  %v742_v48 = vadd.f32 %v741_v43, %v13187_v24 }
 0x14d   :  { %v590_v49 = vpop.f32.mrf.mxu0  ;;  %v743_v50 = vpop.f32.mrf.mxu1  ;;  %v952_v51 = vmax.f32 %v856_v38, %v858_v39 }
 0x14e   :  { %v953_v52 = vmax.f32 %v857_v44, %v859_v45  ;;  %v591_v53 = vadd.f32 %v590_v49, %v13190_v27  ;;  %v744_v54 = vadd.f32 %v743_v50, %v13193_v28  ;;  %v860_v55 = vmax.f32 %v589_v46, 0.0 }
 0x14f   :  { %v862_v56 = vmax.f32 %v742_v48, 0.0  ;;  %v594_v57 = vpop.f32.mrf.mxu0  ;;  %v747_v58 = vpop.f32.mrf.mxu1 }
 0x150   :  { %v1048_v59 = vcombine.low %v952_v51, %v953_v52  ;;  %v1049_v60 = vcombine.high %v952_v51, %v953_v52  ;;  %v861_v61 = vmax.f32 %v591_v53, 0.0  ;;  %v863_v62 = vmax.f32 %v744_v54, 0.0 }
 0x151   :  { %v595_v0 = vadd.f32 %v594_v57, %v13184_v23  ;;  %v748_v1 = vadd.f32 %v747_v58, %v13187_v24  ;;  %v596_v2 = vpop.f32.mrf.mxu0  ;;  %v749_v3 = vpop.f32.mrf.mxu1  ;;  %v954_v9 = vmax.f32 %v860_v55, %v862_v56 }
 0x152   :  { %v1056_v5 = vrot.slane %v1048_v59, %v13200_v47  ;;  %v1063_v6 = vrot.slane %v1049_v60, %v13200_v47  ;;  %v955_v7 = vmax.f32 %v861_v61, %v863_v62  ;;  %v13210_v8 = vadd.f32 %v596_v2, %v13190_v27 }
 0x153   :  { %v864_v10 = vmax.f32 %v595_v0, 0.0  ;;  %v866_v11 = vmax.f32 %v748_v1, 0.0  ;;  %v13213_v12 = vadd.f32 %v749_v3, %v13193_v28 }
 0x154   :  { %v1064_v13 = vcombine.high %v1056_v5, %v1056_v5  ;;  %v1065_v14 = vcombine.high %v1063_v6, %v1063_v6  ;;  %v1486_v15 = vrot.slane %v1056_v5, %v13200_v47  ;;  %v1502_v16 = vrot.slane %v1063_v6, %v13200_v47 }
 0x155   :  { %v1066_v17 = vcombine.low %v954_v9, %v955_v7  ;;  %v1067_v18 = vcombine.high %v954_v9, %v955_v7  ;;  %v13217_v25 = vmax.f32 %v864_v10, %v866_v11  ;;  %v865_v26 = vmax.f32 %v13210_v8, 0.0 }
 0x156   :  { %v1487_v29 = vcombine.high %v1486_v15, %v1486_v15  ;;  %v1494_v30 = vrot.slane %v1064_v13, %v13200_v47  ;;  %v1503_v31 = vcombine.high %v1502_v16, %v1502_v16  ;;  %v1510_v32 = vrot.slane %v1065_v14, %v13200_v47 }
 0x157   :  { %v2441_v33 = vsel %vm2440_vm2, %v1486_v15, -inf  ;;  %v2469_v34 = vsel %vm2440_vm2, %v1502_v16, -inf  ;;  %v13225_v35 = vrot.slane %v1066_v17, %v13200_v47  ;;  %v13228_v36 = vrot.slane %v1067_v18, %v13200_v47 }
 0x158   :  { %v1495_v37 = vcombine.high %v1494_v30, %v1494_v30  ;;  %v1511_v38 = vcombine.high %v1510_v32, %v1510_v32  ;;  %v2442_v39 = vrot.slane %v2441_v33, 4  ;;  %v2448_v40 = vsel %vm2440_vm2, %v1487_v29, -inf }
 0x159   :  { %v2449_v41 = vrot.slane %v2448_v40, 4  ;;  %v2455_v42 = vsel %vm2440_vm2, %v1494_v30, -inf  ;;  %v2470_v43 = vrot.slane %v2469_v34, 4  ;;  %v2476_v44 = vsel %vm2440_vm2, %v1503_v31, -inf }
 0x15a   :  { %v2443_v45 = vmax.f32 %v2441_v33, %v2442_v39  ;;  %v2456_v46 = vrot.slane %v2455_v42, 4  ;;  %v2462_v48 = vsel %vm2440_vm2, %v1495_v37, -inf  ;;  %v2477_v49 = vrot.slane %v2476_v44, 4 }
 0x15b   :  { %v2450_v50 = vmax.f32 %v2448_v40, %v2449_v41  ;;  %v2463_v51 = vrot.slane %v2462_v48, 4  ;;  %v2471_v52 = vmax.f32 %v2469_v34, %v2470_v43  ;;  %v2483_v53 = vsel %vm2440_vm2, %v1510_v32, -inf }
 0x15c   :  { %v2444_v54 = vrot.slane %v2443_v45, 2  ;;  %v2457_v55 = vmax.f32 %v2455_v42, %v2456_v46  ;;  %v2478_v56 = vmax.f32 %v2476_v44, %v2477_v49  ;;  %v2484_v57 = vrot.slane %v2483_v53, 4 }
 0x15d   :  { %v2451_v58 = vrot.slane %v2450_v50, 2  ;;  %v2464_v59 = vmax.f32 %v2462_v48, %v2463_v51  ;;  %v2472_v60 = vrot.slane %v2471_v52, 2  ;;  %v2490_v61 = vsel %vm2440_vm2, %v1511_v38, -inf }
 0x15e   :  { %v2445_v62 = vmax.f32 %v2443_v45, %v2444_v54  ;;  %v2458_v63 = vrot.slane %v2457_v55, 2  ;;  %v2479_v0 = vrot.slane %v2478_v56, 2  ;;  %v2485_v1 = vmax.f32 %v2483_v53, %v2484_v57 }
 0x15f   :  { %v2452_v2 = vmax.f32 %v2450_v50, %v2451_v58  ;;  %v2465_v3 = vrot.slane %v2464_v59, 2  ;;  %v2473_v4 = vmax.f32 %v2471_v52, %v2472_v60  ;;  %v2491_v5 = vrot.slane %v2490_v61, 4 }
 0x160   :  { %v2446_v6 = vrot.slane %v2445_v62, 1  ;;  %v2459_v7 = vmax.f32 %v2457_v55, %v2458_v63  ;;  %v2480_v9 = vmax.f32 %v2478_v56, %v2479_v0  ;;  %v2486_v10 = vrot.slane %v2485_v1, 2 }
 0x161   :  { %v2453_v11 = vrot.slane %v2452_v2, 1  ;;  %v2466_v13 = vmax.f32 %v2464_v59, %v2465_v3  ;;  %v2474_v14 = vrot.slane %v2473_v4, 1  ;;  %v2492_v15 = vmax.f32 %v2490_v61, %v2491_v5 }
 0x162   :  { %v2447_v16 = vmax.f32 %v2445_v62, %v2446_v6  ;;  %v2460_v17 = vrot.slane %v2459_v7, 1  ;;  %v2481_v18 = vrot.slane %v2480_v9, 1  ;;  %v2487_v29 = vmax.f32 %v2485_v1, %v2486_v10 }
 0x163   :  { %v2454_v30 = vmax.f32 %v2452_v2, %v2453_v11  ;;  %v2467_v31 = vrot.slane %v2466_v13, 1  ;;  %v2475_v32 = vmax.f32 %v2473_v4, %v2474_v14  ;;  %v2493_v33 = vrot.slane %v2492_v15, 2 }
 0x164   :  { %v2461_v34 = vmax.f32 %v2459_v7, %v2460_v17  ;;  %v2482_v37 = vmax.f32 %v2480_v9, %v2481_v18  ;;  %v2488_v38 = vrot.slane %v2487_v29, 1  ;;  %v1082_v39 = vcombine.high %v13225_v35, %v13225_v35  ;;  %v11908_v18 = vld [vmem:[#allocation7 + $0x20] ss:$16 sps:$4 sm:$0xff]  }
 0x165   :  { %v2468_v40 = vmax.f32 %v2466_v13, %v2467_v31  ;;  %v2494_v41 = vmax.f32 %v2492_v15, %v2493_v33  ;;  %v11632_v42 = vpack.c.bf16 %v2454_v30, %v2447_v16  ;;  %v1083_v43 = vcombine.high %v13228_v36, %v13228_v36  ;;  %v11910_v13 = vld [vmem:[#allocation7 + $0x24] ss:$16 sps:$4 sm:$0xff]  }
 0x166   :  { %v2489_v44 = vmax.f32 %v2487_v29, %v2488_v38  ;;  %v11634_v45 = vpack.c.bf16 %v2482_v37, %v2475_v32  ;;  %v1518_v46 = vrot.slane %v13225_v35, %v13200_v47  ;;  %v1526_v48 = vrot.slane %v1082_v39, %v13200_v47  ;;  %7458 = vmatprep.subr.bf16.mxu0 %v11910_v13 }
 0x167   :  { %v2495_v49 = vrot.slane %v2494_v41, 1  ;;  %v11633_v50 = vpack.c.bf16 %v2468_v40, %v2461_v34  ;;  %v4457_v51 = vunpack.c.l.b16 %v11632_v42  ;;  %v4458_v52 = vunpack.c.h.b16 %v11632_v42  ;;  %7459 = vmatpush1.bf16.msra.mxu0 %v11908_v18 }
 0x168   :  { %v4461_v53 = vunpack.c.l.b16 %v11634_v45  ;;  %v4462_v54 = vunpack.c.h.b16 %v11634_v45  ;;  %v1519_v55 = vcombine.high %v1518_v46, %v1518_v46  ;;  %v1527_v56 = vcombine.high %v1526_v48, %v1526_v48 }
 0x169   :  { %v2496_v57 = vmax.f32 %v2494_v41, %v2495_v49  ;;  %v4459_v58 = vunpack.c.l.b16 %v11633_v50  ;;  %v4460_v59 = vunpack.c.h.b16 %v11633_v50  ;;  %v1534_v60 = vrot.slane %v13228_v36, %v13200_v47 }
 0x16a   :  { %v1542_v61 = vrot.slane %v1083_v43, %v13200_v47  ;;  %v2497_v35 = vsel %vm2440_vm2, %v1518_v46, -inf  ;;  %v2504_v62 = vsel %vm2440_vm2, %v1519_v55, -inf  ;;  %v2511_v63 = vsel %vm2440_vm2, %v1526_v48, -inf }
 0x16b   :  { %v11635_v0 = vpack.c.bf16 %v2496_v57, %v2489_v44  ;;  %v4650_v1 = vsel %vm4649_vm3, %v4459_v58, %v4457_v51  ;;  %v4663_v2 = vsel %vm4649_vm3, %v4460_v59, %v4458_v52  ;;  %v1535_v3 = vcombine.high %v1534_v60, %v1534_v60 }
 0x16c   :  { %v4652_v4 = vsel %vm4651_vm4, %v4461_v53, %v4650_v1  ;;  %v4664_v5 = vsel %vm4651_vm4, %v4462_v54, %v4663_v2  ;;  %v1543_v6 = vcombine.high %v1542_v61, %v1542_v61  ;;  %v2498_v36 = vrot.slane %v2497_v35, 4  ;;  %v11911_v1 = vld [vmem:[#allocation7 + $0x240] ss:$16 sps:$4 sm:$0xff]  }
 0x16d   :  { %v4463_v7 = vunpack.c.l.b16 %v11635_v0  ;;  %v4464_v9 = vunpack.c.h.b16 %v11635_v0  ;;  %v2505_v10 = vrot.slane %v2504_v62, 4  ;;  %v2512_v11 = vrot.slane %v2511_v63, 4  ;;  %v598_v0 = vpop.f32.mrf.mxu0 }
 0x16e   :  { %v2499_v14 = vmax.f32 %v2497_v35, %v2498_v36  ;;  %v2518_v15 = vsel %vm2440_vm2, %v1527_v56, -inf  ;;  %v2525_v16 = vsel %vm2440_vm2, %v1534_v60, -inf  ;;  %v2532_v17 = vsel %vm2440_vm2, %v1535_v3, -inf  ;;  %v11913_v60 = vld [vmem:[#allocation7 + $0x244] ss:$16 sps:$4 sm:$0xff]  }
 0x16f   :  { %v13257_v29 = vsel %vm4653_vm5, %v4463_v7, %v4652_v4  ;;  %v13260_v30 = vsel %vm4653_vm5, %v4464_v9, %v4664_v5  ;;  %v2506_v31 = vmax.f32 %v2504_v62, %v2505_v10  ;;  %v2513_v32 = vmax.f32 %v2511_v63, %v2512_v11  ;;  %7529 = vmatprep.subr.bf16.mxu1 %v11913_v60 }
 0x170   :  { %v2500_v33 = vrot.slane %v2499_v14, 2  ;;  %v2519_v34 = vrot.slane %v2518_v15, 4  ;;  %v2526_v37 = vrot.slane %v2525_v16, 4  ;;  %v2533_v38 = vrot.slane %v2532_v17, 4  ;;  %7530 = vmatpush1.bf16.msra.mxu1 %v11911_v1 }
 0x171   :  { %v2507_v39 = vrot.slane %v2506_v31, 2  ;;  %v2514_v40 = vrot.slane %v2513_v32, 2  ;;  %v2539_v41 = vsel %vm2440_vm2, %v1542_v61, -inf  ;;  %v2546_v42 = vsel %vm2440_vm2, %v1543_v6, -inf }
 0x172   :  { %v2501_v43 = vmax.f32 %v2499_v14, %v2500_v33  ;;  %v2520_v44 = vmax.f32 %v2518_v15, %v2519_v34  ;;  %v2527_v45 = vmax.f32 %v2525_v16, %v2526_v37  ;;  %v2534_v46 = vmax.f32 %v2532_v17, %v2533_v38  ;;  %v11914_v38 = vld [vmem:[#allocation7] ss:$16 sps:$4 sm:$0xff]  }
 0x173   :  { %v2508_v48 = vmax.f32 %v2506_v31, %v2507_v39  ;;  %v2515_v49 = vmax.f32 %v2513_v32, %v2514_v40  ;;  %v2540_v50 = vrot.slane %v2539_v41, 4  ;;  %v2547_v51 = vrot.slane %v2546_v42, 4  ;;  %v11916_v31 = vld [vmem:[#allocation7 + $0x4] ss:$16 sps:$4 sm:$0xff]  }
 0x174   :  { %v2502_v52 = vrot.slane %v2501_v43, 1  ;;  %v2521_v53 = vrot.slane %v2520_v44, 2  ;;  %v2528_v54 = vrot.slane %v2527_v45, 2  ;;  %v2535_v55 = vrot.slane %v2534_v46, 2  ;;  %7460 = vmatprep.subr.bf16.mxu0 %v11916_v31 }
 0x175   :  { %v2509_v56 = vrot.slane %v2508_v48, 1  ;;  %v2516_v57 = vrot.slane %v2515_v49, 1  ;;  %v2541_v58 = vmax.f32 %v2539_v41, %v2540_v50  ;;  %v2548_v59 = vmax.f32 %v2546_v42, %v2547_v51  ;;  %7461 = vmatpush1.bf16.msra.mxu0 %v11914_v38 }
 0x176   :  { %v2503_v61 = vmax.f32 %v2501_v43, %v2502_v52  ;;  %v2522_v35 = vmax.f32 %v2520_v44, %v2521_v53  ;;  %v2529_v62 = vmax.f32 %v2527_v45, %v2528_v54  ;;  %v2536_v63 = vmax.f32 %v2534_v46, %v2535_v55  ;;  %v600_v45 = vpop.f32.mrf.mxu0 }
 0x177   :  { %v2510_v2 = vmax.f32 %v2508_v48, %v2509_v56  ;;  %v2517_v3 = vmax.f32 %v2515_v49, %v2516_v57  ;;  %v2542_v4 = vrot.slane %v2541_v58, 2  ;;  %v2549_v5 = vrot.slane %v2548_v59, 2 }
 0x178   :  { %v2523_v6 = vrot.slane %v2522_v35, 1  ;;  %v2530_v36 = vrot.slane %v2529_v62, 1  ;;  %v2537_v7 = vrot.slane %v2536_v63, 1  ;;  %v867_v9 = vmax.f32 %v13213_v12, 0.0 }
 0x179   :  { %v2543_v10 = vmax.f32 %v2541_v58, %v2542_v4  ;;  %v2550_v11 = vmax.f32 %v2548_v59, %v2549_v5  ;;  %v11636_v13 = vpack.c.bf16 %v2510_v2, %v2503_v61  ;;  %v599_v14 = vadd.f32 %v598_v0, %v13184_v23 }
 0x17a   :  { %v2524_v15 = vmax.f32 %v2522_v35, %v2523_v6  ;;  %v2531_v16 = vmax.f32 %v2529_v62, %v2530_v36  ;;  %v2538_v17 = vmax.f32 %v2536_v63, %v2537_v7  ;;  %v957_v18 = vmax.f32 %v865_v26, %v867_v9  ;;  %v751_v26 = vpop.f32.mrf.mxu1 }
 0x17b   :  { %v2544_v32 = vrot.slane %v2543_v10, 1  ;;  %v2551_v33 = vrot.slane %v2550_v11, 1  ;;  %v4465_v34 = vunpack.c.l.b16 %v11636_v13  ;;  %v4466_v37 = vunpack.c.h.b16 %v11636_v13 }
 0x17c   :  { %v11637_v39 = vpack.c.bf16 %v2524_v15, %v2517_v3  ;;  %v11638_v12 = vpack.c.bf16 %v2538_v17, %v2531_v16  ;;  %v1084_v40 = vcombine.low %v13217_v25, %v957_v18  ;;  %v1085_v41 = vcombine.high %v13217_v25, %v957_v18 }
 0x17d   :  { %v2545_v42 = vmax.f32 %v2543_v10, %v2544_v32  ;;  %v2552_v43 = vmax.f32 %v2550_v11, %v2551_v33  ;;  %v4656_v44 = vsel %vm4655_vm6, %v4465_v34, %v13257_v29  ;;  %v4666_v8 = vsel %vm4655_vm6, %v4466_v37, %v13260_v30 }
 0x17e   :  { %v4467_v46 = vunpack.c.l.b16 %v11637_v39  ;;  %v4468_v48 = vunpack.c.h.b16 %v11637_v39  ;;  %v4469_v49 = vunpack.c.l.b16 %v11638_v12  ;;  %v4470_v50 = vunpack.c.h.b16 %v11638_v12 }
 0x17f   :  { %v11639_v51 = vpack.c.bf16 %v2552_v43, %v2545_v42  ;;  %v1092_v52 = vrot.slane %v1084_v40, %v13200_v47  ;;  %v1099_v25 = vrot.slane %v1085_v41, %v13200_v47  ;;  %v868_v53 = vmax.f32 %v599_v14, 0.0 }
 0x180   :  { %v4658_v54 = vsel %vm4657_vm7, %v4467_v46, %v4656_v44  ;;  %v4667_v29 = vsel %vm4657_vm7, %v4468_v48, %v4666_v8  ;;  %v752_v55 = vadd.f32 %v751_v26, %v13187_v24  ;;  %v13280_v30 = vadd.f32 %v600_v45, %v13190_v27 }
 0x181   :  { %v4471_v56 = vunpack.c.l.b16 %v11639_v51  ;;  %v4472_v57 = vunpack.c.h.b16 %v11639_v51  ;;  %v4660_v58 = vsel %vm4659_vm8, %v4469_v49, %v4658_v54  ;;  %v4668_v59 = vsel %vm4659_vm8, %v4470_v50, %v4667_v29 }
 0x182   :  { %v1100_v60 = vcombine.high %v1092_v52, %v1092_v52  ;;  %v1101_v61 = vcombine.high %v1099_v25, %v1099_v25  ;;  %v1550_v35 = vrot.slane %v1092_v52, %v13200_v47  ;;  %v1566_v62 = vrot.slane %v1099_v25, %v13200_v47  ;;  %v753_v52 = vpop.f32.mrf.mxu1 }
 0x183   :  { %v4662_v63 = vsel %vm4661_vm9, %v4471_v56, %v4660_v58  ;;  %v4669_v0 = vsel %vm4661_vm9, %v4472_v57, %v4668_v59  ;;  %v870_v1 = vmax.f32 %v752_v55, 0.0  ;;  %v869_v2 = vmax.f32 %v13280_v30, 0.0 }
 0x184   :  { %v4816_v3 = vpack.c.b16 %v4669_v0, %v4662_v63  ;;  %v1551_v4 = vcombine.high %v1550_v35, %v1550_v35  ;;  %v1558_v5 = vrot.slane %v1100_v60, %v13200_v47  ;;  %v1567_v6 = vcombine.high %v1566_v62, %v1566_v62 }
 0x185   :  { %v1574_v36 = vrot.slane %v1101_v61, %v13200_v47  ;;  %v2553_v7 = vsel %vm2440_vm2, %v1550_v35, -inf  ;;  %v2581_v9 = vsel %vm2440_vm2, %v1566_v62, -inf  ;;  %v13293_v10 = vmax.f32 %v868_v53, %v870_v1 }
 0x186   :  { %4848 = vst [vmem:[#allocation2 + $0x30] sm:$0xff] %v4816_v3  ;;  %v1559_v11 = vcombine.high %v1558_v5, %v1558_v5  ;;  %v2554_v13 = vrot.slane %v2553_v7, 4  ;;  %v2560_v14 = vsel %vm2440_vm2, %v1551_v4, -inf  ;;  %v2567_v15 = vsel %vm2440_vm2, %v1558_v5, -inf  ;;  %v604_v3 = vpop.f32.mrf.mxu0  ;;  %v757_v4 = vpop.f32.mrf.mxu1  ;;  %v11922_v5 = vld [vmem:[#allocation7 + $0x1e4] ss:$16 sps:$4 sm:$0xff]  }
 0x187   :  { %v1575_v16 = vcombine.high %v1574_v36, %v1574_v36  ;;  %v2561_v17 = vrot.slane %v2560_v14, 4  ;;  %v2568_v18 = vrot.slane %v2567_v15, 4  ;;  %v2582_v31 = vrot.slane %v2581_v9, 4  ;;  %7462 = vmatprep.subr.bf16.mxu0 %v11922_v5 }
 0x188   :  { %v2555_v32 = vmax.f32 %v2553_v7, %v2554_v13  ;;  %v2574_v33 = vsel %vm2440_vm2, %v1559_v11, -inf  ;;  %v2588_v34 = vsel %vm2440_vm2, %v1567_v6, -inf  ;;  %v2595_v37 = vsel %vm2440_vm2, %v1574_v36, -inf  ;;  %v11920_v11 = vld [vmem:[#allocation7 + $0x1e0] ss:$16 sps:$4 sm:$0xff]  }
 0x189   :  { %v2562_v38 = vmax.f32 %v2560_v14, %v2561_v17  ;;  %v2569_v39 = vmax.f32 %v2567_v15, %v2568_v18  ;;  %v2575_v12 = vrot.slane %v2574_v33, 4  ;;  %v2583_v40 = vmax.f32 %v2581_v9, %v2582_v31  ;;  %7463 = vmatpush2.bf16.msra.mxu0 %v11920_v11 }
 0x18a   :  { %v2556_v41 = vrot.slane %v2555_v32, 2  ;;  %v2589_v42 = vrot.slane %v2588_v34, 4  ;;  %v2596_v43 = vrot.slane %v2595_v37, 4  ;;  %v2602_v44 = vsel %vm2440_vm2, %v1575_v16, -inf }
 0x18b   :  { %v2563_v8 = vrot.slane %v2562_v38, 2  ;;  %v2570_v26 = vrot.slane %v2569_v39, 2  ;;  %v2576_v45 = vmax.f32 %v2574_v33, %v2575_v12  ;;  %v2584_v46 = vrot.slane %v2583_v40, 2  ;;  %v759_v12 = vpop.f32.mrf.mxu1 }
 0x18c   :  { %v2557_v48 = vmax.f32 %v2555_v32, %v2556_v41  ;;  %v2590_v49 = vmax.f32 %v2588_v34, %v2589_v42  ;;  %v2597_v50 = vmax.f32 %v2595_v37, %v2596_v43  ;;  %v2603_v51 = vrot.slane %v2602_v44, 4 }
 0x18d   :  { %v2564_v25 = vmax.f32 %v2562_v38, %v2563_v8  ;;  %v2571_v53 = vmax.f32 %v2569_v39, %v2570_v26  ;;  %v2577_v54 = vrot.slane %v2576_v45, 2  ;;  %v2585_v29 = vmax.f32 %v2583_v40, %v2584_v46  ;;  %v606_v39 = vpop.f32.mrf.mxu0  ;;  %v11919_v40 = vld [vmem:[#allocation7 + $0x224] ss:$16 sps:$4 sm:$0xff]   ;;  %v11917_v8 = vld [vmem:[#allocation7 + $0x220] ss:$16 sps:$4 sm:$0xff]  }
 0x18e   :  { %v2558_v55 = vrot.slane %v2557_v48, 1  ;;  %v2591_v56 = vrot.slane %v2590_v49, 2  ;;  %v2598_v57 = vrot.slane %v2597_v50, 2  ;;  %v2604_v58 = vmax.f32 %v2602_v44, %v2603_v51  ;;  %7531 = vmatprep.subr.bf16.mxu1 %v11919_v40 }
 0x18f   :  { %v2565_v59 = vrot.slane %v2564_v25, 1  ;;  %v2572_v60 = vrot.slane %v2571_v53, 1  ;;  %v2578_v61 = vmax.f32 %v2576_v45, %v2577_v54  ;;  %v2586_v35 = vrot.slane %v2585_v29, 1  ;;  %7532 = vmatpush1.bf16.msra.mxu1 %v11917_v8 }
 0x190   :  { %v2559_v62 = vmax.f32 %v2557_v48, %v2558_v55  ;;  %v2592_v63 = vmax.f32 %v2590_v49, %v2591_v56  ;;  %v2599_v0 = vmax.f32 %v2597_v50, %v2598_v57  ;;  %v2605_v1 = vrot.slane %v2604_v58, 2  ;;  %v608_v57 = vpop.f32.mrf.mxu0 }
 0x191   :  { %v2566_v6 = vmax.f32 %v2564_v25, %v2565_v59  ;;  %v2573_v36 = vmax.f32 %v2571_v53, %v2572_v60  ;;  %v2579_v7 = vrot.slane %v2578_v61, 1  ;;  %v2587_v9 = vmax.f32 %v2585_v29, %v2586_v35 }
 0x192   :  { %v2593_v13 = vrot.slane %v2592_v63, 1  ;;  %v2600_v14 = vrot.slane %v2599_v0, 1  ;;  %v2606_v15 = vmax.f32 %v2604_v58, %v2605_v1  ;;  %v754_v16 = vadd.f32 %v753_v52, %v13193_v28  ;;  %v761_v58 = vpop.f32.mrf.mxu1 }
 0x193   :  { %v2580_v17 = vmax.f32 %v2578_v61, %v2579_v7  ;;  %v11640_v18 = vpack.c.bf16 %v2566_v6, %v2559_v62  ;;  %v605_v31 = vadd.f32 %v604_v3, %v13184_v23  ;;  %v758_v32 = vadd.f32 %v757_v4, %v13187_v24 }
 0x194   :  { %v2594_v33 = vmax.f32 %v2592_v63, %v2593_v13  ;;  %v2601_v34 = vmax.f32 %v2599_v0, %v2600_v14  ;;  %v2607_v37 = vrot.slane %v2606_v15, 1  ;;  %v871_v38 = vmax.f32 %v754_v16, 0.0 }
 0x195   :  { %v11641_v41 = vpack.c.bf16 %v2580_v17, %v2573_v36  ;;  %v4473_v42 = vunpack.c.l.b16 %v11640_v18  ;;  %v4474_v43 = vunpack.c.h.b16 %v11640_v18  ;;  %v872_v44 = vmax.f32 %v605_v31, 0.0 }
 0x196   :  { %v2608_v26 = vmax.f32 %v2606_v15, %v2607_v37  ;;  %v11642_v45 = vpack.c.bf16 %v2594_v33, %v2587_v9  ;;  %v959_v46 = vmax.f32 %v869_v2, %v871_v38  ;;  %v874_v48 = vmax.f32 %v758_v32, 0.0 }
 0x197   :  { %v4475_v49 = vunpack.c.l.b16 %v11641_v41  ;;  %v4476_v50 = vunpack.c.h.b16 %v11641_v41  ;;  %v607_v51 = vadd.f32 %v606_v39, %v13190_v27  ;;  %v760_v52 = vadd.f32 %v759_v12, %v13193_v28 }
 0x198   :  { %v11643_v25 = vpack.c.bf16 %v2608_v26, %v2601_v34  ;;  %v4477_v53 = vunpack.c.l.b16 %v11642_v45  ;;  %v4478_v54 = vunpack.c.h.b16 %v11642_v45  ;;  %v1102_v29 = vcombine.low %v13293_v10, %v959_v46 }
 0x199   :  { %v4670_v55 = vsel %vm4649_vm3, %v4475_v49, %v4473_v42  ;;  %v4673_v56 = vsel %vm4649_vm3, %v4476_v50, %v4474_v43  ;;  %v1103_v30 = vcombine.high %v13293_v10, %v959_v46  ;;  %v13312_v2 = vmax.f32 %v872_v44, %v874_v48 }
 0x19a   :  { %v4479_v59 = vunpack.c.l.b16 %v11643_v25  ;;  %v4480_v60 = vunpack.c.h.b16 %v11643_v25  ;;  %v4671_v61 = vsel %vm4651_vm4, %v4477_v53, %v4670_v55  ;;  %v4674_v35 = vsel %vm4651_vm4, %v4478_v54, %v4673_v56 }
 0x19b   :  { %v1110_v62 = vrot.slane %v1102_v29, %v13200_v47  ;;  %v1117_v63 = vrot.slane %v1103_v30, %v13200_v47  ;;  %v873_v0 = vmax.f32 %v607_v51, 0.0  ;;  %v875_v1 = vmax.f32 %v760_v52, 0.0 }
 0x19c   :  { %v4672_v3 = vsel %vm4653_vm5, %v4479_v59, %v4671_v61  ;;  %v4675_v10 = vsel %vm4653_vm5, %v4480_v60, %v4674_v35  ;;  %v13321_v4 = vadd.f32 %v608_v57, %v13184_v23  ;;  %v13324_v5 = vadd.f32 %v761_v58, %v13187_v24 }
 0x19d   :  { %v4817_v6 = vpack.c.b16 %v4675_v10, %v4672_v3  ;;  %v1118_v36 = vcombine.high %v1110_v62, %v1110_v62  ;;  %v1119_v7 = vcombine.high %v1117_v63, %v1117_v63  ;;  %v1582_v9 = vrot.slane %v1110_v62, %v13200_v47 }
 0x19e   :  { %v1598_v11 = vrot.slane %v1117_v63, %v13200_v47  ;;  %v13328_v13 = vmax.f32 %v873_v0, %v875_v1  ;;  %v876_v14 = vmax.f32 %v13321_v4, 0.0  ;;  %v878_v15 = vmax.f32 %v13324_v5, 0.0 }
 0x19f   :  { %4849 = vst [vmem:[#allocation2] sm:$0x33] %v4817_v6  ;;  %v1583_v16 = vcombine.high %v1582_v9, %v1582_v9  ;;  %v1590_v17 = vrot.slane %v1118_v36, %v13200_v47  ;;  %v1606_v18 = vrot.slane %v1119_v7, %v13200_v47  ;;  %v2609_v31 = vsel %vm2440_vm2, %v1582_v9, -inf  ;;  %v11925_v6 = vld [vmem:[#allocation7 + $0x1c4] ss:$16 sps:$4 sm:$0xff]  }
 0x1a0   :  { %v1599_v32 = vcombine.high %v1598_v11, %v1598_v11  ;;  %v2610_v33 = vrot.slane %v2609_v31, 4  ;;  %v2637_v34 = vsel %vm2440_vm2, %v1598_v11, -inf  ;;  %v1120_v37 = vcombine.low %v13312_v2, %v13328_v13  ;;  %7464 = vmatprep.subr.bf16.mxu0 %v11925_v6 }
 0x1a1   :  { %v1591_v38 = vcombine.high %v1590_v17, %v1590_v17  ;;  %v1607_v39 = vcombine.high %v1606_v18, %v1606_v18  ;;  %v2616_v12 = vsel %vm2440_vm2, %v1583_v16, -inf  ;;  %v2623_v40 = vsel %vm2440_vm2, %v1590_v17, -inf  ;;  %v11923_v16 = vld [vmem:[#allocation7 + $0x1c0] ss:$16 sps:$4 sm:$0xff]  }
 0x1a2   :  { %v2611_v41 = vmax.f32 %v2609_v31, %v2610_v33  ;;  %v2617_v42 = vrot.slane %v2616_v12, 4  ;;  %v2624_v43 = vrot.slane %v2623_v40, 4  ;;  %v2638_v44 = vrot.slane %v2637_v34, 4  ;;  %7465 = vmatpush2.bf16.msra.mxu0 %v11923_v16 }
 0x1a3   :  { %v2630_v8 = vsel %vm2440_vm2, %v1591_v38, -inf  ;;  %v2644_v26 = vsel %vm2440_vm2, %v1599_v32, -inf  ;;  %v2651_v45 = vsel %vm2440_vm2, %v1606_v18, -inf  ;;  %v2658_v46 = vsel %vm2440_vm2, %v1607_v39, -inf }
 0x1a4   :  { %v2612_v48 = vrot.slane %v2611_v41, 2  ;;  %v2618_v49 = vmax.f32 %v2616_v12, %v2617_v42  ;;  %v2625_v50 = vmax.f32 %v2623_v40, %v2624_v43  ;;  %v2631_v51 = vrot.slane %v2630_v8, 4  ;;  %v11928_v43 = vld [vmem:[#allocation7 + $0x204] ss:$16 sps:$4 sm:$0xff]  }
 0x1a5   :  { %v2639_v52 = vmax.f32 %v2637_v34, %v2638_v44  ;;  %v2645_v25 = vrot.slane %v2644_v26, 4  ;;  %v2652_v53 = vrot.slane %v2651_v45, 4  ;;  %v2659_v54 = vrot.slane %v2658_v46, 4  ;;  %7533 = vmatprep.subr.bf16.mxu1 %v11928_v43 }
 0x1a6   :  { %v2613_v29 = vmax.f32 %v2611_v41, %v2612_v48  ;;  %v2619_v55 = vrot.slane %v2618_v49, 2  ;;  %v2626_v56 = vrot.slane %v2625_v50, 2  ;;  %v2632_v30 = vmax.f32 %v2630_v8, %v2631_v51 }
 0x1a7   :  { %v2640_v57 = vrot.slane %v2639_v52, 2  ;;  %v2646_v58 = vmax.f32 %v2644_v26, %v2645_v25  ;;  %v2653_v59 = vmax.f32 %v2651_v45, %v2652_v53  ;;  %v2660_v60 = vmax.f32 %v2658_v46, %v2659_v54  ;;  %v11926_v46 = vld [vmem:[#allocation7 + $0x200] ss:$16 sps:$4 sm:$0xff]  }
 0x1a8   :  { %v2614_v61 = vrot.slane %v2613_v29, 1  ;;  %v2620_v35 = vmax.f32 %v2618_v49, %v2619_v55  ;;  %v2627_v62 = vmax.f32 %v2625_v50, %v2626_v56  ;;  %v2633_v63 = vrot.slane %v2632_v30, 2  ;;  %7534 = vmatpush1.bf16.msra.mxu1 %v11926_v46 }
 0x1a9   :  { %v2641_v0 = vmax.f32 %v2639_v52, %v2640_v57  ;;  %v2647_v1 = vrot.slane %v2646_v58, 2  ;;  %v2654_v3 = vrot.slane %v2653_v59, 2  ;;  %v2661_v10 = vrot.slane %v2660_v60, 2 }
 0x1aa   :  { %v2615_v36 = vmax.f32 %v2613_v29, %v2614_v61  ;;  %v2621_v7 = vrot.slane %v2620_v35, 1  ;;  %v2628_v9 = vrot.slane %v2627_v62, 1  ;;  %v2634_v11 = vmax.f32 %v2632_v30, %v2633_v63 }
 0x1ab   :  { %v2642_v17 = vrot.slane %v2641_v0, 1  ;;  %v2648_v18 = vmax.f32 %v2646_v58, %v2647_v1  ;;  %v2655_v31 = vmax.f32 %v2653_v59, %v2654_v3  ;;  %v2662_v32 = vmax.f32 %v2660_v60, %v2661_v10 }
 0x1ac   :  { %v2622_v33 = vmax.f32 %v2620_v35, %v2621_v7  ;;  %v2629_v34 = vmax.f32 %v2627_v62, %v2628_v9  ;;  %v2635_v38 = vrot.slane %v2634_v11, 1  ;;  %v1121_v39 = vcombine.high %v13312_v2, %v13328_v13 }
 0x1ad   :  { %v2643_v12 = vmax.f32 %v2641_v0, %v2642_v17  ;;  %v2649_v40 = vrot.slane %v2648_v18, 1  ;;  %v2656_v41 = vrot.slane %v2655_v31, 1  ;;  %v2663_v42 = vrot.slane %v2662_v32, 1 }
 0x1ae   :  { %v2636_v44 = vmax.f32 %v2634_v11, %v2635_v38  ;;  %v11644_v8 = vpack.c.bf16 %v2622_v33, %v2615_v36  ;;  %v1128_v26 = vrot.slane %v1120_v37, %v13200_v47  ;;  %v1135_v45 = vrot.slane %v1121_v39, %v13200_v47 }
 0x1af   :  { %v2650_v48 = vmax.f32 %v2648_v18, %v2649_v40  ;;  %v2657_v49 = vmax.f32 %v2655_v31, %v2656_v41  ;;  %v2664_v50 = vmax.f32 %v2662_v32, %v2663_v42  ;;  %v13352_v2 = vmax.f32 %v876_v14, %v878_v15 }
 0x1b0   :  { %v11645_v13 = vpack.c.bf16 %v2636_v44, %v2629_v34  ;;  %v4481_v51 = vunpack.c.l.b16 %v11644_v8  ;;  %v4482_v52 = vunpack.c.h.b16 %v11644_v8  ;;  %v1136_v25 = vcombine.high %v1128_v26, %v1128_v26 }
 0x1b1   :  { %v11646_v53 = vpack.c.bf16 %v2650_v48, %v2643_v12  ;;  %v13354_v37 = vpack.c.bf16 %v2664_v50, %v2657_v49  ;;  %v1137_v54 = vcombine.high %v1135_v45, %v1135_v45  ;;  %v1614_v29 = vrot.slane %v1128_v26, %v13200_v47 }
 0x1b2   :  { %v4483_v55 = vunpack.c.l.b16 %v11645_v13  ;;  %v4484_v56 = vunpack.c.h.b16 %v11645_v13  ;;  %v1622_v5 = vrot.slane %v1136_v25, %v13200_v47  ;;  %v1630_v4 = vrot.slane %v1135_v45, %v13200_v47 }
 0x1b3   :  { %v4485_v14 = vunpack.c.l.b16 %v11646_v53  ;;  %v4486_v15 = vunpack.c.h.b16 %v11646_v53  ;;  %v4487_v30 = vunpack.c.l.b16 %v13354_v37  ;;  %v4488_v57 = vunpack.c.h.b16 %v13354_v37 }
 0x1b4   :  { %v4676_v58 = vsel %vm4649_vm3, %v4483_v55, %v4481_v51  ;;  %v4683_v59 = vsel %vm4649_vm3, %v4484_v56, %v4482_v52  ;;  %v1615_v60 = vcombine.high %v1614_v29, %v1614_v29  ;;  %v1623_v61 = vcombine.high %v1622_v5, %v1622_v5  ;;  %v610_v52 = vpop.f32.mrf.mxu0 }
 0x1b5   :  { %v4677_v35 = vsel %vm4651_vm4, %v4485_v14, %v4676_v58  ;;  %v4684_v62 = vsel %vm4651_vm4, %v4486_v15, %v4683_v59  ;;  %v1631_v63 = vcombine.high %v1630_v4, %v1630_v4  ;;  %v1638_v0 = vrot.slane %v1137_v54, %v13200_v47  ;;  %v763_v14 = vpop.f32.mrf.mxu1 }
 0x1b6   :  { %v2665_v1 = vsel %vm2440_vm2, %v1614_v29, -inf  ;;  %v2672_v3 = vsel %vm2440_vm2, %v1615_v60, -inf  ;;  %v2679_v10 = vsel %vm2440_vm2, %v1622_v5, -inf  ;;  %v2686_v6 = vsel %vm2440_vm2, %v1623_v61, -inf }
 0x1b7   :  { %v1639_v36 = vcombine.high %v1638_v0, %v1638_v0  ;;  %v2666_v7 = vrot.slane %v2665_v1, 4  ;;  %v2673_v9 = vrot.slane %v2672_v3, 4  ;;  %v2680_v11 = vrot.slane %v2679_v10, 4 }
 0x1b8   :  { %v2687_v16 = vrot.slane %v2686_v6, 4  ;;  %v2693_v17 = vsel %vm2440_vm2, %v1630_v4, -inf  ;;  %v2700_v18 = vsel %vm2440_vm2, %v1631_v63, -inf  ;;  %v2707_v31 = vsel %vm2440_vm2, %v1638_v0, -inf }
 0x1b9   :  { %v2667_v32 = vmax.f32 %v2665_v1, %v2666_v7  ;;  %v2674_v33 = vmax.f32 %v2672_v3, %v2673_v9  ;;  %v2681_v34 = vmax.f32 %v2679_v10, %v2680_v11  ;;  %v2694_v38 = vrot.slane %v2693_v17, 4  ;;  %v614_v3 = vpop.f32.mrf.mxu0 }
 0x1ba   :  { %v2688_v39 = vmax.f32 %v2686_v6, %v2687_v16  ;;  %v2701_v12 = vrot.slane %v2700_v18, 4  ;;  %v2708_v40 = vrot.slane %v2707_v31, 4  ;;  %v2714_v41 = vsel %vm2440_vm2, %v1639_v36, -inf }
 0x1bb   :  { %v2668_v42 = vrot.slane %v2667_v32, 2  ;;  %v2675_v43 = vrot.slane %v2674_v33, 2  ;;  %v2682_v44 = vrot.slane %v2681_v34, 2  ;;  %v2695_v8 = vmax.f32 %v2693_v17, %v2694_v38 }
 0x1bc   :  { %v2689_v26 = vrot.slane %v2688_v39, 2  ;;  %v2702_v45 = vmax.f32 %v2700_v18, %v2701_v12  ;;  %v2709_v46 = vmax.f32 %v2707_v31, %v2708_v40  ;;  %v2715_v48 = vrot.slane %v2714_v41, 4  ;;  %v767_v18 = vpop.f32.mrf.mxu1 }
 0x1bd   :  { %v2669_v49 = vmax.f32 %v2667_v32, %v2668_v42  ;;  %v2676_v50 = vmax.f32 %v2674_v33, %v2675_v43  ;;  %v2683_v13 = vmax.f32 %v2681_v34, %v2682_v44  ;;  %v2696_v51 = vrot.slane %v2695_v8, 2 }
 0x1be   :  { %v2690_v25 = vmax.f32 %v2688_v39, %v2689_v26  ;;  %v2703_v53 = vrot.slane %v2702_v45, 2  ;;  %v2710_v54 = vrot.slane %v2709_v46, 2  ;;  %v2716_v29 = vmax.f32 %v2714_v41, %v2715_v48  ;;  %v616_v41 = vpop.f32.mrf.mxu0 }
 0x1bf   :  { %v2670_v55 = vrot.slane %v2669_v49, 1  ;;  %v2677_v56 = vrot.slane %v2676_v50, 1  ;;  %v2684_v5 = vrot.slane %v2683_v13, 1  ;;  %v2697_v4 = vmax.f32 %v2695_v8, %v2696_v51  ;;  %v769_v8 = vpop.f32.mrf.mxu1 }
 0x1c0   :  { %v2691_v15 = vrot.slane %v2690_v25, 1  ;;  %v2704_v58 = vmax.f32 %v2702_v45, %v2703_v53  ;;  %v2711_v59 = vmax.f32 %v2709_v46, %v2710_v54  ;;  %v2717_v60 = vrot.slane %v2716_v29, 2 }
 0x1c1   :  { %v2671_v61 = vmax.f32 %v2669_v49, %v2670_v55  ;;  %v2678_v63 = vmax.f32 %v2676_v50, %v2677_v56  ;;  %v2685_v0 = vmax.f32 %v2683_v13, %v2684_v5  ;;  %v2698_v1 = vrot.slane %v2697_v4, 1 }
 0x1c2   :  { %v2692_v10 = vmax.f32 %v2690_v25, %v2691_v15  ;;  %v2705_v6 = vrot.slane %v2704_v58, 1  ;;  %v2712_v36 = vrot.slane %v2711_v59, 1  ;;  %v2718_v7 = vmax.f32 %v2716_v29, %v2717_v60 }
 0x1c3   :  { %v2699_v9 = vmax.f32 %v2697_v4, %v2698_v1  ;;  %v11648_v11 = vpack.c.bf16 %v2678_v63, %v2671_v61  ;;  %v4678_v16 = vsel %vm4653_vm5, %v4487_v30, %v4677_v35  ;;  %v4685_v17 = vsel %vm4653_vm5, %v4488_v57, %v4684_v62 }
 0x1c4   :  { %v2706_v31 = vmax.f32 %v2704_v58, %v2705_v6  ;;  %v2713_v32 = vmax.f32 %v2711_v59, %v2712_v36  ;;  %v2719_v33 = vrot.slane %v2718_v7, 1  ;;  %v11649_v34 = vpack.c.bf16 %v2692_v10, %v2685_v0 }
 0x1c5   :  { %v4489_v38 = vunpack.c.l.b16 %v11648_v11  ;;  %v4490_v39 = vunpack.c.h.b16 %v11648_v11  ;;  %v611_v12 = vadd.f32 %v610_v52, %v13190_v27  ;;  %v764_v40 = vadd.f32 %v763_v14, %v13193_v28  ;;  %v618_v52 = vpop.f32.mrf.mxu0  ;;  %v771_v14 = vpop.f32.mrf.mxu1 }
 0x1c6   :  { %v2720_v42 = vmax.f32 %v2718_v7, %v2719_v33  ;;  %v11650_v43 = vpack.c.bf16 %v2706_v31, %v2699_v9  ;;  %v4491_v44 = vunpack.c.l.b16 %v11649_v34  ;;  %v4492_v30 = vunpack.c.h.b16 %v11649_v34 }
 0x1c7   :  { %v4679_v37 = vsel %vm4655_vm6, %v4489_v38, %v4678_v16  ;;  %v4686_v57 = vsel %vm4655_vm6, %v4490_v39, %v4685_v17  ;;  %v877_v35 = vmax.f32 %v611_v12, 0.0  ;;  %v879_v62 = vmax.f32 %v764_v40, 0.0 }
 0x1c8   :  { %v11651_v26 = vpack.c.bf16 %v2720_v42, %v2713_v32  ;;  %v4493_v45 = vunpack.c.l.b16 %v11650_v43  ;;  %v4494_v46 = vunpack.c.h.b16 %v11650_v43  ;;  %v4680_v48 = vsel %vm4657_vm7, %v4491_v44, %v4679_v37 }
 0x1c9   :  { %v4687_v49 = vsel %vm4657_vm7, %v4492_v30, %v4686_v57  ;;  %v963_v50 = vmax.f32 %v877_v35, %v879_v62  ;;  %v615_v13 = vadd.f32 %v614_v3, %v13184_v23  ;;  %v768_v51 = vadd.f32 %v767_v18, %v13187_v24  ;;  %v620_v3 = vpop.f32.mrf.mxu0 }
 0x1ca   :  { %v4495_v25 = vunpack.c.l.b16 %v11651_v26  ;;  %v4496_v53 = vunpack.c.h.b16 %v11651_v26  ;;  %v4681_v54 = vsel %vm4659_vm8, %v4493_v45, %v4680_v48  ;;  %v4688_v29 = vsel %vm4659_vm8, %v4494_v46, %v4687_v49 }
 0x1cb   :  { %v1138_v55 = vcombine.low %v13352_v2, %v963_v50  ;;  %v1139_v56 = vcombine.high %v13352_v2, %v963_v50  ;;  %v880_v5 = vmax.f32 %v615_v13, 0.0  ;;  %v882_v4 = vmax.f32 %v768_v51, 0.0 }
 0x1cc   :  { %v4682_v15 = vsel %vm4661_vm9, %v4495_v25, %v4681_v54  ;;  %v4689_v58 = vsel %vm4661_vm9, %v4496_v53, %v4688_v29  ;;  %v617_v59 = vadd.f32 %v616_v41, %v13190_v27  ;;  %v770_v60 = vadd.f32 %v769_v8, %v13193_v28 }
 0x1cd   :  { %v4818_v61 = vpack.c.b16 %v4689_v58, %v4682_v15  ;;  %v1146_v63 = vrot.slane %v1138_v55, %v13200_v47  ;;  %v1153_v0 = vrot.slane %v1139_v56, %v13200_v47  ;;  %v13398_v1 = vmax.f32 %v880_v5, %v882_v4  ;;  %v11931_v4 = vld [vmem:[#allocation7 + $0x1a4] ss:$16 sps:$4 sm:$0xff]  }
 0x1ce   :  { %v881_v2 = vmax.f32 %v617_v59, 0.0  ;;  %v883_v10 = vmax.f32 %v770_v60, 0.0  ;;  %v13401_v6 = vadd.f32 %v618_v52, %v13184_v23  ;;  %v13404_v36 = vadd.f32 %v771_v14, %v13187_v24  ;;  %v11929_v60 = vld [vmem:[#allocation7 + $0x1a0] ss:$16 sps:$4 sm:$0xff]   ;;  %7466 = vmatprep.subr.bf16.mxu0 %v11931_v4 }
 0x1cf   :  { %4850 = vst [vmem:[#allocation2 + $0x58] sm:$0xff] %v4818_v61  ;;  %v1154_v7 = vcombine.high %v1146_v63, %v1146_v63  ;;  %v1155_v9 = vcombine.high %v1153_v0, %v1153_v0  ;;  %v1646_v11 = vrot.slane %v1146_v63, %v13200_v47  ;;  %v1662_v16 = vrot.slane %v1153_v0, %v13200_v47 }
 0x1d0   :  { %v13408_v17 = vmax.f32 %v881_v2, %v883_v10  ;;  %v884_v18 = vmax.f32 %v13401_v6, 0.0  ;;  %v886_v31 = vmax.f32 %v13404_v36, 0.0  ;;  %v13413_v32 = vadd.f32 %v620_v3, %v13190_v27  ;;  %7467 = vmatpush2.bf16.msra.mxu0 %v11929_v60 }
 0x1d1   :  { %v1647_v33 = vcombine.high %v1646_v11, %v1646_v11  ;;  %v1654_v34 = vrot.slane %v1154_v7, %v13200_v47  ;;  %v1663_v38 = vcombine.high %v1662_v16, %v1662_v16  ;;  %v1670_v39 = vrot.slane %v1155_v9, %v13200_v47 }
 0x1d2   :  { %v2721_v12 = vsel %vm2440_vm2, %v1646_v11, -inf  ;;  %v2749_v40 = vsel %vm2440_vm2, %v1662_v16, -inf  ;;  %v1156_v41 = vcombine.low %v13398_v1, %v13408_v17  ;;  %v1157_v42 = vcombine.high %v13398_v1, %v13408_v17 }
 0x1d3   :  { %v1655_v43 = vcombine.high %v1654_v34, %v1654_v34  ;;  %v1671_v44 = vcombine.high %v1670_v39, %v1670_v39  ;;  %v2722_v30 = vrot.slane %v2721_v12, 4  ;;  %v2728_v37 = vsel %vm2440_vm2, %v1647_v33, -inf }
 0x1d4   :  { %v2729_v57 = vrot.slane %v2728_v37, 4  ;;  %v2735_v35 = vsel %vm2440_vm2, %v1654_v34, -inf  ;;  %v2750_v62 = vrot.slane %v2749_v40, 4  ;;  %v2756_v8 = vsel %vm2440_vm2, %v1663_v38, -inf }
 0x1d5   :  { %v2723_v26 = vmax.f32 %v2721_v12, %v2722_v30  ;;  %v2736_v45 = vrot.slane %v2735_v35, 4  ;;  %v2742_v46 = vsel %vm2440_vm2, %v1655_v43, -inf  ;;  %v2757_v48 = vrot.slane %v2756_v8, 4 }
 0x1d6   :  { %v2730_v49 = vmax.f32 %v2728_v37, %v2729_v57  ;;  %v2743_v50 = vrot.slane %v2742_v46, 4  ;;  %v2751_v13 = vmax.f32 %v2749_v40, %v2750_v62  ;;  %v2763_v51 = vsel %vm2440_vm2, %v1670_v39, -inf  ;;  %v11934_v57 = vld [vmem:[#allocation7 + $0x3e4] ss:$16 sps:$4 sm:$0xff]  }
 0x1d7   :  { %v2724_v52 = vrot.slane %v2723_v26, 2  ;;  %v2737_v25 = vmax.f32 %v2735_v35, %v2736_v45  ;;  %v2758_v53 = vmax.f32 %v2756_v8, %v2757_v48  ;;  %v2764_v54 = vrot.slane %v2763_v51, 4  ;;  %v11937_v35 = vld [vmem:[#allocation7 + $0x184] ss:$16 sps:$4 sm:$0xff]   ;;  %v11935_v48 = vld [vmem:[#allocation7 + $0x180] ss:$16 sps:$4 sm:$0xff]   ;;  %7535 = vmatprep.subr.bf16.mxu1 %v11934_v57 }
 0x1d8   :  { %v2731_v29 = vrot.slane %v2730_v49, 2  ;;  %v2744_v55 = vmax.f32 %v2742_v46, %v2743_v50  ;;  %v2752_v56 = vrot.slane %v2751_v13, 2  ;;  %v2770_v5 = vsel %vm2440_vm2, %v1671_v44, -inf  ;;  %v11932_v46 = vld [vmem:[#allocation7 + $0x3e0] ss:$16 sps:$4 sm:$0xff]   ;;  %7468 = vmatprep.subr.bf16.mxu0 %v11937_v35 }
 0x1d9   :  { %v2725_v14 = vmax.f32 %v2723_v26, %v2724_v52  ;;  %v2738_v15 = vrot.slane %v2737_v25, 2  ;;  %v2759_v58 = vrot.slane %v2758_v53, 2  ;;  %v2765_v59 = vmax.f32 %v2763_v51, %v2764_v54  ;;  %7536 = vmatpush2.bf16.msra.mxu1 %v11932_v46  ;;  %7469 = vmatpush2.bf16.msra.mxu0 %v11935_v48 }
 0x1da   :  { %v2732_v61 = vmax.f32 %v2730_v49, %v2731_v29  ;;  %v2745_v63 = vrot.slane %v2744_v55, 2  ;;  %v2753_v0 = vmax.f32 %v2751_v13, %v2752_v56  ;;  %v2771_v3 = vrot.slane %v2770_v5, 4 }
 0x1db   :  { %v2726_v2 = vrot.slane %v2725_v14, 1  ;;  %v2739_v10 = vmax.f32 %v2737_v25, %v2738_v15  ;;  %v2760_v7 = vmax.f32 %v2758_v53, %v2759_v58  ;;  %v2766_v9 = vrot.slane %v2765_v59, 2 }
 0x1dc   :  { %v2733_v11 = vrot.slane %v2732_v61, 1  ;;  %v2746_v16 = vmax.f32 %v2744_v55, %v2745_v63  ;;  %v2754_v33 = vrot.slane %v2753_v0, 1  ;;  %v2772_v34 = vmax.f32 %v2770_v5, %v2771_v3 }
 0x1dd   :  { %v2727_v38 = vmax.f32 %v2725_v14, %v2726_v2  ;;  %v2740_v39 = vrot.slane %v2739_v10, 1  ;;  %v2761_v12 = vrot.slane %v2760_v7, 1  ;;  %v2767_v40 = vmax.f32 %v2765_v59, %v2766_v9 }
 0x1de   :  { %v2734_v43 = vmax.f32 %v2732_v61, %v2733_v11  ;;  %v2747_v44 = vrot.slane %v2746_v16, 1  ;;  %v2755_v30 = vmax.f32 %v2753_v0, %v2754_v33  ;;  %v2773_v37 = vrot.slane %v2772_v34, 2 }
 0x1df   :  { %v2741_v62 = vmax.f32 %v2739_v10, %v2740_v39  ;;  %v2762_v8 = vmax.f32 %v2760_v7, %v2761_v12  ;;  %v2768_v26 = vrot.slane %v2767_v40, 1  ;;  %v1164_v45 = vrot.slane %v1156_v41, %v13200_v47 }
 0x1e0   :  { %v2748_v49 = vmax.f32 %v2746_v16, %v2747_v44  ;;  %v2774_v50 = vmax.f32 %v2772_v34, %v2773_v37  ;;  %v11652_v13 = vpack.c.bf16 %v2734_v43, %v2727_v38  ;;  %v1171_v51 = vrot.slane %v1157_v42, %v13200_v47 }
 0x1e1   :  { %v2769_v52 = vmax.f32 %v2767_v40, %v2768_v26  ;;  %v11654_v25 = vpack.c.bf16 %v2762_v8, %v2755_v30  ;;  %v1172_v53 = vcombine.high %v1164_v45, %v1164_v45  ;;  %v1678_v54 = vrot.slane %v1164_v45, %v13200_v47 }
 0x1e2   :  { %v2775_v29 = vrot.slane %v2774_v50, 1  ;;  %v11653_v55 = vpack.c.bf16 %v2748_v49, %v2741_v62  ;;  %v4497_v41 = vunpack.c.l.b16 %v11652_v13  ;;  %v4498_v56 = vunpack.c.h.b16 %v11652_v13 }
 0x1e3   :  { %v4501_v5 = vunpack.c.l.b16 %v11654_v25  ;;  %v4502_v4 = vunpack.c.h.b16 %v11654_v25  ;;  %v1173_v14 = vcombine.high %v1171_v51, %v1171_v51  ;;  %v1679_v15 = vcombine.high %v1678_v54, %v1678_v54 }
 0x1e4   :  { %v2776_v58 = vmax.f32 %v2774_v50, %v2775_v29  ;;  %v4499_v1 = vunpack.c.l.b16 %v11653_v55  ;;  %v4500_v17 = vunpack.c.h.b16 %v11653_v55  ;;  %v1686_v42 = vrot.slane %v1172_v53, %v13200_v47 }
 0x1e5   :  { %v1694_v59 = vrot.slane %v1171_v51, %v13200_v47  ;;  %v1702_v60 = vrot.slane %v1173_v14, %v13200_v47  ;;  %v2777_v61 = vsel %vm2440_vm2, %v1678_v54, -inf  ;;  %v2784_v63 = vsel %vm2440_vm2, %v1679_v15, -inf  ;;  %v773_v14 = vpop.f32.mrf.mxu1 }
 0x1e6   :  { %v11655_v0 = vpack.c.bf16 %v2776_v58, %v2769_v52  ;;  %v4690_v3 = vsel %vm4649_vm3, %v4499_v1, %v4497_v41  ;;  %v4693_v2 = vsel %vm4649_vm3, %v4500_v17, %v4498_v56  ;;  %v1687_v10 = vcombine.high %v1686_v42, %v1686_v42 }
 0x1e7   :  { %v4691_v7 = vsel %vm4651_vm4, %v4501_v5, %v4690_v3  ;;  %v4694_v9 = vsel %vm4651_vm4, %v4502_v4, %v4693_v2  ;;  %v1695_v11 = vcombine.high %v1694_v59, %v1694_v59  ;;  %v1703_v16 = vcombine.high %v1702_v60, %v1702_v60 }
 0x1e8   :  { %v4503_v33 = vunpack.c.l.b16 %v11655_v0  ;;  %v4504_v34 = vunpack.c.h.b16 %v11655_v0  ;;  %v2778_v38 = vrot.slane %v2777_v61, 4  ;;  %v2785_v39 = vrot.slane %v2784_v63, 4 }
 0x1e9   :  { %v2791_v12 = vsel %vm2440_vm2, %v1686_v42, -inf  ;;  %v2798_v40 = vsel %vm2440_vm2, %v1687_v10, -inf  ;;  %v2805_v43 = vsel %vm2440_vm2, %v1694_v59, -inf  ;;  %v2812_v44 = vsel %vm2440_vm2, %v1695_v11, -inf  ;;  %v624_v42 = vpop.f32.mrf.mxu0 }
 0x1ea   :  { %v4692_v30 = vsel %vm4653_vm5, %v4503_v33, %v4691_v7  ;;  %v4695_v37 = vsel %vm4653_vm5, %v4504_v34, %v4694_v9  ;;  %v2779_v57 = vmax.f32 %v2777_v61, %v2778_v38  ;;  %v2786_v35 = vmax.f32 %v2784_v63, %v2785_v39  ;;  %v777_v33 = vpop.f32.mrf.mxu1 }
 0x1eb   :  { %v4819_v62 = vpack.c.b16 %v4695_v37, %v4692_v30  ;;  %v2792_v8 = vrot.slane %v2791_v12, 4  ;;  %v2799_v26 = vrot.slane %v2798_v40, 4  ;;  %v2806_v45 = vrot.slane %v2805_v43, 4 }
 0x1ec   :  { %v2780_v46 = vrot.slane %v2779_v57, 2  ;;  %v2787_v48 = vrot.slane %v2786_v35, 2  ;;  %v2813_v49 = vrot.slane %v2812_v44, 4  ;;  %v2819_v50 = vsel %vm2440_vm2, %v1702_v60, -inf }
 0x1ed   :  { %4851 = vst [vmem:[#allocation2 + $0x18] sm:$0x33] %v4819_v62  ;;  %v2793_v13 = vmax.f32 %v2791_v12, %v2792_v8  ;;  %v2800_v51 = vmax.f32 %v2798_v40, %v2799_v26  ;;  %v2807_v52 = vmax.f32 %v2805_v43, %v2806_v45  ;;  %v2820_v25 = vrot.slane %v2819_v50, 4  ;;  %v626_v40 = vpop.f32.mrf.mxu0 }
 0x1ee   :  { %v2781_v53 = vmax.f32 %v2779_v57, %v2780_v46  ;;  %v2788_v54 = vmax.f32 %v2786_v35, %v2787_v48  ;;  %v2814_v29 = vmax.f32 %v2812_v44, %v2813_v49  ;;  %v2826_v55 = vsel %vm2440_vm2, %v1703_v16, -inf  ;;  %v779_v49 = vpop.f32.mrf.mxu1 }
 0x1ef   :  { %v2794_v41 = vrot.slane %v2793_v13, 2  ;;  %v2801_v56 = vrot.slane %v2800_v51, 2  ;;  %v2808_v5 = vrot.slane %v2807_v52, 2  ;;  %v2821_v4 = vmax.f32 %v2819_v50, %v2820_v25 }
 0x1f0   :  { %v2782_v15 = vrot.slane %v2781_v53, 1  ;;  %v2789_v58 = vrot.slane %v2788_v54, 1  ;;  %v2815_v1 = vrot.slane %v2814_v29, 2  ;;  %v2827_v17 = vrot.slane %v2826_v55, 4 }
 0x1f1   :  { %v2795_v59 = vmax.f32 %v2793_v13, %v2794_v41  ;;  %v2802_v60 = vmax.f32 %v2800_v51, %v2801_v56  ;;  %v2809_v61 = vmax.f32 %v2807_v52, %v2808_v5  ;;  %v2822_v63 = vrot.slane %v2821_v4, 2 }
 0x1f2   :  { %v2783_v0 = vmax.f32 %v2781_v53, %v2782_v15  ;;  %v2790_v3 = vmax.f32 %v2788_v54, %v2789_v58  ;;  %v2816_v2 = vmax.f32 %v2814_v29, %v2815_v1  ;;  %v2828_v10 = vmax.f32 %v2826_v55, %v2827_v17 }
 0x1f3   :  { %v2796_v7 = vrot.slane %v2795_v59, 1  ;;  %v2803_v9 = vrot.slane %v2802_v60, 1  ;;  %v2810_v11 = vrot.slane %v2809_v61, 1  ;;  %v2823_v16 = vmax.f32 %v2821_v4, %v2822_v63  ;;  %v781_v4 = vpop.f32.mrf.mxu1 }
 0x1f4   :  { %v2817_v34 = vrot.slane %v2816_v2, 1  ;;  %v2829_v38 = vrot.slane %v2828_v10, 2  ;;  %v11656_v39 = vpack.c.bf16 %v2790_v3, %v2783_v0  ;;  %v966_v12 = vmax.f32 %v884_v18, %v886_v31  ;;  %v628_v31 = vpop.f32.mrf.mxu0 }
 0x1f5   :  { %v2797_v43 = vmax.f32 %v2795_v59, %v2796_v7  ;;  %v2804_v44 = vmax.f32 %v2802_v60, %v2803_v9  ;;  %v2811_v30 = vmax.f32 %v2809_v61, %v2810_v11  ;;  %v2824_v37 = vrot.slane %v2823_v16, 1 }
 0x1f6   :  { %v2818_v57 = vmax.f32 %v2816_v2, %v2817_v34  ;;  %v2830_v35 = vmax.f32 %v2828_v10, %v2829_v38  ;;  %v4505_v62 = vunpack.c.l.b16 %v11656_v39  ;;  %v4506_v8 = vunpack.c.h.b16 %v11656_v39  ;;  %v630_v17 = vpop.f32.mrf.mxu0 }
 0x1f7   :  { %v2825_v26 = vmax.f32 %v2823_v16, %v2824_v37  ;;  %v11657_v45 = vpack.c.bf16 %v2804_v44, %v2797_v43  ;;  %v885_v46 = vmax.f32 %v13413_v32, 0.0  ;;  %v774_v48 = vadd.f32 %v773_v14, %v13193_v28  ;;  %v783_v16 = vpop.f32.mrf.mxu1 }
 0x1f8   :  { %v2831_v36 = vrot.slane %v2830_v35, 1  ;;  %v11658_v50 = vpack.c.bf16 %v2818_v57, %v2811_v30  ;;  %v625_v6 = vadd.f32 %v624_v42, %v13184_v23  ;;  %v778_v18 = vadd.f32 %v777_v33, %v13187_v24 }
 0x1f9   :  { %v4507_v13 = vunpack.c.l.b16 %v11657_v45  ;;  %v4508_v51 = vunpack.c.h.b16 %v11657_v45  ;;  %v887_v52 = vmax.f32 %v774_v48, 0.0  ;;  %v627_v25 = vadd.f32 %v626_v40, %v13190_v27 }
 0x1fa   :  { %v2832_v53 = vmax.f32 %v2830_v35, %v2831_v36  ;;  %v4509_v54 = vunpack.c.l.b16 %v11658_v50  ;;  %v4510_v29 = vunpack.c.h.b16 %v11658_v50  ;;  %v888_v55 = vmax.f32 %v625_v6, 0.0  ;;  %v11941_v36 = vld [vmem:[#allocation7 + $0x3c0] ss:$16 sps:$4 sm:$0xff]  }
 0x1fb   :  { %v4696_v32 = vsel %vm4649_vm3, %v4507_v13, %v4505_v62  ;;  %v4703_v41 = vsel %vm4649_vm3, %v4508_v51, %v4506_v8  ;;  %v967_v56 = vmax.f32 %v885_v46, %v887_v52  ;;  %v890_v5 = vmax.f32 %v778_v18, 0.0  ;;  %v11940_v62 = vld [vmem:[#allocation7 + $0x164] ss:$16 sps:$4 sm:$0xff]  }
 0x1fc   :  { %v11659_v14 = vpack.c.bf16 %v2832_v53, %v2825_v26  ;;  %v4697_v15 = vsel %vm4651_vm4, %v4509_v54, %v4696_v32  ;;  %v4704_v58 = vsel %vm4651_vm4, %v4510_v29, %v4703_v41  ;;  %v889_v1 = vmax.f32 %v627_v25, 0.0  ;;  %v11943_v8 = vld [vmem:[#allocation7 + $0x3c4] ss:$16 sps:$4 sm:$0xff]   ;;  %7470 = vmatprep.subr.bf16.mxu0 %v11940_v62 }
 0x1fd   :  { %v1174_v42 = vcombine.low %v966_v12, %v967_v56  ;;  %v1175_v59 = vcombine.high %v966_v12, %v967_v56  ;;  %v13465_v60 = vmax.f32 %v888_v55, %v890_v5  ;;  %v780_v61 = vadd.f32 %v779_v49, %v13193_v28  ;;  %v11938_v49 = vld [vmem:[#allocation7 + $0x160] ss:$16 sps:$4 sm:$0xff]   ;;  %7537 = vmatprep.subr.bf16.mxu1 %v11943_v8 }
 0x1fe   :  { %v4511_v63 = vunpack.c.l.b16 %v11659_v14  ;;  %v4512_v0 = vunpack.c.h.b16 %v11659_v14  ;;  %v629_v3 = vadd.f32 %v628_v31, %v13184_v23  ;;  %v782_v2 = vadd.f32 %v781_v4, %v13187_v24  ;;  %7471 = vmatpush2.bf16.msra.mxu0 %v11938_v49  ;;  %7538 = vmatpush2.bf16.msra.mxu1 %v11941_v36 }
 0x1ff   :  { %v1182_v10 = vrot.slane %v1174_v42, %v13200_v47  ;;  %v1189_v7 = vrot.slane %v1175_v59, %v13200_v47  ;;  %v891_v9 = vmax.f32 %v780_v61, 0.0  ;;  %v13473_v11 = vadd.f32 %v630_v17, %v13190_v27 }
 0x200   :  { %v13476_v33 = vsel %vm4653_vm5, %v4511_v63, %v4697_v15  ;;  %v13479_v34 = vsel %vm4653_vm5, %v4512_v0, %v4704_v58  ;;  %v892_v38 = vmax.f32 %v629_v3, 0.0  ;;  %v894_v39 = vmax.f32 %v782_v2, 0.0 }
 0x201   :  { %v1190_v12 = vcombine.high %v1182_v10, %v1182_v10  ;;  %v1191_v40 = vcombine.high %v1189_v7, %v1189_v7  ;;  %v1710_v43 = vrot.slane %v1182_v10, %v13200_v47  ;;  %v1726_v44 = vrot.slane %v1189_v7, %v13200_v47 }
 0x202   :  { %v13483_v30 = vmax.f32 %v889_v1, %v891_v9  ;;  %v13485_v37 = vmax.f32 %v892_v38, %v894_v39  ;;  %v893_v57 = vmax.f32 %v13473_v11, 0.0  ;;  %v13489_v35 = vadd.f32 %v783_v16, %v13193_v28 }
 0x203   :  { %v1711_v26 = vcombine.high %v1710_v43, %v1710_v43  ;;  %v1718_v45 = vrot.slane %v1190_v12, %v13200_v47  ;;  %v1727_v46 = vcombine.high %v1726_v44, %v1726_v44  ;;  %v1734_v48 = vrot.slane %v1191_v40, %v13200_v47  ;;  %v11946_v40 = vld [vmem:[#allocation7 + $0x144] ss:$16 sps:$4 sm:$0xff]  }
 0x204   :  { %v2833_v50 = vsel %vm2440_vm2, %v1710_v43, -inf  ;;  %v2861_v6 = vsel %vm2440_vm2, %v1726_v44, -inf  ;;  %v1192_v18 = vcombine.low %v13465_v60, %v13483_v30  ;;  %v1193_v31 = vcombine.high %v13465_v60, %v13483_v30  ;;  %v11949_v43 = vld [vmem:[#allocation7 + $0x3a4] ss:$16 sps:$4 sm:$0xff]   ;;  %7472 = vmatprep.subr.bf16.mxu0 %v11946_v40 }
 0x205   :  { %v1719_v13 = vcombine.high %v1718_v45, %v1718_v45  ;;  %v1735_v51 = vcombine.high %v1734_v48, %v1734_v48  ;;  %v2834_v52 = vrot.slane %v2833_v50, 4  ;;  %v2840_v25 = vsel %vm2440_vm2, %v1711_v26, -inf  ;;  %7539 = vmatprep.subr.bf16.mxu1 %v11949_v43 }
 0x206   :  { %v2841_v53 = vrot.slane %v2840_v25, 4  ;;  %v2847_v54 = vsel %vm2440_vm2, %v1718_v45, -inf  ;;  %v2862_v29 = vrot.slane %v2861_v6, 4  ;;  %v2868_v55 = vsel %vm2440_vm2, %v1727_v46, -inf  ;;  %v11944_v45 = vld [vmem:[#allocation7 + $0x140] ss:$16 sps:$4 sm:$0xff]  }
 0x207   :  { %v2835_v32 = vmax.f32 %v2833_v50, %v2834_v52  ;;  %v2848_v41 = vrot.slane %v2847_v54, 4  ;;  %v2854_v56 = vsel %vm2440_vm2, %v1719_v13, -inf  ;;  %v2869_v5 = vrot.slane %v2868_v55, 4  ;;  %v11947_v46 = vld [vmem:[#allocation7 + $0x3a0] ss:$16 sps:$4 sm:$0xff]   ;;  %7473 = vmatpush2.bf16.msra.mxu0 %v11944_v45 }
 0x208   :  { %v2842_v4 = vmax.f32 %v2840_v25, %v2841_v53  ;;  %v2855_v14 = vrot.slane %v2854_v56, 4  ;;  %v2863_v15 = vmax.f32 %v2861_v6, %v2862_v29  ;;  %v2875_v58 = vsel %vm2440_vm2, %v1734_v48, -inf  ;;  %7540 = vmatpush2.bf16.msra.mxu1 %v11947_v46 }
 0x209   :  { %v2836_v1 = vrot.slane %v2835_v32, 2  ;;  %v2849_v17 = vmax.f32 %v2847_v54, %v2848_v41  ;;  %v2870_v42 = vmax.f32 %v2868_v55, %v2869_v5  ;;  %v2876_v59 = vrot.slane %v2875_v58, 4 }
 0x20a   :  { %v2843_v61 = vrot.slane %v2842_v4, 2  ;;  %v2856_v63 = vmax.f32 %v2854_v56, %v2855_v14  ;;  %v2864_v0 = vrot.slane %v2863_v15, 2  ;;  %v2882_v3 = vsel %vm2440_vm2, %v1735_v51, -inf }
 0x20b   :  { %v2837_v2 = vmax.f32 %v2835_v32, %v2836_v1  ;;  %v2850_v10 = vrot.slane %v2849_v17, 2  ;;  %v2871_v7 = vrot.slane %v2870_v42, 2  ;;  %v2877_v9 = vmax.f32 %v2875_v58, %v2876_v59 }
 0x20c   :  { %v2844_v16 = vmax.f32 %v2842_v4, %v2843_v61  ;;  %v2857_v38 = vrot.slane %v2856_v63, 2  ;;  %v2865_v39 = vmax.f32 %v2863_v15, %v2864_v0  ;;  %v2883_v12 = vrot.slane %v2882_v3, 4 }
 0x20d   :  { %v2838_v44 = vrot.slane %v2837_v2, 1  ;;  %v2851_v62 = vmax.f32 %v2849_v17, %v2850_v10  ;;  %v2872_v8 = vmax.f32 %v2870_v42, %v2871_v7  ;;  %v2878_v26 = vrot.slane %v2877_v9, 2 }
 0x20e   :  { %v2845_v48 = vrot.slane %v2844_v16, 1  ;;  %v2858_v49 = vmax.f32 %v2856_v63, %v2857_v38  ;;  %v2866_v36 = vrot.slane %v2865_v39, 1  ;;  %v2884_v50 = vmax.f32 %v2882_v3, %v2883_v12 }
 0x20f   :  { %v2839_v6 = vmax.f32 %v2837_v2, %v2838_v44  ;;  %v2852_v13 = vrot.slane %v2851_v62, 1  ;;  %v2873_v51 = vrot.slane %v2872_v8, 1  ;;  %v2879_v52 = vmax.f32 %v2877_v9, %v2878_v26 }
 0x210   :  { %v2846_v25 = vmax.f32 %v2844_v16, %v2845_v48  ;;  %v2859_v53 = vrot.slane %v2858_v49, 1  ;;  %v2867_v54 = vmax.f32 %v2865_v39, %v2866_v36  ;;  %v2885_v29 = vrot.slane %v2884_v50, 2 }
 0x211   :  { %v2853_v55 = vmax.f32 %v2851_v62, %v2852_v13  ;;  %v2874_v32 = vmax.f32 %v2872_v8, %v2873_v51  ;;  %v2880_v41 = vrot.slane %v2879_v52, 1  ;;  %v1200_v56 = vrot.slane %v1192_v18, %v13200_v47 }
 0x212   :  { %v2860_v5 = vmax.f32 %v2858_v49, %v2859_v53  ;;  %v2886_v4 = vmax.f32 %v2884_v50, %v2885_v29  ;;  %v11660_v14 = vpack.c.bf16 %v2846_v25, %v2839_v6  ;;  %v1207_v15 = vrot.slane %v1193_v31, %v13200_v47 }
 0x213   :  { %v2881_v58 = vmax.f32 %v2879_v52, %v2880_v41  ;;  %v11662_v1 = vpack.c.bf16 %v2874_v32, %v2867_v54  ;;  %v1208_v17 = vcombine.high %v1200_v56, %v1200_v56  ;;  %v1742_v42 = vrot.slane %v1200_v56, %v13200_v47 }
 0x214   :  { %v2887_v59 = vrot.slane %v2886_v4, 1  ;;  %v11661_v61 = vpack.c.bf16 %v2860_v5, %v2853_v55  ;;  %v4513_v63 = vunpack.c.l.b16 %v11660_v14  ;;  %v4514_v0 = vunpack.c.h.b16 %v11660_v14 }
 0x215   :  { %v4517_v3 = vunpack.c.l.b16 %v11662_v1  ;;  %v4518_v2 = vunpack.c.h.b16 %v11662_v1  ;;  %v1209_v18 = vcombine.high %v1207_v15, %v1207_v15  ;;  %v1743_v10 = vcombine.high %v1742_v42, %v1742_v42 }
 0x216   :  { %v2888_v7 = vmax.f32 %v2886_v4, %v2887_v59  ;;  %v4515_v9 = vunpack.c.l.b16 %v11661_v61  ;;  %v4516_v16 = vunpack.c.h.b16 %v11661_v61  ;;  %v4699_v60 = vsel %vm4655_vm6, %v4513_v63, %v13476_v33 }
 0x217   :  { %v4706_v30 = vsel %vm4655_vm6, %v4514_v0, %v13479_v34  ;;  %v1750_v31 = vrot.slane %v1208_v17, %v13200_v47  ;;  %v1758_v38 = vrot.slane %v1207_v15, %v13200_v47  ;;  %v1766_v39 = vrot.slane %v1209_v18, %v13200_v47 }
 0x218   :  { %v11663_v12 = vpack.c.bf16 %v2888_v7, %v2881_v58  ;;  %v4700_v40 = vsel %vm4657_vm7, %v4515_v9, %v4699_v60  ;;  %v4707_v43 = vsel %vm4657_vm7, %v4516_v16, %v4706_v30  ;;  %v2889_v44 = vsel %vm2440_vm2, %v1742_v42, -inf }
 0x219   :  { %v4701_v62 = vsel %vm4659_vm8, %v4517_v3, %v4700_v40  ;;  %v4708_v33 = vsel %vm4659_vm8, %v4518_v2, %v4707_v43  ;;  %v1751_v8 = vcombine.high %v1750_v31, %v1750_v31  ;;  %v1759_v26 = vcombine.high %v1758_v38, %v1758_v38 }
 0x21a   :  { %v4519_v34 = vunpack.c.l.b16 %v11663_v12  ;;  %v4520_v45 = vunpack.c.h.b16 %v11663_v12  ;;  %v1767_v46 = vcombine.high %v1766_v39, %v1766_v39  ;;  %v2890_v48 = vrot.slane %v2889_v44, 4 }
 0x21b   :  { %v2896_v49 = vsel %vm2440_vm2, %v1743_v10, -inf  ;;  %v2903_v36 = vsel %vm2440_vm2, %v1750_v31, -inf  ;;  %v2910_v50 = vsel %vm2440_vm2, %v1751_v8, -inf  ;;  %v2917_v6 = vsel %vm2440_vm2, %v1758_v38, -inf }
 0x21c   :  { %v4702_v13 = vsel %vm4661_vm9, %v4519_v34, %v4701_v62  ;;  %v4709_v51 = vsel %vm4661_vm9, %v4520_v45, %v4708_v33  ;;  %v2891_v52 = vmax.f32 %v2889_v44, %v2890_v48  ;;  %v2897_v25 = vrot.slane %v2896_v49, 4  ;;  %v634_v45 = vpop.f32.mrf.mxu0  ;;  %v11952_v48 = vld [vmem:[#allocation7 + $0x124] ss:$16 sps:$4 sm:$0xff]  }
 0x21d   :  { %v4820_v53 = vpack.c.b16 %v4709_v51, %v4702_v13  ;;  %v2904_v54 = vrot.slane %v2903_v36, 4  ;;  %v2911_v29 = vrot.slane %v2910_v50, 4  ;;  %v2918_v55 = vrot.slane %v2917_v6, 4  ;;  %v11950_v51 = vld [vmem:[#allocation7 + $0x120] ss:$16 sps:$4 sm:$0xff]   ;;  %7474 = vmatprep.subr.bf16.mxu0 %v11952_v48 }
 0x21e   :  { %v2892_v32 = vrot.slane %v2891_v52, 2  ;;  %v2898_v41 = vmax.f32 %v2896_v49, %v2897_v25  ;;  %v2924_v56 = vsel %vm2440_vm2, %v1759_v26, -inf  ;;  %v2931_v5 = vsel %vm2440_vm2, %v1766_v39, -inf  ;;  %v11955_v49 = vld [vmem:[#allocation7 + $0x384] ss:$16 sps:$4 sm:$0xff]   ;;  %7475 = vmatpush2.bf16.msra.mxu0 %v11950_v51 }
 0x21f   :  { %4852 = vst [vmem:[#allocation2 + $0x50] sm:$0xff] %v4820_v53  ;;  %v2905_v4 = vmax.f32 %v2903_v36, %v2904_v54  ;;  %v2912_v14 = vmax.f32 %v2910_v50, %v2911_v29  ;;  %v2919_v15 = vmax.f32 %v2917_v6, %v2918_v55  ;;  %v2925_v58 = vrot.slane %v2924_v56, 4  ;;  %7541 = vmatprep.subr.bf16.mxu1 %v11955_v49 }
 0x220   :  { %v2893_v1 = vmax.f32 %v2891_v52, %v2892_v32  ;;  %v2899_v17 = vrot.slane %v2898_v41, 2  ;;  %v2932_v42 = vrot.slane %v2931_v5, 4  ;;  %v2938_v59 = vsel %vm2440_vm2, %v1767_v46, -inf  ;;  %v787_v46 = vpop.f32.mrf.mxu1  ;;  %v11953_v52 = vld [vmem:[#allocation7 + $0x380] ss:$16 sps:$4 sm:$0xff]  }
 0x221   :  { %v2906_v61 = vrot.slane %v2905_v4, 2  ;;  %v2913_v63 = vrot.slane %v2912_v14, 2  ;;  %v2920_v0 = vrot.slane %v2919_v15, 2  ;;  %v2926_v3 = vmax.f32 %v2924_v56, %v2925_v58  ;;  %7542 = vmatpush2.bf16.msra.mxu1 %v11953_v52 }
 0x222   :  { %v2894_v2 = vrot.slane %v2893_v1, 1  ;;  %v2900_v18 = vmax.f32 %v2898_v41, %v2899_v17  ;;  %v2933_v10 = vmax.f32 %v2931_v5, %v2932_v42  ;;  %v2939_v7 = vrot.slane %v2938_v59, 4 }
 0x223   :  { %v2907_v9 = vmax.f32 %v2905_v4, %v2906_v61  ;;  %v2914_v16 = vmax.f32 %v2912_v14, %v2913_v63  ;;  %v2921_v60 = vmax.f32 %v2919_v15, %v2920_v0  ;;  %v2927_v30 = vrot.slane %v2926_v3, 2  ;;  %v636_v61 = vpop.f32.mrf.mxu0  ;;  %v789_v63 = vpop.f32.mrf.mxu1 }
 0x224   :  { %v2895_v31 = vmax.f32 %v2893_v1, %v2894_v2  ;;  %v2901_v38 = vrot.slane %v2900_v18, 1  ;;  %v2934_v39 = vrot.slane %v2933_v10, 2  ;;  %v2940_v12 = vmax.f32 %v2938_v59, %v2939_v7 }
 0x225   :  { %v2908_v40 = vrot.slane %v2907_v9, 1  ;;  %v2915_v43 = vrot.slane %v2914_v16, 1  ;;  %v2922_v44 = vrot.slane %v2921_v60, 1  ;;  %v2928_v62 = vmax.f32 %v2926_v3, %v2927_v30 }
 0x226   :  { %v2902_v33 = vmax.f32 %v2900_v18, %v2901_v38  ;;  %v2935_v8 = vmax.f32 %v2933_v10, %v2934_v39  ;;  %v2941_v26 = vrot.slane %v2940_v12, 2  ;;  %v895_v34 = vmax.f32 %v13489_v35, 0.0 }
 0x227   :  { %v2909_v36 = vmax.f32 %v2907_v9, %v2908_v40  ;;  %v2916_v50 = vmax.f32 %v2914_v16, %v2915_v43  ;;  %v2923_v6 = vmax.f32 %v2921_v60, %v2922_v44  ;;  %v2929_v13 = vrot.slane %v2928_v62, 1 }
 0x228   :  { %v2936_v25 = vrot.slane %v2935_v8, 1  ;;  %v2942_v53 = vmax.f32 %v2940_v12, %v2941_v26  ;;  %v11664_v54 = vpack.c.bf16 %v2902_v33, %v2895_v31  ;;  %v971_v29 = vmax.f32 %v893_v57, %v895_v34 }
 0x229   :  { %v2930_v55 = vmax.f32 %v2928_v62, %v2929_v13  ;;  %v11665_v35 = vpack.c.bf16 %v2916_v50, %v2909_v36  ;;  %v635_v32 = vadd.f32 %v634_v45, %v13184_v23  ;;  %v788_v41 = vadd.f32 %v787_v46, %v13187_v24 }
 0x22a   :  { %v2937_v56 = vmax.f32 %v2935_v8, %v2936_v25  ;;  %v2943_v5 = vrot.slane %v2942_v53, 1  ;;  %v4521_v4 = vunpack.c.l.b16 %v11664_v54  ;;  %v4522_v14 = vunpack.c.h.b16 %v11664_v54 }
 0x22b   :  { %v11666_v15 = vpack.c.bf16 %v2930_v55, %v2923_v6  ;;  %v4523_v58 = vunpack.c.l.b16 %v11665_v35  ;;  %v4524_v1 = vunpack.c.h.b16 %v11665_v35  ;;  %v1210_v11 = vcombine.low %v13485_v37, %v971_v29 }
 0x22c   :  { %v2944_v57 = vmax.f32 %v2942_v53, %v2943_v5  ;;  %v1211_v17 = vcombine.high %v13485_v37, %v971_v29  ;;  %v896_v42 = vmax.f32 %v635_v32, 0.0  ;;  %v898_v59 = vmax.f32 %v788_v41, 0.0 }
 0x22d   :  { %v4525_v0 = vunpack.c.l.b16 %v11666_v15  ;;  %v4526_v3 = vunpack.c.h.b16 %v11666_v15  ;;  %v4710_v2 = vsel %vm4649_vm3, %v4523_v58, %v4521_v4  ;;  %v4713_v18 = vsel %vm4649_vm3, %v4524_v1, %v4522_v14 }
 0x22e   :  { %v11667_v10 = vpack.c.bf16 %v2944_v57, %v2937_v56  ;;  %v1218_v7 = vrot.slane %v1210_v11, %v13200_v47  ;;  %v1225_v9 = vrot.slane %v1211_v17, %v13200_v47  ;;  %v13546_v16 = vmax.f32 %v896_v42, %v898_v59 }
 0x22f   :  { %v4711_v60 = vsel %vm4651_vm4, %v4525_v0, %v4710_v2  ;;  %v4714_v37 = vsel %vm4651_vm4, %v4526_v3, %v4713_v18  ;;  %v13551_v30 = vadd.f32 %v636_v61, %v13190_v27  ;;  %v13554_v31 = vadd.f32 %v789_v63, %v13193_v28 }
 0x230   :  { %v4527_v38 = vunpack.c.l.b16 %v11667_v10  ;;  %v4528_v39 = vunpack.c.h.b16 %v11667_v10  ;;  %v1226_v12 = vcombine.high %v1218_v7, %v1218_v7  ;;  %v1227_v40 = vcombine.high %v1225_v9, %v1225_v9 }
 0x231   :  { %v1774_v43 = vrot.slane %v1218_v7, %v13200_v47  ;;  %v1790_v44 = vrot.slane %v1225_v9, %v13200_v47  ;;  %v897_v62 = vmax.f32 %v13551_v30, 0.0  ;;  %v899_v33 = vmax.f32 %v13554_v31, 0.0 }
 0x232   :  { %v4712_v8 = vsel %vm4653_vm5, %v4527_v38, %v4711_v60  ;;  %v4715_v26 = vsel %vm4653_vm5, %v4528_v39, %v4714_v37  ;;  %v1782_v34 = vrot.slane %v1226_v12, %v13200_v47  ;;  %v1798_v45 = vrot.slane %v1227_v40, %v13200_v47 }
 0x233   :  { %v4821_v46 = vpack.c.b16 %v4715_v26, %v4712_v8  ;;  %v1775_v48 = vcombine.high %v1774_v43, %v1774_v43  ;;  %v1791_v49 = vcombine.high %v1790_v44, %v1790_v44  ;;  %v2945_v36 = vsel %vm2440_vm2, %v1774_v43, -inf }
 0x234   :  { %v1783_v50 = vcombine.high %v1782_v34, %v1782_v34  ;;  %v1799_v6 = vcombine.high %v1798_v45, %v1798_v45  ;;  %v2946_v13 = vrot.slane %v2945_v36, 4  ;;  %v2959_v51 = vsel %vm2440_vm2, %v1782_v34, -inf  ;;  %v638_v34 = vpop.f32.mrf.mxu0 }
 0x235   :  { %4853 = vst [vmem:[#allocation2 + $0x68] sm:$0x33] %v4821_v46  ;;  %v2952_v52 = vsel %vm2440_vm2, %v1775_v48, -inf  ;;  %v2960_v25 = vrot.slane %v2959_v51, 4  ;;  %v2973_v53 = vsel %vm2440_vm2, %v1790_v44, -inf  ;;  %v2980_v54 = vsel %vm2440_vm2, %v1791_v49, -inf }
 0x236   :  { %v2947_v29 = vmax.f32 %v2945_v36, %v2946_v13  ;;  %v2953_v55 = vrot.slane %v2952_v52, 4  ;;  %v2966_v35 = vsel %vm2440_vm2, %v1783_v50, -inf  ;;  %v2974_v32 = vrot.slane %v2973_v53, 4  ;;  %v11958_v36 = vld [vmem:[#allocation7 + $0x104] ss:$16 sps:$4 sm:$0xff]  }
 0x237   :  { %v2961_v41 = vmax.f32 %v2959_v51, %v2960_v25  ;;  %v2967_v56 = vrot.slane %v2966_v35, 4  ;;  %v2981_v5 = vrot.slane %v2980_v54, 4  ;;  %v2987_v4 = vsel %vm2440_vm2, %v1798_v45, -inf  ;;  %v11959_v25 = vld [vmem:[#allocation7 + $0x360] ss:$16 sps:$4 sm:$0xff]   ;;  %7476 = vmatprep.subr.bf16.mxu0 %v11958_v36 }
 0x238   :  { %v2948_v14 = vrot.slane %v2947_v29, 2  ;;  %v2954_v15 = vmax.f32 %v2952_v52, %v2953_v55  ;;  %v2975_v58 = vmax.f32 %v2973_v53, %v2974_v32  ;;  %v2988_v1 = vrot.slane %v2987_v4, 4  ;;  %v11956_v52 = vld [vmem:[#allocation7 + $0x100] ss:$16 sps:$4 sm:$0xff]  }
 0x239   :  { %v2962_v11 = vrot.slane %v2961_v41, 2  ;;  %v2968_v57 = vmax.f32 %v2966_v35, %v2967_v56  ;;  %v2982_v17 = vmax.f32 %v2980_v54, %v2981_v5  ;;  %v2994_v42 = vsel %vm2440_vm2, %v1799_v6, -inf  ;;  %v11961_v35 = vld [vmem:[#allocation7 + $0x364] ss:$16 sps:$4 sm:$0xff]   ;;  %7477 = vmatpush2.bf16.msra.mxu0 %v11956_v52  ;;  %v791_v52 = vpop.f32.mrf.mxu1 }
 0x23a   :  { %v2949_v59 = vmax.f32 %v2947_v29, %v2948_v14  ;;  %v2955_v61 = vrot.slane %v2954_v15, 2  ;;  %v2976_v63 = vrot.slane %v2975_v58, 2  ;;  %v2989_v0 = vmax.f32 %v2987_v4, %v2988_v1  ;;  %7543 = vmatprep.subr.bf16.mxu1 %v11961_v35 }
 0x23b   :  { %v2963_v3 = vmax.f32 %v2961_v41, %v2962_v11  ;;  %v2969_v2 = vrot.slane %v2968_v57, 2  ;;  %v2983_v18 = vrot.slane %v2982_v17, 2  ;;  %v2995_v10 = vrot.slane %v2994_v42, 4  ;;  %7544 = vmatpush2.bf16.msra.mxu1 %v11959_v25 }
 0x23c   :  { %v2950_v7 = vrot.slane %v2949_v59, 1  ;;  %v2956_v9 = vmax.f32 %v2954_v15, %v2955_v61  ;;  %v2977_v60 = vmax.f32 %v2975_v58, %v2976_v63  ;;  %v2990_v37 = vrot.slane %v2989_v0, 2 }
 0x23d   :  { %v2964_v38 = vrot.slane %v2963_v3, 1  ;;  %v2970_v39 = vmax.f32 %v2968_v57, %v2969_v2  ;;  %v2984_v12 = vmax.f32 %v2982_v17, %v2983_v18  ;;  %v2996_v40 = vmax.f32 %v2994_v42, %v2995_v10 }
 0x23e   :  { %v2951_v43 = vmax.f32 %v2949_v59, %v2950_v7  ;;  %v2957_v44 = vrot.slane %v2956_v9, 1  ;;  %v2978_v8 = vrot.slane %v2977_v60, 1  ;;  %v2991_v26 = vmax.f32 %v2989_v0, %v2990_v37 }
 0x23f   :  { %v2965_v45 = vmax.f32 %v2963_v3, %v2964_v38  ;;  %v2971_v46 = vrot.slane %v2970_v39, 1  ;;  %v2985_v48 = vrot.slane %v2984_v12, 1  ;;  %v2997_v49 = vrot.slane %v2996_v40, 2 }
 0x240   :  { %v2958_v50 = vmax.f32 %v2956_v9, %v2957_v44  ;;  %v2979_v6 = vmax.f32 %v2977_v60, %v2978_v8  ;;  %v2992_v13 = vrot.slane %v2991_v26, 1  ;;  %v973_v51 = vmax.f32 %v897_v62, %v899_v33 }
 0x241   :  { %v2972_v53 = vmax.f32 %v2970_v39, %v2971_v46  ;;  %v2986_v54 = vmax.f32 %v2984_v12, %v2985_v48  ;;  %v2998_v29 = vmax.f32 %v2996_v40, %v2997_v49  ;;  %v13577_v55 = vadd.f32 %v638_v34, %v13184_v23 }
 0x242   :  { %v2993_v32 = vmax.f32 %v2991_v26, %v2992_v13  ;;  %v11668_v41 = vpack.c.bf16 %v2958_v50, %v2951_v43  ;;  %v1228_v56 = vcombine.low %v13546_v16, %v973_v51  ;;  %v1229_v5 = vcombine.high %v13546_v16, %v973_v51 }
 0x243   :  { %v2999_v31 = vrot.slane %v2998_v29, 1  ;;  %v11669_v30 = vpack.c.bf16 %v2972_v53, %v2965_v45  ;;  %v11670_v62 = vpack.c.bf16 %v2986_v54, %v2979_v6  ;;  %v900_v33 = vmax.f32 %v13577_v55, 0.0 }
 0x244   :  { %v4529_v4 = vunpack.c.l.b16 %v11668_v41  ;;  %v4530_v14 = vunpack.c.h.b16 %v11668_v41  ;;  %v1236_v15 = vrot.slane %v1228_v56, %v13200_v47  ;;  %v1243_v58 = vrot.slane %v1229_v5, %v13200_v47 }
 0x245   :  { %v3000_v1 = vmax.f32 %v2998_v29, %v2999_v31  ;;  %v4531_v11 = vunpack.c.l.b16 %v11669_v30  ;;  %v4532_v57 = vunpack.c.h.b16 %v11669_v30  ;;  %v4533_v17 = vunpack.c.l.b16 %v11670_v62 }
 0x246   :  { %v4534_v42 = vunpack.c.h.b16 %v11670_v62  ;;  %v1244_v16 = vcombine.high %v1236_v15, %v1236_v15  ;;  %v1245_v59 = vcombine.high %v1243_v58, %v1243_v58  ;;  %v1806_v61 = vrot.slane %v1236_v15, %v13200_v47 }
 0x247   :  { %v13585_v63 = vpack.c.bf16 %v3000_v1, %v2993_v32  ;;  %v4716_v0 = vsel %vm4649_vm3, %v4531_v11, %v4529_v4  ;;  %v4723_v3 = vsel %vm4649_vm3, %v4532_v57, %v4530_v14  ;;  %v1822_v2 = vrot.slane %v1243_v58, %v13200_v47  ;;  %v640_v4 = vpop.f32.mrf.mxu0  ;;  %v793_v11 = vpop.f32.mrf.mxu1 }
 0x248   :  { %v13591_v18 = vsel %vm4651_vm4, %v4533_v17, %v4716_v0  ;;  %v13594_v10 = vsel %vm4651_vm4, %v4534_v42, %v4723_v3  ;;  %v1807_v7 = vcombine.high %v1806_v61, %v1806_v61  ;;  %v1814_v9 = vrot.slane %v1244_v16, %v13200_v47 }
 0x249   :  { %v4535_v60 = vunpack.c.l.b16 %v13585_v63  ;;  %v4536_v37 = vunpack.c.h.b16 %v13585_v63  ;;  %v1823_v38 = vcombine.high %v1822_v2, %v1822_v2  ;;  %v1830_v39 = vrot.slane %v1245_v59, %v13200_v47 }
 0x24a   :  { %v1815_v12 = vcombine.high %v1814_v9, %v1814_v9  ;;  %v3001_v40 = vsel %vm2440_vm2, %v1806_v61, -inf  ;;  %v3008_v43 = vsel %vm2440_vm2, %v1807_v7, -inf  ;;  %v3015_v44 = vsel %vm2440_vm2, %v1814_v9, -inf }
 0x24b   :  { %v1831_v8 = vcombine.high %v1830_v39, %v1830_v39  ;;  %v3002_v26 = vrot.slane %v3001_v40, 4  ;;  %v3009_v34 = vrot.slane %v3008_v43, 4  ;;  %v3016_v45 = vrot.slane %v3015_v44, 4 }
 0x24c   :  { %v3022_v46 = vsel %vm2440_vm2, %v1815_v12, -inf  ;;  %v3029_v48 = vsel %vm2440_vm2, %v1822_v2, -inf  ;;  %v3036_v49 = vsel %vm2440_vm2, %v1823_v38, -inf  ;;  %v3043_v36 = vsel %vm2440_vm2, %v1830_v39, -inf  ;;  %v644_v39 = vpop.f32.mrf.mxu0 }
 0x24d   :  { %v3003_v50 = vmax.f32 %v3001_v40, %v3002_v26  ;;  %v3010_v6 = vmax.f32 %v3008_v43, %v3009_v34  ;;  %v3017_v13 = vmax.f32 %v3015_v44, %v3016_v45  ;;  %v3023_v51 = vrot.slane %v3022_v46, 4 }
 0x24e   :  { %v3030_v25 = vrot.slane %v3029_v48, 4  ;;  %v3037_v53 = vrot.slane %v3036_v49, 4  ;;  %v3044_v54 = vrot.slane %v3043_v36, 4  ;;  %v3050_v29 = vsel %vm2440_vm2, %v1831_v8, -inf  ;;  %v797_v8 = vpop.f32.mrf.mxu1 }
 0x24f   :  { %v3004_v35 = vrot.slane %v3003_v50, 2  ;;  %v3011_v32 = vrot.slane %v3010_v6, 2  ;;  %v3018_v41 = vrot.slane %v3017_v13, 2  ;;  %v3024_v56 = vmax.f32 %v3022_v46, %v3023_v51 }
 0x250   :  { %v3031_v5 = vmax.f32 %v3029_v48, %v3030_v25  ;;  %v3038_v31 = vmax.f32 %v3036_v49, %v3037_v53  ;;  %v3045_v30 = vmax.f32 %v3043_v36, %v3044_v54  ;;  %v3051_v62 = vrot.slane %v3050_v29, 4  ;;  %v646_v53 = vpop.f32.mrf.mxu0 }
 0x251   :  { %v3005_v14 = vmax.f32 %v3003_v50, %v3004_v35  ;;  %v3012_v15 = vmax.f32 %v3010_v6, %v3011_v32  ;;  %v3019_v58 = vmax.f32 %v3017_v13, %v3018_v41  ;;  %v3025_v1 = vrot.slane %v3024_v56, 2  ;;  %v799_v41 = vpop.f32.mrf.mxu1 }
 0x252   :  { %v3032_v57 = vrot.slane %v3031_v5, 2  ;;  %v3039_v17 = vrot.slane %v3038_v31, 2  ;;  %v3046_v42 = vrot.slane %v3045_v30, 2  ;;  %v3052_v16 = vmax.f32 %v3050_v29, %v3051_v62 }
 0x253   :  { %v3006_v59 = vrot.slane %v3005_v14, 1  ;;  %v3013_v61 = vrot.slane %v3012_v15, 1  ;;  %v3020_v0 = vrot.slane %v3019_v58, 1  ;;  %v3026_v3 = vmax.f32 %v3024_v56, %v3025_v1 }
 0x254   :  { %v3033_v2 = vmax.f32 %v3031_v5, %v3032_v57  ;;  %v3040_v7 = vmax.f32 %v3038_v31, %v3039_v17  ;;  %v3047_v9 = vmax.f32 %v3045_v30, %v3046_v42  ;;  %v3053_v38 = vrot.slane %v3052_v16, 2 }
 0x255   :  { %v3007_v12 = vmax.f32 %v3005_v14, %v3006_v59  ;;  %v3014_v40 = vmax.f32 %v3012_v15, %v3013_v61  ;;  %v3021_v43 = vmax.f32 %v3019_v58, %v3020_v0  ;;  %v3027_v44 = vrot.slane %v3026_v3, 1  ;;  %v648_v58 = vpop.f32.mrf.mxu0 }
 0x256   :  { %v3034_v26 = vrot.slane %v3033_v2, 1  ;;  %v3041_v34 = vrot.slane %v3040_v7, 1  ;;  %v3048_v45 = vrot.slane %v3047_v9, 1  ;;  %v3054_v46 = vmax.f32 %v3052_v16, %v3053_v38 }
 0x257   :  { %v3028_v48 = vmax.f32 %v3026_v3, %v3027_v44  ;;  %v11672_v49 = vpack.c.bf16 %v3014_v40, %v3007_v12  ;;  %v4718_v36 = vsel %vm4653_vm5, %v4535_v60, %v13591_v18  ;;  %v4725_v50 = vsel %vm4653_vm5, %v4536_v37, %v13594_v10  ;;  %v650_v40 = vpop.f32.mrf.mxu0 }
 0x258   :  { %v3035_v6 = vmax.f32 %v3033_v2, %v3034_v26  ;;  %v3042_v13 = vmax.f32 %v3040_v7, %v3041_v34  ;;  %v3049_v51 = vmax.f32 %v3047_v9, %v3048_v45  ;;  %v3055_v25 = vrot.slane %v3054_v46, 1 }
 0x259   :  { %v11673_v54 = vpack.c.bf16 %v3028_v48, %v3021_v43  ;;  %v4537_v29 = vunpack.c.l.b16 %v11672_v49  ;;  %v4538_v35 = vunpack.c.h.b16 %v11672_v49  ;;  %v792_v32 = vadd.f32 %v791_v52, %v13187_v24 }
 0x25a   :  { %v3056_v56 = vmax.f32 %v3054_v46, %v3055_v25  ;;  %v11674_v5 = vpack.c.bf16 %v3042_v13, %v3035_v6  ;;  %v641_v18 = vadd.f32 %v640_v4, %v13190_v27  ;;  %v794_v60 = vadd.f32 %v793_v11, %v13193_v28  ;;  %v801_v4 = vpop.f32.mrf.mxu1 }
 0x25b   :  { %v4539_v63 = vunpack.c.l.b16 %v11673_v54  ;;  %v4540_v31 = vunpack.c.h.b16 %v11673_v54  ;;  %v4719_v10 = vsel %vm4655_vm6, %v4537_v29, %v4718_v36  ;;  %v4726_v37 = vsel %vm4655_vm6, %v4538_v35, %v4725_v50 }
 0x25c   :  { %v11675_v30 = vpack.c.bf16 %v3056_v56, %v3049_v51  ;;  %v4541_v62 = vunpack.c.l.b16 %v11674_v5  ;;  %v4542_v14 = vunpack.c.h.b16 %v11674_v5  ;;  %v902_v15 = vmax.f32 %v792_v32, 0.0  ;;  %v803_v55 = vpop.f32.mrf.mxu1 }
 0x25d   :  { %v4720_v52 = vsel %vm4657_vm7, %v4539_v63, %v4719_v10  ;;  %v4727_v1 = vsel %vm4657_vm7, %v4540_v31, %v4726_v37  ;;  %v901_v57 = vmax.f32 %v641_v18, 0.0  ;;  %v903_v17 = vmax.f32 %v794_v60, 0.0 }
 0x25e   :  { %v4543_v42 = vunpack.c.l.b16 %v11675_v30  ;;  %v4544_v11 = vunpack.c.h.b16 %v11675_v30  ;;  %v4721_v16 = vsel %vm4659_vm8, %v4541_v62, %v4720_v52  ;;  %v4728_v59 = vsel %vm4659_vm8, %v4542_v14, %v4727_v1 }
 0x25f   :  { %v974_v61 = vmax.f32 %v900_v33, %v902_v15  ;;  %v975_v0 = vmax.f32 %v901_v57, %v903_v17  ;;  %v645_v3 = vadd.f32 %v644_v39, %v13184_v23  ;;  %v798_v2 = vadd.f32 %v797_v8, %v13187_v24 }
 0x260   :  { %v4722_v7 = vsel %vm4661_vm9, %v4543_v42, %v4721_v16  ;;  %v4729_v9 = vsel %vm4661_vm9, %v4544_v11, %v4728_v59  ;;  %v647_v38 = vadd.f32 %v646_v53, %v13190_v27  ;;  %v800_v12 = vadd.f32 %v799_v41, %v13193_v28 }
 0x261   :  { %v4822_v43 = vpack.c.b16 %v4729_v9, %v4722_v7  ;;  %v1246_v44 = vcombine.low %v974_v61, %v975_v0  ;;  %v1247_v26 = vcombine.high %v974_v61, %v975_v0  ;;  %v904_v34 = vmax.f32 %v645_v3, 0.0 }
 0x262   :  { %v906_v33 = vmax.f32 %v798_v2, 0.0  ;;  %v905_v45 = vmax.f32 %v647_v38, 0.0  ;;  %v907_v46 = vmax.f32 %v800_v12, 0.0  ;;  %v13634_v39 = vadd.f32 %v648_v58, %v13184_v23 }
 0x263   :  { %4854 = vst [vmem:[#allocation2 + $0x8] sm:$0xff] %v4822_v43  ;;  %v1254_v8 = vrot.slane %v1246_v44, %v13200_v47  ;;  %v1261_v48 = vrot.slane %v1247_v26, %v13200_v47  ;;  %v13639_v49 = vadd.f32 %v801_v4, %v13187_v24  ;;  %v13642_v36 = vadd.f32 %v650_v40, %v13190_v27 }
 0x264   :  { %v976_v50 = vmax.f32 %v904_v34, %v906_v33  ;;  %v977_v6 = vmax.f32 %v905_v45, %v907_v46  ;;  %v908_v13 = vmax.f32 %v13634_v39, 0.0  ;;  %v13646_v51 = vadd.f32 %v803_v55, %v13193_v28 }
 0x265   :  { %v1262_v25 = vcombine.high %v1254_v8, %v1254_v8  ;;  %v1263_v53 = vcombine.high %v1261_v48, %v1261_v48  ;;  %v1838_v54 = vrot.slane %v1254_v8, %v13200_v47  ;;  %v1854_v29 = vrot.slane %v1261_v48, %v13200_v47 }
 0x266   :  { %v1264_v35 = vcombine.low %v976_v50, %v977_v6  ;;  %v1265_v32 = vcombine.high %v976_v50, %v977_v6  ;;  %v910_v41 = vmax.f32 %v13639_v49, 0.0  ;;  %v909_v56 = vmax.f32 %v13642_v36, 0.0 }
 0x267   :  { %v1839_v5 = vcombine.high %v1838_v54, %v1838_v54  ;;  %v1846_v18 = vrot.slane %v1262_v25, %v13200_v47  ;;  %v1855_v60 = vcombine.high %v1854_v29, %v1854_v29  ;;  %v1862_v63 = vrot.slane %v1263_v53, %v13200_v47 }
 0x268   :  { %v3057_v31 = vsel %vm2440_vm2, %v1838_v54, -inf  ;;  %v3085_v10 = vsel %vm2440_vm2, %v1854_v29, -inf  ;;  %v13657_v37 = vrot.slane %v1264_v35, %v13200_v47  ;;  %v13660_v30 = vrot.slane %v1265_v32, %v13200_v47 }
 0x269   :  { %v1847_v62 = vcombine.high %v1846_v18, %v1846_v18  ;;  %v1863_v14 = vcombine.high %v1862_v63, %v1862_v63  ;;  %v3058_v15 = vrot.slane %v3057_v31, 4  ;;  %v3064_v58 = vsel %vm2440_vm2, %v1839_v5, -inf }
 0x26a   :  { %v3065_v52 = vrot.slane %v3064_v58, 4  ;;  %v3071_v1 = vsel %vm2440_vm2, %v1846_v18, -inf  ;;  %v3086_v57 = vrot.slane %v3085_v10, 4  ;;  %v3092_v17 = vsel %vm2440_vm2, %v1855_v60, -inf }
 0x26b   :  { %v3059_v4 = vmax.f32 %v3057_v31, %v3058_v15  ;;  %v3072_v42 = vrot.slane %v3071_v1, 4  ;;  %v3078_v11 = vsel %vm2440_vm2, %v1847_v62, -inf  ;;  %v3093_v16 = vrot.slane %v3092_v17, 4 }
 0x26c   :  { %v3066_v59 = vmax.f32 %v3064_v58, %v3065_v52  ;;  %v3079_v61 = vrot.slane %v3078_v11, 4  ;;  %v3087_v0 = vmax.f32 %v3085_v10, %v3086_v57  ;;  %v3099_v3 = vsel %vm2440_vm2, %v1862_v63, -inf }
 0x26d   :  { %v3060_v2 = vrot.slane %v3059_v4, 2  ;;  %v3073_v7 = vmax.f32 %v3071_v1, %v3072_v42  ;;  %v3094_v9 = vmax.f32 %v3092_v17, %v3093_v16  ;;  %v3100_v38 = vrot.slane %v3099_v3, 4 }
 0x26e   :  { %v3067_v12 = vrot.slane %v3066_v59, 2  ;;  %v3080_v40 = vmax.f32 %v3078_v11, %v3079_v61  ;;  %v3088_v43 = vrot.slane %v3087_v0, 2  ;;  %v3106_v44 = vsel %vm2440_vm2, %v1863_v14, -inf  ;;  %v11967_v11 = vld [vmem:[#allocation7 + $0x344] ss:$16 sps:$4 sm:$0xff]  }
 0x26f   :  { %v3061_v26 = vmax.f32 %v3059_v4, %v3060_v2  ;;  %v3074_v34 = vrot.slane %v3073_v7, 2  ;;  %v3095_v55 = vrot.slane %v3094_v9, 2  ;;  %v3101_v33 = vmax.f32 %v3099_v3, %v3100_v38  ;;  %v11965_v3 = vld [vmem:[#allocation7 + $0x340] ss:$16 sps:$4 sm:$0xff]   ;;  %7545 = vmatprep.subr.bf16.mxu1 %v11967_v11 }
 0x270   :  { %v3068_v45 = vmax.f32 %v3066_v59, %v3067_v12  ;;  %v3081_v46 = vrot.slane %v3080_v40, 2  ;;  %v3089_v8 = vmax.f32 %v3087_v0, %v3088_v43  ;;  %v3107_v48 = vrot.slane %v3106_v44, 4  ;;  %7546 = vmatpush2.bf16.msra.mxu1 %v11965_v3 }
 0x271   :  { %v3062_v50 = vrot.slane %v3061_v26, 1  ;;  %v3075_v6 = vmax.f32 %v3073_v7, %v3074_v34  ;;  %v3096_v25 = vmax.f32 %v3094_v9, %v3095_v55  ;;  %v3102_v53 = vrot.slane %v3101_v33, 2 }
 0x272   :  { %v3069_v54 = vrot.slane %v3068_v45, 1  ;;  %v3082_v29 = vmax.f32 %v3080_v40, %v3081_v46  ;;  %v3090_v35 = vrot.slane %v3089_v8, 1  ;;  %v3108_v32 = vmax.f32 %v3106_v44, %v3107_v48 }
 0x273   :  { %v3063_v5 = vmax.f32 %v3061_v26, %v3062_v50  ;;  %v3076_v18 = vrot.slane %v3075_v6, 1  ;;  %v3097_v60 = vrot.slane %v3096_v25, 1  ;;  %v3103_v63 = vmax.f32 %v3101_v33, %v3102_v53  ;;  %v11968_v50 = vld [vmem:[#allocation7 + $0x320] ss:$16 sps:$4 sm:$0xff]  }
 0x274   :  { %v3070_v31 = vmax.f32 %v3068_v45, %v3069_v54  ;;  %v3083_v10 = vrot.slane %v3082_v29, 1  ;;  %v3091_v62 = vmax.f32 %v3089_v8, %v3090_v35  ;;  %v3109_v14 = vrot.slane %v3108_v32, 2 }
 0x275   :  { %v3077_v15 = vmax.f32 %v3075_v6, %v3076_v18  ;;  %v3098_v58 = vmax.f32 %v3096_v25, %v3097_v60  ;;  %v3104_v52 = vrot.slane %v3103_v63, 1  ;;  %v1280_v1 = vcombine.high %v13657_v37, %v13657_v37 }
 0x276   :  { %v3084_v57 = vmax.f32 %v3082_v29, %v3083_v10  ;;  %v3110_v17 = vmax.f32 %v3108_v32, %v3109_v14  ;;  %v11676_v4 = vpack.c.bf16 %v3070_v31, %v3063_v5  ;;  %v1281_v42 = vcombine.high %v13660_v30, %v13660_v30 }
 0x277   :  { %v3105_v16 = vmax.f32 %v3103_v63, %v3104_v52  ;;  %v11678_v59 = vpack.c.bf16 %v3098_v58, %v3091_v62  ;;  %v1870_v61 = vrot.slane %v13657_v37, %v13200_v47  ;;  %v1878_v0 = vrot.slane %v1280_v1, %v13200_v47  ;;  %v11970_v37 = vld [vmem:[#allocation7 + $0x324] ss:$16 sps:$4 sm:$0xff]  }
 0x278   :  { %v3111_v2 = vrot.slane %v3110_v17, 1  ;;  %v11677_v7 = vpack.c.bf16 %v3084_v57, %v3077_v15  ;;  %v4545_v9 = vunpack.c.l.b16 %v11676_v4  ;;  %v4546_v38 = vunpack.c.h.b16 %v11676_v4  ;;  %7547 = vmatprep.subr.bf16.mxu1 %v11970_v37 }
 0x279   :  { %v4549_v12 = vunpack.c.l.b16 %v11678_v59  ;;  %v4550_v40 = vunpack.c.h.b16 %v11678_v59  ;;  %v1871_v43 = vcombine.high %v1870_v61, %v1870_v61  ;;  %v1879_v44 = vcombine.high %v1878_v0, %v1878_v0  ;;  %7548 = vmatpush2.bf16.msra.mxu1 %v11968_v50 }
 0x27a   :  { %v3112_v26 = vmax.f32 %v3110_v17, %v3111_v2  ;;  %v4547_v34 = vunpack.c.l.b16 %v11677_v7  ;;  %v4548_v55 = vunpack.c.h.b16 %v11677_v7  ;;  %v1886_v33 = vrot.slane %v13660_v30, %v13200_v47 }
 0x27b   :  { %v1894_v45 = vrot.slane %v1281_v42, %v13200_v47  ;;  %v3113_v46 = vsel %vm2440_vm2, %v1870_v61, -inf  ;;  %v3120_v8 = vsel %vm2440_vm2, %v1871_v43, -inf  ;;  %v3127_v48 = vsel %vm2440_vm2, %v1878_v0, -inf }
 0x27c   :  { %v11679_v6 = vpack.c.bf16 %v3112_v26, %v3105_v16  ;;  %v4730_v25 = vsel %vm4649_vm3, %v4547_v34, %v4545_v9  ;;  %v4733_v53 = vsel %vm4649_vm3, %v4548_v55, %v4546_v38  ;;  %v1887_v54 = vcombine.high %v1886_v33, %v1886_v33 }
 0x27d   :  { %v4731_v29 = vsel %vm4651_vm4, %v4549_v12, %v4730_v25  ;;  %v4734_v30 = vsel %vm4651_vm4, %v4550_v40, %v4733_v53  ;;  %v1895_v35 = vcombine.high %v1894_v45, %v1894_v45  ;;  %v3114_v32 = vrot.slane %v3113_v46, 4 }
 0x27e   :  { %v4551_v5 = vunpack.c.l.b16 %v11679_v6  ;;  %v4552_v18 = vunpack.c.h.b16 %v11679_v6  ;;  %v3121_v60 = vrot.slane %v3120_v8, 4  ;;  %v3128_v63 = vrot.slane %v3127_v48, 4  ;;  %v654_v6 = vpop.f32.mrf.mxu0 }
 0x27f   :  { %v3115_v31 = vmax.f32 %v3113_v46, %v3114_v32  ;;  %v3134_v10 = vsel %vm2440_vm2, %v1879_v44, -inf  ;;  %v3141_v62 = vsel %vm2440_vm2, %v1886_v33, -inf  ;;  %v3148_v14 = vsel %vm2440_vm2, %v1887_v54, -inf }
 0x280   :  { %v4732_v15 = vsel %vm4653_vm5, %v4551_v5, %v4731_v29  ;;  %v4735_v58 = vsel %vm4653_vm5, %v4552_v18, %v4734_v30  ;;  %v3122_v52 = vmax.f32 %v3120_v8, %v3121_v60  ;;  %v3129_v1 = vmax.f32 %v3127_v48, %v3128_v63 }
 0x281   :  { %v4823_v57 = vpack.c.b16 %v4735_v58, %v4732_v15  ;;  %v3116_v17 = vrot.slane %v3115_v31, 2  ;;  %v3135_v4 = vrot.slane %v3134_v10, 4  ;;  %v3142_v42 = vrot.slane %v3141_v62, 4  ;;  %v807_v58 = vpop.f32.mrf.mxu1 }
 0x282   :  { %v3123_v11 = vrot.slane %v3122_v52, 2  ;;  %v3130_v16 = vrot.slane %v3129_v1, 2  ;;  %v3149_v59 = vrot.slane %v3148_v14, 4  ;;  %v3155_v61 = vsel %vm2440_vm2, %v1894_v45, -inf }
 0x283   :  { %4855 = vst [vmem:[#allocation2 + $0x48] sm:$0x33] %v4823_v57  ;;  %v3117_v0 = vmax.f32 %v3115_v31, %v3116_v17  ;;  %v3136_v3 = vmax.f32 %v3134_v10, %v3135_v4  ;;  %v3143_v2 = vmax.f32 %v3141_v62, %v3142_v42  ;;  %v3156_v7 = vrot.slane %v3155_v61, 4 }
 0x284   :  { %v3124_v9 = vmax.f32 %v3122_v52, %v3123_v11  ;;  %v3131_v38 = vmax.f32 %v3129_v1, %v3130_v16  ;;  %v3150_v12 = vmax.f32 %v3148_v14, %v3149_v59  ;;  %v3162_v40 = vsel %vm2440_vm2, %v1895_v35, -inf  ;;  %v656_v52 = vpop.f32.mrf.mxu0  ;;  %v11973_v59 = vld [vmem:[#allocation7 + $0x304] ss:$16 sps:$4 sm:$0xff]  }
 0x285   :  { %v3118_v43 = vrot.slane %v3117_v0, 1  ;;  %v3137_v44 = vrot.slane %v3136_v3, 2  ;;  %v3144_v26 = vrot.slane %v3143_v2, 2  ;;  %v3157_v34 = vmax.f32 %v3155_v61, %v3156_v7  ;;  %v11971_v7 = vld [vmem:[#allocation7 + $0x300] ss:$16 sps:$4 sm:$0xff]   ;;  %7549 = vmatprep.subr.bf16.mxu1 %v11973_v59 }
 0x286   :  { %v3125_v55 = vrot.slane %v3124_v9, 1  ;;  %v3132_v33 = vrot.slane %v3131_v38, 1  ;;  %v3151_v37 = vrot.slane %v3150_v12, 2  ;;  %v3163_v46 = vrot.slane %v3162_v40, 4  ;;  %7550 = vmatpush2.bf16.msra.mxu1 %v11971_v7 }
 0x287   :  { %v3119_v8 = vmax.f32 %v3117_v0, %v3118_v43  ;;  %v3138_v45 = vmax.f32 %v3136_v3, %v3137_v44  ;;  %v3145_v48 = vmax.f32 %v3143_v2, %v3144_v26  ;;  %v3158_v50 = vrot.slane %v3157_v34, 2  ;;  %v809_v26 = vpop.f32.mrf.mxu1 }
 0x288   :  { %v3126_v25 = vmax.f32 %v3124_v9, %v3125_v55  ;;  %v3133_v53 = vmax.f32 %v3131_v38, %v3132_v33  ;;  %v3152_v54 = vmax.f32 %v3150_v12, %v3151_v37  ;;  %v3164_v29 = vmax.f32 %v3162_v40, %v3163_v46 }
 0x289   :  { %v3139_v30 = vrot.slane %v3138_v45, 1  ;;  %v3146_v32 = vrot.slane %v3145_v48, 1  ;;  %v3159_v35 = vmax.f32 %v3157_v34, %v3158_v50  ;;  %v978_v5 = vmax.f32 %v908_v13, %v910_v41 }
 0x28a   :  { %v3153_v18 = vrot.slane %v3152_v54, 1  ;;  %v3165_v60 = vrot.slane %v3164_v29, 2  ;;  %v11680_v63 = vpack.c.bf16 %v3126_v25, %v3119_v8  ;;  %v911_v31 = vmax.f32 %v13646_v51, 0.0 }
 0x28b   :  { %v3140_v10 = vmax.f32 %v3138_v45, %v3139_v30  ;;  %v3147_v62 = vmax.f32 %v3145_v48, %v3146_v32  ;;  %v3160_v14 = vrot.slane %v3159_v35, 1  ;;  %v655_v15 = vadd.f32 %v654_v6, %v13184_v23 }
 0x28c   :  { %v3154_v1 = vmax.f32 %v3152_v54, %v3153_v18  ;;  %v3166_v57 = vmax.f32 %v3164_v29, %v3165_v60  ;;  %v4553_v17 = vunpack.c.l.b16 %v11680_v63  ;;  %v4554_v4 = vunpack.c.h.b16 %v11680_v63 }
 0x28d   :  { %v3161_v49 = vmax.f32 %v3159_v35, %v3160_v14  ;;  %v11681_v42 = vpack.c.bf16 %v3140_v10, %v3133_v53  ;;  %v979_v39 = vmax.f32 %v909_v56, %v911_v31  ;;  %v912_v13 = vmax.f32 %v655_v15, 0.0 }
 0x28e   :  { %v3167_v41 = vrot.slane %v3166_v57, 1  ;;  %v11682_v11 = vpack.c.bf16 %v3154_v1, %v3147_v62  ;;  %v808_v51 = vadd.f32 %v807_v58, %v13187_v24  ;;  %v13702_v16 = vadd.f32 %v656_v52, %v13190_v27 }
 0x28f   :  { %v4555_v61 = vunpack.c.l.b16 %v11681_v42  ;;  %v4556_v0 = vunpack.c.h.b16 %v11681_v42  ;;  %v1282_v3 = vcombine.low %v978_v5, %v979_v39  ;;  %v1283_v2 = vcombine.high %v978_v5, %v979_v39 }
 0x290   :  { %v3168_v9 = vmax.f32 %v3166_v57, %v3167_v41  ;;  %v4557_v38 = vunpack.c.l.b16 %v11682_v11  ;;  %v4558_v12 = vunpack.c.h.b16 %v11682_v11  ;;  %v914_v40 = vmax.f32 %v808_v51, 0.0 }
 0x291   :  { %v4736_v36 = vsel %vm4649_vm3, %v4555_v61, %v4553_v17  ;;  %v4743_v56 = vsel %vm4649_vm3, %v4556_v0, %v4554_v4  ;;  %v1290_v43 = vrot.slane %v1282_v3, %v13200_v47  ;;  %v1297_v44 = vrot.slane %v1283_v2, %v13200_v47 }
 0x292   :  { %v11683_v34 = vpack.c.bf16 %v3168_v9, %v3161_v49  ;;  %v4737_v55 = vsel %vm4651_vm4, %v4557_v38, %v4736_v36  ;;  %v4744_v33 = vsel %vm4651_vm4, %v4558_v12, %v4743_v56  ;;  %v13710_v37 = vmax.f32 %v912_v13, %v914_v40 }
 0x293   :  { %v1298_v46 = vcombine.high %v1290_v43, %v1290_v43  ;;  %v1299_v8 = vcombine.high %v1297_v44, %v1297_v44  ;;  %v1902_v45 = vrot.slane %v1290_v43, %v13200_v47  ;;  %v1918_v48 = vrot.slane %v1297_v44, %v13200_v47 }
 0x294   :  { %v4559_v50 = vunpack.c.l.b16 %v11683_v34  ;;  %v4560_v6 = vunpack.c.h.b16 %v11683_v34  ;;  %v913_v25 = vmax.f32 %v13702_v16, 0.0  ;;  %v13716_v53 = vadd.f32 %v809_v26, %v13193_v28 }
 0x295   :  { %v1903_v54 = vcombine.high %v1902_v45, %v1902_v45  ;;  %v1910_v29 = vrot.slane %v1298_v46, %v13200_v47  ;;  %v1919_v30 = vcombine.high %v1918_v48, %v1918_v48  ;;  %v1926_v32 = vrot.slane %v1299_v8, %v13200_v47 }
 0x296   :  { %v13721_v35 = vsel %vm4653_vm5, %v4559_v50, %v4737_v55  ;;  %v13724_v5 = vsel %vm4653_vm5, %v4560_v6, %v4744_v33  ;;  %v3169_v18 = vsel %vm2440_vm2, %v1902_v45, -inf  ;;  %v3197_v60 = vsel %vm2440_vm2, %v1918_v48, -inf }
 0x297   :  { %v1911_v63 = vcombine.high %v1910_v29, %v1910_v29  ;;  %v1927_v31 = vcombine.high %v1926_v32, %v1926_v32  ;;  %v3170_v10 = vrot.slane %v3169_v18, 4  ;;  %v3176_v62 = vsel %vm2440_vm2, %v1903_v54, -inf }
 0x298   :  { %v3177_v14 = vrot.slane %v3176_v62, 4  ;;  %v3183_v15 = vsel %vm2440_vm2, %v1910_v29, -inf  ;;  %v3198_v58 = vrot.slane %v3197_v60, 4  ;;  %v3204_v52 = vsel %vm2440_vm2, %v1919_v30, -inf  ;;  %v658_v29 = vpop.f32.mrf.mxu0 }
 0x299   :  { %v3171_v1 = vmax.f32 %v3169_v18, %v3170_v10  ;;  %v3184_v57 = vrot.slane %v3183_v15, 4  ;;  %v3190_v17 = vsel %vm2440_vm2, %v1911_v63, -inf  ;;  %v3205_v4 = vrot.slane %v3204_v52, 4  ;;  %v811_v63 = vpop.f32.mrf.mxu1 }
 0x29a   :  { %v3178_v49 = vmax.f32 %v3176_v62, %v3177_v14  ;;  %v3191_v42 = vrot.slane %v3190_v17, 4  ;;  %v3199_v39 = vmax.f32 %v3197_v60, %v3198_v58  ;;  %v3211_v13 = vsel %vm2440_vm2, %v1926_v32, -inf }
 0x29b   :  { %v3172_v41 = vrot.slane %v3171_v1, 2  ;;  %v3185_v11 = vmax.f32 %v3183_v15, %v3184_v57  ;;  %v3206_v51 = vmax.f32 %v3204_v52, %v3205_v4  ;;  %v3212_v59 = vrot.slane %v3211_v13, 4 }
 0x29c   :  { %v3179_v61 = vrot.slane %v3178_v49, 2  ;;  %v3192_v0 = vmax.f32 %v3190_v17, %v3191_v42  ;;  %v3200_v3 = vrot.slane %v3199_v39, 2  ;;  %v3218_v2 = vsel %vm2440_vm2, %v1927_v31, -inf }
 0x29d   :  { %v3173_v7 = vmax.f32 %v3171_v1, %v3172_v41  ;;  %v3186_v9 = vrot.slane %v3185_v11, 2  ;;  %v3207_v38 = vrot.slane %v3206_v51, 2  ;;  %v3213_v12 = vmax.f32 %v3211_v13, %v3212_v59 }
 0x29e   :  { %v3180_v40 = vmax.f32 %v3178_v49, %v3179_v61  ;;  %v3193_v36 = vrot.slane %v3192_v0, 2  ;;  %v3201_v56 = vmax.f32 %v3199_v39, %v3200_v3  ;;  %v3219_v43 = vrot.slane %v3218_v2, 4 }
 0x29f   :  { %v3174_v44 = vrot.slane %v3173_v7, 1  ;;  %v3187_v26 = vmax.f32 %v3185_v11, %v3186_v9  ;;  %v3208_v34 = vmax.f32 %v3206_v51, %v3207_v38  ;;  %v3214_v55 = vrot.slane %v3213_v12, 2 }
 0x2a0   :  { %v3181_v33 = vrot.slane %v3180_v40, 1  ;;  %v3194_v46 = vmax.f32 %v3192_v0, %v3193_v36  ;;  %v3202_v8 = vrot.slane %v3201_v56, 1  ;;  %v3220_v45 = vmax.f32 %v3218_v2, %v3219_v43  ;;  %v660_v36 = vpop.f32.mrf.mxu0 }
 0x2a1   :  { %v3175_v48 = vmax.f32 %v3173_v7, %v3174_v44  ;;  %v3188_v50 = vrot.slane %v3187_v26, 1  ;;  %v3209_v6 = vrot.slane %v3208_v34, 1  ;;  %v3215_v54 = vmax.f32 %v3213_v12, %v3214_v55 }
 0x2a2   :  { %v3182_v30 = vmax.f32 %v3180_v40, %v3181_v33  ;;  %v3195_v32 = vrot.slane %v3194_v46, 1  ;;  %v3203_v18 = vmax.f32 %v3201_v56, %v3202_v8  ;;  %v3221_v60 = vrot.slane %v3220_v45, 2 }
 0x2a3   :  { %v3189_v31 = vmax.f32 %v3187_v26, %v3188_v50  ;;  %v3210_v10 = vmax.f32 %v3208_v34, %v3209_v6  ;;  %v3216_v62 = vrot.slane %v3215_v54, 1  ;;  %v915_v14 = vmax.f32 %v13716_v53, 0.0 }
 0x2a4   :  { %v3196_v15 = vmax.f32 %v3194_v46, %v3195_v32  ;;  %v3222_v58 = vmax.f32 %v3220_v45, %v3221_v60  ;;  %v11684_v52 = vpack.c.bf16 %v3182_v30, %v3175_v48  ;;  %v659_v1 = vadd.f32 %v658_v29, %v13184_v23 }
 0x2a5   :  { %v3217_v57 = vmax.f32 %v3215_v54, %v3216_v62  ;;  %v11686_v17 = vpack.c.bf16 %v3210_v10, %v3203_v18  ;;  %v981_v4 = vmax.f32 %v913_v25, %v915_v14  ;;  %v812_v49 = vadd.f32 %v811_v63, %v13187_v24 }
 0x2a6   :  { %v3223_v42 = vrot.slane %v3222_v58, 1  ;;  %v11685_v39 = vpack.c.bf16 %v3196_v15, %v3189_v31  ;;  %v4561_v13 = vunpack.c.l.b16 %v11684_v52  ;;  %v4562_v41 = vunpack.c.h.b16 %v11684_v52 }
 0x2a7   :  { %v4565_v11 = vunpack.c.l.b16 %v11686_v17  ;;  %v4566_v51 = vunpack.c.h.b16 %v11686_v17  ;;  %v1300_v53 = vcombine.low %v13710_v37, %v981_v4  ;;  %v1301_v59 = vcombine.high %v13710_v37, %v981_v4 }
 0x2a8   :  { %v3224_v61 = vmax.f32 %v3222_v58, %v3223_v42  ;;  %v4563_v0 = vunpack.c.l.b16 %v11685_v39  ;;  %v4564_v3 = vunpack.c.h.b16 %v11685_v39  ;;  %v4739_v2 = vsel %vm4655_vm6, %v4561_v13, %v13721_v35 }
 0x2a9   :  { %v4746_v16 = vsel %vm4655_vm6, %v4562_v41, %v13724_v5  ;;  %v1308_v25 = vrot.slane %v1300_v53, %v13200_v47  ;;  %v1315_v7 = vrot.slane %v1301_v59, %v13200_v47  ;;  %v916_v9 = vmax.f32 %v659_v1, 0.0 }
 0x2aa   :  { %v11687_v38 = vpack.c.bf16 %v3224_v61, %v3217_v57  ;;  %v4740_v12 = vsel %vm4657_vm7, %v4563_v0, %v4739_v2  ;;  %v4747_v40 = vsel %vm4657_vm7, %v4564_v3, %v4746_v16  ;;  %v918_v37 = vmax.f32 %v812_v49, 0.0 }
 0x2ab   :  { %v4741_v56 = vsel %vm4659_vm8, %v4565_v11, %v4740_v12  ;;  %v4748_v43 = vsel %vm4659_vm8, %v4566_v51, %v4747_v40  ;;  %v1316_v35 = vcombine.high %v1308_v25, %v1308_v25  ;;  %v1317_v44 = vcombine.high %v1315_v7, %v1315_v7  ;;  %v813_v40 = vpop.f32.mrf.mxu1 }
 0x2ac   :  { %v4567_v26 = vunpack.c.l.b16 %v11687_v38  ;;  %v4568_v5 = vunpack.c.h.b16 %v11687_v38  ;;  %v1934_v34 = vrot.slane %v1308_v25, %v13200_v47  ;;  %v1950_v55 = vrot.slane %v1315_v7, %v13200_v47 }
 0x2ad   :  { %v1942_v33 = vrot.slane %v1316_v35, %v13200_v47  ;;  %v1958_v46 = vrot.slane %v1317_v44, %v13200_v47  ;;  %v13755_v8 = vmax.f32 %v916_v9, %v918_v37  ;;  %v13758_v45 = vadd.f32 %v660_v36, %v13190_v27 }
 0x2ae   :  { %v4742_v48 = vsel %vm4661_vm9, %v4567_v26, %v4741_v56  ;;  %v4749_v50 = vsel %vm4661_vm9, %v4568_v5, %v4748_v43  ;;  %v1935_v6 = vcombine.high %v1934_v34, %v1934_v34  ;;  %v1951_v54 = vcombine.high %v1950_v55, %v1950_v55 }
 0x2af   :  { %v4824_v29 = vpack.c.b16 %v4749_v50, %v4742_v48  ;;  %v1943_v30 = vcombine.high %v1942_v33, %v1942_v33  ;;  %v1959_v32 = vcombine.high %v1958_v46, %v1958_v46  ;;  %v3225_v18 = vsel %vm2440_vm2, %v1934_v34, -inf  ;;  %v664_v48 = vpop.f32.mrf.mxu0 }
 0x2b0   :  { %v3226_v60 = vrot.slane %v3225_v18, 4  ;;  %v3232_v63 = vsel %vm2440_vm2, %v1935_v6, -inf  ;;  %v3239_v31 = vsel %vm2440_vm2, %v1942_v33, -inf  ;;  %v3253_v10 = vsel %vm2440_vm2, %v1950_v55, -inf }
 0x2b1   :  { %4856 = vst [vmem:[#allocation2 + $0x40] sm:$0xff] %v4824_v29  ;;  %v3233_v62 = vrot.slane %v3232_v63, 4  ;;  %v3240_v14 = vrot.slane %v3239_v31, 4  ;;  %v3246_v15 = vsel %vm2440_vm2, %v1943_v30, -inf  ;;  %v3254_v58 = vrot.slane %v3253_v10, 4  ;;  %v817_v30 = vpop.f32.mrf.mxu1 }
 0x2b2   :  { %v3227_v52 = vmax.f32 %v3225_v18, %v3226_v60  ;;  %v3247_v1 = vrot.slane %v3246_v15, 4  ;;  %v3260_v57 = vsel %vm2440_vm2, %v1951_v54, -inf  ;;  %v3267_v17 = vsel %vm2440_vm2, %v1958_v46, -inf }
 0x2b3   :  { %v3234_v4 = vmax.f32 %v3232_v63, %v3233_v62  ;;  %v3241_v49 = vmax.f32 %v3239_v31, %v3240_v14  ;;  %v3255_v42 = vmax.f32 %v3253_v10, %v3254_v58  ;;  %v3261_v39 = vrot.slane %v3260_v57, 4 }
 0x2b4   :  { %v3228_v13 = vrot.slane %v3227_v52, 2  ;;  %v3248_v41 = vmax.f32 %v3246_v15, %v3247_v1  ;;  %v3268_v11 = vrot.slane %v3267_v17, 4  ;;  %v3274_v51 = vsel %vm2440_vm2, %v1959_v32, -inf }
 0x2b5   :  { %v3235_v53 = vrot.slane %v3234_v4, 2  ;;  %v3242_v59 = vrot.slane %v3241_v49, 2  ;;  %v3256_v61 = vrot.slane %v3255_v42, 2  ;;  %v3262_v0 = vmax.f32 %v3260_v57, %v3261_v39 }
 0x2b6   :  { %v3229_v3 = vmax.f32 %v3227_v52, %v3228_v13  ;;  %v3249_v2 = vrot.slane %v3248_v41, 2  ;;  %v3269_v16 = vmax.f32 %v3267_v17, %v3268_v11  ;;  %v3275_v25 = vrot.slane %v3274_v51, 4 }
 0x2b7   :  { %v3236_v7 = vmax.f32 %v3234_v4, %v3235_v53  ;;  %v3243_v9 = vmax.f32 %v3241_v49, %v3242_v59  ;;  %v3257_v38 = vmax.f32 %v3255_v42, %v3256_v61  ;;  %v3263_v12 = vrot.slane %v3262_v0, 2  ;;  %v666_v42 = vpop.f32.mrf.mxu0 }
 0x2b8   :  { %v3230_v37 = vrot.slane %v3229_v3, 1  ;;  %v3250_v36 = vmax.f32 %v3248_v41, %v3249_v2  ;;  %v3270_v56 = vrot.slane %v3269_v16, 2  ;;  %v3276_v43 = vmax.f32 %v3274_v51, %v3275_v25  ;;  %v13777_v25 = vld [vmem:[#allocation2] sm:$0x11] }
 0x2b9   :  { %v3237_v35 = vrot.slane %v3236_v7, 1  ;;  %v3244_v44 = vrot.slane %v3243_v9, 1  ;;  %v3258_v26 = vrot.slane %v3257_v38, 1  ;;  %v3264_v5 = vmax.f32 %v3262_v0, %v3263_v12 }
 0x2ba   :  { %v3231_v34 = vmax.f32 %v3229_v3, %v3230_v37  ;;  %v3251_v55 = vrot.slane %v3250_v36, 1  ;;  %v3271_v33 = vmax.f32 %v3269_v16, %v3270_v56  ;;  %v3277_v46 = vrot.slane %v3276_v43, 2  ;;  %v819_v16 = vpop.f32.mrf.mxu1  ;;  %v13785_v37 = vld [vmem:[#allocation2 + $0x18] sm:$0x11] }
 0x2bb   :  { %v3238_v50 = vmax.f32 %v3236_v7, %v3237_v35  ;;  %v3245_v6 = vmax.f32 %v3243_v9, %v3244_v44  ;;  %v3259_v54 = vmax.f32 %v3257_v38, %v3258_v26  ;;  %v3265_v29 = vrot.slane %v3264_v5, 1  ;;  %v13789_v44 = vld [vmem:[#allocation2 + $0x30] sm:$0xff] }
 0x2bc   :  { %v3252_v32 = vmax.f32 %v3250_v36, %v3251_v55  ;;  %v3272_v18 = vrot.slane %v3271_v33, 1  ;;  %v3278_v60 = vmax.f32 %v3276_v43, %v3277_v46  ;;  %v917_v63 = vmax.f32 %v13758_v45, 0.0 }
 0x2bd   :  { %v3266_v31 = vmax.f32 %v3264_v5, %v3265_v29  ;;  %v11688_v10 = vpack.c.bf16 %v3238_v50, %v3231_v34  ;;  %v814_v62 = vadd.f32 %v813_v40, %v13193_v28  ;;  %v665_v14 = vadd.f32 %v664_v48, %v13184_v23  ;;  %v13783_v40 = vld [vmem:[#allocation2 + $0x58] sm:$0xff] }
 0x2be   :  { %v3273_v15 = vmax.f32 %v3271_v33, %v3272_v18  ;;  %v3279_v58 = vrot.slane %v3278_v60, 1  ;;  %v11689_v52 = vpack.c.bf16 %v3252_v32, %v3245_v6  ;;  %v818_v1 = vadd.f32 %v817_v30, %v13187_v24 }
 0x2bf   :  { %v11690_v57 = vpack.c.bf16 %v3266_v31, %v3259_v54  ;;  %v4569_v17 = vunpack.c.l.b16 %v11688_v10  ;;  %v4570_v4 = vunpack.c.h.b16 %v11688_v10  ;;  %v919_v49 = vmax.f32 %v814_v62, 0.0 }
 0x2c0   :  { %v3280_v39 = vmax.f32 %v3278_v60, %v3279_v58  ;;  %v4571_v13 = vunpack.c.l.b16 %v11689_v52  ;;  %v4572_v41 = vunpack.c.h.b16 %v11689_v52  ;;  %v920_v45 = vmax.f32 %v665_v14, 0.0 }
 0x2c1   :  { %v4573_v11 = vunpack.c.l.b16 %v11690_v57  ;;  %v4574_v51 = vunpack.c.h.b16 %v11690_v57  ;;  %v983_v53 = vmax.f32 %v917_v63, %v919_v49  ;;  %v922_v59 = vmax.f32 %v818_v1, 0.0  ;;  %v11977_v1 = vld [vmem:[#allocation7 + $0x4e4] ss:$16 sps:$4 sm:$0xff]  }
 0x2c2   :  { %v11691_v61 = vpack.c.bf16 %v3280_v39, %v3273_v15  ;;  %v4750_v0 = vsel %vm4649_vm3, %v4571_v13, %v4569_v17  ;;  %v4753_v3 = vsel %vm4649_vm3, %v4572_v41, %v4570_v4  ;;  %v667_v2 = vadd.f32 %v666_v42, %v13190_v27  ;;  %7592 = vmatprep.subr.bf16.mxu0 %v11977_v1 }
 0x2c3   :  { %v4751_v7 = vsel %vm4651_vm4, %v4573_v11, %v4750_v0  ;;  %v4754_v9 = vsel %vm4651_vm4, %v4574_v51, %v4753_v3  ;;  %v1318_v38 = vcombine.low %v13755_v8, %v983_v53  ;;  %v1319_v12 = vcombine.high %v13755_v8, %v983_v53 }
 0x2c4   :  { %v4575_v36 = vunpack.c.l.b16 %v11691_v61  ;;  %v4576_v56 = vunpack.c.h.b16 %v11691_v61  ;;  %v13787_v43 = vmax.f32 %v920_v45, %v922_v59  ;;  %v921_v35 = vmax.f32 %v667_v2, 0.0 }
 0x2c5   :  { %v1326_v26 = vrot.slane %v1318_v38, %v13200_v47  ;;  %v1333_v5 = vrot.slane %v1319_v12, %v13200_v47  ;;  %v820_v34 = vadd.f32 %v819_v16, %v13193_v28  ;;  %v13796_v8 = vcombine.low %v13789_v44, %v13777_v25 }
 0x2c6   :  { %v4752_v55 = vsel %vm4653_vm5, %v4575_v36, %v4751_v7  ;;  %v4755_v33 = vsel %vm4653_vm5, %v4576_v56, %v4754_v9  ;;  %v13802_v46 = vcombine.low %v13783_v40, %v13785_v37  ;;  %v13806_v48 = vcombine.high %v13789_v44, %v13783_v40 }
 0x2c7   :  { %v4825_v50 = vpack.c.b16 %v4755_v33, %v4752_v55  ;;  %v1334_v6 = vcombine.high %v1326_v26, %v1326_v26  ;;  %v1335_v54 = vcombine.high %v1333_v5, %v1333_v5  ;;  %v1966_v29 = vrot.slane %v1326_v26, %v13200_v47 }
 0x2c8   :  { %v1982_v30 = vrot.slane %v1333_v5, %v13200_v47  ;;  %v923_v32 = vmax.f32 %v820_v34, 0.0  ;;  %v4969_v18 = vshrl.u32 %v13796_v8, 16  ;;  %v4971_v60 = vshll.u32 %v13796_v8, 16  ;;  %7478 = vmatprep.mubr.bf16.mxu0 %v13806_v48 }
 0x2c9   :  { %4857 = vst [vmem:[#allocation2 + $0x20] sm:$0x33] %v4825_v50  ;;  %v1967_v63 = vcombine.high %v1966_v29, %v1966_v29  ;;  %v1974_v31 = vrot.slane %v1334_v6, %v13200_v47  ;;  %v1990_v10 = vrot.slane %v1335_v54, %v13200_v47  ;;  %v3281_v62 = vsel %vm2440_vm2, %v1966_v29, -inf }
 0x2ca   :  { %v1983_v14 = vcombine.high %v1982_v30, %v1982_v30  ;;  %v3282_v15 = vrot.slane %v3281_v62, 4  ;;  %v3309_v58 = vsel %vm2440_vm2, %v1982_v30, -inf  ;;  %v13817_v52 = vmax.f32 %v921_v35, %v923_v32 }
 0x2cb   :  { %v1975_v57 = vcombine.high %v1974_v31, %v1974_v31  ;;  %v1991_v17 = vcombine.high %v1990_v10, %v1990_v10  ;;  %v3288_v4 = vsel %vm2440_vm2, %v1967_v63, -inf  ;;  %v3295_v49 = vsel %vm2440_vm2, %v1974_v31, -inf }
 0x2cc   :  { %v3283_v42 = vmax.f32 %v3281_v62, %v3282_v15  ;;  %v3289_v39 = vrot.slane %v3288_v4, 4  ;;  %v3296_v13 = vrot.slane %v3295_v49, 4  ;;  %v3310_v41 = vrot.slane %v3309_v58, 4 }
 0x2cd   :  { %v3302_v45 = vsel %vm2440_vm2, %v1975_v57, -inf  ;;  %v3316_v11 = vsel %vm2440_vm2, %v1983_v14, -inf  ;;  %v3323_v51 = vsel %vm2440_vm2, %v1990_v10, -inf  ;;  %v3330_v53 = vsel %vm2440_vm2, %v1991_v17, -inf }
 0x2ce   :  { %v3284_v59 = vrot.slane %v3283_v42, 2  ;;  %v3290_v61 = vmax.f32 %v3288_v4, %v3289_v39  ;;  %v3297_v0 = vmax.f32 %v3295_v49, %v3296_v13  ;;  %v3303_v3 = vrot.slane %v3302_v45, 4 }
 0x2cf   :  { %v3311_v2 = vmax.f32 %v3309_v58, %v3310_v41  ;;  %v3317_v16 = vrot.slane %v3316_v11, 4  ;;  %v3324_v7 = vrot.slane %v3323_v51, 4  ;;  %v3331_v9 = vrot.slane %v3330_v53, 4 }
 0x2d0   :  { %v3285_v38 = vmax.f32 %v3283_v42, %v3284_v59  ;;  %v3291_v12 = vrot.slane %v3290_v61, 2  ;;  %v3298_v36 = vrot.slane %v3297_v0, 2  ;;  %v3304_v56 = vmax.f32 %v3302_v45, %v3303_v3 }
 0x2d1   :  { %v3312_v35 = vrot.slane %v3311_v2, 2  ;;  %v3318_v26 = vmax.f32 %v3316_v11, %v3317_v16  ;;  %v3325_v5 = vmax.f32 %v3323_v51, %v3324_v7  ;;  %v3332_v34 = vmax.f32 %v3330_v53, %v3331_v9 }
 0x2d2   :  { %v3286_v55 = vrot.slane %v3285_v38, 1  ;;  %v3292_v33 = vmax.f32 %v3290_v61, %v3291_v12  ;;  %v3299_v50 = vmax.f32 %v3297_v0, %v3298_v36  ;;  %v3305_v6 = vrot.slane %v3304_v56, 2 }
 0x2d3   :  { %v3313_v54 = vmax.f32 %v3311_v2, %v3312_v35  ;;  %v3319_v29 = vrot.slane %v3318_v26, 2  ;;  %v3326_v30 = vrot.slane %v3325_v5, 2  ;;  %v3333_v32 = vrot.slane %v3332_v34, 2 }
 0x2d4   :  { %v3287_v63 = vmax.f32 %v3285_v38, %v3286_v55  ;;  %v3293_v31 = vrot.slane %v3292_v33, 1  ;;  %v3300_v10 = vrot.slane %v3299_v50, 1  ;;  %v3306_v62 = vmax.f32 %v3304_v56, %v3305_v6 }
 0x2d5   :  { %v3314_v14 = vrot.slane %v3313_v54, 1  ;;  %v3320_v15 = vmax.f32 %v3318_v26, %v3319_v29  ;;  %v3327_v58 = vmax.f32 %v3325_v5, %v3326_v30  ;;  %v3334_v1 = vmax.f32 %v3332_v34, %v3333_v32 }
 0x2d6   :  { %v3294_v57 = vmax.f32 %v3292_v33, %v3293_v31  ;;  %v3301_v17 = vmax.f32 %v3299_v50, %v3300_v10  ;;  %v3307_v4 = vrot.slane %v3306_v62, 1  ;;  %v1336_v49 = vcombine.low %v13787_v43, %v13817_v52 }
 0x2d7   :  { %v3315_v42 = vmax.f32 %v3313_v54, %v3314_v14  ;;  %v3321_v39 = vrot.slane %v3320_v15, 1  ;;  %v3328_v13 = vrot.slane %v3327_v58, 1  ;;  %v3335_v41 = vrot.slane %v3334_v1, 1 }
 0x2d8   :  { %v3308_v45 = vmax.f32 %v3306_v62, %v3307_v4  ;;  %v11692_v11 = vpack.c.bf16 %v3294_v57, %v3287_v63  ;;  %v1337_v51 = vcombine.high %v13787_v43, %v13817_v52  ;;  %v1344_v53 = vrot.slane %v1336_v49, %v13200_v47 }
 0x2d9   :  { %v3322_v59 = vmax.f32 %v3320_v15, %v3321_v39  ;;  %v3329_v61 = vmax.f32 %v3327_v58, %v3328_v13  ;;  %v3336_v0 = vmax.f32 %v3334_v1, %v3335_v41  ;;  %v13832_v3 = vrot.slane %v4971_v60, 1  ;;  %v13858_v39 = vpop.f32.mrf.mxu0 }
 0x2da   :  { %v11693_v2 = vpack.c.bf16 %v3308_v45, %v3301_v17  ;;  %v4577_v16 = vunpack.c.l.b16 %v11692_v11  ;;  %v4578_v7 = vunpack.c.h.b16 %v11692_v11  ;;  %v1351_v9 = vrot.slane %v1337_v51, %v13200_v47  ;;  %v13860_v51 = vpop.f32.mrf.mxu1 }
 0x2db   :  { %v11694_v38 = vpack.c.bf16 %v3322_v59, %v3315_v42  ;;  %v13835_v12 = vpack.c.bf16 %v3336_v0, %v3329_v61  ;;  %v1352_v36 = vcombine.high %v1344_v53, %v1344_v53  ;;  %v1998_v43 = vrot.slane %v1344_v53, %v13200_v47 }
 0x2dc   :  { %v4579_v52 = vunpack.c.l.b16 %v11693_v2  ;;  %v4580_v56 = vunpack.c.h.b16 %v11693_v2  ;;  %v1353_v35 = vcombine.high %v1351_v9, %v1351_v9  ;;  %v2014_v26 = vrot.slane %v1351_v9, %v13200_v47 }
 0x2dd   :  { %v4581_v5 = vunpack.c.l.b16 %v11694_v38  ;;  %v4582_v34 = vunpack.c.h.b16 %v11694_v38  ;;  %v4583_v60 = vunpack.c.l.b16 %v13835_v12  ;;  %v4584_v55 = vunpack.c.h.b16 %v13835_v12 }
 0x2de   :  { %v4756_v33 = vsel %vm4649_vm3, %v4579_v52, %v4577_v16  ;;  %v4763_v50 = vsel %vm4649_vm3, %v4580_v56, %v4578_v7  ;;  %v1999_v6 = vcombine.high %v1998_v43, %v1998_v43  ;;  %v2006_v54 = vrot.slane %v1352_v36, %v13200_v47  ;;  %v13863_v56 = vpop.f32.mrf.mxu0 }
 0x2df   :  { %v13845_v29 = vsel %vm4651_vm4, %v4581_v5, %v4756_v33  ;;  %v13848_v30 = vsel %vm4651_vm4, %v4582_v34, %v4763_v50  ;;  %v2015_v32 = vcombine.high %v2014_v26, %v2014_v26  ;;  %v2022_v63 = vrot.slane %v1353_v35, %v13200_v47  ;;  %v13865_v33 = vpop.f32.mrf.mxu1 }
 0x2e0   :  { %v2007_v31 = vcombine.high %v2006_v54, %v2006_v54  ;;  %v3337_v10 = vsel %vm2440_vm2, %v1998_v43, -inf  ;;  %v3344_v62 = vsel %vm2440_vm2, %v1999_v6, -inf  ;;  %v3351_v14 = vsel %vm2440_vm2, %v2006_v54, -inf }
 0x2e1   :  { %v2023_v15 = vcombine.high %v2022_v63, %v2022_v63  ;;  %v3338_v58 = vrot.slane %v3337_v10, 4  ;;  %v3345_v1 = vrot.slane %v3344_v62, 4  ;;  %v3352_v57 = vrot.slane %v3351_v14, 4 }
 0x2e2   :  { %v3358_v17 = vsel %vm2440_vm2, %v2007_v31, -inf  ;;  %v3365_v4 = vsel %vm2440_vm2, %v2014_v26, -inf  ;;  %v3372_v49 = vsel %vm2440_vm2, %v2015_v32, -inf  ;;  %v3379_v42 = vsel %vm2440_vm2, %v2022_v63, -inf }
 0x2e3   :  { %v3339_v13 = vmax.f32 %v3337_v10, %v3338_v58  ;;  %v3346_v41 = vmax.f32 %v3344_v62, %v3345_v1  ;;  %v3353_v45 = vmax.f32 %v3351_v14, %v3352_v57  ;;  %v3359_v11 = vrot.slane %v3358_v17, 4  ;;  %v674_v57 = vpop.f32.mrf.mxu0 }
 0x2e4   :  { %v3366_v53 = vrot.slane %v3365_v4, 4  ;;  %v3373_v59 = vrot.slane %v3372_v49, 4  ;;  %v3380_v61 = vrot.slane %v3379_v42, 4  ;;  %v3386_v0 = vsel %vm2440_vm2, %v2023_v15, -inf }
 0x2e5   :  { %v3340_v2 = vrot.slane %v3339_v13, 2  ;;  %v3347_v16 = vrot.slane %v3346_v41, 2  ;;  %v3354_v7 = vrot.slane %v3353_v45, 2  ;;  %v3360_v9 = vmax.f32 %v3358_v17, %v3359_v11 }
 0x2e6   :  { %v3367_v38 = vmax.f32 %v3365_v4, %v3366_v53  ;;  %v3374_v36 = vmax.f32 %v3372_v49, %v3373_v59  ;;  %v3381_v43 = vmax.f32 %v3379_v42, %v3380_v61  ;;  %v3387_v52 = vrot.slane %v3386_v0, 4 }
 0x2e7   :  { %v3341_v35 = vmax.f32 %v3339_v13, %v3340_v2  ;;  %v3348_v26 = vmax.f32 %v3346_v41, %v3347_v16  ;;  %v3355_v5 = vmax.f32 %v3353_v45, %v3354_v7  ;;  %v3361_v34 = vrot.slane %v3360_v9, 2  ;;  %v827_v13 = vpop.f32.mrf.mxu1 }
 0x2e8   :  { %v3368_v50 = vrot.slane %v3367_v38, 2  ;;  %v3375_v6 = vrot.slane %v3374_v36, 2  ;;  %v3382_v54 = vrot.slane %v3381_v43, 2  ;;  %v3388_v32 = vmax.f32 %v3386_v0, %v3387_v52 }
 0x2e9   :  { %v3342_v63 = vrot.slane %v3341_v35, 1  ;;  %v3349_v31 = vrot.slane %v3348_v26, 1  ;;  %v3356_v10 = vrot.slane %v3355_v5, 1  ;;  %v3362_v62 = vmax.f32 %v3360_v9, %v3361_v34 }
 0x2ea   :  { %v3369_v14 = vmax.f32 %v3367_v38, %v3368_v50  ;;  %v3376_v15 = vmax.f32 %v3374_v36, %v3375_v6  ;;  %v3383_v58 = vmax.f32 %v3381_v43, %v3382_v54  ;;  %v3389_v1 = vrot.slane %v3388_v32, 2  ;;  %v676_v36 = vpop.f32.mrf.mxu0 }
 0x2eb   :  { %v3343_v17 = vmax.f32 %v3341_v35, %v3342_v63  ;;  %v3350_v4 = vmax.f32 %v3348_v26, %v3349_v31  ;;  %v3357_v49 = vmax.f32 %v3355_v5, %v3356_v10  ;;  %v3363_v42 = vrot.slane %v3362_v62, 1  ;;  %v829_v5 = vpop.f32.mrf.mxu1 }
 0x2ec   :  { %v3370_v41 = vrot.slane %v3369_v14, 1  ;;  %v3377_v45 = vrot.slane %v3376_v15, 1  ;;  %v3384_v11 = vrot.slane %v3383_v58, 1  ;;  %v3390_v53 = vmax.f32 %v3388_v32, %v3389_v1  ;;  %v678_v10 = vpop.f32.mrf.mxu0 }
 0x2ed   :  { %v3364_v59 = vmax.f32 %v3362_v62, %v3363_v42  ;;  %v11696_v61 = vpack.c.bf16 %v3350_v4, %v3343_v17  ;;  %v4758_v0 = vsel %vm4653_vm5, %v4583_v60, %v13845_v29  ;;  %v4765_v2 = vsel %vm4653_vm5, %v4584_v55, %v13848_v30  ;;  %v11975_v42 = vld [vmem:[#allocation7 + $0x4e0] ss:$16 sps:$4 sm:$0xff]  }
 0x2ee   :  { %v3371_v16 = vmax.f32 %v3369_v14, %v3370_v41  ;;  %v3378_v7 = vmax.f32 %v3376_v15, %v3377_v45  ;;  %v3385_v9 = vmax.f32 %v3383_v58, %v3384_v11  ;;  %v3391_v38 = vrot.slane %v3390_v53, 1  ;;  %v831_v58 = vpop.f32.mrf.mxu1 }
 0x2ef   :  { %v11697_v43 = vpack.c.bf16 %v3364_v59, %v3357_v49  ;;  %v4585_v52 = vunpack.c.l.b16 %v11696_v61  ;;  %v4586_v35 = vunpack.c.h.b16 %v11696_v61  ;;  %v4983_v26 = vshrl.u32 %v13802_v46, 16 }
 0x2f0   :  { %v3392_v34 = vmax.f32 %v3390_v53, %v3391_v38  ;;  %v11698_v50 = vpack.c.bf16 %v3378_v7, %v3371_v16  ;;  %v4985_v60 = vshll.u32 %v13802_v46, 16  ;;  %v669_v12 = vadd.f32 %v13858_v39, %v13184_v23  ;;  %v680_v16 = vpop.f32.mrf.mxu0 }
 0x2f1   :  { %v4587_v29 = vunpack.c.l.b16 %v11697_v43  ;;  %v4588_v55 = vunpack.c.h.b16 %v11697_v43  ;;  %v4759_v30 = vsel %vm4655_vm6, %v4585_v52, %v4758_v0  ;;  %v4766_v6 = vsel %vm4655_vm6, %v4586_v35, %v4765_v2 }
 0x2f2   :  { %v11699_v54 = vpack.c.bf16 %v3392_v34, %v3385_v9  ;;  %v4589_v32 = vunpack.c.l.b16 %v11698_v50  ;;  %v4590_v63 = vunpack.c.h.b16 %v11698_v50  ;;  %v13881_v31 = vrot.slane %v4985_v60, 1  ;;  %v11978_v50 = vld [vmem:[#allocation7 + $0x4c0] ss:$16 sps:$4 sm:$0xff]  }
 0x2f3   :  { %v4760_v62 = vsel %vm4657_vm7, %v4587_v29, %v4759_v30  ;;  %v4767_v14 = vsel %vm4657_vm7, %v4588_v55, %v4766_v6  ;;  %v924_v15 = vmax.f32 %v669_v12, 0.0  ;;  %v822_v39 = vadd.f32 %v13860_v51, %v13187_v24  ;;  %v11980_v51 = vld [vmem:[#allocation7 + $0x4c4] ss:$16 sps:$4 sm:$0xff]  }
 0x2f4   :  { %v4591_v1 = vunpack.c.l.b16 %v11699_v54  ;;  %v4592_v17 = vunpack.c.h.b16 %v11699_v54  ;;  %v4761_v4 = vsel %vm4659_vm8, %v4589_v32, %v4760_v62  ;;  %v4768_v49 = vsel %vm4659_vm8, %v4590_v63, %v4767_v14  ;;  %v11984_v29 = vld [vmem:[#allocation7 + $0x4a4] ss:$16 sps:$4 sm:$0xff]  }
 0x2f5   :  { %v926_v41 = vmax.f32 %v822_v39, 0.0  ;;  %v13891_v45 = vcombine.low %v13789_v44, %v13783_v40  ;;  %v671_v11 = vadd.f32 %v13863_v56, %v13190_v27  ;;  %v824_v53 = vadd.f32 %v13865_v33, %v13193_v28  ;;  %v833_v56 = vpop.f32.mrf.mxu1  ;;  %v11982_v39 = vld [vmem:[#allocation7 + $0x4a0] ss:$16 sps:$4 sm:$0xff]  }
 0x2f6   :  { %v4762_v59 = vsel %vm4661_vm9, %v4591_v1, %v4761_v4  ;;  %v4769_v61 = vsel %vm4661_vm9, %v4592_v17, %v4768_v49  ;;  %v675_v0 = vadd.f32 %v674_v57, %v13184_v23  ;;  %v828_v2 = vadd.f32 %v827_v13, %v13187_v24 }
 0x2f7   :  { %v4826_v7 = vpack.c.b16 %v4769_v61, %v4762_v59  ;;  %v986_v9 = vmax.f32 %v924_v15, %v926_v41  ;;  %7479 = vmatmul.mubr.bf16.vlgmr.msra.gmra.mxu0 %v13891_v45  ;;  %v925_v38 = vmax.f32 %v671_v11, 0.0  ;;  %v927_v43 = vmax.f32 %v824_v53, 0.0 }
 0x2f8   :  { %v928_v52 = vmax.f32 %v675_v0, 0.0  ;;  %v930_v35 = vmax.f32 %v828_v2, 0.0  ;;  %v677_v33 = vadd.f32 %v676_v36, %v13190_v27  ;;  %v830_v34 = vadd.f32 %v829_v5, %v13193_v28  ;;  %7593 = vmatpush1.bf16.msra.mxu0 %v11975_v42 }
 0x2f9   :  { %4858 = vst [vmem:[#allocation2 + $0x10] sm:$0xff] %v4826_v7  ;;  %v987_v57 = vmax.f32 %v925_v38, %v927_v43  ;;  %v679_v13 = vadd.f32 %v678_v10, %v13184_v23  ;;  %v832_v60 = vadd.f32 %v831_v58, %v13187_v24  ;;  %v681_v12 = vadd.f32 %v680_v16, %v13190_v27 }
 0x2fa   :  { %7594 = vmatprep.subr.bf16.mxu0 %v11980_v51  ;;  %v988_v55 = vmax.f32 %v928_v52, %v930_v35  ;;  %v929_v30 = vmax.f32 %v677_v33, 0.0  ;;  %v931_v6 = vmax.f32 %v830_v34, 0.0  ;;  %v834_v54 = vadd.f32 %v833_v56, %v13193_v28 }
 0x2fb   :  { %v1354_v36 = vcombine.low %v986_v9, %v987_v57  ;;  %v1355_v32 = vcombine.high %v986_v9, %v987_v57  ;;  %v932_v5 = vmax.f32 %v679_v13, 0.0  ;;  %v934_v63 = vmax.f32 %v832_v60, 0.0 }
 0x2fc   :  { %v989_v62 = vmax.f32 %v929_v30, %v931_v6  ;;  %v933_v14 = vmax.f32 %v681_v12, 0.0  ;;  %v935_v15 = vmax.f32 %v834_v54, 0.0  ;;  %v13910_v10 = vcombine.high %v13789_v44, %v13777_v25  ;;  %7595 = vmatpush1.bf16.msra.mxu0 %v11978_v50 }
 0x2fd   :  { %v1362_v58 = vrot.slane %v1354_v36, %v13200_v47  ;;  %v1369_v1 = vrot.slane %v1355_v32, %v13200_v47  ;;  %v13914_v17 = vmax.f32 %v932_v5, %v934_v63  ;;  %v13918_v4 = vcombine.high %v13783_v40, %v13785_v37  ;;  %7596 = vmatprep.subr.bf16.mxu0 %v11984_v29 }
 0x2fe   :  { %v1372_v49 = vcombine.low %v988_v55, %v989_v62  ;;  %v1373_v42 = vcombine.high %v988_v55, %v989_v62  ;;  %v13920_v41 = vmax.f32 %v933_v14, %v935_v15  ;;  %v4976_v25 = vshrl.u32 %v13910_v10, 16  ;;  %v11988_v15 = vld [vmem:[#allocation7 + $0x484] ss:$16 sps:$4 sm:$0xff]  }
 0x2ff   :  { %v1370_v44 = vcombine.high %v1362_v58, %v1362_v58  ;;  %v1371_v11 = vcombine.high %v1369_v1, %v1369_v1  ;;  %v2030_v53 = vrot.slane %v1362_v58, %v13200_v47  ;;  %v2046_v51 = vrot.slane %v1369_v1, %v13200_v47 }
 0x300   :  { %v13926_v59 = vrot.slane %v1372_v49, %v13200_v47  ;;  %v13929_v61 = vrot.slane %v1373_v42, %v13200_v47  ;;  %v1390_v40 = vcombine.low %v13914_v17, %v13920_v41  ;;  %v1391_v37 = vcombine.high %v13914_v17, %v13920_v41  ;;  %7597 = vmatpush1.bf16.msra.mxu0 %v11982_v39  ;;  %v11986_v42 = vld [vmem:[#allocation7 + $0x480] ss:$16 sps:$4 sm:$0xff]  }
 0x301   :  { %v2031_v0 = vcombine.high %v2030_v53, %v2030_v53  ;;  %v2038_v2 = vrot.slane %v1370_v44, %v13200_v47  ;;  %v2047_v16 = vcombine.high %v2046_v51, %v2046_v51  ;;  %v2054_v7 = vrot.slane %v1371_v11, %v13200_v47  ;;  %7598 = vmatprep.subr.bf16.mxu0 %v11988_v15  ;;  %v11991_v15 = vld [vmem:[#allocation7 + $0x6e4] ss:$16 sps:$4 sm:$0xff]  }
 0x302   :  { %v3393_v9 = vsel %vm2440_vm2, %v2030_v53, -inf  ;;  %v3421_v38 = vsel %vm2440_vm2, %v2046_v51, -inf  ;;  %v1388_v43 = vcombine.high %v13926_v59, %v13926_v59  ;;  %v1389_v56 = vcombine.high %v13929_v61, %v13929_v61  ;;  %7665 = vmatprep.subr.bf16.mxu1 %v11991_v15 }
 0x303   :  { %v2039_v52 = vcombine.high %v2038_v2, %v2038_v2  ;;  %v2055_v35 = vcombine.high %v2054_v7, %v2054_v7  ;;  %v3394_v33 = vrot.slane %v3393_v9, 4  ;;  %v3400_v34 = vsel %vm2440_vm2, %v2031_v0, -inf }
 0x304   :  { %v3401_v50 = vrot.slane %v3400_v34, 4  ;;  %v3407_v57 = vsel %vm2440_vm2, %v2038_v2, -inf  ;;  %v3422_v13 = vrot.slane %v3421_v38, 4  ;;  %v3428_v60 = vsel %vm2440_vm2, %v2047_v16, -inf  ;;  %7599 = vmatpush1.bf16.msra.mxu0 %v11986_v42 }
 0x305   :  { %v3395_v12 = vmax.f32 %v3393_v9, %v3394_v33  ;;  %v3408_v29 = vrot.slane %v3407_v57, 4  ;;  %v3414_v55 = vsel %vm2440_vm2, %v2039_v52, -inf  ;;  %v3429_v30 = vrot.slane %v3428_v60, 4 }
 0x306   :  { %v3402_v6 = vmax.f32 %v3400_v34, %v3401_v50  ;;  %v3415_v54 = vrot.slane %v3414_v55, 4  ;;  %v3423_v36 = vmax.f32 %v3421_v38, %v3422_v13  ;;  %v3435_v32 = vsel %vm2440_vm2, %v2054_v7, -inf  ;;  %v11994_v34 = vld [vmem:[#allocation7 + $0x464] ss:$16 sps:$4 sm:$0xff]  }
 0x307   :  { %v3396_v5 = vrot.slane %v3395_v12, 2  ;;  %v3409_v63 = vmax.f32 %v3407_v57, %v3408_v29  ;;  %v3430_v62 = vmax.f32 %v3428_v60, %v3429_v30  ;;  %v3436_v14 = vrot.slane %v3435_v32, 4  ;;  %v11992_v60 = vld [vmem:[#allocation7 + $0x460] ss:$16 sps:$4 sm:$0xff]   ;;  %7600 = vmatprep.subr.bf16.mxu0 %v11994_v34 }
 0x308   :  { %v3403_v39 = vrot.slane %v3402_v6, 2  ;;  %v3416_v58 = vmax.f32 %v3414_v55, %v3415_v54  ;;  %v3424_v1 = vrot.slane %v3423_v36, 2  ;;  %v3442_v49 = vsel %vm2440_vm2, %v2055_v35, -inf  ;;  %7601 = vmatpush1.bf16.msra.mxu0 %v11992_v60 }
 0x309   :  { %v3397_v44 = vmax.f32 %v3395_v12, %v3396_v5  ;;  %v3410_v11 = vrot.slane %v3409_v63, 2  ;;  %v3431_v53 = vrot.slane %v3430_v62, 2  ;;  %v3437_v51 = vmax.f32 %v3435_v32, %v3436_v14 }
 0x30a   :  { %v3404_v0 = vmax.f32 %v3402_v6, %v3403_v39  ;;  %v3417_v2 = vrot.slane %v3416_v58, 2  ;;  %v3425_v16 = vmax.f32 %v3423_v36, %v3424_v1  ;;  %v3443_v7 = vrot.slane %v3442_v49, 4 }
 0x30b   :  { %v3398_v9 = vrot.slane %v3397_v44, 1  ;;  %v3411_v38 = vmax.f32 %v3409_v63, %v3410_v11  ;;  %v3432_v52 = vmax.f32 %v3430_v62, %v3431_v53  ;;  %v3438_v33 = vrot.slane %v3437_v51, 2 }
 0x30c   :  { %v3405_v50 = vrot.slane %v3404_v0, 1  ;;  %v3418_v57 = vmax.f32 %v3416_v58, %v3417_v2  ;;  %v3426_v13 = vrot.slane %v3425_v16, 1  ;;  %v3444_v35 = vmax.f32 %v3442_v49, %v3443_v7 }
 0x30d   :  { %v3399_v12 = vmax.f32 %v3397_v44, %v3398_v9  ;;  %v3412_v29 = vrot.slane %v3411_v38, 1  ;;  %v3433_v55 = vrot.slane %v3432_v52, 1  ;;  %v3439_v30 = vmax.f32 %v3437_v51, %v3438_v33 }
 0x30e   :  { %v3406_v6 = vmax.f32 %v3404_v0, %v3405_v50  ;;  %v3419_v54 = vrot.slane %v3418_v57, 1  ;;  %v3427_v36 = vmax.f32 %v3425_v16, %v3426_v13  ;;  %v3445_v32 = vrot.slane %v3444_v35, 2 }
 0x30f   :  { %v3413_v5 = vmax.f32 %v3411_v38, %v3412_v29  ;;  %v3434_v63 = vmax.f32 %v3432_v52, %v3433_v55  ;;  %v3440_v62 = vrot.slane %v3439_v30, 1  ;;  %v2062_v14 = vrot.slane %v13926_v59, %v13200_v47 }
 0x310   :  { %v3420_v39 = vmax.f32 %v3418_v57, %v3419_v54  ;;  %v3446_v58 = vmax.f32 %v3444_v35, %v3445_v32  ;;  %v11700_v1 = vpack.c.bf16 %v3406_v6, %v3399_v12  ;;  %v2070_v49 = vrot.slane %v1388_v43, %v13200_v47 }
 0x311   :  { %v3441_v42 = vmax.f32 %v3439_v30, %v3440_v62  ;;  %v11702_v44 = vpack.c.bf16 %v3434_v63, %v3427_v36  ;;  %v2063_v11 = vcombine.high %v2062_v14, %v2062_v14  ;;  %v2078_v53 = vrot.slane %v13929_v61, %v13200_v47 }
 0x312   :  { %v3447_v51 = vrot.slane %v3446_v58, 1  ;;  %v11701_v0 = vpack.c.bf16 %v3420_v39, %v3413_v5  ;;  %v4593_v2 = vunpack.c.l.b16 %v11700_v1  ;;  %v4594_v16 = vunpack.c.h.b16 %v11700_v1 }
 0x313   :  { %v4597_v7 = vunpack.c.l.b16 %v11702_v44  ;;  %v4598_v9 = vunpack.c.h.b16 %v11702_v44  ;;  %v2071_v38 = vcombine.high %v2070_v49, %v2070_v49  ;;  %v2079_v52 = vcombine.high %v2078_v53, %v2078_v53 }
 0x314   :  { %v3448_v33 = vmax.f32 %v3446_v58, %v3447_v51  ;;  %v4595_v34 = vunpack.c.l.b16 %v11701_v0  ;;  %v4596_v50 = vunpack.c.h.b16 %v11701_v0  ;;  %v2086_v59 = vrot.slane %v1389_v56, %v13200_v47 }
 0x315   :  { %v3449_v43 = vsel %vm2440_vm2, %v2062_v14, -inf  ;;  %v3456_v57 = vsel %vm2440_vm2, %v2063_v11, -inf  ;;  %v3463_v13 = vsel %vm2440_vm2, %v2070_v49, -inf  ;;  %v3470_v35 = vsel %vm2440_vm2, %v2071_v38, -inf }
 0x316   :  { %v11703_v60 = vpack.c.bf16 %v3448_v33, %v3441_v42  ;;  %v4770_v12 = vsel %vm4649_vm3, %v4595_v34, %v4593_v2  ;;  %v4773_v29 = vsel %vm4649_vm3, %v4596_v50, %v4594_v16  ;;  %v2087_v55 = vcombine.high %v2086_v59, %v2086_v59  ;;  %v12001_v42 = vld [vmem:[#allocation7 + $0x444] ss:$16 sps:$4 sm:$0xff]   ;;  %v11999_v2 = vld [vmem:[#allocation7 + $0x440] ss:$16 sps:$4 sm:$0xff]  }
 0x317   :  { %v4771_v30 = vsel %vm4651_vm4, %v4597_v7, %v4770_v12  ;;  %v4774_v6 = vsel %vm4651_vm4, %v4598_v9, %v4773_v29  ;;  %v3450_v61 = vrot.slane %v3449_v43, 4  ;;  %v3457_v56 = vrot.slane %v3456_v57, 4  ;;  %7602 = vmatprep.subr.bf16.mxu0 %v12001_v42 }
 0x318   :  { %v4599_v54 = vunpack.c.l.b16 %v11703_v60  ;;  %v4600_v36 = vunpack.c.h.b16 %v11703_v60  ;;  %v3464_v32 = vrot.slane %v3463_v13, 4  ;;  %v3471_v5 = vrot.slane %v3470_v35, 4  ;;  %7603 = vmatpush1.bf16.msra.mxu0 %v11999_v2 }
 0x319   :  { %v3451_v63 = vmax.f32 %v3449_v43, %v3450_v61  ;;  %v3458_v62 = vmax.f32 %v3456_v57, %v3457_v56  ;;  %v3477_v14 = vsel %vm2440_vm2, %v2078_v53, -inf  ;;  %v3484_v15 = vsel %vm2440_vm2, %v2079_v52, -inf }
 0x31a   :  { %v4772_v39 = vsel %vm4653_vm5, %v4599_v54, %v4771_v30  ;;  %v4775_v58 = vsel %vm4653_vm5, %v4600_v36, %v4774_v6  ;;  %v3465_v1 = vmax.f32 %v3463_v13, %v3464_v32  ;;  %v3472_v49 = vmax.f32 %v3470_v35, %v3471_v5 }
 0x31b   :  { %v4827_v44 = vpack.c.b16 %v4775_v58, %v4772_v39  ;;  %v3452_v11 = vrot.slane %v3451_v63, 2  ;;  %v3459_v51 = vrot.slane %v3458_v62, 2  ;;  %v3478_v0 = vrot.slane %v3477_v14, 4  ;;  %v12008_v39 = vld [vmem:[#allocation7 + $0x424] ss:$16 sps:$4 sm:$0xff]  }
 0x31c   :  { %v3466_v16 = vrot.slane %v3465_v1, 2  ;;  %v3473_v7 = vrot.slane %v3472_v49, 2  ;;  %v3485_v9 = vrot.slane %v3484_v15, 4  ;;  %v3491_v38 = vsel %vm2440_vm2, %v2086_v59, -inf  ;;  %7604 = vmatprep.subr.bf16.mxu0 %v12008_v39 }
 0x31d   :  { %4859 = vst [vmem:[#allocation2 + $0x38] sm:$0x33] %v4827_v44  ;;  %v3453_v53 = vmax.f32 %v3451_v63, %v3452_v11  ;;  %v3460_v52 = vmax.f32 %v3458_v62, %v3459_v51  ;;  %v3479_v33 = vmax.f32 %v3477_v14, %v3478_v0  ;;  %v3492_v34 = vrot.slane %v3491_v38, 4 }
 0x31e   :  { %v3467_v50 = vmax.f32 %v3465_v1, %v3466_v16  ;;  %v3474_v43 = vmax.f32 %v3472_v49, %v3473_v7  ;;  %v3486_v57 = vmax.f32 %v3484_v15, %v3485_v9  ;;  %v3498_v13 = vsel %vm2440_vm2, %v2087_v55, -inf  ;;  %v12006_v49 = vld [vmem:[#allocation7 + $0x420] ss:$16 sps:$4 sm:$0xff]  }
 0x31f   :  { %v3454_v35 = vrot.slane %v3453_v53, 1  ;;  %v3461_v60 = vrot.slane %v3460_v52, 1  ;;  %v3480_v12 = vrot.slane %v3479_v33, 2  ;;  %v3493_v29 = vmax.f32 %v3491_v38, %v3492_v34  ;;  %7605 = vmatpush1.bf16.msra.mxu0 %v12006_v49 }
 0x320   :  { %v3468_v30 = vrot.slane %v3467_v50, 1  ;;  %v3475_v6 = vrot.slane %v3474_v43, 1  ;;  %v3487_v61 = vrot.slane %v3486_v57, 2  ;;  %v3499_v59 = vrot.slane %v3498_v13, 4 }
 0x321   :  { %v3455_v56 = vmax.f32 %v3453_v53, %v3454_v35  ;;  %v3462_v54 = vmax.f32 %v3460_v52, %v3461_v60  ;;  %v3481_v36 = vmax.f32 %v3479_v33, %v3480_v12  ;;  %v3494_v32 = vrot.slane %v3493_v29, 2 }
 0x322   :  { %v3469_v5 = vmax.f32 %v3467_v50, %v3468_v30  ;;  %v3476_v63 = vmax.f32 %v3474_v43, %v3475_v6  ;;  %v3488_v62 = vmax.f32 %v3486_v57, %v3487_v61  ;;  %v3500_v14 = vmax.f32 %v3498_v13, %v3499_v59  ;;  %v12012_v57 = vld [vmem:[#allocation7 + $0x400] ss:$16 sps:$4 sm:$0xff]  }
 0x323   :  { %v3482_v15 = vrot.slane %v3481_v36, 1  ;;  %v3495_v58 = vmax.f32 %v3493_v29, %v3494_v32  ;;  %v11704_v55 = vpack.c.bf16 %v3462_v54, %v3455_v56  ;;  %v1398_v1 = vrot.slane %v1390_v40, %v13200_v47  ;;  %v12014_v40 = vld [vmem:[#allocation7 + $0x404] ss:$16 sps:$4 sm:$0xff]  }
 0x324   :  { %v3489_v42 = vrot.slane %v3488_v62, 1  ;;  %v3501_v44 = vrot.slane %v3500_v14, 2  ;;  %v11705_v11 = vpack.c.bf16 %v3476_v63, %v3469_v5  ;;  %v1405_v51 = vrot.slane %v1391_v37, %v13200_v47  ;;  %7606 = vmatprep.subr.bf16.mxu0 %v12014_v40  ;;  %v12021_v56 = vld [vmem:[#allocation7 + $0x5e4] ss:$16 sps:$4 sm:$0xff]   ;;  %v12019_v63 = vld [vmem:[#allocation7 + $0x5e0] ss:$16 sps:$4 sm:$0xff]  }
 0x325   :  { %v3483_v0 = vmax.f32 %v3481_v36, %v3482_v15  ;;  %v3496_v2 = vrot.slane %v3495_v58, 1  ;;  %v4601_v16 = vunpack.c.l.b16 %v11704_v55  ;;  %v4602_v7 = vunpack.c.h.b16 %v11704_v55  ;;  %7607 = vmatpush1.bf16.msra.mxu0 %v12012_v57 }
 0x326   :  { %v3490_v9 = vmax.f32 %v3488_v62, %v3489_v42  ;;  %v3502_v38 = vmax.f32 %v3500_v14, %v3501_v44  ;;  %v4603_v53 = vunpack.c.l.b16 %v11705_v11  ;;  %v4604_v52 = vunpack.c.h.b16 %v11705_v11  ;;  %7608 = vmatprep.subr.bf16.mxu0 %v12021_v56 }
 0x327   :  { %v3497_v33 = vmax.f32 %v3495_v58, %v3496_v2  ;;  %v1406_v34 = vcombine.high %v1398_v1, %v1398_v1  ;;  %v1407_v50 = vcombine.high %v1405_v51, %v1405_v51  ;;  %v2094_v43 = vrot.slane %v1398_v1, %v13200_v47 }
 0x328   :  { %v3503_v13 = vrot.slane %v3502_v38, 1  ;;  %v11706_v17 = vpack.c.bf16 %v3490_v9, %v3483_v0  ;;  %v4776_v41 = vsel %vm4649_vm3, %v4603_v53, %v4601_v16  ;;  %v4783_v37 = vsel %vm4649_vm3, %v4604_v52, %v4602_v7  ;;  %v12028_v0 = vld [vmem:[#allocation7 + $0x5c4] ss:$16 sps:$4 sm:$0xff]  }
 0x329   :  { %v2095_v35 = vcombine.high %v2094_v43, %v2094_v43  ;;  %v2102_v60 = vrot.slane %v1406_v34, %v13200_v47  ;;  %v2110_v12 = vrot.slane %v1405_v51, %v13200_v47  ;;  %v2118_v29 = vrot.slane %v1407_v50, %v13200_v47  ;;  %7609 = vmatpush2.bf16.msra.mxu0 %v12019_v63  ;;  %v12026_v34 = vld [vmem:[#allocation7 + $0x5c0] ss:$16 sps:$4 sm:$0xff]  }
 0x32a   :  { %v3504_v30 = vmax.f32 %v3502_v38, %v3503_v13  ;;  %v4605_v6 = vunpack.c.l.b16 %v11706_v17  ;;  %v4606_v61 = vunpack.c.h.b16 %v11706_v17  ;;  %v3505_v59 = vsel %vm2440_vm2, %v2094_v43, -inf  ;;  %7610 = vmatprep.subr.bf16.mxu0 %v12028_v0  ;;  %v14005_v17 = vpop.f32.mrf.mxu1 }
 0x32b   :  { %v2103_v54 = vcombine.high %v2102_v60, %v2102_v60  ;;  %v2111_v36 = vcombine.high %v2110_v12, %v2110_v12  ;;  %v2119_v32 = vcombine.high %v2118_v29, %v2118_v29  ;;  %v3506_v5 = vrot.slane %v3505_v59, 4 }
 0x32c   :  { %v11707_v62 = vpack.c.bf16 %v3504_v30, %v3497_v33  ;;  %v4777_v14 = vsel %vm4651_vm4, %v4605_v6, %v4776_v41  ;;  %v4784_v39 = vsel %vm4651_vm4, %v4606_v61, %v4783_v37  ;;  %v3512_v15 = vsel %vm2440_vm2, %v2095_v35, -inf  ;;  %v14003_v33 = vpop.f32.mrf.mxu0 }
 0x32d   :  { %v3507_v58 = vmax.f32 %v3505_v59, %v3506_v5  ;;  %v3513_v55 = vrot.slane %v3512_v15, 4  ;;  %v3519_v1 = vsel %vm2440_vm2, %v2102_v60, -inf  ;;  %v3526_v49 = vsel %vm2440_vm2, %v2103_v54, -inf  ;;  %7611 = vmatpush2.bf16.msra.mxu0 %v12026_v34  ;;  %v12032_v59 = vld [vmem:[#allocation7 + $0x5a0] ss:$16 sps:$4 sm:$0xff]  }
 0x32e   :  { %v4607_v42 = vunpack.c.l.b16 %v11707_v62  ;;  %v4608_v44 = vunpack.c.h.b16 %v11707_v62  ;;  %v3520_v11 = vrot.slane %v3519_v1, 4  ;;  %v3527_v51 = vrot.slane %v3526_v49, 4  ;;  %v14009_v63 = vpop.f32.mrf.mxu0  ;;  %v12034_v62 = vld [vmem:[#allocation7 + $0x5a4] ss:$16 sps:$4 sm:$0xff]  }
 0x32f   :  { %v3508_v2 = vrot.slane %v3507_v58, 2  ;;  %v3514_v16 = vmax.f32 %v3512_v15, %v3513_v55  ;;  %v3533_v7 = vsel %vm2440_vm2, %v2110_v12, -inf  ;;  %v3540_v9 = vsel %vm2440_vm2, %v2111_v36, -inf  ;;  %7612 = vmatprep.subr.bf16.mxu0 %v12034_v62 }
 0x330   :  { %v13998_v38 = vsel %vm4653_vm5, %v4607_v42, %v4777_v14  ;;  %v14001_v53 = vsel %vm4653_vm5, %v4608_v44, %v4784_v39  ;;  %v3521_v52 = vmax.f32 %v3519_v1, %v3520_v11  ;;  %v3528_v40 = vmax.f32 %v3526_v49, %v3527_v51 }
 0x331   :  { %v3509_v50 = vmax.f32 %v3507_v58, %v3508_v2  ;;  %v3515_v43 = vrot.slane %v3514_v16, 2  ;;  %v3534_v57 = vrot.slane %v3533_v7, 4  ;;  %v3541_v13 = vrot.slane %v3540_v9, 4  ;;  %7613 = vmatpush2.bf16.msra.mxu0 %v12032_v59  ;;  %v12046_v59 = vld [vmem:[#allocation7 + $0x560] ss:$16 sps:$4 sm:$0xff]  }
 0x332   :  { %v3522_v41 = vrot.slane %v3521_v52, 2  ;;  %v3529_v37 = vrot.slane %v3528_v40, 2  ;;  %v3547_v35 = vsel %vm2440_vm2, %v2118_v29, -inf  ;;  %v3554_v60 = vsel %vm2440_vm2, %v2119_v32, -inf  ;;  %v14011_v29 = vpop.f32.mrf.mxu1 }
 0x333   :  { %v3510_v12 = vrot.slane %v3509_v50, 1  ;;  %v3516_v30 = vmax.f32 %v3514_v16, %v3515_v43  ;;  %v3535_v6 = vmax.f32 %v3533_v7, %v3534_v57  ;;  %v3542_v61 = vmax.f32 %v3540_v9, %v3541_v13  ;;  %v688_v9 = vpop.f32.mrf.mxu0 }
 0x334   :  { %v3523_v56 = vmax.f32 %v3521_v52, %v3522_v41  ;;  %v3530_v54 = vmax.f32 %v3528_v40, %v3529_v37  ;;  %v3548_v36 = vrot.slane %v3547_v35, 4  ;;  %v3555_v5 = vrot.slane %v3554_v60, 4  ;;  %v12039_v52 = vld [vmem:[#allocation7 + $0x580] ss:$16 sps:$4 sm:$0xff]   ;;  %v12041_v40 = vld [vmem:[#allocation7 + $0x584] ss:$16 sps:$4 sm:$0xff]   ;;  %v841_v13 = vpop.f32.mrf.mxu1 }
 0x335   :  { %v3511_v14 = vmax.f32 %v3509_v50, %v3510_v12  ;;  %v3517_v39 = vrot.slane %v3516_v30, 1  ;;  %v3536_v15 = vrot.slane %v3535_v6, 2  ;;  %v3543_v58 = vrot.slane %v3542_v61, 2  ;;  %7614 = vmatprep.subr.bf16.mxu0 %v12041_v40 }
 0x336   :  { %v3524_v32 = vrot.slane %v3523_v56, 1  ;;  %v3531_v55 = vrot.slane %v3530_v54, 1  ;;  %v3549_v1 = vmax.f32 %v3547_v35, %v3548_v36  ;;  %v3556_v49 = vmax.f32 %v3554_v60, %v3555_v5  ;;  %7615 = vmatpush2.bf16.msra.mxu0 %v12039_v52 }
 0x337   :  { %v3518_v42 = vmax.f32 %v3516_v30, %v3517_v39  ;;  %v3537_v44 = vmax.f32 %v3535_v6, %v3536_v15  ;;  %v3544_v11 = vmax.f32 %v3542_v61, %v3543_v58  ;;  %v4978_v51 = vshll.u32 %v13910_v10, 16  ;;  %v12054_v39 = vld [vmem:[#allocation7 + $0x544] ss:$16 sps:$4 sm:$0xff]  }
 0x338   :  { %v3525_v0 = vmax.f32 %v3523_v56, %v3524_v32  ;;  %v3532_v2 = vmax.f32 %v3530_v54, %v3531_v55  ;;  %v3550_v16 = vrot.slane %v3549_v1, 2  ;;  %v3557_v7 = vrot.slane %v3556_v49, 2  ;;  %v12048_v56 = vld [vmem:[#allocation7 + $0x564] ss:$16 sps:$4 sm:$0xff]  }
 0x339   :  { %v3538_v34 = vrot.slane %v3537_v44, 1  ;;  %v3545_v50 = vrot.slane %v3544_v11, 1  ;;  %v11708_v43 = vpack.c.bf16 %v3518_v42, %v3511_v14  ;;  %v4980_v57 = vrot.slane %v4978_v51, 1  ;;  %v690_v14 = vpop.f32.mrf.mxu0  ;;  %7616 = vmatprep.subr.bf16.mxu0 %v12048_v56 }
 0x33a   :  { %v3551_v41 = vmax.f32 %v3549_v1, %v3550_v16  ;;  %v3558_v37 = vmax.f32 %v3556_v49, %v3557_v7  ;;  %v11709_v35 = vpack.c.bf16 %v3532_v2, %v3525_v0  ;;  %v4990_v60 = vshrl.u32 %v13918_v4, 16  ;;  %v843_v1 = vpop.f32.mrf.mxu1  ;;  %7617 = vmatpush2.bf16.msra.mxu0 %v12046_v59 }
 0x33b   :  { %v3539_v12 = vmax.f32 %v3537_v44, %v3538_v34  ;;  %v3546_v30 = vmax.f32 %v3544_v11, %v3545_v50  ;;  %v4609_v6 = vunpack.c.l.b16 %v11708_v43  ;;  %v4610_v61 = vunpack.c.h.b16 %v11708_v43  ;;  %v694_v52 = vpop.f32.mrf.mxu0  ;;  %7618 = vmatprep.subr.bf16.mxu0 %v12054_v39  ;;  %v11997_v39 = vld [vmem:[#allocation7 + $0x6c4] ss:$16 sps:$4 sm:$0xff]  }
 0x33c   :  { %v3552_v54 = vrot.slane %v3551_v41, 1  ;;  %v3559_v36 = vrot.slane %v3558_v37, 1  ;;  %v4611_v5 = vunpack.c.l.b16 %v11709_v35  ;;  %v4612_v62 = vunpack.c.h.b16 %v11709_v35  ;;  %v847_v43 = vpop.f32.mrf.mxu1 }
 0x33d   :  { %v11710_v15 = vpack.c.bf16 %v3546_v30, %v3539_v12  ;;  %v4779_v58 = vsel %vm4655_vm6, %v4609_v6, %v13998_v38  ;;  %v4786_v32 = vsel %vm4655_vm6, %v4610_v61, %v14001_v53  ;;  %v4981_v55 = vor.u32 %v4980_v57, %v4976_v25  ;;  %v12052_v53 = vld [vmem:[#allocation7 + $0x540] ss:$16 sps:$4 sm:$0xff]   ;;  %v696_v30 = vpop.f32.mrf.mxu0 }
 0x33e   :  { %v3553_v49 = vmax.f32 %v3551_v41, %v3552_v54  ;;  %v3560_v42 = vmax.f32 %v3558_v37, %v3559_v36  ;;  %v4780_v44 = vsel %vm4657_vm7, %v4611_v5, %v4779_v58  ;;  %v4787_v11 = vsel %vm4657_vm7, %v4612_v62, %v4786_v32  ;;  %7619 = vmatpush2.bf16.msra.mxu0 %v12052_v53  ;;  %v12058_v6 = vld [vmem:[#allocation7 + $0x520] ss:$16 sps:$4 sm:$0xff]   ;;  %v849_v56 = vpop.f32.mrf.mxu1  ;;  %v12068_v54 = vld [vmem:[#allocation7 + $0x504] ss:$16 sps:$4 sm:$0xff]  }
 0x33f   :  { %v4613_v51 = vunpack.c.l.b16 %v11710_v15  ;;  %v4614_v0 = vunpack.c.h.b16 %v11710_v15  ;;  %v4992_v2 = vshll.u32 %v13918_v4, 16  ;;  %v685_v38 = vadd.f32 %v14003_v33, %v13184_v23  ;;  %v12060_v4 = vld [vmem:[#allocation7 + $0x524] ss:$16 sps:$4 sm:$0xff]  }
 0x340   :  { %v11711_v16 = vpack.c.bf16 %v3560_v42, %v3553_v49  ;;  %v838_v10 = vadd.f32 %v14005_v17, %v13187_v24  ;;  %v4974_v25 = vor.u32 %v13832_v3, %v4969_v18  ;;  %v4988_v7 = vor.u32 %v13881_v31, %v4983_v26  ;;  %7620 = vmatprep.subr.bf16.mxu0 %v12060_v4  ;;  %v851_v53 = vpop.f32.mrf.mxu1  ;;  %v12004_v4 = vld [vmem:[#allocation7 + $0x6a4] ss:$16 sps:$4 sm:$0xff]  }
 0x341   :  { %v4781_v40 = vsel %vm4659_vm8, %v4613_v51, %v4780_v44  ;;  %v4788_v33 = vsel %vm4659_vm8, %v4614_v0, %v4787_v11  ;;  %v4994_v34 = vrot.slane %v4992_v2, 1  ;;  %v936_v50 = vmax.f32 %v685_v38, 0.0  ;;  %v698_v44 = vpop.f32.mrf.mxu0  ;;  %v14058_v38 = vld [vmem:[#allocation2 + $0x50] sm:$0xff] }
 0x342   :  { %v4615_v57 = vunpack.c.l.b16 %v11711_v16  ;;  %v4616_v17 = vunpack.c.h.b16 %v11711_v16  ;;  %v938_v41 = vmax.f32 %v838_v10, 0.0  ;;  %v14036_v8 = vcombine.low %v4974_v25, %v4988_v7  ;;  %7621 = vmatpush2.bf16.msra.mxu0 %v12058_v6  ;;  %v11995_v16 = vld [vmem:[#allocation7 + $0x6c0] ss:$16 sps:$4 sm:$0xff]   ;;  %v12011_v6 = vld [vmem:[#allocation7 + $0x684] ss:$16 sps:$4 sm:$0xff]  }
 0x343   :  { %v4995_v18 = vor.u32 %v4994_v34, %v4990_v60  ;;  %v687_v46 = vadd.f32 %v14009_v63, %v13190_v27  ;;  %v840_v3 = vadd.f32 %v14011_v29, %v13193_v28  ;;  %v689_v26 = vadd.f32 %v688_v9, %v13184_v23  ;;  %v11989_v29 = vld [vmem:[#allocation7 + $0x6e0] ss:$16 sps:$4 sm:$0xff]   ;;  %7622 = vmatprep.subr.bf16.mxu0 %v12068_v54 }
 0x344   :  { %v4782_v31 = vsel %vm4661_vm9, %v4615_v57, %v4781_v40  ;;  %v4789_v37 = vsel %vm4661_vm9, %v4616_v17, %v4788_v33  ;;  %v992_v35 = vmax.f32 %v936_v50, %v938_v41  ;;  %v842_v12 = vadd.f32 %v841_v13, %v13187_v24 }
 0x345   :  { %v4828_v60 = vpack.c.b16 %v4789_v37, %v4782_v31  ;;  %v14046_v61 = vcombine.low %v4981_v55, %v4995_v18  ;;  %v937_v63 = vmax.f32 %v687_v46, 0.0  ;;  %v939_v59 = vmax.f32 %v840_v3, 0.0  ;;  %v14054_v55 = vld [vmem:[#allocation2 + $0x8] sm:$0xff] }
 0x346   :  { %v940_v9 = vmax.f32 %v689_v26, 0.0  ;;  %v942_v36 = vmax.f32 %v842_v12, 0.0  ;;  %v691_v5 = vadd.f32 %v690_v14, %v13190_v27  ;;  %v844_v62 = vadd.f32 %v843_v1, %v13193_v28  ;;  %v12077_v46 = vld [vmem:[#allocation7 + $0x8e4] ss:$16 sps:$4 sm:$0xff]  }
 0x347   :  { %4860 = vst [vmem:[#allocation2 + $0x60] sm:$0xff] %v4828_v60  ;;  %7551 = vmatprep.mubr.bf16.mxu1 %v14046_v61  ;;  %v993_v13 = vmax.f32 %v937_v63, %v939_v59  ;;  %v695_v15 = vadd.f32 %v694_v52, %v13184_v23  ;;  %v848_v58 = vadd.f32 %v847_v43, %v13187_v24  ;;  %v12066_v43 = vld [vmem:[#allocation7 + $0x500] ss:$16 sps:$4 sm:$0xff]  }
 0x348   :  { %v697_v32 = vadd.f32 %v696_v30, %v13190_v27  ;;  %7552 = vmatmul.mubr.bf16.vlgmr.msra.gmra.mxu1 %v14036_v8  ;;  %v994_v49 = vmax.f32 %v940_v9, %v942_v36  ;;  %v941_v42 = vmax.f32 %v691_v5, 0.0  ;;  %v943_v14 = vmax.f32 %v844_v62, 0.0  ;;  %7623 = vmatpush2.bf16.msra.mxu0 %v12066_v43 }
 0x349   :  { %v850_v1 = vadd.f32 %v849_v56, %v13193_v28  ;;  %v1408_v11 = vcombine.low %v992_v35, %v993_v13  ;;  %v1409_v51 = vcombine.high %v992_v35, %v993_v13  ;;  %v944_v0 = vmax.f32 %v695_v15, 0.0  ;;  %7666 = vmatpush1.bf16.msra.mxu1 %v11989_v29  ;;  %7738 = vmatprep.subr.bf16.mxu0 %v12077_v46  ;;  %v12009_v15 = vld [vmem:[#allocation7 + $0x680] ss:$16 sps:$4 sm:$0xff]   ;;  %v12024_v46 = vld [vmem:[#allocation7 + $0x644] ss:$16 sps:$4 sm:$0xff]  }
 0x34a   :  { %v946_v2 = vmax.f32 %v848_v58, 0.0  ;;  %v995_v10 = vmax.f32 %v941_v42, %v943_v14  ;;  %v945_v25 = vmax.f32 %v697_v32, 0.0  ;;  %v14062_v52 = vcombine.high %v14058_v38, %v14054_v55  ;;  %7667 = vmatprep.subr.bf16.mxu1 %v11997_v39  ;;  %v12017_v14 = vld [vmem:[#allocation7 + $0x664] ss:$16 sps:$4 sm:$0xff]  }
 0x34b   :  { %v947_v7 = vmax.f32 %v850_v1, 0.0  ;;  %v1416_v40 = vrot.slane %v1408_v11, %v13200_v47  ;;  %v1423_v33 = vrot.slane %v1409_v51, %v13200_v47  ;;  %v14069_v50 = vadd.f32 %v698_v44, %v13184_v23  ;;  %v12002_v23 = vld [vmem:[#allocation7 + $0x6a0] ss:$16 sps:$4 sm:$0xff]  }
 0x34c   :  { %v14066_v34 = vmax.f32 %v944_v0, %v946_v2  ;;  %v1426_v57 = vcombine.low %v994_v49, %v995_v10  ;;  %v1427_v17 = vcombine.high %v994_v49, %v995_v10  ;;  %7488 = vmatprep.mubr.bf16.mxu0 %v14062_v52  ;;  %v14075_v18 = vadd.f32 %v851_v53, %v13187_v24 }
 0x34d   :  { %v14071_v41 = vmax.f32 %v945_v25, %v947_v7  ;;  %v1424_v3 = vcombine.high %v1416_v40, %v1416_v40  ;;  %v1425_v26 = vcombine.high %v1423_v33, %v1423_v33  ;;  %v2126_v31 = vrot.slane %v1416_v40, %v13200_v47  ;;  %7668 = vmatpush1.bf16.msra.mxu1 %v11995_v16  ;;  %v12015_v40 = vld [vmem:[#allocation7 + $0x660] ss:$16 sps:$4 sm:$0xff]  }
 0x34e   :  { %v2142_v37 = vrot.slane %v1423_v33, %v13200_v47  ;;  %v14080_v35 = vrot.slane %v1426_v57, %v13200_v47  ;;  %v14083_v12 = vrot.slane %v1427_v17, %v13200_v47  ;;  %7669 = vmatprep.subr.bf16.mxu1 %v12004_v4 }
 0x34f   :  { %v1444_v30 = vcombine.low %v14066_v34, %v14071_v41  ;;  %v1445_v24 = vcombine.high %v14066_v34, %v14071_v41  ;;  %v2127_v60 = vcombine.high %v2126_v31, %v2126_v31  ;;  %v2134_v63 = vrot.slane %v1424_v3, %v13200_v47 }
 0x350   :  { %v2143_v59 = vcombine.high %v2142_v37, %v2142_v37  ;;  %v2150_v56 = vrot.slane %v1425_v26, %v13200_v47  ;;  %v3561_v29 = vsel %vm2440_vm2, %v2126_v31, -inf  ;;  %v3589_v54 = vsel %vm2440_vm2, %v2142_v37, -inf }
 0x351   :  { %v1442_v9 = vcombine.high %v14080_v35, %v14080_v35  ;;  %v1443_v36 = vcombine.high %v14083_v12, %v14083_v12  ;;  %v2135_v5 = vcombine.high %v2134_v63, %v2134_v63  ;;  %v3562_v39 = vrot.slane %v3561_v29, 4  ;;  %7670 = vmatpush1.bf16.msra.mxu1 %v12002_v23 }
 0x352   :  { %v2151_v62 = vcombine.high %v2150_v56, %v2150_v56  ;;  %v3568_v13 = vsel %vm2440_vm2, %v2127_v60, -inf  ;;  %v3575_v32 = vsel %vm2440_vm2, %v2134_v63, -inf  ;;  %v3590_v49 = vrot.slane %v3589_v54, 4  ;;  %7671 = vmatprep.subr.bf16.mxu1 %v12011_v6 }
 0x353   :  { %v3569_v58 = vrot.slane %v3568_v13, 4  ;;  %v3596_v42 = vsel %vm2440_vm2, %v2143_v59, -inf  ;;  %v3563_v1 = vmax.f32 %v3561_v29, %v3562_v39  ;;  %v3576_v44 = vrot.slane %v3575_v32, 4 }
 0x354   :  { %v3582_v11 = vsel %vm2440_vm2, %v2135_v5, -inf  ;;  %v3597_v51 = vrot.slane %v3596_v42, 4  ;;  %v3591_v53 = vmax.f32 %v3589_v54, %v3590_v49  ;;  %v3603_v16 = vsel %vm2440_vm2, %v2150_v56, -inf  ;;  %v12022_v5 = vld [vmem:[#allocation7 + $0x640] ss:$16 sps:$4 sm:$0xff]  }
 0x355   :  { %v3570_v0 = vmax.f32 %v3568_v13, %v3569_v58  ;;  %v3583_v2 = vrot.slane %v3582_v11, 4  ;;  %v3564_v10 = vrot.slane %v3563_v1, 2  ;;  %v3577_v25 = vmax.f32 %v3575_v32, %v3576_v44  ;;  %7672 = vmatpush1.bf16.msra.mxu1 %v12009_v15  ;;  %v12031_v58 = vld [vmem:[#allocation7 + $0x624] ss:$16 sps:$4 sm:$0xff]  }
 0x356   :  { %v3598_v7 = vmax.f32 %v3596_v42, %v3597_v51  ;;  %v3604_v4 = vrot.slane %v3603_v16, 4  ;;  %v3592_v57 = vrot.slane %v3591_v53, 2  ;;  %v3610_v17 = vsel %vm2440_vm2, %v2151_v62, -inf  ;;  %7673 = vmatprep.subr.bf16.mxu1 %v12017_v14 }
 0x357   :  { %v3571_v33 = vrot.slane %v3570_v0, 2  ;;  %v3584_v43 = vmax.f32 %v3582_v11, %v3583_v2  ;;  %v3565_v3 = vmax.f32 %v3563_v1, %v3564_v10  ;;  %v3578_v26 = vrot.slane %v3577_v25, 2  ;;  %v12029_v10 = vld [vmem:[#allocation7 + $0x620] ss:$16 sps:$4 sm:$0xff]  }
 0x358   :  { %v3599_v31 = vrot.slane %v3598_v7, 2  ;;  %v3605_v37 = vmax.f32 %v3603_v16, %v3604_v4  ;;  %v3593_v60 = vmax.f32 %v3591_v53, %v3592_v57  ;;  %v3611_v63 = vrot.slane %v3610_v17, 4 }
 0x359   :  { %v3572_v23 = vmax.f32 %v3570_v0, %v3571_v33  ;;  %v3585_v6 = vrot.slane %v3584_v43, 2  ;;  %v3566_v59 = vrot.slane %v3565_v3, 1  ;;  %v3579_v56 = vmax.f32 %v3577_v25, %v3578_v26  ;;  %7674 = vmatpush1.bf16.msra.mxu1 %v12015_v40  ;;  %v12037_v33 = vld [vmem:[#allocation7 + $0x604] ss:$16 sps:$4 sm:$0xff]  }
 0x35a   :  { %v3600_v29 = vmax.f32 %v3598_v7, %v3599_v31  ;;  %v3606_v54 = vrot.slane %v3605_v37, 2  ;;  %v3594_v15 = vrot.slane %v3593_v60, 1  ;;  %v3612_v62 = vmax.f32 %v3610_v17, %v3611_v63  ;;  %7675 = vmatprep.subr.bf16.mxu1 %v12024_v46 }
 0x35b   :  { %v3573_v39 = vrot.slane %v3572_v23, 1  ;;  %v3586_v13 = vmax.f32 %v3584_v43, %v3585_v6  ;;  %v3567_v32 = vmax.f32 %v3565_v3, %v3566_v59  ;;  %v3580_v49 = vrot.slane %v3579_v56, 1  ;;  %v12035_v59 = vld [vmem:[#allocation7 + $0x600] ss:$16 sps:$4 sm:$0xff]  }
 0x35c   :  { %v3601_v42 = vrot.slane %v3600_v29, 1  ;;  %v3607_v14 = vmax.f32 %v3605_v37, %v3606_v54  ;;  %v3595_v11 = vmax.f32 %v3593_v60, %v3594_v15  ;;  %v3613_v51 = vrot.slane %v3612_v62, 2  ;;  %v12044_v54 = vld [vmem:[#allocation7 + $0x7e4] ss:$16 sps:$4 sm:$0xff]  }
 0x35d   :  { %v3574_v1 = vmax.f32 %v3572_v23, %v3573_v39  ;;  %v3587_v44 = vrot.slane %v3586_v13, 1  ;;  %v3581_v0 = vmax.f32 %v3579_v56, %v3580_v49  ;;  %v2158_v16 = vrot.slane %v14080_v35, %v13200_v47  ;;  %7676 = vmatpush1.bf16.msra.mxu1 %v12022_v5 }
 0x35e   :  { %v3602_v2 = vmax.f32 %v3600_v29, %v3601_v42  ;;  %v3608_v53 = vrot.slane %v3607_v14, 1  ;;  %v3614_v7 = vmax.f32 %v3612_v62, %v3613_v51  ;;  %v2166_v40 = vrot.slane %v1442_v9, %v13200_v47  ;;  %7677 = vmatprep.subr.bf16.mxu1 %v12031_v58 }
 0x35f   :  { %v3588_v25 = vmax.f32 %v3586_v13, %v3587_v44  ;;  %v11712_v4 = vpack.c.bf16 %v3574_v1, %v3567_v32  ;;  %v2159_v17 = vcombine.high %v2158_v16, %v2158_v16  ;;  %v2174_v46 = vrot.slane %v14083_v12, %v13200_v47  ;;  %v12042_v1 = vld [vmem:[#allocation7 + $0x7e0] ss:$16 sps:$4 sm:$0xff]  }
 0x360   :  { %v3609_v43 = vmax.f32 %v3607_v14, %v3608_v53  ;;  %v11714_v57 = vpack.c.bf16 %v3602_v2, %v3595_v11  ;;  %v3615_v3 = vrot.slane %v3614_v7, 1  ;;  %v2167_v60 = vcombine.high %v2166_v40, %v2166_v40  ;;  %v12051_v2 = vld [vmem:[#allocation7 + $0x7c4] ss:$16 sps:$4 sm:$0xff]  }
 0x361   :  { %v11713_v26 = vpack.c.bf16 %v3588_v25, %v3581_v0  ;;  %v4617_v31 = vunpack.c.l.b16 %v11712_v4  ;;  %v4618_v37 = vunpack.c.h.b16 %v11712_v4  ;;  %v2175_v63 = vcombine.high %v2174_v46, %v2174_v46  ;;  %7678 = vmatpush1.bf16.msra.mxu1 %v12029_v10 }
 0x362   :  { %v4621_v23 = vunpack.c.l.b16 %v11714_v57  ;;  %v4622_v6 = vunpack.c.h.b16 %v11714_v57  ;;  %v3616_v35 = vmax.f32 %v3614_v7, %v3615_v3  ;;  %v2182_v29 = vrot.slane %v1443_v36, %v13200_v47  ;;  %7679 = vmatprep.subr.bf16.mxu1 %v12037_v33 }
 0x363   :  { %v4619_v9 = vunpack.c.l.b16 %v11713_v26  ;;  %v4620_v56 = vunpack.c.h.b16 %v11713_v26  ;;  %v3617_v5 = vsel %vm2440_vm2, %v2158_v16, -inf  ;;  %v3624_v39 = vsel %vm2440_vm2, %v2159_v17, -inf  ;;  %v12049_v26 = vld [vmem:[#allocation7 + $0x7c0] ss:$16 sps:$4 sm:$0xff]  }
 0x364   :  { %v3631_v13 = vsel %vm2440_vm2, %v2166_v40, -inf  ;;  %v3638_v15 = vsel %vm2440_vm2, %v2167_v60, -inf  ;;  %v11715_v62 = vpack.c.bf16 %v3616_v35, %v3609_v43  ;;  %v2183_v49 = vcombine.high %v2182_v29, %v2182_v29 }
 0x365   :  { %v4790_v58 = vsel %vm4649_vm3, %v4619_v9, %v4617_v31  ;;  %v4793_v32 = vsel %vm4649_vm3, %v4620_v56, %v4618_v37  ;;  %v3618_v36 = vrot.slane %v3617_v5, 4  ;;  %v3625_v14 = vrot.slane %v3624_v39, 4  ;;  %7680 = vmatpush1.bf16.msra.mxu1 %v12035_v59 }
 0x366   :  { %v4791_v42 = vsel %vm4651_vm4, %v4621_v23, %v4790_v58  ;;  %v4794_v12 = vsel %vm4651_vm4, %v4622_v6, %v4793_v32  ;;  %v4623_v44 = vunpack.c.l.b16 %v11715_v62  ;;  %v4624_v11 = vunpack.c.h.b16 %v11715_v62  ;;  %7681 = vmatprep.subr.bf16.mxu1 %v12044_v54  ;;  %v12055_v58 = vld [vmem:[#allocation7 + $0x7a0] ss:$16 sps:$4 sm:$0xff]  }
 0x367   :  { %v3632_v51 = vrot.slane %v3631_v13, 4  ;;  %v3639_v0 = vrot.slane %v3638_v15, 4  ;;  %v3619_v53 = vmax.f32 %v3617_v5, %v3618_v36  ;;  %v3626_v16 = vmax.f32 %v3624_v39, %v3625_v14  ;;  %v12063_v36 = vld [vmem:[#allocation7 + $0x784] ss:$16 sps:$4 sm:$0xff]  }
 0x368   :  { %v3645_v10 = vsel %vm2440_vm2, %v2174_v46, -inf  ;;  %v3652_v25 = vsel %vm2440_vm2, %v2175_v63, -inf  ;;  %v4792_v7 = vsel %vm4653_vm5, %v4623_v44, %v4791_v42  ;;  %v4795_v4 = vsel %vm4653_vm5, %v4624_v11, %v4794_v12  ;;  %v12057_v46 = vld [vmem:[#allocation7 + $0x7a4] ss:$16 sps:$4 sm:$0xff]  }
 0x369   :  { %v3633_v40 = vmax.f32 %v3631_v13, %v3632_v51  ;;  %v3640_v33 = vmax.f32 %v3638_v15, %v3639_v0  ;;  %v4829_v43 = vpack.c.b16 %v4795_v4, %v4792_v7  ;;  %v3620_v57 = vrot.slane %v3619_v53, 2  ;;  %7682 = vmatpush2.bf16.msra.mxu1 %v12042_v1  ;;  %v12061_v7 = vld [vmem:[#allocation7 + $0x780] ss:$16 sps:$4 sm:$0xff]  }
 0x36a   :  { %v3627_v17 = vrot.slane %v3626_v16, 2  ;;  %v3646_v3 = vrot.slane %v3645_v10, 4  ;;  %v3653_v23 = vrot.slane %v3652_v25, 4  ;;  %v3659_v6 = vsel %vm2440_vm2, %v2182_v29, -inf  ;;  %7683 = vmatprep.subr.bf16.mxu1 %v12051_v2 }
 0x36b   :  { %v3634_v31 = vrot.slane %v3633_v40, 2  ;;  %v3641_v37 = vrot.slane %v3640_v33, 2  ;;  %4861 = vst [vmem:[#allocation2 + $0x70] sm:$0x33] %v4829_v43  ;;  %v3621_v60 = vmax.f32 %v3619_v53, %v3620_v57  ;;  %v3660_v35 = vrot.slane %v3659_v6, 4 }
 0x36c   :  { %v3628_v63 = vmax.f32 %v3626_v16, %v3627_v17  ;;  %v3647_v59 = vmax.f32 %v3645_v10, %v3646_v3  ;;  %v3654_v54 = vmax.f32 %v3652_v25, %v3653_v23  ;;  %v3666_v5 = vsel %vm2440_vm2, %v2183_v49, -inf  ;;  %v12071_v57 = vld [vmem:[#allocation7 + $0x764] ss:$16 sps:$4 sm:$0xff]  }
 0x36d   :  { %v3635_v9 = vmax.f32 %v3633_v40, %v3634_v31  ;;  %v3642_v56 = vmax.f32 %v3640_v33, %v3641_v37  ;;  %v3622_v39 = vrot.slane %v3621_v60, 1  ;;  %v3661_v62 = vmax.f32 %v3659_v6, %v3660_v35  ;;  %7684 = vmatpush2.bf16.msra.mxu1 %v12049_v26  ;;  %v12069_v35 = vld [vmem:[#allocation7 + $0x760] ss:$16 sps:$4 sm:$0xff]  }
 0x36e   :  { %v3629_v13 = vrot.slane %v3628_v63, 1  ;;  %v3648_v15 = vrot.slane %v3647_v59, 2  ;;  %v3655_v42 = vrot.slane %v3654_v54, 2  ;;  %v3667_v12 = vrot.slane %v3666_v5, 4  ;;  %7685 = vmatprep.subr.bf16.mxu1 %v12057_v46 }
 0x36f   :  { %v3636_v32 = vrot.slane %v3635_v9, 1  ;;  %v3643_v29 = vrot.slane %v3642_v56, 1  ;;  %v3623_v14 = vmax.f32 %v3621_v60, %v3622_v39  ;;  %v3662_v11 = vrot.slane %v3661_v62, 2 }
 0x370   :  { %v3630_v1 = vmax.f32 %v3628_v63, %v3629_v13  ;;  %v3649_v44 = vmax.f32 %v3647_v59, %v3648_v15  ;;  %v3656_v2 = vmax.f32 %v3654_v54, %v3655_v42  ;;  %v3668_v49 = vmax.f32 %v3666_v5, %v3667_v12 }
 0x371   :  { %v3637_v51 = vmax.f32 %v3635_v9, %v3636_v32  ;;  %v3644_v0 = vmax.f32 %v3642_v56, %v3643_v29  ;;  %v3663_v16 = vmax.f32 %v3661_v62, %v3662_v11  ;;  %v1452_v25 = vrot.slane %v1444_v30, %v13200_v47  ;;  %7686 = vmatpush2.bf16.msra.mxu1 %v12055_v58  ;;  %v12074_v56 = vld [vmem:[#allocation7 + $0x744] ss:$16 sps:$4 sm:$0xff]  }
 0x372   :  { %v3650_v53 = vrot.slane %v3649_v44, 1  ;;  %v11716_v10 = vpack.c.bf16 %v3630_v1, %v3623_v14  ;;  %v3657_v4 = vrot.slane %v3656_v2, 1  ;;  %v3669_v40 = vrot.slane %v3668_v49, 2  ;;  %7687 = vmatprep.subr.bf16.mxu1 %v12063_v36  ;;  %v12072_v14 = vld [vmem:[#allocation7 + $0x740] ss:$16 sps:$4 sm:$0xff]  }
 0x373   :  { %v11717_v33 = vpack.c.bf16 %v3644_v0, %v3637_v51  ;;  %v1459_v43 = vrot.slane %v1445_v24, %v13200_v47  ;;  %v3664_v3 = vrot.slane %v3663_v16, 1  ;;  %v1460_v60 = vcombine.high %v1452_v25, %v1452_v25  ;;  %v12083_v0 = vld [vmem:[#allocation7 + $0x724] ss:$16 sps:$4 sm:$0xff]  }
 0x374   :  { %v3651_v17 = vmax.f32 %v3649_v44, %v3650_v53  ;;  %v4625_v26 = vunpack.c.l.b16 %v11716_v10  ;;  %v4626_v31 = vunpack.c.h.b16 %v11716_v10  ;;  %v3658_v37 = vmax.f32 %v3656_v2, %v3657_v4 }
 0x375   :  { %v3670_v23 = vmax.f32 %v3668_v49, %v3669_v40  ;;  %v4627_v6 = vunpack.c.l.b16 %v11717_v33  ;;  %v4628_v30 = vunpack.c.h.b16 %v11717_v33  ;;  %v3665_v46 = vmax.f32 %v3663_v16, %v3664_v3  ;;  %7688 = vmatpush2.bf16.msra.mxu1 %v12061_v7 }
 0x376   :  { %v1461_v63 = vcombine.high %v1459_v43, %v1459_v43  ;;  %v2190_v59 = vrot.slane %v1452_v25, %v13200_v47  ;;  %v11718_v34 = vpack.c.bf16 %v3658_v37, %v3651_v17  ;;  %7689 = vmatprep.subr.bf16.mxu1 %v12071_v57  ;;  %v2198_v5 = vrot.slane %v1460_v60, %v13200_v47  ;;  %v12081_v17 = vld [vmem:[#allocation7 + $0x720] ss:$16 sps:$4 sm:$0xff]  }
 0x377   :  { %v3671_v9 = vrot.slane %v3670_v23, 1  ;;  %v4796_v41 = vsel %vm4649_vm3, %v4627_v6, %v4625_v26  ;;  %v4803_v24 = vsel %vm4649_vm3, %v4628_v30, %v4626_v31  ;;  %v2206_v39 = vrot.slane %v1459_v43, %v13200_v47 }
 0x378   :  { %v2191_v54 = vcombine.high %v2190_v59, %v2190_v59  ;;  %v2214_v13 = vrot.slane %v1461_v63, %v13200_v47  ;;  %v4629_v62 = vunpack.c.l.b16 %v11718_v34  ;;  %v4630_v58 = vunpack.c.h.b16 %v11718_v34 }
 0x379   :  { %v3672_v15 = vmax.f32 %v3670_v23, %v3671_v9  ;;  %v3673_v32 = vsel %vm2440_vm2, %v2190_v59, -inf  ;;  %v2199_v29 = vcombine.high %v2198_v5, %v2198_v5  ;;  %v2207_v42 = vcombine.high %v2206_v39, %v2206_v39  ;;  %7690 = vmatpush2.bf16.msra.mxu1 %v12069_v35  ;;  %v12091_v23 = vld [vmem:[#allocation7 + $0x704] ss:$16 sps:$4 sm:$0xff]  }
 0x37a   :  { %v2215_v12 = vcombine.high %v2214_v13, %v2214_v13  ;;  %v3674_v36 = vrot.slane %v3673_v32, 4  ;;  %v4797_v44 = vsel %vm4651_vm4, %v4629_v62, %v4796_v41  ;;  %v4804_v11 = vsel %vm4651_vm4, %v4630_v58, %v4803_v24  ;;  %7691 = vmatprep.subr.bf16.mxu1 %v12074_v56  ;;  %v12102_v58 = vld [vmem:[#allocation7 + $0xec] ss:$16 sps:$4 sm:$0xff]  }
 0x37b   :  { %v11719_v1 = vpack.c.bf16 %v3672_v15, %v3665_v46  ;;  %v3680_v51 = vsel %vm2440_vm2, %v2191_v54, -inf  ;;  %v3687_v53 = vsel %vm2440_vm2, %v2198_v5, -inf  ;;  %v3694_v16 = vsel %vm2440_vm2, %v2199_v29, -inf  ;;  %v12089_v54 = vld [vmem:[#allocation7 + $0x700] ss:$16 sps:$4 sm:$0xff]  }
 0x37c   :  { %v3675_v2 = vmax.f32 %v3673_v32, %v3674_v36  ;;  %v3681_v49 = vrot.slane %v3680_v51, 4  ;;  %v3688_v7 = vrot.slane %v3687_v53, 4  ;;  %v3695_v4 = vrot.slane %v3694_v16, 4 }
 0x37d   :  { %v4631_v10 = vunpack.c.l.b16 %v11719_v1  ;;  %v4632_v25 = vunpack.c.h.b16 %v11719_v1  ;;  %v3701_v43 = vsel %vm2440_vm2, %v2206_v39, -inf  ;;  %v3708_v57 = vsel %vm2440_vm2, %v2207_v42, -inf  ;;  %7692 = vmatpush2.bf16.msra.mxu1 %v12072_v14 }
 0x37e   :  { %v3676_v40 = vrot.slane %v3675_v2, 2  ;;  %v3682_v33 = vmax.f32 %v3680_v51, %v3681_v49  ;;  %v3689_v31 = vmax.f32 %v3687_v53, %v3688_v7  ;;  %v3696_v37 = vmax.f32 %v3694_v16, %v3695_v4  ;;  %7693 = vmatprep.subr.bf16.mxu1 %v12083_v0 }
 0x37f   :  { %v14152_v3 = vsel %vm4653_vm5, %v4631_v10, %v4797_v44  ;;  %v14155_v26 = vsel %vm4653_vm5, %v4632_v25, %v4804_v11  ;;  %v3702_v46 = vrot.slane %v3701_v43, 4  ;;  %v3709_v60 = vrot.slane %v3708_v57, 4 }
 0x380   :  { %v3677_v6 = vmax.f32 %v3675_v2, %v3676_v40  ;;  %v3683_v30 = vrot.slane %v3682_v33, 2  ;;  %v3690_v63 = vrot.slane %v3689_v31, 2  ;;  %v3697_v59 = vrot.slane %v3696_v37, 2 }
 0x381   :  { %v3715_v35 = vsel %vm2440_vm2, %v2214_v13, -inf  ;;  %v3722_v9 = vsel %vm2440_vm2, %v2215_v12, -inf  ;;  %v3703_v24 = vmax.f32 %v3701_v43, %v3702_v46  ;;  %v3710_v56 = vmax.f32 %v3708_v57, %v3709_v60  ;;  %7694 = vmatpush2.bf16.msra.mxu1 %v12081_v17  ;;  %v700_v60 = vpop.f32.mrf.mxu0 }
 0x382   :  { %v3678_v34 = vrot.slane %v3677_v6, 1  ;;  %v3684_v41 = vmax.f32 %v3682_v33, %v3683_v30  ;;  %v3691_v5 = vmax.f32 %v3689_v31, %v3690_v63  ;;  %v3698_v39 = vmax.f32 %v3696_v37, %v3697_v59  ;;  %7695 = vmatprep.subr.bf16.mxu1 %v12091_v23  ;;  %v853_v63 = vpop.f32.mrf.mxu1 }
 0x383   :  { %v3716_v15 = vrot.slane %v3715_v35, 4  ;;  %v3723_v62 = vrot.slane %v3722_v9, 4  ;;  %v3704_v42 = vrot.slane %v3703_v24, 2  ;;  %v3711_v36 = vrot.slane %v3710_v56, 2 }
 0x384   :  { %v3679_v32 = vmax.f32 %v3677_v6, %v3678_v34  ;;  %v3685_v29 = vrot.slane %v3684_v41, 1  ;;  %v3692_v14 = vrot.slane %v3691_v5, 1  ;;  %v3699_v13 = vrot.slane %v3698_v39, 1  ;;  %v14170_v34 = vld [vmem:[#allocation2 + $0x68] sm:$0x11] }
 0x385   :  { %v3717_v1 = vmax.f32 %v3715_v35, %v3716_v15  ;;  %v3724_v12 = vmax.f32 %v3722_v9, %v3723_v62  ;;  %v3705_v11 = vmax.f32 %v3703_v24, %v3704_v42  ;;  %v3712_v51 = vmax.f32 %v3710_v56, %v3711_v36  ;;  %7696 = vmatpush2.bf16.msra.mxu1 %v12089_v54 }
 0x386   :  { %v3686_v44 = vmax.f32 %v3684_v41, %v3685_v29  ;;  %v948_v0 = vmax.f32 %v14069_v50, 0.0  ;;  %v3693_v2 = vmax.f32 %v3691_v5, %v3692_v14  ;;  %v3700_v49 = vmax.f32 %v3698_v39, %v3699_v13  ;;  %7811 = vmatprep.subr.bf16.mxu1 %v12102_v58  ;;  %v14172_v41 = vld [vmem:[#allocation2 + $0x48] sm:$0x11] }
 0x387   :  { %v3718_v53 = vrot.slane %v3717_v1, 2  ;;  %v3725_v16 = vrot.slane %v3724_v12, 2  ;;  %v3706_v10 = vrot.slane %v3705_v11, 1  ;;  %v3713_v25 = vrot.slane %v3712_v51, 1 }
 0x388   :  { %v11720_v7 = vpack.c.bf16 %v3686_v44, %v3679_v32  ;;  %v950_v4 = vmax.f32 %v14075_v18, 0.0  ;;  %v11721_v43 = vpack.c.bf16 %v3700_v49, %v3693_v2  ;;  %v14163_v57 = vcombine.low %v14058_v38, %v14054_v55 }
 0x389   :  { %v3719_v40 = vmax.f32 %v3717_v1, %v3718_v53  ;;  %v3726_v33 = vmax.f32 %v3724_v12, %v3725_v16  ;;  %v3707_v17 = vmax.f32 %v3705_v11, %v3706_v10  ;;  %v3714_v50 = vmax.f32 %v3712_v51, %v3713_v25  ;;  %v14190_v16 = vld [vmem:[#allocation2 + $0x10] sm:$0xff] }
 0x38a   :  { %v4633_v31 = vunpack.c.l.b16 %v11720_v7  ;;  %v4634_v37 = vunpack.c.h.b16 %v11720_v7  ;;  %v4635_v30 = vunpack.c.l.b16 %v11721_v43  ;;  %v4636_v46 = vunpack.c.h.b16 %v11721_v43  ;;  %7489 = vmatmul.mubr.bf16.gmra.mxu0 %v14163_v57 }
 0x38b   :  { %v3720_v23 = vrot.slane %v3719_v40, 1  ;;  %v3727_v6 = vrot.slane %v3726_v33, 1  ;;  %v11722_v18 = vpack.c.bf16 %v3714_v50, %v3707_v17  ;;  %v998_v9 = vmax.f32 %v948_v0, %v950_v4 }
 0x38c   :  { %v4799_v59 = vsel %vm4655_vm6, %v4633_v31, %v14152_v3  ;;  %v4806_v35 = vsel %vm4655_vm6, %v4634_v37, %v14155_v26  ;;  %v701_v62 = vadd.f32 %v700_v60, %v13190_v27  ;;  %v854_v3 = vadd.f32 %v853_v63, %v13193_v28 }
 0x38d   :  { %v3721_v24 = vmax.f32 %v3719_v40, %v3720_v23  ;;  %v3728_v56 = vmax.f32 %v3726_v33, %v3727_v6  ;;  %v4800_v54 = vsel %vm4657_vm7, %v4635_v30, %v4799_v59  ;;  %v4807_v5 = vsel %vm4657_vm7, %v4636_v46, %v4806_v35  ;;  %v14194_v40 = vld [vmem:[#allocation2 + $0x20] sm:$0x11]  ;;  %v14205_v30 = vld [vmem:[#allocation2 + $0x38] sm:$0x11] }
 0x38e   :  { %v4637_v39 = vunpack.c.l.b16 %v11722_v18  ;;  %v4638_v15 = vunpack.c.h.b16 %v11722_v18  ;;  %v10924_v26 = vcombine.high %v14058_v38, %v14170_v34  ;;  %v10926_v32 = vcombine.high %v14054_v55, %v14172_v41 }
 0x38f   :  { %v11723_v58 = vpack.c.bf16 %v3728_v56, %v3721_v24  ;;  %v10923_v29 = vcombine.low %v14058_v38, %v14170_v34  ;;  %v949_v14 = vmax.f32 %v701_v62, 0.0  ;;  %v951_v13 = vmax.f32 %v854_v3, 0.0 }
 0x390   :  { %v4801_v42 = vsel %vm4659_vm8, %v4637_v39, %v4800_v54  ;;  %v4808_v36 = vsel %vm4659_vm8, %v4638_v15, %v4807_v5  ;;  %v5004_v12 = vshrl.u32 %v10924_v26, 16  ;;  %v5006_v28 = vshll.u32 %v10924_v26, 16 }
 0x391   :  { %v4639_v1 = vunpack.c.l.b16 %v11723_v58  ;;  %v4640_v27 = vunpack.c.h.b16 %v11723_v58  ;;  %v999_v44 = vmax.f32 %v949_v14, %v951_v13  ;;  %v5018_v11 = vshrl.u32 %v10926_v32, 16 }
 0x392   :  { %v5020_v51 = vshll.u32 %v10926_v32, 16  ;;  %v10925_v0 = vcombine.low %v14054_v55, %v14172_v41  ;;  %v5008_v49 = vrot.slane %v5006_v28, 1  ;;  %v4997_v53 = vshrl.u32 %v10923_v29, 16  ;;  %v14196_v55 = vld [vmem:[#allocation2 + $0x40] sm:$0xff] }
 0x393   :  { %v4802_v2 = vsel %vm4661_vm9, %v4639_v1, %v4801_v42  ;;  %v4809_v38 = vsel %vm4661_vm9, %v4640_v27, %v4808_v36  ;;  %v1462_v25 = vcombine.low %v998_v9, %v999_v44  ;;  %v1463_v7 = vcombine.high %v998_v9, %v999_v44 }
 0x394   :  { %v14192_v10 = vpack.c.b16 %v4809_v38, %v4802_v2  ;;  %v5022_v4 = vrot.slane %v5020_v51, 1  ;;  %v5009_v33 = vor.u32 %v5008_v49, %v5004_v12  ;;  %v4999_v43 = vshll.u32 %v10923_v29, 16 }
 0x395   :  { %v5011_v17 = vshrl.u32 %v10925_v0, 16  ;;  %v5013_v50 = vshll.u32 %v10925_v0, 16  ;;  %v1470_v31 = vrot.slane %v1462_v25, %v13200_v47  ;;  %v1477_v37 = vrot.slane %v1463_v7, %v13200_v47 }
 0x396   :  { %4862 = vst [vmem:[#allocation2 + $0x78] sm:$0xff] %v14192_v10  ;;  %v5023_v23 = vor.u32 %v5022_v4, %v5018_v11  ;;  %v14203_v6 = vcombine.high %v14196_v55, %v14190_v16  ;;  %v5001_v46 = vrot.slane %v4999_v43, 1  ;;  %v14209_v63 = vcombine.low %v14196_v55, %v14190_v16 }
 0x397   :  { %v5015_v60 = vrot.slane %v5013_v50, 1  ;;  %v14213_v18 = vcombine.high %v14196_v55, %v14194_v40  ;;  %v1478_v59 = vcombine.high %v1470_v31, %v1470_v31  ;;  %v1479_v35 = vcombine.high %v1477_v37, %v1477_v37 }
 0x398   :  { %v2222_v9 = vrot.slane %v1470_v31, %v13200_v47  ;;  %v2238_v24 = vrot.slane %v1477_v37, %v13200_v47  ;;  %7498 = vmatprep.mubr.bf16.mxu0 %v14203_v6  ;;  %v14218_v56 = vcombine.low %v5009_v33, %v5023_v23  ;;  %v5002_v54 = vor.u32 %v5001_v46, %v4997_v53 }
 0x399   :  { %v5016_v5 = vor.u32 %v5015_v60, %v5011_v17  ;;  %7499 = vmatmul.mubr.bf16.gmra.mxu0 %v14209_v63  ;;  %v14223_v39 = vcombine.high %v14190_v16, %v14205_v30  ;;  %v2230_v62 = vrot.slane %v1478_v59, %v13200_v47  ;;  %v2246_v58 = vrot.slane %v1479_v35, %v13200_v47 }
 0x39a   :  { %v2223_v15 = vcombine.high %v2222_v9, %v2222_v9  ;;  %v2239_v3 = vcombine.high %v2238_v24, %v2238_v24  ;;  %v3729_v26 = vsel %vm2440_vm2, %v2222_v9, -inf  ;;  %v3757_v32 = vsel %vm2440_vm2, %v2238_v24, -inf  ;;  %7561 = vmatprep.mubr.bf16.mxu1 %v14218_v56 }
 0x39b   :  { %v14230_v29 = vcombine.low %v5002_v54, %v5016_v5  ;;  %v5032_v42 = vshrl.u32 %v14213_v18, 16  ;;  %v2231_v36 = vcombine.high %v2230_v62, %v2230_v62  ;;  %v2247_v14 = vcombine.high %v2246_v58, %v2246_v58 }
 0x39c   :  { %v3730_v13 = vrot.slane %v3729_v26, 4  ;;  %v3736_v1 = vsel %vm2440_vm2, %v2223_v15, -inf  ;;  %v3743_v12 = vsel %vm2440_vm2, %v2230_v62, -inf  ;;  %v3758_v28 = vrot.slane %v3757_v32, 4 }
 0x39d   :  { %v3737_v27 = vrot.slane %v3736_v1, 4  ;;  %v3764_v47 = vsel %vm2440_vm2, %v2239_v3, -inf  ;;  %7562 = vmatmul.mubr.bf16.gmra.mxu1 %v14230_v29  ;;  %v3744_v11 = vrot.slane %v3743_v12, 4  ;;  %v3750_v51 = vsel %vm2440_vm2, %v2231_v36, -inf }
 0x39e   :  { %v3731_v44 = vmax.f32 %v3729_v26, %v3730_v13  ;;  %v3765_v0 = vrot.slane %v3764_v47, 4  ;;  %v3751_v38 = vrot.slane %v3750_v51, 4  ;;  %v3759_v49 = vmax.f32 %v3757_v32, %v3758_v28 }
 0x39f   :  { %v3738_v2 = vmax.f32 %v3736_v1, %v3737_v27  ;;  %v3771_v53 = vsel %vm2440_vm2, %v2246_v58, -inf  ;;  %v3745_v7 = vmax.f32 %v3743_v12, %v3744_v11  ;;  %v3778_v31 = vsel %vm2440_vm2, %v2247_v14, -inf }
 0x3a0   :  { %v3732_v25 = vrot.slane %v3731_v44, 2  ;;  %v3766_v4 = vmax.f32 %v3764_v47, %v3765_v0  ;;  %v3772_v33 = vrot.slane %v3771_v53, 4  ;;  %v3752_v17 = vmax.f32 %v3750_v51, %v3751_v38 }
 0x3a1   :  { %v3739_v43 = vrot.slane %v3738_v2, 2  ;;  %v3760_v50 = vrot.slane %v3759_v49, 2  ;;  %v3746_v23 = vrot.slane %v3745_v7, 2  ;;  %v3779_v24 = vrot.slane %v3778_v31, 4 }
 0x3a2   :  { %v3733_v37 = vmax.f32 %v3731_v44, %v3732_v25  ;;  %v3767_v46 = vrot.slane %v3766_v4, 2  ;;  %v3773_v60 = vmax.f32 %v3771_v53, %v3772_v33  ;;  %v3753_v35 = vrot.slane %v3752_v17, 2 }
 0x3a3   :  { %v3740_v59 = vmax.f32 %v3738_v2, %v3739_v43  ;;  %v3761_v9 = vmax.f32 %v3759_v49, %v3760_v50  ;;  %v3747_v5 = vmax.f32 %v3745_v7, %v3746_v23  ;;  %v3780_v32 = vmax.f32 %v3778_v31, %v3779_v24 }
 0x3a4   :  { %v3734_v54 = vrot.slane %v3733_v37, 1  ;;  %v3768_v15 = vmax.f32 %v3766_v4, %v3767_v46  ;;  %v3774_v62 = vrot.slane %v3773_v60, 2  ;;  %v3754_v58 = vmax.f32 %v3752_v17, %v3753_v35 }
 0x3a5   :  { %v3741_v3 = vrot.slane %v3740_v59, 1  ;;  %v3762_v26 = vrot.slane %v3761_v9, 1  ;;  %v3748_v13 = vrot.slane %v3747_v5, 1  ;;  %v3781_v47 = vrot.slane %v3780_v32, 2 }
 0x3a6   :  { %v3735_v36 = vmax.f32 %v3733_v37, %v3734_v54  ;;  %v3769_v1 = vrot.slane %v3768_v15, 1  ;;  %v3775_v14 = vmax.f32 %v3773_v60, %v3774_v62  ;;  %v3755_v12 = vrot.slane %v3754_v58, 1  ;;  %v4870_v54 = vld [vmem:[#allocation2 + $0x60] sm:$0xff] }
 0x3a7   :  { %v3742_v27 = vmax.f32 %v3740_v59, %v3741_v3  ;;  %v3763_v28 = vmax.f32 %v3761_v9, %v3762_v26  ;;  %v3749_v44 = vmax.f32 %v3747_v5, %v3748_v13  ;;  %v5034_v0 = vshll.u32 %v14213_v18, 16 }
 0x3a8   :  { %v3770_v11 = vmax.f32 %v3768_v15, %v3769_v1  ;;  %v3776_v51 = vrot.slane %v3775_v14, 1  ;;  %v3756_v2 = vmax.f32 %v3754_v58, %v3755_v12  ;;  %v3782_v38 = vmax.f32 %v3780_v32, %v3781_v47  ;;  %v4881_v12 = vld [vmem:[#allocation2 + $0x58] sm:$0xee] }
 0x3a9   :  { %v11724_v49 = vpack.c.bf16 %v3742_v27, %v3735_v36  ;;  %v5046_v53 = vshrl.u32 %v14223_v39, 16  ;;  %v5036_v4 = vrot.slane %v5034_v0, 1  ;;  %v5048_v33 = vshll.u32 %v14223_v39, 16  ;;  %v4880_v27 = vld [vmem:[#allocation2 + $0x30] sm:$0xee] }
 0x3aa   :  { %v3777_v25 = vmax.f32 %v3775_v14, %v3776_v51  ;;  %v11726_v7 = vpack.c.bf16 %v3770_v11, %v3763_v28  ;;  %v3783_v43 = vrot.slane %v3782_v38, 1  ;;  %v11725_v17 = vpack.c.bf16 %v3756_v2, %v3749_v44  ;;  %v12819_v44 = vld [vmem:[#allocation2] sm:$0x11]  ;;  %v12820_v51 = vld [vmem:[#allocation2 + $0x18] sm:$0x11] }
 0x3ab   :  { %v4641_v50 = vunpack.c.l.b16 %v11724_v49  ;;  %v4642_v31 = vunpack.c.h.b16 %v11724_v49  ;;  %v5037_v46 = vor.u32 %v5036_v4, %v5032_v42  ;;  %v5050_v60 = vrot.slane %v5048_v33, 1  ;;  %v14273_v33 = vld [vmem:[#allocation2 + $0x18] sm:$0x33] }
 0x3ac   :  { %v4645_v37 = vunpack.c.l.b16 %v11726_v7  ;;  %v4646_v23 = vunpack.c.h.b16 %v11726_v7  ;;  %v3784_v59 = vmax.f32 %v3782_v38, %v3783_v43  ;;  %v4643_v35 = vunpack.c.l.b16 %v11725_v17 }
 0x3ad   :  { %v4644_v9 = vunpack.c.h.b16 %v11725_v17  ;;  %v10927_v24 = vcombine.low %v14196_v55, %v14194_v40  ;;  %v5051_v5 = vor.u32 %v5050_v60, %v5046_v53  ;;  %v10929_v39 = vcombine.low %v14190_v16, %v14205_v30  ;;  %v14262_v16 = vld [vmem:[#allocation2] sm:$0x33] }
 0x3ae   :  { %v14250_v15 = vcombine.high %v4870_v54, %v14192_v10  ;;  %v14253_v62 = vcombine.low %v4870_v54, %v14192_v10  ;;  %v11727_v18 = vpack.c.bf16 %v3784_v59, %v3777_v25  ;;  %v4810_v42 = vsel %vm4649_vm3, %v4643_v35, %v4641_v50  ;;  %v14271_v25 = vld [vmem:[#allocation2 + $0x70] sm:$0x11]  ;;  %v14275_v50 = vld [vmem:[#allocation2 + $0x50] sm:$0xee] }
 0x3af   :  { %v4813_v3 = vsel %vm4649_vm3, %v4644_v9, %v4642_v31  ;;  %v4811_v58 = vsel %vm4651_vm4, %v4645_v37, %v4810_v42  ;;  %v14259_v26 = vcombine.low %v5037_v46, %v5051_v5  ;;  %v5027_v32 = vshll.u32 %v10927_v24, 16  ;;  %v14277_v46 = vld [vmem:[#allocation2 + $0x8] sm:$0xee] }
 0x3b0   :  { %v4814_v55 = vsel %vm4651_vm4, %v4646_v23, %v4813_v3  ;;  %7508 = vmatprep.mubr.bf16.mxu0 %v14250_v15  ;;  %v4647_v36 = vunpack.c.l.b16 %v11727_v18  ;;  %v4648_v13 = vunpack.c.h.b16 %v11727_v18  ;;  %v5025_v1 = vshrl.u32 %v10927_v24, 16  ;;  %v12075_v3 = vld [vmem:[#allocation7 + $0x8e0] ss:$16 sps:$4 sm:$0xff]  }
 0x3b1   :  { %v5041_v14 = vshll.u32 %v10929_v39, 16  ;;  %7509 = vmatmul.mubr.bf16.gmra.mxu0 %v14253_v62  ;;  %7571 = vmatprep.mubr.bf16.mxu1 %v14259_v26  ;;  %v5029_v28 = vrot.slane %v5027_v32, 1  ;;  %v5039_v47 = vshrl.u32 %v10929_v39, 16  ;;  %v10936_v11 = vcombine.high %v4880_v27, %v12819_v44 }
 0x3b2   :  { %v10938_v0 = vcombine.high %v4881_v12, %v12820_v51  ;;  %v4812_v2 = vsel %vm4653_vm5, %v4647_v36, %v4811_v58  ;;  %v4815_v38 = vsel %vm4653_vm5, %v4648_v13, %v4814_v55  ;;  %v14269_v53 = vcombine.low %v4880_v27, %v14262_v16 }
 0x3b3   :  { %v5043_v49 = vrot.slane %v5041_v14, 1  ;;  %v4831_v7 = vpack.c.b16 %v4815_v38, %v4812_v2  ;;  %v5030_v4 = vor.u32 %v5029_v28, %v5025_v1  ;;  %v5121_v43 = vrot.slane %v10936_v11, 1  ;;  %v12086_v1 = vld [vmem:[#allocation7 + $0x8c4] ss:$16 sps:$4 sm:$0xff]  }
 0x3b4   :  { %v5123_v17 = vrot.slane %v10938_v0, 1  ;;  %v10935_v37 = vcombine.low %v4880_v27, %v12819_v44  ;;  %v10937_v23 = vcombine.low %v4881_v12, %v12820_v51  ;;  %v10940_v60 = vcombine.high %v14275_v50, %v14170_v34  ;;  %v12084_v0 = vld [vmem:[#allocation7 + $0x8c0] ss:$16 sps:$4 sm:$0xff]  }
 0x3b5   :  { %v5044_v31 = vor.u32 %v5043_v49, %v5039_v47  ;;  %4863 = vst [vmem:[#allocation2 + $0x28] sm:$0x33] %v4831_v7  ;;  %v10942_v35 = vcombine.high %v14277_v46, %v14172_v41  ;;  %v10932_v9 = vcombine.high %v4870_v54, %v14271_v25  ;;  %v10931_v24 = vcombine.low %v4870_v54, %v14271_v25 }
 0x3b6   :  { %v14281_v59 = vcombine.low %v5121_v43, %v5123_v17  ;;  %v14290_v39 = vcombine.low %v4881_v12, %v14273_v33  ;;  %v5120_v18 = vrot.slane %v10935_v37, 1  ;;  %v5122_v42 = vrot.slane %v10937_v23, 1  ;;  %v12094_v43 = vld [vmem:[#allocation7 + $0x8a4] ss:$16 sps:$4 sm:$0xff]  }
 0x3b7   :  { %v14287_v5 = vcombine.low %v5030_v4, %v5044_v31  ;;  %v5125_v58 = vrot.slane %v10940_v60, 1  ;;  %v5127_v55 = vrot.slane %v10942_v35, 1  ;;  %v5060_v32 = vshrl.u32 %v10932_v9, 16 }
 0x3b8   :  { %7624 = vmatprep.mubr.bf16.mxu0 %v14281_v59  ;;  %v5062_v36 = vshll.u32 %v10932_v9, 16  ;;  %v14294_v13 = vcombine.low %v5120_v18, %v5122_v42  ;;  %v5055_v54 = vshll.u32 %v10931_v24, 16  ;;  %v10952_v14 = vcombine.high %v4880_v27, %v14262_v16  ;;  %v14312_v42 = vld [vmem:[#allocation2 + $0x40] sm:$0xee] }
 0x3b9   :  { %7572 = vmatmul.mubr.bf16.gmra.mxu1 %v14287_v5  ;;  %v10954_v28 = vcombine.high %v4881_v12, %v14273_v33  ;;  %v14298_v47 = vcombine.low %v5125_v58, %v5127_v55  ;;  %v10939_v11 = vcombine.low %v14275_v50, %v14170_v34  ;;  %v10941_v51 = vcombine.low %v14277_v46, %v14172_v41 }
 0x3ba   :  { %v5064_v44 = vrot.slane %v5062_v36, 1  ;;  %7625 = vmatmul.mubr.bf16.vlgmr.msra.gmra.mxu0 %v14294_v13  ;;  %v5057_v2 = vrot.slane %v5055_v54, 1  ;;  %v5185_v38 = vshrl.u32 %v10952_v14, 16  ;;  %v5188_v49 = vshll.u32 %v10952_v14, 16 }
 0x3bb   :  { %v5201_v7 = vshrl.u32 %v10954_v28, 16  ;;  %7739 = vmatpush1.bf16.msra.mxu0 %v12075_v3  ;;  %7634 = vmatprep.mubr.bf16.mxu0 %v14298_v47  ;;  %v5053_v12 = vshrl.u32 %v10931_v24, 16  ;;  %v5204_v4 = vshll.u32 %v10954_v28, 16  ;;  %v5126_v17 = vrot.slane %v10941_v51, 1  ;;  %v14314_v24 = vld [vmem:[#allocation2 + $0x10] sm:$0xee] }
 0x3bc   :  { %v5065_v27 = vor.u32 %v5064_v44, %v5060_v32  ;;  %v14306_v31 = vld [vmem:[#allocation2 + $0x28] sm:$0x11]  ;;  %7740 = vmatprep.subr.bf16.mxu0 %v12086_v1  ;;  %v5187_v34 = vrot.slane %v5185_v38, 1  ;;  %v5190_v41 = vrot.slane %v5188_v49, 2  ;;  %v5124_v23 = vrot.slane %v10939_v11, 1 }
 0x3bd   :  { %v5203_v37 = vrot.slane %v5201_v7, 1  ;;  %v10934_v60 = vcombine.high %v14192_v10, %v14306_v31  ;;  %v10933_v35 = vcombine.low %v14192_v10, %v14306_v31  ;;  %v5058_v9 = vor.u32 %v5057_v2, %v5053_v12  ;;  %v12092_v3 = vld [vmem:[#allocation7 + $0x8a0] ss:$16 sps:$4 sm:$0xff]   ;;  %v14323_v28 = vld [vmem:[#allocation2 + $0x68] sm:$0x33] }
 0x3be   :  { %v5206_v18 = vrot.slane %v5204_v4, 2  ;;  %v14316_v58 = vcombine.low %v5124_v23, %v5126_v17  ;;  %v10944_v55 = vcombine.high %v14312_v42, %v14194_v40  ;;  %v10946_v32 = vcombine.high %v14314_v24, %v14205_v30  ;;  %v12099_v38 = vld [vmem:[#allocation7 + $0x884] ss:$16 sps:$4 sm:$0xff]  }
 0x3bf   :  { %v5177_v36 = vshrl.u32 %v14269_v53, 16  ;;  %v5074_v1 = vshrl.u32 %v10934_v60, 16  ;;  %v5076_v54 = vshll.u32 %v10934_v60, 16  ;;  %v5069_v10 = vshll.u32 %v10933_v35, 16  ;;  %7741 = vmatpush1.bf16.msra.mxu0 %v12084_v0  ;;  %v14327_v17 = vld [vmem:[#allocation2 + $0x48] sm:$0x33] }
 0x3c0   :  { %v5191_v14 = vor.u32 %v5190_v41, %v5187_v34  ;;  %v5067_v44 = vshrl.u32 %v10933_v35, 16  ;;  %v5207_v11 = vor.u32 %v5206_v18, %v5203_v37  ;;  %7742 = vmatprep.subr.bf16.mxu0 %v12094_v43  ;;  %v5129_v51 = vrot.slane %v10944_v55, 1  ;;  %v12097_v60 = vld [vmem:[#allocation7 + $0x880] ss:$16 sps:$4 sm:$0xff]  }
 0x3c1   :  { %v5131_v2 = vrot.slane %v10946_v32, 1  ;;  %v5078_v49 = vrot.slane %v5076_v54, 1  ;;  %v5071_v7 = vrot.slane %v5069_v10, 1  ;;  %v5180_v12 = vshll.u32 %v14269_v53, 16  ;;  %v12106_v54 = vld [vmem:[#allocation7 + $0x864] ss:$16 sps:$4 sm:$0xff]  }
 0x3c2   :  { %v5193_v4 = vshrl.u32 %v14290_v39, 16  ;;  %7635 = vmatmul.mubr.bf16.gmra.mxu0 %v14316_v58  ;;  %v14332_v34 = vrot.slane %v5177_v36, 1  ;;  %v5196_v41 = vshll.u32 %v14290_v39, 16  ;;  %v10956_v43 = vcombine.high %v14275_v50, %v14323_v28 }
 0x3c3   :  { %v14330_v0 = vcombine.low %v5129_v51, %v5131_v2  ;;  %v5079_v37 = vor.u32 %v5078_v49, %v5074_v1  ;;  %v5072_v23 = vor.u32 %v5071_v7, %v5067_v44  ;;  %7743 = vmatpush1.bf16.msra.mxu0 %v12092_v3  ;;  %v5182_v53 = vrot.slane %v5180_v12, 2  ;;  %v12104_v3 = vld [vmem:[#allocation7 + $0x860] ss:$16 sps:$4 sm:$0xff]  }
 0x3c4   :  { %v5195_v35 = vrot.slane %v5193_v4, 1  ;;  %7744 = vmatprep.subr.bf16.mxu0 %v12099_v38  ;;  %v5198_v18 = vrot.slane %v5196_v41, 2  ;;  %v10958_v55 = vcombine.high %v14277_v46, %v14327_v17  ;;  %v5217_v32 = vshrl.u32 %v10956_v43, 16  ;;  %v14348_v51 = vld [vmem:[#allocation2 + $0x60] sm:$0xee] }
 0x3c5   :  { %15049 = vst [vmem:[#allocation25_spill] sm:$0xff] %v14330_v0  ;;  %7644 = vmatprep.mubr.bf16.mxu0 %v14330_v0  ;;  %v5220_v36 = vshll.u32 %v10956_v43, 16  ;;  %v14340_v39 = vcombine.low %v5065_v27, %v5079_v37  ;;  %v14342_v10 = vcombine.low %v5058_v9, %v5072_v23  ;;  %v14344_v1 = vcombine.low %v5191_v14, %v5207_v11  ;;  %v14351_v12 = vld [vmem:[#allocation2 + $0x20] sm:$0x33]  ;;  %v14356_v11 = vld [vmem:[#allocation2 + $0x78] sm:$0xee] }
 0x3c6   :  { %v10943_v44 = vcombine.low %v14312_v42, %v14194_v40  ;;  %v5183_v2 = vor.u32 %v5182_v53, %v14332_v34  ;;  %v5219_v38 = vrot.slane %v5217_v32, 1  ;;  %v5233_v7 = vshrl.u32 %v10958_v55, 16  ;;  %v14360_v4 = vld [vmem:[#allocation2 + $0x38] sm:$0x33]  ;;  %v12121_v0 = vld [vmem:[#allocation7 + $0x820] ss:$16 sps:$4 sm:$0xff]  }
 0x3c7   :  { %v5222_v49 = vrot.slane %v5220_v36, 2  ;;  %7581 = vmatprep.mubr.bf16.mxu1 %v14340_v39  ;;  %v5199_v27 = vor.u32 %v5198_v18, %v5195_v35  ;;  %7745 = vmatpush1.bf16.msra.mxu0 %v12097_v60  ;;  %v5236_v9 = vshll.u32 %v10958_v55, 16  ;;  %v10945_v14 = vcombine.low %v14314_v24, %v14205_v30  ;;  %v12115_v23 = vld [vmem:[#allocation7 + $0x844] ss:$16 sps:$4 sm:$0xff]  }
 0x3c8   :  { %v10948_v40 = vcombine.high %v14348_v51, %v14271_v25  ;;  %7582 = vmatmul.mubr.bf16.gmra.mxu1 %v14342_v10  ;;  %v5235_v41 = vrot.slane %v5233_v7, 1  ;;  %7746 = vmatprep.subr.bf16.mxu0 %v12106_v54  ;;  %v5128_v43 = vrot.slane %v10943_v44, 1  ;;  %v10950_v37 = vcombine.high %v14356_v11, %v14306_v31 }
 0x3c9   :  { %v5223_v34 = vor.u32 %v5222_v49, %v5219_v38  ;;  %7697 = vmatprep.mubr.bf16.mxu1 %v14344_v1  ;;  %v5238_v30 = vrot.slane %v5236_v9, 2  ;;  %v5130_v60 = vrot.slane %v10945_v14, 1  ;;  %v10955_v35 = vcombine.low %v14275_v50, %v14323_v28  ;;  %v12113_v38 = vld [vmem:[#allocation7 + $0x840] ss:$16 sps:$4 sm:$0xff]  }
 0x3ca   :  { %v5133_v53 = vrot.slane %v10948_v40, 1  ;;  %v5135_v18 = vrot.slane %v10950_v37, 1  ;;  %v10957_v55 = vcombine.low %v14277_v46, %v14327_v17  ;;  %v10960_v32 = vcombine.high %v14312_v42, %v14351_v12  ;;  %v12123_v46 = vld [vmem:[#allocation7 + $0x824] ss:$16 sps:$4 sm:$0xff]   ;;  %v12100_v37 = vld [vmem:[#allocation7 + $0xe8] ss:$16 sps:$4 sm:$0xff]  }
 0x3cb   :  { %v10962_v36 = vcombine.high %v14314_v24, %v14360_v4  ;;  %v5239_v54 = vor.u32 %v5238_v30, %v5235_v41  ;;  %v14374_v44 = vcombine.low %v5128_v43, %v5130_v60  ;;  %7747 = vmatpush1.bf16.msra.mxu0 %v12104_v3  ;;  %v5209_v49 = vshrl.u32 %v10955_v35, 16  ;;  %v12109_v3 = vld [vmem:[#allocation7 + $0xcc] ss:$16 sps:$4 sm:$0xff]  }
 0x3cc   :  { %v5212_v7 = vshll.u32 %v10955_v35, 16  ;;  %v14376_v9 = vcombine.low %v5133_v53, %v5135_v18  ;;  %7748 = vmatprep.subr.bf16.mxu0 %v12115_v23  ;;  %v5225_v50 = vshrl.u32 %v10957_v55, 16  ;;  %v5228_v14 = vshll.u32 %v10957_v55, 16 }
 0x3cd   :  { %v5249_v40 = vshrl.u32 %v10960_v32, 16  ;;  %v14378_v22 = vcombine.low %v5183_v2, %v5199_v27  ;;  %v14380_v20 = vcombine.low %v5223_v34, %v5239_v54  ;;  %7645 = vmatmul.mubr.bf16.gmra.mxu0 %v14374_v44  ;;  %v5211_v41 = vrot.slane %v5209_v49, 1  ;;  %v12133_v54 = vld [vmem:[#allocation7 + $0x804] ss:$16 sps:$4 sm:$0xff]  }
 0x3ce   :  { %v5252_v43 = vshll.u32 %v10960_v32, 16  ;;  %7654 = vmatprep.mubr.bf16.mxu0 %v14376_v9  ;;  %v5214_v30 = vrot.slane %v5212_v7, 2  ;;  %v5227_v60 = vrot.slane %v5225_v50, 1  ;;  %v5230_v53 = vrot.slane %v5228_v14, 2  ;;  %v14389_v32 = vld [vmem:[#allocation2 + $0x30] sm:$0xcc] }
 0x3cf   :  { %15050 = vst [vmem:[#allocation26_spill] sm:$0xff] %v14378_v22  ;;  %15051 = vst [vmem:[#allocation27_spill] sm:$0xff] %v14380_v20  ;;  %v5265_v23 = vshrl.u32 %v10962_v36, 16  ;;  %7749 = vmatpush1.bf16.msra.mxu0 %v12113_v38  ;;  %v5251_v35 = vrot.slane %v5249_v40, 1  ;;  %v5268_v55 = vshll.u32 %v10962_v36, 16  ;;  %v10947_v2 = vcombine.low %v14348_v51, %v14271_v25 }
 0x3d0   :  { %v5254_v18 = vrot.slane %v5252_v43, 2  ;;  %7698 = vmatmul.mubr.bf16.vlgmr.msra.gmra.mxu1 %v14378_v22  ;;  %7750 = vmatprep.subr.bf16.mxu0 %v12123_v46  ;;  %v10949_v34 = vcombine.low %v14356_v11, %v14306_v31  ;;  %v12107_v38 = vld [vmem:[#allocation7 + $0xc8] ss:$16 sps:$4 sm:$0xff]   ;;  %v5231_v49 = vor.u32 %v5230_v53, %v5227_v60  ;;  %v10968_v25 = vcombine.high %v14389_v32, %v14262_v16  ;;  %v12118_v50 = vld [vmem:[#allocation7 + $0xac] ss:$16 sps:$4 sm:$0xff]  }
 0x3d1   :  { %v5267_v27 = vrot.slane %v5265_v23, 1  ;;  %7812 = vmatpush1.bf16.msra.mxu1 %v12100_v37  ;;  %7707 = vmatprep.mubr.bf16.mxu1 %v14380_v20  ;;  %v5270_v36 = vrot.slane %v5268_v55, 2  ;;  %v14392_v7 = vld [vmem:[#allocation2 + $0x58] sm:$0xcc]  ;;  %v5132_v14 = vrot.slane %v10947_v2, 1  ;;  %v5215_v37 = vor.u32 %v5214_v30, %v5211_v41 }
 0x3d2   :  { %7813 = vmatprep.subr.bf16.mxu1 %v12109_v3  ;;  %v5134_v40 = vrot.slane %v10949_v34, 1  ;;  %v10970_v31 = vcombine.high %v14392_v7, %v14273_v33  ;;  %v14398_v46 = vld [vmem:[#allocation2 + $0x70] sm:$0x33]  ;;  %v5255_v43 = vor.u32 %v5254_v18, %v5251_v35  ;;  %v10959_v53 = vcombine.low %v14312_v42, %v14351_v12  ;;  %v14406_v34 = vld [vmem:[#allocation2 + $0x28] sm:$0x33] }
 0x3d3   :  { %v5271_v23 = vor.u32 %v5270_v36, %v5267_v27  ;;  %7751 = vmatpush1.bf16.msra.mxu0 %v12121_v0  ;;  %v12131_v60 = vld [vmem:[#allocation7 + $0x800] ss:$16 sps:$4 sm:$0xff]   ;;  %v5345_v20 = vrot.slane %v10968_v25, 2  ;;  %v10961_v2 = vcombine.low %v14314_v24, %v14360_v4  ;;  %v12116_v22 = vld [vmem:[#allocation7 + $0xa8] ss:$16 sps:$4 sm:$0xff]   ;;  %v14408_v41 = vcombine.low %v5215_v37, %v5231_v49 }
 0x3d4   :  { %v14402_v55 = vcombine.low %v5132_v14, %v5134_v40  ;;  %v5347_v3 = vrot.slane %v10970_v31, 2  ;;  %7752 = vmatprep.subr.bf16.mxu0 %v12133_v54  ;;  %v5241_v30 = vshrl.u32 %v10959_v53, 16  ;;  %v5244_v0 = vshll.u32 %v10959_v53, 16  ;;  %v12126_v18 = vld [vmem:[#allocation7 + $0x8c] ss:$16 sps:$4 sm:$0xff]  }
 0x3d5   :  { %7814 = vmatpush1.bf16.msra.mxu1 %v12107_v38  ;;  %15053 = vst [vmem:[#allocation29_spill] sm:$0xff] %v14408_v41  ;;  %v10964_v35 = vcombine.high %v14348_v51, %v14398_v46  ;;  %v14412_v42 = vcombine.low %v5255_v43, %v5271_v23  ;;  %v5257_v24 = vshrl.u32 %v10961_v2, 16  ;;  %v5260_v54 = vshll.u32 %v10961_v2, 16  ;;  %v12142_v36 = vld [vmem:[#allocation7 + $0x9e4] ss:$16 sps:$4 sm:$0xff]  }
 0x3d6   :  { %15052 = vst [vmem:[#allocation28_spill] sm:$0xff] %v14402_v55  ;;  %7815 = vmatprep.subr.bf16.mxu1 %v12118_v50  ;;  %7655 = vmatmul.mubr.bf16.gmra.mxu0 %v14402_v55  ;;  %v14415_v27 = vcombine.low %v5345_v20, %v5347_v3  ;;  %v5243_v38 = vrot.slane %v5241_v30, 1  ;;  %v5246_v25 = vrot.slane %v5244_v0, 2  ;;  %v10966_v49 = vcombine.high %v14356_v11, %v14406_v34  ;;  %v12140_v40 = vld [vmem:[#allocation7 + $0x9e0] ss:$16 sps:$4 sm:$0xff]  }
 0x3d7   :  { %15054 = vst [vmem:[#allocation30_spill] sm:$0xff] %v14412_v42  ;;  %7753 = vmatpush1.bf16.msra.mxu0 %v12131_v60  ;;  %v5281_v14 = vshrl.u32 %v10964_v35, 16  ;;  %v5259_v50 = vrot.slane %v5257_v24, 1  ;;  %v5262_v31 = vrot.slane %v5260_v54, 2  ;;  %v5284_v37 = vshll.u32 %v10964_v35, 16 }
 0x3d8   :  { %15055 = vst [vmem:[#allocation31_spill] sm:$0xff] %v14415_v27  ;;  %7708 = vmatmul.mubr.bf16.gmra.mxu1 %v14408_v41  ;;  %7770 = vmatprep.mubr.bf16.mxu0 %v14415_v27  ;;  %v12148_v20 = vld [vmem:[#allocation7 + $0x9c4] ss:$16 sps:$4 sm:$0xff]   ;;  %v10963_v43 = vcombine.low %v14348_v51, %v14398_v46  ;;  %v12124_v23 = vld [vmem:[#allocation7 + $0x88] ss:$16 sps:$4 sm:$0xff]   ;;  %v5297_v53 = vshrl.u32 %v10966_v49, 16  ;;  %v10965_v24 = vcombine.low %v14356_v11, %v14406_v34 }
 0x3d9   :  { %7816 = vmatpush1.bf16.msra.mxu1 %v12116_v22  ;;  %7717 = vmatprep.mubr.bf16.mxu1 %v14412_v42  ;;  %v5283_v60 = vrot.slane %v5281_v14, 1  ;;  %v5300_v3 = vshll.u32 %v10966_v49, 16  ;;  %v12136_v2 = vld [vmem:[#allocation7 + $0x6c] ss:$16 sps:$4 sm:$0xff]   ;;  %v5263_v30 = vor.u32 %v5262_v31, %v5259_v50  ;;  %v5286_v0 = vrot.slane %v5284_v37, 2 }
 0x3da   :  { %7817 = vmatprep.subr.bf16.mxu1 %v12126_v18  ;;  %7754 = vmatprep.subr.bf16.mxu0 %v12142_v36  ;;  %v5299_v35 = vrot.slane %v5297_v53, 1  ;;  %v12146_v41 = vld [vmem:[#allocation7 + $0x9c0] ss:$16 sps:$4 sm:$0xff]   ;;  %v5247_v51 = vor.u32 %v5246_v25, %v5243_v38  ;;  %v5273_v22 = vshrl.u32 %v10963_v43, 16  ;;  %v5276_v42 = vshll.u32 %v10963_v43, 16 }
 0x3db   :  { %v5302_v54 = vrot.slane %v5300_v3, 2  ;;  %7755 = vmatpush2.bf16.msra.mxu0 %v12140_v40  ;;  %v5289_v27 = vshrl.u32 %v10965_v24, 16  ;;  %v12156_v14 = vld [vmem:[#allocation7 + $0x9a4] ss:$16 sps:$4 sm:$0xff]   ;;  %v12134_v49 = vld [vmem:[#allocation7 + $0x68] ss:$16 sps:$4 sm:$0xff]   ;;  %v5287_v18 = vor.u32 %v5286_v0, %v5283_v60 }
 0x3dc   :  { %7756 = vmatprep.subr.bf16.mxu0 %v12148_v20  ;;  %v5292_v50 = vshll.u32 %v10965_v24, 16  ;;  %v14426_v36 = vcombine.low %v5247_v51, %v5263_v30  ;;  %v12145_v31 = vld [vmem:[#allocation7 + $0x4c] ss:$16 sps:$4 sm:$0xff]   ;;  %v12154_v38 = vld [vmem:[#allocation7 + $0x9a0] ss:$16 sps:$4 sm:$0xff]   ;;  %v5275_v25 = vrot.slane %v5273_v22, 1 }
 0x3dd   :  { %7818 = vmatpush1.bf16.msra.mxu1 %v12124_v23  ;;  %v5303_v55 = vor.u32 %v5302_v54, %v5299_v35  ;;  %v5291_v11 = vrot.slane %v5289_v27, 1  ;;  %v5278_v20 = vrot.slane %v5276_v42, 2  ;;  %v12162_v43 = vld [vmem:[#allocation7 + $0x984] ss:$16 sps:$4 sm:$0xff]   ;;  %v12143_v23 = vld [vmem:[#allocation7 + $0x48] ss:$16 sps:$4 sm:$0xff]  }
 0x3de   :  { %7819 = vmatprep.subr.bf16.mxu1 %v12136_v2  ;;  %v5294_v40 = vrot.slane %v5292_v50, 2  ;;  %v12151_v60 = vld [vmem:[#allocation7 + $0x2c] ss:$16 sps:$4 sm:$0xff]   ;;  %v12160_v27 = vld [vmem:[#allocation7 + $0x980] ss:$16 sps:$4 sm:$0xff]  }
 0x3df   :  { %v14428_v37 = vcombine.low %v5287_v18, %v5303_v55  ;;  %7757 = vmatpush2.bf16.msra.mxu0 %v12146_v41  ;;  %v5279_v55 = vor.u32 %v5278_v20, %v5275_v25  ;;  %v12168_v3 = vld [vmem:[#allocation7 + $0x964] ss:$16 sps:$4 sm:$0xff]   ;;  %v12149_v41 = vld [vmem:[#allocation7 + $0x28] ss:$16 sps:$4 sm:$0xff]   ;;  %v12159_v42 = vld [vmem:[#allocation7 + $0xc] ss:$16 sps:$4 sm:$0xff]   ;;  %v10969_v18 = vcombine.low %v14392_v7, %v14273_v33 }
 0x3e0   :  { %7718 = vmatmul.mubr.bf16.gmra.mxu1 %v14426_v36  ;;  %7758 = vmatprep.subr.bf16.mxu0 %v12156_v14  ;;  %v5295_v53 = vor.u32 %v5294_v40, %v5291_v11  ;;  %v12166_v30 = vld [vmem:[#allocation7 + $0x960] ss:$16 sps:$4 sm:$0xff]   ;;  %v12174_v0 = vld [vmem:[#allocation7 + $0x944] ss:$16 sps:$4 sm:$0xff]   ;;  %v12157_v24 = vld [vmem:[#allocation7 + $0x8] ss:$16 sps:$4 sm:$0xff]   ;;  %v10967_v40 = vcombine.low %v14389_v32, %v14262_v16 }
 0x3e1   :  { %7820 = vmatpush1.bf16.msra.mxu1 %v12134_v49  ;;  %7727 = vmatprep.mubr.bf16.mxu1 %v14428_v37  ;;  %v12165_v35 = vld [vmem:[#allocation7 + $0x1ec] ss:$16 sps:$4 sm:$0xff]   ;;  %v12172_v54 = vld [vmem:[#allocation7 + $0x940] ss:$16 sps:$4 sm:$0xff]   ;;  %v12180_v51 = vld [vmem:[#allocation7 + $0x924] ss:$16 sps:$4 sm:$0xff]  }
 0x3e2   :  { %7821 = vmatprep.subr.bf16.mxu1 %v12145_v31  ;;  %v14432_v2 = vcombine.low %v5279_v55, %v5295_v53  ;;  %v12163_v22 = vld [vmem:[#allocation7 + $0x1e8] ss:$16 sps:$4 sm:$0xff]   ;;  %v12171_v14 = vld [vmem:[#allocation7 + $0x1cc] ss:$16 sps:$4 sm:$0xff]   ;;  %v12178_v49 = vld [vmem:[#allocation7 + $0x920] ss:$16 sps:$4 sm:$0xff]  }
 0x3e3   :  { %7759 = vmatpush2.bf16.msra.mxu0 %v12154_v38  ;;  %v12186_v50 = vld [vmem:[#allocation7 + $0x904] ss:$16 sps:$4 sm:$0xff]   ;;  %v12177_v38 = vld [vmem:[#allocation7 + $0x1ac] ss:$16 sps:$4 sm:$0xff]   ;;  %v12184_v20 = vld [vmem:[#allocation7 + $0x900] ss:$16 sps:$4 sm:$0xff]  }
 0x3e4   :  { %7760 = vmatprep.subr.bf16.mxu0 %v12162_v43  ;;  %v4899_v31 = vld [vmem:[#allocation2 + $0x8] sm:$0xcc]  ;;  %v4898_v25 = vld [vmem:[#allocation2 + $0x50] sm:$0xcc]  ;;  %v5344_v53 = vrot.slane %v10967_v40, 2 }
 0x3e5   :  { %7822 = vmatpush1.bf16.msra.mxu1 %v12143_v23  ;;  %v10974_v11 = vcombine.high %v4899_v31, %v14327_v17  ;;  %v10972_v43 = vcombine.high %v4898_v25, %v14323_v28  ;;  %v5346_v23 = vrot.slane %v10969_v18, 2  ;;  %v12195_v33 = vld [vmem:[#allocation7 + $0x2ec] ss:$16 sps:$4 sm:$0xff]   ;;  %v12175_v7 = vld [vmem:[#allocation7 + $0x1a8] ss:$16 sps:$4 sm:$0xff]  }
 0x3e6   :  { %7823 = vmatprep.subr.bf16.mxu1 %v12151_v60  ;;  %v12193_v55 = vld [vmem:[#allocation7 + $0x2e8] ss:$16 sps:$4 sm:$0xff]   ;;  %v12202_v32 = vld [vmem:[#allocation7 + $0x2cc] ss:$16 sps:$4 sm:$0xff]  }
 0x3e7   :  { %7761 = vmatpush2.bf16.msra.mxu0 %v12160_v27  ;;  %v5351_v60 = vrot.slane %v10974_v11, 2  ;;  %v12183_v27 = vld [vmem:[#allocation7 + $0x18c] ss:$16 sps:$4 sm:$0xff]   ;;  %v14442_v16 = vcombine.low %v5344_v53, %v5346_v23  ;;  %v12187_v18 = vld [vmem:[#allocation7 + $0x168] ss:$16 sps:$4 sm:$0xff]   ;;  %v7480_v23 = vpop.f32.mrf.mxu0 }
 0x3e8   :  { %7728 = vmatmul.mubr.bf16.gmra.mxu1 %v14432_v2  ;;  %7762 = vmatprep.subr.bf16.mxu0 %v12168_v3  ;;  %v5349_v3 = vrot.slane %v10972_v43, 2  ;;  %v12207_v11 = vld [vmem:[#allocation7 + $0x2a8] ss:$16 sps:$4 sm:$0xff]   ;;  %v5744_v43 = vld [vmem:[#allocation8] sm:$0xf] }
 0x3e9   :  { %7824 = vmatpush1.bf16.msra.mxu1 %v12149_v41  ;;  %7843 = vmatprep.mubr.bf16.mxu1 %v13806_v48  ;;  %v12169_v48 = vld [vmem:[#allocation7 + $0x1c8] ss:$16 sps:$4 sm:$0xff]   ;;  %v10973_v41 = vcombine.low %v4899_v31, %v14327_v17  ;;  %v12192_v31 = vld [vmem:[#allocation7 + $0x14c] ss:$16 sps:$4 sm:$0xff]  }
 0x3ea   :  { %7825 = vmatprep.subr.bf16.mxu1 %v12159_v42  ;;  %v4901_v42 = vld [vmem:[#allocation2 + $0x10] sm:$0xcc] }
 0x3eb   :  { %7763 = vmatpush2.bf16.msra.mxu0 %v12166_v30  ;;  %v12181_v30 = vld [vmem:[#allocation7 + $0x188] ss:$16 sps:$4 sm:$0xff]   ;;  %v12199_v53 = vld [vmem:[#allocation7 + $0x12c] ss:$16 sps:$4 sm:$0xff]  }
 0x3ec   :  { %7764 = vmatprep.subr.bf16.mxu0 %v12174_v0  ;;  %v14445_v0 = vcombine.low %v5349_v3, %v5351_v60 }
 0x3ed   :  { %7826 = vmatpush1.bf16.msra.mxu1 %v12157_v24  ;;  %v10978_v24 = vcombine.high %v4901_v42, %v14360_v4 }
 0x3ee   :  { %7827 = vmatprep.subr.bf16.mxu1 %v12165_v35  ;;  %v12189_v35 = vld [vmem:[#allocation7 + $0x16c] ss:$16 sps:$4 sm:$0xff]  }
 0x3ef   :  { %7765 = vmatpush2.bf16.msra.mxu0 %v12172_v54  ;;  %v10971_v54 = vcombine.low %v4898_v25, %v14323_v28  ;;  %v10977_v25 = vcombine.low %v4901_v42, %v14360_v4  ;;  %v12211_v4 = vld [vmem:[#allocation7 + $0x288] ss:$16 sps:$4 sm:$0xff]   ;;  %v12220_v42 = vld [vmem:[#allocation7 + $0x26c] ss:$16 sps:$4 sm:$0xff]  }
 0x3f0   :  { %7766 = vmatprep.subr.bf16.mxu0 %v12180_v51  ;;  %v4900_v51 = vld [vmem:[#allocation2 + $0x40] sm:$0xcc] }
 0x3f1   :  { %7828 = vmatpush2.bf16.msra.mxu1 %v12163_v22  ;;  %v12200_v22 = vld [vmem:[#allocation7 + $0x2c8] ss:$16 sps:$4 sm:$0xff]   ;;  %v10976_v17 = vcombine.high %v4900_v51, %v14351_v12 }
 0x3f2   :  { %7829 = vmatprep.subr.bf16.mxu1 %v12171_v14  ;;  %v5350_v14 = vrot.slane %v10973_v41, 2  ;;  %v5354_v41 = vrot.slane %v10977_v25, 2 }
 0x3f3   :  { %7767 = vmatpush2.bf16.msra.mxu0 %v12178_v49  ;;  %v12209_v49 = vld [vmem:[#allocation7 + $0x2ac] ss:$16 sps:$4 sm:$0xff]   ;;  %v5353_v40 = vrot.slane %v10976_v17, 2 }
 0x3f4   :  { %7768 = vmatprep.subr.bf16.mxu0 %v12186_v50  ;;  %v5355_v50 = vrot.slane %v10978_v24, 2  ;;  %v12197_v24 = vld [vmem:[#allocation7 + $0x128] ss:$16 sps:$4 sm:$0xff]  }
 0x3f5   :  { %7830 = vmatpush2.bf16.msra.mxu1 %v12169_v48  ;;  %v5348_v48 = vrot.slane %v10971_v54, 2  ;;  %v14466_v54 = vrot.slane %v5744_v43, %v13179_v21 }
 0x3f6   :  { %7831 = vmatprep.subr.bf16.mxu1 %v12177_v38  ;;  %v12213_v38 = vld [vmem:[#allocation7 + $0x28c] ss:$16 sps:$4 sm:$0xff]  }
 0x3f7   :  { %7769 = vmatpush2.bf16.msra.mxu0 %v12184_v20  ;;  %v14452_v28 = vcombine.low %v5348_v48, %v5350_v14  ;;  %v4903_v20 = vld [vmem:[#allocation2 + $0x78] sm:$0xcc] }
 0x3f8   :  { %7884 = vmatprep.subr.bf16.mxu0 %v12195_v33  ;;  %v12190_v33 = vld [vmem:[#allocation7 + $0x148] ss:$16 sps:$4 sm:$0xff]   ;;  %v10982_v60 = vcombine.high %v4903_v20, %v14406_v34 }
 0x3f9   :  { %7832 = vmatpush2.bf16.msra.mxu1 %v12175_v7  ;;  %v14455_v7 = vcombine.low %v5353_v40, %v5355_v50  ;;  %v10981_v50 = vcombine.low %v4903_v20, %v14406_v34  ;;  %v12226_v34 = vld [vmem:[#allocation7 + $0x248] ss:$16 sps:$4 sm:$0xff]  }
 0x3fa   :  { %7833 = vmatprep.subr.bf16.mxu1 %v12183_v27  ;;  %7771 = vmatmul.mubr.bf16.vlgmr.msra.gmra.mxu0 %v14442_v16  ;;  %v10975_v27 = vcombine.low %v4900_v51, %v14351_v12  ;;  %v12206_v12 = vld [vmem:[#allocation7 + $0x10c] ss:$16 sps:$4 sm:$0xff]  }
 0x3fb   :  { %7780 = vmatprep.mubr.bf16.mxu0 %v14445_v0  ;;  %7885 = vmatpush1.bf16.msra.mxu0 %v12193_v55  ;;  %v4902_v55 = vld [vmem:[#allocation2 + $0x60] sm:$0xcc] }
 0x3fc   :  { %7886 = vmatprep.subr.bf16.mxu0 %v12202_v32  ;;  %v10980_v3 = vcombine.high %v4902_v55, %v14398_v46  ;;  %v14463_v32 = vrot.slane %v5744_v43, %v13175_v19  ;;  %v5352_v51 = vrot.slane %v10975_v27, 2  ;;  %v12216_v43 = vld [vmem:[#allocation7 + $0x4ec] ss:$16 sps:$4 sm:$0xff]  }
 0x3fd   :  { %7834 = vmatpush2.bf16.msra.mxu1 %v12181_v30  ;;  %v7482_v30 = vpop.f32.mrf.mxu0  ;;  %v12236_v27 = vld [vmem:[#allocation7 + $0x22c] ss:$16 sps:$4 sm:$0xff]  }
 0x3fe   :  { %7835 = vmatprep.subr.bf16.mxu1 %v12189_v35  ;;  %v5359_v35 = vrot.slane %v10982_v60, 2  ;;  %v5357_v17 = vrot.slane %v10980_v3, 2  ;;  %v7481_v14 = vadd.f32 %v7480_v23, %v14463_v32  ;;  %v10979_v23 = vcombine.low %v4902_v55, %v14398_v46  ;;  %v12214_v3 = vld [vmem:[#allocation7 + $0x4e8] ss:$16 sps:$4 sm:$0xff]  }
 0x3ff   :  { %7887 = vmatpush1.bf16.msra.mxu0 %v12200_v22  ;;  %v12218_v22 = vld [vmem:[#allocation7 + $0x268] ss:$16 sps:$4 sm:$0xff]  }
 0x400   :  { %7888 = vmatprep.subr.bf16.mxu0 %v12209_v49  ;;  %v14469_v49 = vcombine.low %v5352_v51, %v5354_v41  ;;  %v14472_v40 = vcombine.low %v5357_v17, %v5359_v35  ;;  %v5356_v46 = vrot.slane %v10979_v23, 2  ;;  %v12234_v55 = vld [vmem:[#allocation7 + $0x228] ss:$16 sps:$4 sm:$0xff]   ;;  %v12239_v17 = vld [vmem:[#allocation7 + $0x48c] ss:$16 sps:$4 sm:$0xff]  }
 0x401   :  { %7836 = vmatpush2.bf16.msra.mxu1 %v12187_v18  ;;  %v12228_v18 = vld [vmem:[#allocation7 + $0x24c] ss:$16 sps:$4 sm:$0xff]   ;;  %v12221_v35 = vld [vmem:[#allocation7 + $0x4c8] ss:$16 sps:$4 sm:$0xff]  }
 0x402   :  { %7837 = vmatprep.subr.bf16.mxu1 %v12192_v31  ;;  %7781 = vmatmul.mubr.bf16.gmra.mxu0 %v14452_v28  ;;  %v7484_v31 = vpop.f32.mrf.mxu0  ;;  %v12240_v51 = vld [vmem:[#allocation7 + $0x208] ss:$16 sps:$4 sm:$0xff]  }
 0x403   :  { %7790 = vmatprep.mubr.bf16.mxu0 %v14455_v7  ;;  %7889 = vmatpush1.bf16.msra.mxu0 %v12207_v11  ;;  %v12204_v11 = vld [vmem:[#allocation7 + $0x108] ss:$16 sps:$4 sm:$0xff]   ;;  %v7485_v20 = vadd.f32 %v7484_v31, %v14463_v32  ;;  %v12260_v31 = vld [vmem:[#allocation7 + $0x3ac] ss:$16 sps:$4 sm:$0xff]  }
 0x404   :  { %7890 = vmatprep.subr.bf16.mxu0 %v12213_v38  ;;  %v7483_v38 = vadd.f32 %v7482_v30, %v14466_v54  ;;  %v12264_v23 = vld [vmem:[#allocation7 + $0x388] ss:$16 sps:$4 sm:$0xff]  }
 0x405   :  { %7838 = vmatpush2.bf16.msra.mxu1 %v12190_v33 }
 0x406   :  { %7839 = vmatprep.subr.bf16.mxu1 %v12199_v53  ;;  %v5358_v53 = vrot.slane %v10981_v50, 2  ;;  %v12245_v50 = vld [vmem:[#allocation7 + $0x46c] ss:$16 sps:$4 sm:$0xff]  }
 0x407   :  { %7891 = vmatpush1.bf16.msra.mxu0 %v12211_v4 }
 0x408   :  { %7892 = vmatprep.subr.bf16.mxu0 %v12220_v42  ;;  %v7553_v48 = vpop.f32.mrf.mxu1  ;;  %v12223_v42 = vld [vmem:[#allocation7 + $0x4cc] ss:$16 sps:$4 sm:$0xff]   ;;  %v14486_v30 = vcombine.low %v5356_v46, %v5358_v53  ;;  %v12270_v53 = vld [vmem:[#allocation7 + $0x368] ss:$16 sps:$4 sm:$0xff]  }
 0x409   :  { %7840 = vmatpush2.bf16.msra.mxu1 %v12197_v24  ;;  %v14475_v25 = vadd.f32 %v7553_v48, %v7481_v14  ;;  %v12242_v24 = vld [vmem:[#allocation7 + $0x20c] ss:$16 sps:$4 sm:$0xff]   ;;  %v12246_v14 = vld [vmem:[#allocation7 + $0x3e8] ss:$16 sps:$4 sm:$0xff]  }
 0x40a   :  { %7841 = vmatprep.subr.bf16.mxu1 %v12206_v12  ;;  %7791 = vmatmul.mubr.bf16.gmra.mxu0 %v14469_v49  ;;  %v7555_v33 = vpop.f32.mrf.mxu1  ;;  %v12231_v12 = vld [vmem:[#allocation7 + $0x4ac] ss:$16 sps:$4 sm:$0xff]   ;;  %v12243_v48 = vld [vmem:[#allocation7 + $0x468] ss:$16 sps:$4 sm:$0xff]  }
 0x40b   :  { %7800 = vmatprep.mubr.bf16.mxu0 %v14472_v40  ;;  %7893 = vmatpush1.bf16.msra.mxu0 %v12218_v22  ;;  %v14481_v60 = vadd.f32 %v7555_v33, %v7483_v38  ;;  %v12248_v22 = vld [vmem:[#allocation7 + $0x3ec] ss:$16 sps:$4 sm:$0xff]   ;;  %v12258_v38 = vld [vmem:[#allocation7 + $0x3a8] ss:$16 sps:$4 sm:$0xff]  }
 0x40c   :  { %7894 = vmatprep.subr.bf16.mxu0 %v12228_v18  ;;  %v7557_v4 = vpop.f32.mrf.mxu1  ;;  %v12237_v18 = vld [vmem:[#allocation7 + $0x488] ss:$16 sps:$4 sm:$0xff]   ;;  %v12272_v33 = vld [vmem:[#allocation7 + $0x36c] ss:$16 sps:$4 sm:$0xff]  }
 0x40d   :  { %7842 = vmatpush2.bf16.msra.mxu1 %v12204_v11  ;;  %v14483_v41 = vadd.f32 %v7557_v4, %v7485_v20  ;;  %v12251_v11 = vld [vmem:[#allocation7 + $0x44c] ss:$16 sps:$4 sm:$0xff]   ;;  %v12276_v4 = vld [vmem:[#allocation7 + $0x348] ss:$16 sps:$4 sm:$0xff]  }
 0x40e   :  { %7957 = vmatprep.subr.bf16.mxu1 %v12216_v43  ;;  %v12257_v43 = vld [vmem:[#allocation7 + $0x42c] ss:$16 sps:$4 sm:$0xff]  }
 0x40f   :  { %7895 = vmatpush1.bf16.msra.mxu0 %v12226_v34  ;;  %v12255_v34 = vld [vmem:[#allocation7 + $0x428] ss:$16 sps:$4 sm:$0xff]   ;;  %v12263_v20 = vld [vmem:[#allocation7 + $0x40c] ss:$16 sps:$4 sm:$0xff]  }
 0x410   :  { %7844 = vmatmul.mubr.bf16.vlgmr.msra.gmra.mxu1 %v13891_v45  ;;  %7896 = vmatprep.subr.bf16.mxu0 %v12236_v27  ;;  %v12229_v45 = vld [vmem:[#allocation7 + $0x4a8] ss:$16 sps:$4 sm:$0xff]   ;;  %v12269_v27 = vld [vmem:[#allocation7 + $0x5ec] ss:$16 sps:$4 sm:$0xff]  }
 0x411   :  { %7853 = vmatprep.mubr.bf16.mxu1 %v14062_v52  ;;  %7958 = vmatpush1.bf16.msra.mxu1 %v12214_v3  ;;  %v12254_v52 = vld [vmem:[#allocation7 + $0x3cc] ss:$16 sps:$4 sm:$0xff]  }
 0x412   :  { %7959 = vmatprep.subr.bf16.mxu1 %v12223_v42  ;;  %7801 = vmatmul.mubr.bf16.gmra.mxu0 %v14486_v30  ;;  %v12284_v3 = vld [vmem:[#allocation7 + $0x32c] ss:$16 sps:$4 sm:$0xff]   ;;  %v12267_v42 = vld [vmem:[#allocation7 + $0x5e8] ss:$16 sps:$4 sm:$0xff]  }
 0x413   :  { %7897 = vmatpush1.bf16.msra.mxu0 %v12234_v55  ;;  %7916 = vmatprep.mubr.bf16.mxu0 %v14046_v61  ;;  %v12252_v61 = vld [vmem:[#allocation7 + $0x3c8] ss:$16 sps:$4 sm:$0xff]   ;;  %v12275_v46 = vld [vmem:[#allocation7 + $0x5cc] ss:$16 sps:$4 sm:$0xff]  }
 0x414   :  { %7898 = vmatprep.subr.bf16.mxu0 %v12242_v24  ;;  %v12282_v55 = vld [vmem:[#allocation7 + $0x328] ss:$16 sps:$4 sm:$0xff]  }
 0x415   :  { %7960 = vmatpush1.bf16.msra.mxu1 %v12221_v35  ;;  %v12273_v24 = vld [vmem:[#allocation7 + $0x5c8] ss:$16 sps:$4 sm:$0xff]   ;;  %v12281_v35 = vld [vmem:[#allocation7 + $0x5ac] ss:$16 sps:$4 sm:$0xff]  }
 0x416   :  { %7961 = vmatprep.subr.bf16.mxu1 %v12231_v12  ;;  %v12299_v12 = vld [vmem:[#allocation7 + $0x6ec] ss:$16 sps:$4 sm:$0xff]  }
 0x417   :  { %7899 = vmatpush1.bf16.msra.mxu0 %v12240_v51  ;;  %v12279_v51 = vld [vmem:[#allocation7 + $0x5a8] ss:$16 sps:$4 sm:$0xff]  }
 0x418   :  { %7854 = vmatmul.mubr.bf16.gmra.mxu1 %v14163_v57  ;;  %7900 = vmatprep.subr.bf16.mxu0 %v12248_v22  ;;  %v12266_v57 = vld [vmem:[#allocation7 + $0x38c] ss:$16 sps:$4 sm:$0xff]  }
 0x419   :  { %7863 = vmatprep.mubr.bf16.mxu1 %v14203_v6  ;;  %7962 = vmatpush1.bf16.msra.mxu1 %v12229_v45  ;;  %v12249_v6 = vld [vmem:[#allocation7 + $0x448] ss:$16 sps:$4 sm:$0xff]   ;;  %v12287_v22 = vld [vmem:[#allocation7 + $0x58c] ss:$16 sps:$4 sm:$0xff]  }
 0x41a   :  { %7963 = vmatprep.subr.bf16.mxu1 %v12239_v17  ;;  %v12297_v45 = vld [vmem:[#allocation7 + $0x6e8] ss:$16 sps:$4 sm:$0xff]   ;;  %v12305_v17 = vld [vmem:[#allocation7 + $0x6cc] ss:$16 sps:$4 sm:$0xff]  }
 0x41b   :  { %7901 = vmatpush2.bf16.msra.mxu0 %v12246_v14  ;;  %v12285_v14 = vld [vmem:[#allocation7 + $0x588] ss:$16 sps:$4 sm:$0xff]  }
 0x41c   :  { %7902 = vmatprep.subr.bf16.mxu0 %v12254_v52  ;;  %v12293_v52 = vld [vmem:[#allocation7 + $0x56c] ss:$16 sps:$4 sm:$0xff]  }
 0x41d   :  { %7964 = vmatpush1.bf16.msra.mxu1 %v12237_v18  ;;  %v12303_v18 = vld [vmem:[#allocation7 + $0x6c8] ss:$16 sps:$4 sm:$0xff]  }
 0x41e   :  { %7965 = vmatprep.subr.bf16.mxu1 %v12245_v50  ;;  %v12311_v50 = vld [vmem:[#allocation7 + $0x6ac] ss:$16 sps:$4 sm:$0xff]  }
 0x41f   :  { %7903 = vmatpush2.bf16.msra.mxu0 %v12252_v61  ;;  %v12291_v61 = vld [vmem:[#allocation7 + $0x568] ss:$16 sps:$4 sm:$0xff]  }
 0x420   :  { %7864 = vmatmul.mubr.bf16.gmra.mxu1 %v14209_v63  ;;  %7904 = vmatprep.subr.bf16.mxu0 %v12260_v31  ;;  %v12278_v63 = vld [vmem:[#allocation7 + $0x34c] ss:$16 sps:$4 sm:$0xff]  }
 0x421   :  { %7873 = vmatprep.mubr.bf16.mxu1 %v14250_v15  ;;  %7966 = vmatpush1.bf16.msra.mxu1 %v12243_v48  ;;  %v12261_v15 = vld [vmem:[#allocation7 + $0x408] ss:$16 sps:$4 sm:$0xff]   ;;  %v12296_v31 = vld [vmem:[#allocation7 + $0x54c] ss:$16 sps:$4 sm:$0xff]  }
 0x422   :  { %7967 = vmatprep.subr.bf16.mxu1 %v12251_v11  ;;  %v12309_v48 = vld [vmem:[#allocation7 + $0x6a8] ss:$16 sps:$4 sm:$0xff]   ;;  %v12314_v11 = vld [vmem:[#allocation7 + $0x68c] ss:$16 sps:$4 sm:$0xff]  }
 0x423   :  { %7905 = vmatpush2.bf16.msra.mxu0 %v12258_v38  ;;  %v12294_v38 = vld [vmem:[#allocation7 + $0x548] ss:$16 sps:$4 sm:$0xff]  }
 0x424   :  { %7906 = vmatprep.subr.bf16.mxu0 %v12266_v57  ;;  %v12302_v57 = vld [vmem:[#allocation7 + $0x52c] ss:$16 sps:$4 sm:$0xff]  }
 0x425   :  { %7968 = vmatpush1.bf16.msra.mxu1 %v12249_v6  ;;  %v12300_v6 = vld [vmem:[#allocation7 + $0x528] ss:$16 sps:$4 sm:$0xff]  }
 0x426   :  { %7969 = vmatprep.subr.bf16.mxu1 %v12257_v43  ;;  %v12308_v43 = vld [vmem:[#allocation7 + $0x50c] ss:$16 sps:$4 sm:$0xff]  }
 0x427   :  { %7907 = vmatpush2.bf16.msra.mxu0 %v12264_v23  ;;  %v12318_v23 = vld [vmem:[#allocation7 + $0x668] ss:$16 sps:$4 sm:$0xff]  }
 0x428   :  { %7874 = vmatmul.mubr.bf16.gmra.mxu1 %v14253_v62  ;;  %7908 = vmatprep.subr.bf16.mxu0 %v12272_v33  ;;  %v12290_v62 = vld [vmem:[#allocation7 + $0x30c] ss:$16 sps:$4 sm:$0xff]  }
 0x429   :  { %7970 = vmatpush1.bf16.msra.mxu1 %v12255_v34  ;;  %7989 = vmatprep.mubr.bf16.mxu1 %v14281_v59  ;;  %v12288_v59 = vld [vmem:[#allocation7 + $0x308] ss:$16 sps:$4 sm:$0xff]   ;;  %v12326_v33 = vld [vmem:[#allocation7 + $0x64c] ss:$16 sps:$4 sm:$0xff]  }
 0x42a   :  { %7971 = vmatprep.subr.bf16.mxu1 %v12263_v20  ;;  %v12306_v34 = vld [vmem:[#allocation7 + $0x508] ss:$16 sps:$4 sm:$0xff]   ;;  %v12317_v20 = vld [vmem:[#allocation7 + $0x8ec] ss:$16 sps:$4 sm:$0xff]  }
 0x42b   :  { %7909 = vmatpush2.bf16.msra.mxu0 %v12270_v53  ;;  %v12315_v53 = vld [vmem:[#allocation7 + $0x8e8] ss:$16 sps:$4 sm:$0xff]  }
 0x42c   :  { %7910 = vmatprep.subr.bf16.mxu0 %v12278_v63  ;;  %v12323_v63 = vld [vmem:[#allocation7 + $0x8cc] ss:$16 sps:$4 sm:$0xff]  }
 0x42d   :  { %7972 = vmatpush1.bf16.msra.mxu1 %v12261_v15  ;;  %v12330_v15 = vld [vmem:[#allocation7 + $0x628] ss:$16 sps:$4 sm:$0xff]  }
 0x42e   :  { %7973 = vmatprep.subr.bf16.mxu1 %v12269_v27  ;;  %v14503_v27 = vpop.f32.mrf.mxu0 }
 0x42f   :  { %7911 = vmatpush2.bf16.msra.mxu0 %v12276_v4  ;;  %v12338_v4 = vld [vmem:[#allocation7 + $0x60c] ss:$16 sps:$4 sm:$0xff]  }
 0x430   :  { %7912 = vmatprep.subr.bf16.mxu0 %v12284_v3  ;;  %v12329_v3 = vld [vmem:[#allocation7 + $0x8ac] ss:$16 sps:$4 sm:$0xff]  }
 0x431   :  { %7974 = vmatpush2.bf16.msra.mxu1 %v12267_v42  ;;  %v12336_v42 = vld [vmem:[#allocation7 + $0x608] ss:$16 sps:$4 sm:$0xff]  }
 0x432   :  { %7975 = vmatprep.subr.bf16.mxu1 %v12275_v46  ;;  %v12344_v46 = vld [vmem:[#allocation7 + $0x7ec] ss:$16 sps:$4 sm:$0xff]  }
 0x433   :  { %7913 = vmatpush2.bf16.msra.mxu0 %v12282_v55  ;;  %v12327_v55 = vld [vmem:[#allocation7 + $0x8a8] ss:$16 sps:$4 sm:$0xff]  }
 0x434   :  { %7914 = vmatprep.subr.bf16.mxu0 %v12290_v62  ;;  %v12335_v62 = vld [vmem:[#allocation7 + $0x88c] ss:$16 sps:$4 sm:$0xff]  }
 0x435   :  { %7976 = vmatpush2.bf16.msra.mxu1 %v12273_v24  ;;  %v12350_v24 = vld [vmem:[#allocation7 + $0x7cc] ss:$16 sps:$4 sm:$0xff]  }
 0x436   :  { %7977 = vmatprep.subr.bf16.mxu1 %v12281_v35  ;;  %v15056_v35 = vld [vmem:[#allocation25_spill] sm:$0xff] }
 0x437   :  { %7915 = vmatpush2.bf16.msra.mxu0 %v12288_v59  ;;  %v14511_v59 = vpop.f32.mrf.mxu1 }
 0x438   :  { %8030 = vmatprep.subr.bf16.mxu0 %v12299_v12  ;;  %v12341_v12 = vld [vmem:[#allocation7 + $0x86c] ss:$16 sps:$4 sm:$0xff]  }
 0x439   :  { %7978 = vmatpush2.bf16.msra.mxu1 %v12279_v51 }
 0x43a   :  { %7979 = vmatprep.subr.bf16.mxu1 %v12287_v22  ;;  %7917 = vmatmul.mubr.bf16.vlgmr.msra.gmra.mxu0 %v14036_v8  ;;  %v12312_v8 = vld [vmem:[#allocation7 + $0x688] ss:$16 sps:$4 sm:$0xff]  }
 0x43b   :  { %7926 = vmatprep.mubr.bf16.mxu0 %v14218_v56  ;;  %8031 = vmatpush1.bf16.msra.mxu0 %v12297_v45  ;;  %v12320_v56 = vld [vmem:[#allocation7 + $0x66c] ss:$16 sps:$4 sm:$0xff]   ;;  %v12348_v22 = vld [vmem:[#allocation7 + $0x7c8] ss:$16 sps:$4 sm:$0xff]  }
 0x43c   :  { %8032 = vmatprep.subr.bf16.mxu0 %v12305_v17  ;;  %v12356_v17 = vld [vmem:[#allocation7 + $0x7ac] ss:$16 sps:$4 sm:$0xff]  }
 0x43d   :  { %7980 = vmatpush2.bf16.msra.mxu1 %v12285_v14 }
 0x43e   :  { %7981 = vmatprep.subr.bf16.mxu1 %v12293_v52  ;;  %v12339_v52 = vld [vmem:[#allocation7 + $0x868] ss:$16 sps:$4 sm:$0xff]  }
 0x43f   :  { %8033 = vmatpush1.bf16.msra.mxu0 %v12303_v18 }
 0x440   :  { %8034 = vmatprep.subr.bf16.mxu0 %v12311_v50 }
 0x441   :  { %7982 = vmatpush2.bf16.msra.mxu1 %v12291_v61  ;;  %v12347_v61 = vld [vmem:[#allocation7 + $0x84c] ss:$16 sps:$4 sm:$0xff]  }
 0x442   :  { %7983 = vmatprep.subr.bf16.mxu1 %v12296_v31  ;;  %7927 = vmatmul.mubr.bf16.gmra.mxu0 %v14230_v29  ;;  %v12324_v29 = vld [vmem:[#allocation7 + $0x648] ss:$16 sps:$4 sm:$0xff]  }
 0x443   :  { %7936 = vmatprep.mubr.bf16.mxu0 %v14259_v26  ;;  %8035 = vmatpush1.bf16.msra.mxu0 %v12309_v48  ;;  %v12332_v26 = vld [vmem:[#allocation7 + $0x62c] ss:$16 sps:$4 sm:$0xff]  }
 0x444   :  { %8036 = vmatprep.subr.bf16.mxu0 %v12314_v11  ;;  %v12354_v11 = vld [vmem:[#allocation7 + $0x7a8] ss:$16 sps:$4 sm:$0xff]  }
 0x445   :  { %7984 = vmatpush2.bf16.msra.mxu1 %v12294_v38 }
 0x446   :  { %7985 = vmatprep.subr.bf16.mxu1 %v12302_v57  ;;  %v12362_v57 = vld [vmem:[#allocation7 + $0x78c] ss:$16 sps:$4 sm:$0xff]  }
 0x447   :  { %8037 = vmatpush1.bf16.msra.mxu0 %v12312_v8 }
 0x448   :  { %8038 = vmatprep.subr.bf16.mxu0 %v12320_v56 }
 0x449   :  { %7986 = vmatpush2.bf16.msra.mxu1 %v12300_v6  ;;  %v12345_v6 = vld [vmem:[#allocation7 + $0x848] ss:$16 sps:$4 sm:$0xff]  }
 0x44a   :  { %7987 = vmatprep.subr.bf16.mxu1 %v12308_v43  ;;  %7937 = vmatmul.mubr.bf16.gmra.mxu0 %v14287_v5  ;;  %v12321_v5 = vld [vmem:[#allocation7 + $0x8c8] ss:$16 sps:$4 sm:$0xff]  }
 0x44b   :  { %7946 = vmatprep.mubr.bf16.mxu0 %v14340_v39  ;;  %8039 = vmatpush1.bf16.msra.mxu0 %v12318_v23  ;;  %v7490_v39 = vpop.f32.mrf.mxu0 }
 0x44c   :  { %8040 = vmatprep.subr.bf16.mxu0 %v12326_v33  ;;  %v7491_v51 = vadd.f32 %v7490_v39, %v14463_v32  ;;  %v12353_v33 = vld [vmem:[#allocation7 + $0x82c] ss:$16 sps:$4 sm:$0xff]  }
 0x44d   :  { %7988 = vmatpush2.bf16.msra.mxu1 %v12306_v34 }
 0x44e   :  { %8103 = vmatprep.subr.bf16.mxu1 %v12317_v20  ;;  %v12360_v20 = vld [vmem:[#allocation7 + $0x788] ss:$16 sps:$4 sm:$0xff]  }
 0x44f   :  { %8041 = vmatpush1.bf16.msra.mxu0 %v12324_v29  ;;  %v12351_v29 = vld [vmem:[#allocation7 + $0x828] ss:$16 sps:$4 sm:$0xff]  }
 0x450   :  { %7990 = vmatmul.mubr.bf16.vlgmr.msra.gmra.mxu1 %v14294_v13  ;;  %8042 = vmatprep.subr.bf16.mxu0 %v12332_v26  ;;  %v7492_v13 = vpop.f32.mrf.mxu0 }
 0x451   :  { %7999 = vmatprep.mubr.bf16.mxu1 %v14298_v47  ;;  %8104 = vmatpush1.bf16.msra.mxu1 %v12315_v53  ;;  %v12342_v47 = vld [vmem:[#allocation7 + $0x7e8] ss:$16 sps:$4 sm:$0xff]   ;;  %v12359_v53 = vld [vmem:[#allocation7 + $0x80c] ss:$16 sps:$4 sm:$0xff]  }
 0x452   :  { %8105 = vmatprep.subr.bf16.mxu1 %v12323_v63  ;;  %7947 = vmatmul.mubr.bf16.gmra.mxu0 %v14342_v10  ;;  %v12333_v10 = vld [vmem:[#allocation7 + $0x888] ss:$16 sps:$4 sm:$0xff]  }
 0x453   :  { %8043 = vmatpush1.bf16.msra.mxu0 %v12330_v15  ;;  %8062 = vmatprep.mubr.bf16.mxu0 %v14344_v1  ;;  %v7494_v1 = vpop.f32.mrf.mxu0  ;;  %v12366_v63 = vld [vmem:[#allocation7 + $0x768] ss:$16 sps:$4 sm:$0xff]   ;;  %v12374_v15 = vld [vmem:[#allocation7 + $0x74c] ss:$16 sps:$4 sm:$0xff]  }
 0x454   :  { %8044 = vmatprep.subr.bf16.mxu0 %v12338_v4  ;;  %v7495_v31 = vadd.f32 %v7494_v1, %v14463_v32  ;;  %v15058_v4 = vld [vmem:[#allocation31_spill] sm:$0xff] }
 0x455   :  { %8106 = vmatpush1.bf16.msra.mxu1 %v12321_v5  ;;  %v7496_v18 = vpop.f32.mrf.mxu0  ;;  %v12357_v5 = vld [vmem:[#allocation7 + $0x808] ss:$16 sps:$4 sm:$0xff]   ;;  %v12377_v1 = vld [vmem:[#allocation7 + $0x9ac] ss:$16 sps:$4 sm:$0xff]  }
 0x456   :  { %8107 = vmatprep.subr.bf16.mxu1 %v12329_v3  ;;  %v7497_v8 = vadd.f32 %v7496_v18, %v14466_v54  ;;  %v12365_v3 = vld [vmem:[#allocation7 + $0x9ec] ss:$16 sps:$4 sm:$0xff]  }
 0x457   :  { %8045 = vmatpush1.bf16.msra.mxu0 %v12336_v42  ;;  %v12372_v42 = vld [vmem:[#allocation7 + $0x748] ss:$16 sps:$4 sm:$0xff]  }
 0x458   :  { %8000 = vmatmul.mubr.bf16.gmra.mxu1 %v14316_v58  ;;  %8046 = vmatprep.subr.bf16.mxu0 %v12344_v46  ;;  %v7493_v58 = vadd.f32 %v7492_v13, %v14466_v54  ;;  %v12380_v46 = vld [vmem:[#allocation7 + $0x72c] ss:$16 sps:$4 sm:$0xff]  }
 0x459   :  { %8009 = vmatprep.mubr.bf16.mxu1 %v15056_v35  ;;  %8108 = vmatpush1.bf16.msra.mxu1 %v12327_v55  ;;  %v7500_v23 = vpop.f32.mrf.mxu0  ;;  %v12363_v55 = vld [vmem:[#allocation7 + $0x9e8] ss:$16 sps:$4 sm:$0xff]   ;;  %v12386_v35 = vld [vmem:[#allocation7 + $0x70c] ss:$16 sps:$4 sm:$0xff]  }
 0x45a   :  { %8109 = vmatprep.subr.bf16.mxu1 %v12335_v62  ;;  %v12371_v62 = vld [vmem:[#allocation7 + $0x9cc] ss:$16 sps:$4 sm:$0xff]  }
 0x45b   :  { %8047 = vmatpush2.bf16.msra.mxu0 %v12342_v47  ;;  %v7502_v26 = vpop.f32.mrf.mxu0  ;;  %v12378_v47 = vld [vmem:[#allocation7 + $0x728] ss:$16 sps:$4 sm:$0xff]  }
 0x45c   :  { %8048 = vmatprep.subr.bf16.mxu0 %v12350_v24 }
 0x45d   :  { %v7563_v45 = vpop.f32.mrf.mxu1  ;;  %8110 = vmatpush1.bf16.msra.mxu1 %v12333_v10  ;;  %v7504_v39 = vpop.f32.mrf.mxu0  ;;  %v12369_v10 = vld [vmem:[#allocation7 + $0x9c8] ss:$16 sps:$4 sm:$0xff]  }
 0x45e   :  { %v14515_v14 = vadd.f32 %v7563_v45, %v7491_v51  ;;  %8111 = vmatprep.subr.bf16.mxu1 %v12341_v12  ;;  %v12384_v51 = vld [vmem:[#allocation7 + $0x708] ss:$16 sps:$4 sm:$0xff]  }
 0x45f   :  { %v7565_v50 = vpop.f32.mrf.mxu1  ;;  %8049 = vmatpush2.bf16.msra.mxu0 %v12348_v22  ;;  %v7506_v13 = vpop.f32.mrf.mxu0  ;;  %v12375_v45 = vld [vmem:[#allocation7 + $0x9a8] ss:$16 sps:$4 sm:$0xff]  }
 0x460   :  { %v14518_v48 = vadd.f32 %v7565_v50, %v7493_v58  ;;  %8010 = vmatmul.mubr.bf16.gmra.mxu1 %v14374_v44  ;;  %8050 = vmatprep.subr.bf16.mxu0 %v12356_v17  ;;  %v12368_v44 = vld [vmem:[#allocation7 + $0x76c] ss:$16 sps:$4 sm:$0xff]   ;;  %v7503_v50 = vadd.f32 %v7502_v26, %v14466_v54 }
 0x461   :  { %v7567_v38 = vpop.f32.mrf.mxu1  ;;  %8019 = vmatprep.mubr.bf16.mxu1 %v14376_v9  ;;  %8112 = vmatpush1.bf16.msra.mxu1 %v12339_v52  ;;  %v15057_v9 = vld [vmem:[#allocation28_spill] sm:$0xff]  ;;  %v12383_v17 = vld [vmem:[#allocation7 + $0x98c] ss:$16 sps:$4 sm:$0xff]   ;;  %v7501_v52 = vadd.f32 %v7500_v23, %v14463_v32 }
 0x462   :  { %v14522_v56 = vadd.f32 %v7567_v38, %v7495_v31  ;;  %8113 = vmatprep.subr.bf16.mxu1 %v12347_v61  ;;  %v12381_v31 = vld [vmem:[#allocation7 + $0x988] ss:$16 sps:$4 sm:$0xff]   ;;  %v12389_v38 = vld [vmem:[#allocation7 + $0x96c] ss:$16 sps:$4 sm:$0xff]  }
 0x463   :  { %v7569_v43 = vpop.f32.mrf.mxu1  ;;  %8051 = vmatpush2.bf16.msra.mxu0 %v12354_v11 }
 0x464   :  { %v14525_v34 = vadd.f32 %v7569_v43, %v7497_v8  ;;  %8052 = vmatprep.subr.bf16.mxu0 %v12362_v57  ;;  %v15059_v57 = vld [vmem:[#allocation26_spill] sm:$0xff] }
 0x465   :  { %8114 = vmatpush1.bf16.msra.mxu1 %v12345_v6  ;;  %v7505_v6 = vadd.f32 %v7504_v39, %v14463_v32 }
 0x466   :  { %8115 = vmatprep.subr.bf16.mxu1 %v12353_v33 }
 0x467   :  { %8053 = vmatpush2.bf16.msra.mxu0 %v12360_v20  ;;  %v15060_v20 = vld [vmem:[#allocation27_spill] sm:$0xff] }
 0x468   :  { %8020 = vmatmul.mubr.bf16.gmra.mxu1 %v15057_v9  ;;  %8054 = vmatprep.subr.bf16.mxu0 %v12368_v44 }
 0x469   :  { %8116 = vmatpush1.bf16.msra.mxu1 %v12351_v29  ;;  %8135 = vmatprep.mubr.bf16.mxu1 %v15058_v4  ;;  %v7507_v29 = vadd.f32 %v7506_v13, %v14466_v54 }
 0x46a   :  { %8117 = vmatprep.subr.bf16.mxu1 %v12359_v53  ;;  %v12387_v53 = vld [vmem:[#allocation7 + $0x968] ss:$16 sps:$4 sm:$0xff]  }
 0x46b   :  { %8055 = vmatpush2.bf16.msra.mxu0 %v12366_v63 }
 0x46c   :  { %8056 = vmatprep.subr.bf16.mxu0 %v12374_v15  ;;  %v12392_v15 = vld [vmem:[#allocation7 + $0x94c] ss:$16 sps:$4 sm:$0xff]  }
 0x46d   :  { %8118 = vmatpush1.bf16.msra.mxu1 %v12357_v5 }
 0x46e   :  { %8119 = vmatprep.subr.bf16.mxu1 %v12365_v3 }
 0x46f   :  { %8057 = vmatpush2.bf16.msra.mxu0 %v12372_v42  ;;  %v12395_v42 = vld [vmem:[#allocation7 + $0x92c] ss:$16 sps:$4 sm:$0xff]  }
 0x470   :  { %8058 = vmatprep.subr.bf16.mxu0 %v12380_v46  ;;  %v15061_v46 = vld [vmem:[#allocation29_spill] sm:$0xff] }
 0x471   :  { %v7510_v24 = vpop.f32.mrf.mxu0  ;;  %8120 = vmatpush2.bf16.msra.mxu1 %v12363_v55 }
 0x472   :  { %8121 = vmatprep.subr.bf16.mxu1 %v12371_v62  ;;  %v15062_v62 = vld [vmem:[#allocation30_spill] sm:$0xff] }
 0x473   :  { %v7512_v12 = vpop.f32.mrf.mxu0  ;;  %8059 = vmatpush2.bf16.msra.mxu0 %v12378_v47  ;;  %v12393_v47 = vld [vmem:[#allocation7 + $0x928] ss:$16 sps:$4 sm:$0xff]  }
 0x474   :  { %8060 = vmatprep.subr.bf16.mxu0 %v12386_v35 }
 0x475   :  { %v14529_v22 = vpop.f32.mrf.mxu0  ;;  %8122 = vmatpush2.bf16.msra.mxu1 %v12369_v10  ;;  %v12398_v10 = vld [vmem:[#allocation7 + $0x90c] ss:$16 sps:$4 sm:$0xff]  }
 0x476   :  { %8123 = vmatprep.subr.bf16.mxu1 %v12377_v1  ;;  %v7511_v1 = vadd.f32 %v7510_v24, %v14463_v32 }
 0x477   :  { %v7516_v58 = vpop.f32.mrf.mxu0  ;;  %8061 = vmatpush2.bf16.msra.mxu0 %v12384_v51 }
 0x478   :  { %v7517_v24 = vadd.f32 %v7516_v58, %v14466_v54 }
 0x479   :  { %v7573_v18 = vpop.f32.mrf.mxu1  ;;  %8124 = vmatpush2.bf16.msra.mxu1 %v12375_v45 }
 0x47a   :  { %v7574_v61 = vadd.f32 %v7573_v18, %v7501_v52  ;;  %8125 = vmatprep.subr.bf16.mxu1 %v12383_v17  ;;  %8063 = vmatmul.mubr.bf16.vlgmr.msra.gmra.mxu0 %v15059_v57  ;;  %v7626_v8 = vpop.f32.mrf.mxu0  ;;  %v7513_v52 = vadd.f32 %v7512_v12, %v14466_v54 }
 0x47b   :  { %v7575_v11 = vpop.f32.mrf.mxu1  ;;  %v7627_v33 = vadd.f32 %v7626_v8, %v14475_v25  ;;  %8072 = vmatprep.mubr.bf16.mxu0 %v15060_v20  ;;  %v12390_v25 = vld [vmem:[#allocation7 + $0x948] ss:$16 sps:$4 sm:$0xff]  }
 0x47c   :  { %v7576_v43 = vadd.f32 %v7575_v11, %v7503_v50  ;;  %v7628_v44 = vpop.f32.mrf.mxu0 }
 0x47d   :  { %v7577_v23 = vpop.f32.mrf.mxu1  ;;  %8126 = vmatpush2.bf16.msra.mxu1 %v12381_v31  ;;  %v7629_v63 = vadd.f32 %v7628_v44, %v14481_v60 }
 0x47e   :  { %v7578_v26 = vadd.f32 %v7577_v23, %v7505_v6  ;;  %8127 = vmatprep.subr.bf16.mxu1 %v12389_v38  ;;  %v7630_v4 = vpop.f32.mrf.mxu0 }
 0x47f   :  { %v7579_v9 = vpop.f32.mrf.mxu1  ;;  %v7631_v39 = vadd.f32 %v7630_v4, %v14483_v41 }
 0x480   :  { %v7580_v5 = vadd.f32 %v7579_v9, %v7507_v29  ;;  %v7632_v3 = vpop.f32.mrf.mxu0 }
 0x481   :  { %8128 = vmatpush2.bf16.msra.mxu1 %v12387_v53 }
 0x482   :  { %8129 = vmatprep.subr.bf16.mxu1 %v12392_v15  ;;  %8073 = vmatmul.mubr.bf16.gmra.mxu0 %v15061_v46  ;;  %v7636_v55 = vpop.f32.mrf.mxu0 }
 0x483   :  { %v7637_v13 = vadd.f32 %v7636_v55, %v14515_v14  ;;  %8082 = vmatprep.mubr.bf16.mxu0 %v15062_v62  ;;  %v12396_v14 = vld [vmem:[#allocation7 + $0x908] ss:$16 sps:$4 sm:$0xff]  }
 0x484   :  { %v7638_v60 = vpop.f32.mrf.mxu0 }
 0x485   :  { %8130 = vmatpush2.bf16.msra.mxu1 %v12390_v25  ;;  %v7639_v35 = vadd.f32 %v7638_v60, %v14518_v48  ;;  %v7515_v48 = vadd.f32 %v14529_v22, %v14463_v32  ;;  %v7487_v32 = vadd.f32 %v14503_v27, %v14466_v54 }
 0x486   :  { %8131 = vmatprep.subr.bf16.mxu1 %v12395_v42  ;;  %v7640_v41 = vpop.f32.mrf.mxu0 }
 0x487   :  { %v7641_v51 = vadd.f32 %v7640_v41, %v14522_v56  ;;  %v7560_v44 = vadd.f32 %v14511_v59, %v7487_v32  ;;  %v12411_v32 = vld [vmem:[#allocation10 + $0x2a0] ss:$16 sps:$4 sm:$0xff]  }
 0x488   :  { %v7583_v45 = vpop.f32.mrf.mxu1  ;;  %v7642_v17 = vpop.f32.mrf.mxu0 }
 0x489   :  { %v7584_v18 = vadd.f32 %v7583_v45, %v7511_v1  ;;  %8132 = vmatpush2.bf16.msra.mxu1 %v12393_v47  ;;  %v7643_v50 = vadd.f32 %v7642_v17, %v14525_v34 }
 0x48a   :  { %v7585_v31 = vpop.f32.mrf.mxu1  ;;  %8133 = vmatprep.subr.bf16.mxu1 %v12398_v10  ;;  %8083 = vmatmul.mubr.bf16.gmra.mxu0 %v14426_v36 }
 0x48b   :  { %v7586_v11 = vadd.f32 %v7585_v31, %v7513_v52  ;;  %8092 = vmatprep.mubr.bf16.mxu0 %v14428_v37  ;;  %v12402_v31 = vld [vmem:[#allocation10 + $0x2e8] ss:$16 sps:$4 sm:$0xff]  }
 0x48c   :  { %v7587_v56 = vpop.f32.mrf.mxu1 }
 0x48d   :  { %v7588_v38 = vadd.f32 %v7587_v56, %v7515_v48  ;;  %8134 = vmatpush2.bf16.msra.mxu1 %v12396_v14  ;;  %v7646_v12 = vpop.f32.mrf.mxu0  ;;  %v12399_v14 = vld [vmem:[#allocation10 + $0x2e0] ss:$16 sps:$4 sm:$0xff]   ;;  %v12404_v48 = vld [vmem:[#allocation10 + $0x2ec] ss:$16 sps:$4 sm:$0xff]  }
 0x48e   :  { %v7589_v57 = vpop.f32.mrf.mxu1  ;;  %v7647_v8 = vadd.f32 %v7646_v12, %v7574_v61  ;;  %8858 = vmatprep.subr.bf16.mxu1 %v12404_v48  ;;  %v12407_v12 = vld [vmem:[#allocation10 + $0x2c4] ss:$16 sps:$4 sm:$0xff]   ;;  %v12438_v48 = vld [vmem:[#allocation10 + $0x228] ss:$16 sps:$4 sm:$0xff]  }
 0x48f   :  { %v7590_v6 = vadd.f32 %v7589_v57, %v7517_v24  ;;  %v7648_v34 = vpop.f32.mrf.mxu0 }
 0x490   :  { %8136 = vmatmul.mubr.bf16.vlgmr.msra.gmra.mxu1 %v14442_v16  ;;  %v7699_v20 = vpop.f32.mrf.mxu1  ;;  %v7649_v36 = vadd.f32 %v7648_v34, %v7576_v43  ;;  %v7633_v16 = vadd.f32 %v7632_v3, %v7560_v44 }
 0x491   :  { %v7700_v22 = vadd.f32 %v7699_v20, %v7627_v33  ;;  %8145 = vmatprep.mubr.bf16.mxu1 %v14445_v0  ;;  %v7650_v37 = vpop.f32.mrf.mxu0  ;;  %8859 = vmatpush1.bf16.msra.mxu1 %v12402_v31  ;;  %v12437_v31 = vld [vmem:[#allocation10 + $0x224] ss:$16 sps:$4 sm:$0xff]  }
 0x492   :  { %v7701_v23 = vpop.f32.mrf.mxu1  ;;  %v7651_v58 = vadd.f32 %v7650_v37, %v7578_v26  ;;  %8093 = vmatmul.mubr.bf16.gmra.mxu0 %v14432_v2 }
 0x493   :  { %v7702_v61 = vadd.f32 %v7701_v23, %v7629_v63  ;;  %v7652_v29 = vpop.f32.mrf.mxu0  ;;  %v12414_v23 = vld [vmem:[#allocation10 + $0x2a8] ss:$16 sps:$4 sm:$0xff]  }
 0x494   :  { %v7703_v53 = vpop.f32.mrf.mxu1  ;;  %v7653_v9 = vadd.f32 %v7652_v29, %v7580_v5 }
 0x495   :  { %v7704_v15 = vadd.f32 %v7703_v53, %v7631_v39  ;;  %v12417_v53 = vld [vmem:[#allocation10 + $0x280] ss:$16 sps:$4 sm:$0xff]  }
 0x496   :  { %v7705_v43 = vpop.f32.mrf.mxu1  ;;  %v7656_v4 = vpop.f32.mrf.mxu0 }
 0x497   :  { %v7706_v25 = vadd.f32 %v7705_v43, %v7633_v16  ;;  %v7657_v54 = vadd.f32 %v7656_v4, %v7584_v18  ;;  %v12422_v43 = vld [vmem:[#allocation10 + $0x28c] ss:$16 sps:$4 sm:$0xff]  }
 0x498   :  { %8146 = vmatmul.mubr.bf16.gmra.mxu1 %v14452_v28  ;;  %v7709_v0 = vpop.f32.mrf.mxu1  ;;  %v7658_v27 = vpop.f32.mrf.mxu0 }
 0x499   :  { %v7710_v33 = vadd.f32 %v7709_v0, %v7637_v13  ;;  %8155 = vmatprep.mubr.bf16.mxu1 %v14455_v7  ;;  %v7659_v2 = vadd.f32 %v7658_v27, %v7586_v11 }
 0x49a   :  { %v7711_v26 = vpop.f32.mrf.mxu1  ;;  %v7660_v59 = vpop.f32.mrf.mxu0 }
 0x49b   :  { %v7712_v63 = vadd.f32 %v7711_v26, %v7639_v35  ;;  %v7661_v42 = vadd.f32 %v7660_v59, %v7588_v38  ;;  %v12405_v38 = vld [vmem:[#allocation10 + $0x2c0] ss:$16 sps:$4 sm:$0xff]  }
 0x49c   :  { %v7713_v46 = vpop.f32.mrf.mxu1  ;;  %v7662_v5 = vpop.f32.mrf.mxu0 }
 0x49d   :  { %v14561_v3 = vadd.f32 %v7713_v46, %v7641_v51  ;;  %v7663_v39 = vadd.f32 %v7662_v5, %v7590_v6  ;;  %v12410_v6 = vld [vmem:[#allocation10 + $0x2cc] ss:$16 sps:$4 sm:$0xff]  }
 0x49e   :  { %v7715_v55 = vpop.f32.mrf.mxu1  ;;  %8860 = vmatprep.subr.bf16.mxu1 %v12410_v6 }
 0x49f   :  { %v14563_v62 = vadd.f32 %v7715_v55, %v7643_v50  ;;  %v12401_v50 = vld [vmem:[#allocation10 + $0x2e4] ss:$16 sps:$4 sm:$0xff]  }
 0x4a0   :  { %8156 = vmatmul.mubr.bf16.gmra.mxu1 %v14469_v49  ;;  %v7719_v28 = vpop.f32.mrf.mxu1  ;;  %8817 = vmatprep.subr.bf16.mxu0 %v12401_v50  ;;  %v12435_v50 = vld [vmem:[#allocation10 + $0x220] ss:$16 sps:$4 sm:$0xff]  }
 0x4a1   :  { %v14566_v60 = vadd.f32 %v7719_v28, %v7647_v8  ;;  %8165 = vmatprep.mubr.bf16.mxu1 %v14472_v40  ;;  %8818 = vmatpush1.bf16.msra.mxu0 %v12399_v14  ;;  %v12408_v8 = vld [vmem:[#allocation10 + $0x2c8] ss:$16 sps:$4 sm:$0xff]  }
 0x4a2   :  { %v7721_v7 = vpop.f32.mrf.mxu1  ;;  %8819 = vmatprep.subr.bf16.mxu0 %v12407_v12  ;;  %8861 = vmatpush1.bf16.msra.mxu1 %v12408_v8  ;;  %v12441_v12 = vld [vmem:[#allocation10 + $0x200] ss:$16 sps:$4 sm:$0xff]   ;;  %v12444_v8 = vld [vmem:[#allocation10 + $0x208] ss:$16 sps:$4 sm:$0xff]  }
 0x4a3   :  { %v14569_v13 = vadd.f32 %v7721_v7, %v7649_v36 }
 0x4a4   :  { %v7723_v47 = vpop.f32.mrf.mxu1 }
 0x4a5   :  { %v14571_v35 = vadd.f32 %v7723_v47, %v7651_v58  ;;  %8820 = vmatpush1.bf16.msra.mxu0 %v12405_v38  ;;  %v12416_v58 = vld [vmem:[#allocation10 + $0x2ac] ss:$16 sps:$4 sm:$0xff]  }
 0x4a6   :  { %v7725_v10 = vpop.f32.mrf.mxu1  ;;  %8862 = vmatprep.subr.bf16.mxu1 %v12416_v58 }
 0x4a7   :  { %v14573_v41 = vadd.f32 %v7725_v10, %v7653_v9  ;;  %8863 = vmatpush1.bf16.msra.mxu1 %v12414_v23  ;;  %v12419_v9 = vld [vmem:[#allocation10 + $0x284] ss:$16 sps:$4 sm:$0xff]   ;;  %v12423_v10 = vld [vmem:[#allocation10 + $0x260] ss:$16 sps:$4 sm:$0xff]   ;;  %v12452_v23 = vld [vmem:[#allocation10 + $0x3ec] ss:$16 sps:$4 sm:$0xff]  }
 0x4a8   :  { %8166 = vmatmul.mubr.bf16.gmra.mxu1 %v14486_v30  ;;  %v7729_v1 = vpop.f32.mrf.mxu1  ;;  %8864 = vmatprep.subr.bf16.mxu1 %v12422_v43  ;;  %v12456_v43 = vld [vmem:[#allocation10 + $0x3c8] ss:$16 sps:$4 sm:$0xff]  }
 0x4a9   :  { %v14576_v51 = vadd.f32 %v7729_v1, %v7657_v54  ;;  %v12426_v1 = vld [vmem:[#allocation10 + $0x268] ss:$16 sps:$4 sm:$0xff]  }
 0x4aa   :  { %v7731_v49 = vpop.f32.mrf.mxu1 }
 0x4ab   :  { %v14578_v45 = vadd.f32 %v7731_v49, %v7659_v2 }
 0x4ac   :  { %v7733_v17 = vpop.f32.mrf.mxu1 }
 0x4ad   :  { %v14580_v52 = vadd.f32 %v7733_v17, %v7661_v42  ;;  %v12431_v17 = vld [vmem:[#allocation10 + $0x244] ss:$16 sps:$4 sm:$0xff]  }
 0x4ae   :  { %v7735_v40 = vpop.f32.mrf.mxu1 }
 0x4af   :  { %v14582_v18 = vadd.f32 %v7735_v40, %v7663_v39 }
 0x4ba   :  { %v7772_v30 = vpop.f32.mrf.mxu0 }
 0x4bb   :  { %v14584_v11 = vadd.f32 %v7772_v30, %v7700_v22  ;;  %v12413_v22 = vld [vmem:[#allocation10 + $0x2a4] ss:$16 sps:$4 sm:$0xff]   ;;  %v12440_v30 = vld [vmem:[#allocation10 + $0x22c] ss:$16 sps:$4 sm:$0xff]  }
 0x4bc   :  { %v7774_v56 = vpop.f32.mrf.mxu0  ;;  %8821 = vmatprep.subr.bf16.mxu0 %v12413_v22  ;;  %v12449_v22 = vld [vmem:[#allocation10 + $0x3e4] ss:$16 sps:$4 sm:$0xff]  }
 0x4bd   :  { %v14586_v24 = vadd.f32 %v7774_v56, %v7702_v61  ;;  %8822 = vmatpush1.bf16.msra.mxu0 %v12411_v32  ;;  %v12447_v32 = vld [vmem:[#allocation10 + $0x3e0] ss:$16 sps:$4 sm:$0xff]  }
 0x4be   :  { %v7776_v57 = vpop.f32.mrf.mxu0  ;;  %8823 = vmatprep.subr.bf16.mxu0 %v12419_v9 }
 0x4bf   :  { %v14588_v34 = vadd.f32 %v7776_v57, %v7704_v15  ;;  %v12420_v15 = vld [vmem:[#allocation10 + $0x288] ss:$16 sps:$4 sm:$0xff]   ;;  %v12443_v57 = vld [vmem:[#allocation10 + $0x204] ss:$16 sps:$4 sm:$0xff]  }
 0x4c0   :  { %v7778_v20 = vpop.f32.mrf.mxu0  ;;  %8865 = vmatpush1.bf16.msra.mxu1 %v12420_v15  ;;  %v12455_v15 = vld [vmem:[#allocation10 + $0x3c4] ss:$16 sps:$4 sm:$0xff]  }
 0x4c1   :  { %v14590_v36 = vadd.f32 %v7778_v20, %v7706_v25  ;;  %8824 = vmatpush1.bf16.msra.mxu0 %v12417_v53  ;;  %v12446_v20 = vld [vmem:[#allocation10 + $0x20c] ss:$16 sps:$4 sm:$0xff]  }
 0x4c2   :  { %v7782_v37 = vpop.f32.mrf.mxu0 }
 0x4c3   :  { %v14592_v44 = vadd.f32 %v7782_v37, %v7710_v33  ;;  %v12450_v37 = vld [vmem:[#allocation10 + $0x3e8] ss:$16 sps:$4 sm:$0xff]  }
 0x4c4   :  { %v7784_v61 = vpop.f32.mrf.mxu0 }
 0x4c5   :  { %v14594_v29 = vadd.f32 %v7784_v61, %v7712_v63 }
 0x4c6   :  { %v7786_v16 = vpop.f32.mrf.mxu0 }
 0x4c7   :  { %v14597_v4 = vadd.f32 %v7786_v16, %v14561_v3  ;;  %v12453_v16 = vld [vmem:[#allocation10 + $0x3c0] ss:$16 sps:$4 sm:$0xff]  }
 0x4c8   :  { %v7788_v25 = vpop.f32.mrf.mxu0 }
 0x4c9   :  { %v14600_v54 = vadd.f32 %v7788_v25, %v14563_v62  ;;  %v12458_v25 = vld [vmem:[#allocation10 + $0x3cc] ss:$16 sps:$4 sm:$0xff]  }
 0x4ca   :  { %v7792_v0 = vpop.f32.mrf.mxu0 }
 0x4cb   :  { %v14603_v27 = vadd.f32 %v7792_v0, %v14566_v60 }
 0x4cc   :  { %v7794_v33 = vpop.f32.mrf.mxu0 }
 0x4cd   :  { %15063 = vst [vmem:[#allocation25_spill] sm:$0xff] %v14603_v27  ;;  %v14606_v2 = vadd.f32 %v7794_v33, %v14569_v13 }
 0x4ce   :  { %v7796_v26 = vpop.f32.mrf.mxu0 }
 0x4cf   :  { %15064 = vst [vmem:[#allocation28_spill] sm:$0xff] %v14606_v2  ;;  %v14609_v59 = vadd.f32 %v7796_v26, %v14571_v35  ;;  %v12459_v26 = vld [vmem:[#allocation10 + $0x3a0] ss:$16 sps:$4 sm:$0xff]  }
 0x4d0   :  { %v7798_v63 = vpop.f32.mrf.mxu0  ;;  %v14617_v3 = vpop.f32.mrf.mxu1 }
 0x4d1   :  { %v14612_v42 = vadd.f32 %v7798_v63, %v14573_v41  ;;  %v12425_v41 = vld [vmem:[#allocation10 + $0x264] ss:$16 sps:$4 sm:$0xff]  }
 0x4d2   :  { %v7802_v46 = vpop.f32.mrf.mxu0  ;;  %v14625_v60 = vpop.f32.mrf.mxu1  ;;  %8825 = vmatprep.subr.bf16.mxu0 %v12425_v41  ;;  %v12461_v63 = vld [vmem:[#allocation10 + $0x3a4] ss:$16 sps:$4 sm:$0xff]  }
 0x4d3   :  { %v14615_v5 = vadd.f32 %v7802_v46, %v14576_v51  ;;  %v12428_v51 = vld [vmem:[#allocation10 + $0x26c] ss:$16 sps:$4 sm:$0xff]   ;;  %8826 = vmatpush1.bf16.msra.mxu0 %v12423_v10  ;;  %v12462_v46 = vld [vmem:[#allocation10 + $0x3a8] ss:$16 sps:$4 sm:$0xff]   ;;  %v12465_v10 = vld [vmem:[#allocation10 + $0x380] ss:$16 sps:$4 sm:$0xff]  }
 0x4d4   :  { %v7804_v39 = vpop.f32.mrf.mxu0  ;;  %v14630_v47 = vpop.f32.mrf.mxu1  ;;  %8866 = vmatprep.subr.bf16.mxu1 %v12428_v51  ;;  %8827 = vmatprep.subr.bf16.mxu0 %v12431_v17  ;;  %v12467_v41 = vld [vmem:[#allocation10 + $0x384] ss:$16 sps:$4 sm:$0xff]   ;;  %v12470_v51 = vld [vmem:[#allocation10 + $0x38c] ss:$16 sps:$4 sm:$0xff]  }
 0x4d5   :  { %15065 = vst [vmem:[#allocation31_spill] sm:$0xff] %v14615_v5  ;;  %v14620_v55 = vadd.f32 %v7804_v39, %v14578_v45  ;;  %8867 = vmatpush1.bf16.msra.mxu1 %v12426_v1  ;;  %v12429_v45 = vld [vmem:[#allocation10 + $0x240] ss:$16 sps:$4 sm:$0xff]   ;;  %v12464_v39 = vld [vmem:[#allocation10 + $0x3ac] ss:$16 sps:$4 sm:$0xff]  }
 0x4d6   :  { %v7806_v62 = vpop.f32.mrf.mxu0  ;;  %v14632_v35 = vpop.f32.mrf.mxu1  ;;  %v12468_v1 = vld [vmem:[#allocation10 + $0x388] ss:$16 sps:$4 sm:$0xff]  }
 0x4d7   :  { %15066 = vst [vmem:[#allocation26_spill] sm:$0xff] %v14620_v55  ;;  %v14623_v28 = vadd.f32 %v7806_v62, %v14580_v52  ;;  %v12432_v52 = vld [vmem:[#allocation10 + $0x248] ss:$16 sps:$4 sm:$0xff]   ;;  %8828 = vmatpush1.bf16.msra.mxu0 %v12429_v45  ;;  %v12473_v45 = vld [vmem:[#allocation10 + $0x364] ss:$16 sps:$4 sm:$0xff]  }
 0x4d8   :  { %v7808_v7 = vpop.f32.mrf.mxu0  ;;  %v14634_v49 = vpop.f32.mrf.mxu1  ;;  %8829 = vmatprep.subr.bf16.mxu0 %v12437_v31  ;;  %v12474_v31 = vld [vmem:[#allocation10 + $0x368] ss:$16 sps:$4 sm:$0xff]  }
 0x4d9   :  { %v14628_v13 = vadd.f32 %v7808_v7, %v14582_v18  ;;  %v12434_v18 = vld [vmem:[#allocation10 + $0x24c] ss:$16 sps:$4 sm:$0xff]  }
 0x4da   :  { %v14636_v40 = vpop.f32.mrf.mxu1  ;;  %8868 = vmatprep.subr.bf16.mxu1 %v12434_v18  ;;  %v12476_v18 = vld [vmem:[#allocation10 + $0x36c] ss:$16 sps:$4 sm:$0xff]  }
 0x4db   :  { %15067 = vst [vmem:[#allocation27_spill] sm:$0xff] %v14628_v13  ;;  %8869 = vmatpush1.bf16.msra.mxu1 %v12432_v52  ;;  %8830 = vmatpush1.bf16.msra.mxu0 %v12435_v50  ;;  %v12471_v50 = vld [vmem:[#allocation10 + $0x360] ss:$16 sps:$4 sm:$0xff]  }
 0x4dc   :  { %v14638_v14 = vpop.f32.mrf.mxu1  ;;  %8870 = vmatprep.subr.bf16.mxu1 %v12440_v30  ;;  %8831 = vmatprep.subr.bf16.mxu0 %v12443_v57  ;;  %v12482_v30 = vld [vmem:[#allocation10 + $0x34c] ss:$16 sps:$4 sm:$0xff]  }
 0x4de   :  { %v14640_v56 = vpop.f32.mrf.mxu1 }
 0x4df   :  { %8871 = vmatpush1.bf16.msra.mxu1 %v12438_v48  ;;  %8832 = vmatpush1.bf16.msra.mxu0 %v12441_v12  ;;  %v12479_v48 = vld [vmem:[#allocation10 + $0x344] ss:$16 sps:$4 sm:$0xff]  }
 0x4e0   :  { %v14642_v38 = vpop.f32.mrf.mxu1  ;;  %8872 = vmatprep.subr.bf16.mxu1 %v12446_v20  ;;  %8833 = vmatprep.subr.bf16.mxu0 %v12449_v22  ;;  %v12485_v22 = vld [vmem:[#allocation10 + $0x324] ss:$16 sps:$4 sm:$0xff]  }
 0x4e2   :  { %v14644_v6 = vpop.f32.mrf.mxu1 }
 0x4e3   :  { %8873 = vmatpush1.bf16.msra.mxu1 %v12444_v8  ;;  %8834 = vmatpush2.bf16.msra.mxu0 %v12447_v32  ;;  %v12477_v8 = vld [vmem:[#allocation10 + $0x340] ss:$16 sps:$4 sm:$0xff]   ;;  %v12480_v32 = vld [vmem:[#allocation10 + $0x348] ss:$16 sps:$4 sm:$0xff]  }
 0x4e4   :  { %v14646_v58 = vpop.f32.mrf.mxu1  ;;  %8874 = vmatprep.subr.bf16.mxu1 %v12452_v23  ;;  %8835 = vmatprep.subr.bf16.mxu0 %v12455_v15 }
 0x4e6   :  { %v14650_v53 = vpop.f32.mrf.mxu1 }
 0x4e7   :  { %8875 = vmatpush2.bf16.msra.mxu1 %v12450_v37  ;;  %8836 = vmatpush2.bf16.msra.mxu0 %v12453_v16  ;;  %v12488_v37 = vld [vmem:[#allocation10 + $0x32c] ss:$16 sps:$4 sm:$0xff]   ;;  %v12483_v16 = vld [vmem:[#allocation10 + $0x320] ss:$16 sps:$4 sm:$0xff]  }
 0x4e8   :  { %8876 = vmatprep.subr.bf16.mxu1 %v12458_v25  ;;  %v14654_v0 = vpop.f32.mrf.mxu1  ;;  %8837 = vmatprep.subr.bf16.mxu0 %v12461_v63  ;;  %v12491_v25 = vld [vmem:[#allocation10 + $0x304] ss:$16 sps:$4 sm:$0xff]  }
 0x4ea   :  { %v14658_v62 = vpop.f32.mrf.mxu1 }
 0x4eb   :  { %8877 = vmatpush2.bf16.msra.mxu1 %v12456_v43  ;;  %8838 = vmatpush2.bf16.msra.mxu0 %v12459_v26  ;;  %v12486_v43 = vld [vmem:[#allocation10 + $0x328] ss:$16 sps:$4 sm:$0xff]   ;;  %v12494_v26 = vld [vmem:[#allocation10 + $0x30c] ss:$16 sps:$4 sm:$0xff]  }
 0x4ec   :  { %8878 = vmatprep.subr.bf16.mxu1 %v12464_v39  ;;  %v14662_v17 = vpop.f32.mrf.mxu1  ;;  %8839 = vmatprep.subr.bf16.mxu0 %v12467_v41  ;;  %v12497_v41 = vld [vmem:[#allocation10 + $0xe4] ss:$16 sps:$4 sm:$0xff]  }
 0x4ee   :  { %v14666_v12 = vpop.f32.mrf.mxu1 }
 0x4ef   :  { %8879 = vmatpush2.bf16.msra.mxu1 %v12462_v46  ;;  %8840 = vmatpush2.bf16.msra.mxu0 %v12465_v10  ;;  %v12489_v46 = vld [vmem:[#allocation10 + $0x300] ss:$16 sps:$4 sm:$0xff]   ;;  %v12492_v10 = vld [vmem:[#allocation10 + $0x308] ss:$16 sps:$4 sm:$0xff]  }
 0x4f0   :  { %8880 = vmatprep.subr.bf16.mxu1 %v12470_v51  ;;  %8841 = vmatprep.subr.bf16.mxu0 %v12473_v45 }
 0x4f3   :  { %8881 = vmatpush2.bf16.msra.mxu1 %v12468_v1  ;;  %8842 = vmatpush2.bf16.msra.mxu0 %v12471_v50  ;;  %v12500_v1 = vld [vmem:[#allocation10 + $0xec] ss:$16 sps:$4 sm:$0xff]  }
 0x4f4   :  { %8882 = vmatprep.subr.bf16.mxu1 %v12476_v18  ;;  %8843 = vmatprep.subr.bf16.mxu0 %v12479_v48 }
 0x4f7   :  { %8883 = vmatpush2.bf16.msra.mxu1 %v12474_v31  ;;  %8844 = vmatpush2.bf16.msra.mxu0 %v12477_v8 }
 0x4f8   :  { %8884 = vmatprep.subr.bf16.mxu1 %v12482_v30  ;;  %8845 = vmatprep.subr.bf16.mxu0 %v12485_v22 }
 0x4fa   :  { %v14648_v61 = vpop.f32.mrf.mxu0 }
 0x4fb   :  { %8885 = vmatpush2.bf16.msra.mxu1 %v12480_v32  ;;  %8846 = vmatpush2.bf16.msra.mxu0 %v12483_v16 }
 0x4fc   :  { %v14652_v9 = vpop.f32.mrf.mxu0  ;;  %8886 = vmatprep.subr.bf16.mxu1 %v12488_v37  ;;  %8847 = vmatprep.subr.bf16.mxu0 %v12491_v25 }
 0x4fe   :  { %v14656_v33 = vpop.f32.mrf.mxu0 }
 0x4ff   :  { %8887 = vmatpush2.bf16.msra.mxu1 %v12486_v43  ;;  %8848 = vmatpush2.bf16.msra.mxu0 %v12489_v46 }
 0x500   :  { %v14660_v7 = vpop.f32.mrf.mxu0  ;;  %8888 = vmatprep.subr.bf16.mxu1 %v12494_v26  ;;  %9251 = vmatprep.subr.bf16.mxu0 %v12497_v41 }
 0x502   :  { %v14664_v52 = vpop.f32.mrf.mxu0 }
 0x503   :  { %8889 = vmatpush2.bf16.msra.mxu1 %v12492_v10 }
 0x504   :  { %v14668_v57 = vpop.f32.mrf.mxu0  ;;  %9292 = vmatprep.subr.bf16.mxu1 %v12500_v1 }
 0x506   :  { %v14672_v23 = vpop.f32.mrf.mxu0 }
 0x508   :  { %v14676_v63 = vpop.f32.mrf.mxu0 }
 0x50a   :  { %v14680_v51 = vpop.f32.mrf.mxu0 }
 0x50c   :  { %v14684_v18 = vpop.f32.mrf.mxu0 }
 0x50e   :  { %v14688_v31 = vpop.f32.mrf.mxu0 }
 0x510   :  { %v14670_v20 = vpop.f32.mrf.mxu1  ;;  %v14692_v30 = vpop.f32.mrf.mxu0 }
 0x512   :  { %v14674_v15 = vpop.f32.mrf.mxu1  ;;  %v14696_v32 = vpop.f32.mrf.mxu0 }
 0x514   :  { %v14678_v39 = vpop.f32.mrf.mxu1  ;;  %v14700_v37 = vpop.f32.mrf.mxu0 }
 0x516   :  { %v14682_v45 = vpop.f32.mrf.mxu1  ;;  %v14704_v43 = vpop.f32.mrf.mxu0 }
 0x517   :  { %15073 = vst [vmem:[#allocation35_spill] sm:$0xff] %v14704_v43 }
 0x518   :  { %v14686_v50 = vpop.f32.mrf.mxu1  ;;  %v14708_v26 = vpop.f32.mrf.mxu0 }
 0x519   :  { %15068 = vst [vmem:[#allocation29_spill] sm:$0xff] %v14686_v50  ;;  %15075 = vst [vmem:[#allocation37_spill] sm:$0xff] %v14708_v26  ;;  %v15084_v26 = vld [vmem:[#allocation24_spill] sm:$0xff] }
 0x51a   :  { %v14690_v48 = vpop.f32.mrf.mxu1 }
 0x51b   :  { %15069 = vst [vmem:[#allocation30_spill] sm:$0xff] %v14690_v48 }
 0x51c   :  { %v14694_v8 = vpop.f32.mrf.mxu1 }
 0x51d   :  { %15070 = vst [vmem:[#allocation32_spill] sm:$0xff] %v14694_v8  ;;  %v12821_v8 = vld [vmem:[#allocation8] sm:$0xf] }
 0x51e   :  { %v14698_v22 = vpop.f32.mrf.mxu1  ;;  %v5761_v50 = vrot.slane %v12821_v8, %v15084_v26 }
 0x51f   :  { %15071 = vst [vmem:[#allocation33_spill] sm:$0xff] %v14698_v22 }
 0x520   :  { %v14702_v16 = vpop.f32.mrf.mxu1 }
 0x521   :  { %15072 = vst [vmem:[#allocation34_spill] sm:$0xff] %v14702_v16 }
 0x522   :  { %v14706_v25 = vpop.f32.mrf.mxu1 }
 0x523   :  { %15074 = vst [vmem:[#allocation36_spill] sm:$0xff] %v14706_v25  ;;  %v15083_v25 = vld [vmem:[#allocation22_spill] sm:$0xff] }
 0x524   :  { %v14710_v46 = vpop.f32.mrf.mxu1  ;;  %v5757_v48 = vrot.slane %v12821_v8, %v15083_v25  ;;  %v7852_v25 = vadd.f32 %v14632_v35, %v5761_v50  ;;  %v7868_v8 = vadd.f32 %v14644_v6, %v5761_v50 }
 0x525   :  { %15076 = vst [vmem:[#allocation38_spill] sm:$0xff] %v14710_v46 }
 0x526   :  { %v14716_v1 = vpop.f32.mrf.mxu1  ;;  %v7856_v27 = vadd.f32 %v14634_v49, %v5757_v48  ;;  %v7866_v35 = vadd.f32 %v14642_v38, %v5757_v48  ;;  %v7870_v55 = vadd.f32 %v14646_v58, %v5757_v48  ;;  %v7872_v49 = vadd.f32 %v14650_v53, %v5761_v50 }
 0x527   :  { %15078 = vst [vmem:[#allocation40_spill] sm:$0xff] %v14716_v1  ;;  %v7846_v1 = vadd.f32 %v14617_v3, %v5757_v48  ;;  %v7858_v3 = vadd.f32 %v14636_v40, %v5761_v50  ;;  %v7876_v40 = vadd.f32 %v14654_v0, %v5757_v48  ;;  %v7925_v58 = vadd.f32 %v14660_v7, %v7852_v25 }
 0x528   :  { %v14722_v22 = vpop.f32.mrf.mxu1  ;;  %v7929_v53 = vadd.f32 %v14664_v52, %v7856_v27  ;;  %v7943_v7 = vadd.f32 %v14688_v31, %v7870_v55  ;;  %v15087_v55 = vld [vmem:[#allocation29_spill] sm:$0xff] }
 0x529   :  { %15081 = vst [vmem:[#allocation43_spill] sm:$0xff] %v14722_v22  ;;  %v7860_v22 = vadd.f32 %v14638_v14, %v5757_v48  ;;  %v7880_v14 = vadd.f32 %v14662_v17, %v5757_v48 }
 0x52a   :  { %v14740_v26 = vpop.f32.mrf.mxu1  ;;  %v8002_v31 = vadd.f32 %v15087_v55, %v7929_v53 }
 0x52c   :  { %v8025_v5 = vpop.f32.mrf.mxu1 }
 0x53a   :  { %v14712_v10 = vpop.f32.mrf.mxu0 }
 0x53c   :  { %v14714_v41 = vpop.f32.mrf.mxu0 }
 0x53d   :  { %15077 = vst [vmem:[#allocation39_spill] sm:$0xff] %v14714_v41 }
 0x53e   :  { %v14718_v21 = vpop.f32.mrf.mxu0 }
 0x53f   :  { %15079 = vst [vmem:[#allocation41_spill] sm:$0xff] %v14718_v21  ;;  %v7848_v21 = vadd.f32 %v14625_v60, %v5761_v50  ;;  %v7919_v60 = vadd.f32 %v14648_v61, %v7846_v1  ;;  %v7931_v61 = vadd.f32 %v14668_v57, %v7858_v3  ;;  %v7945_v57 = vadd.f32 %v14692_v30, %v7872_v49  ;;  %v15090_v30 = vld [vmem:[#allocation37_spill] sm:$0xff]  ;;  %v15093_v49 = vld [vmem:[#allocation34_spill] sm:$0xff] }
 0x540   :  { %v14720_v19 = vpop.f32.mrf.mxu0 }
 0x541   :  { %15080 = vst [vmem:[#allocation42_spill] sm:$0xff] %v14720_v19  ;;  %v7878_v19 = vadd.f32 %v14658_v62, %v5761_v50  ;;  %v7921_v38 = vadd.f32 %v14652_v9, %v7848_v21  ;;  %v7992_v0 = vadd.f32 %v14670_v20, %v7919_v60  ;;  %v7933_v62 = vadd.f32 %v14672_v23, %v7860_v22  ;;  %v15085_v22 = vld [vmem:[#allocation35_spill] sm:$0xff] }
 0x542   :  { %v14724_v16 = vpop.f32.mrf.mxu0  ;;  %v7949_v20 = vadd.f32 %v14696_v32, %v7876_v40 }
 0x543   :  { %15082 = vst [vmem:[#allocation44_spill] sm:$0xff] %v14724_v16  ;;  %v7850_v16 = vadd.f32 %v14630_v47, %v5757_v48  ;;  %v7862_v47 = vadd.f32 %v14640_v56, %v5761_v50  ;;  %v7882_v56 = vadd.f32 %v14666_v12, %v5761_v50  ;;  %v7939_v12 = vadd.f32 %v14680_v51, %v7866_v35  ;;  %v8027_v50 = vpop.f32.mrf.mxu1 }
 0x544   :  { %v14730_v41 = vpop.f32.mrf.mxu0  ;;  %v7994_v9 = vadd.f32 %v14674_v15, %v7921_v38  ;;  %v8065_v27 = vadd.f32 %v14712_v10, %v7992_v0  ;;  %v7951_v23 = vadd.f32 %v14700_v37, %v7878_v19  ;;  %v7998_v48 = vadd.f32 %v14682_v45, %v7925_v58  ;;  %v15088_v10 = vld [vmem:[#allocation30_spill] sm:$0xff]  ;;  %v15091_v19 = vld [vmem:[#allocation33_spill] sm:$0xff]  ;;  %v15096_v0 = vld [vmem:[#allocation40_spill] sm:$0xff] }
 0x545   :  { %v7923_v13 = vadd.f32 %v14656_v33, %v7850_v16  ;;  %v7935_v17 = vadd.f32 %v14676_v63, %v7862_v47  ;;  %v7941_v33 = vadd.f32 %v14684_v18, %v7868_v8  ;;  %v7953_v15 = vadd.f32 %v15085_v22, %v7880_v14  ;;  %v15086_v16 = vld [vmem:[#allocation39_spill] sm:$0xff]  ;;  %v15094_v14 = vld [vmem:[#allocation36_spill] sm:$0xff]  ;;  %v15095_v58 = vld [vmem:[#allocation38_spill] sm:$0xff] }
 0x546   :  { %v14742_v43 = vpop.f32.mrf.mxu0  ;;  %v8067_v18 = vadd.f32 %v15086_v16, %v7994_v9  ;;  %v8004_v1 = vadd.f32 %v15088_v10, %v7931_v61  ;;  %v7955_v8 = vadd.f32 %v15090_v30, %v7882_v56  ;;  %v15092_v60 = vld [vmem:[#allocation41_spill] sm:$0xff]  ;;  %v8012_v40 = vadd.f32 %v15093_v49, %v7939_v12 }
 0x547   :  { %v7996_v52 = vadd.f32 %v14678_v39, %v7923_v13  ;;  %v15089_v13 = vld [vmem:[#allocation32_spill] sm:$0xff]  ;;  %v8008_v37 = vadd.f32 %v15091_v19, %v7935_v17  ;;  %v8014_v38 = vadd.f32 %v15094_v14, %v7941_v33  ;;  %v8016_v53 = vadd.f32 %v15095_v58, %v7943_v7 }
 0x548   :  { %v14752_v2 = vpop.f32.mrf.mxu0  ;;  %v8006_v39 = vadd.f32 %v15089_v13, %v7933_v62  ;;  %v8018_v61 = vadd.f32 %v15096_v0, %v7945_v57  ;;  %v8026_v12 = vadd.f32 %v8025_v5, %v7953_v15  ;;  %v8028_v55 = vadd.f32 %v8027_v50, %v7955_v8 }
 0x549   :  { %v8069_v47 = vadd.f32 %v15092_v60, %v7996_v52  ;;  %v15099_v52 = vld [vmem:[#allocation43_spill] sm:$0xff]  ;;  %v15100_v7 = vmax.f32 %v14586_v24, 0.0  ;;  %v8081_v60 = vadd.f32 %v14752_v2, %v8008_v37  ;;  %v15102_v50 = vmax.f32 %v14588_v34, 0.0 }
 0x54a   :  { %v14762_v46 = vpop.f32.mrf.mxu0  ;;  %v8079_v19 = vadd.f32 %v14742_v43, %v8006_v39  ;;  %v15103_v2 = vmax.f32 %v14590_v36, 0.0 }
 0x54b   :  { %v8085_v24 = vadd.f32 %v14762_v46, %v8012_v40 }
 0x54c   :  { %v14772_v6 = vpop.f32.mrf.mxu0 }
 0x54d   :  { %v8087_v8 = vadd.f32 %v14772_v6, %v8014_v38 }
 0x54e   :  { %v8088_v21 = vpop.f32.mrf.mxu0 }
 0x550   :  { %v8137_v63 = vpop.f32.mrf.mxu1  ;;  %v8090_v51 = vpop.f32.mrf.mxu0 }
 0x551   :  { %v8138_v25 = vadd.f32 %v8137_v63, %v8065_v27  ;;  %v15097_v27 = vld [vmem:[#allocation42_spill] sm:$0xff]  ;;  %v15098_v63 = vmax.f32 %v14584_v11, 0.0  ;;  %v8077_v11 = vadd.f32 %v14730_v41, %v8004_v1  ;;  %v14822_v49 = vadd.f32 %v8090_v51, %v8018_v61 }
 0x552   :  { %v8139_v32 = vpop.f32.mrf.mxu1  ;;  %v8094_v3 = vpop.f32.mrf.mxu0  ;;  %v8071_v56 = vadd.f32 %v15097_v27, %v7998_v48 }
 0x553   :  { %v8178_v45 = vmax.f32 %v8138_v25, 0.0  ;;  %v8140_v35 = vadd.f32 %v8139_v32, %v8067_v18  ;;  %v8022_v25 = vadd.f32 %v15099_v52, %v7949_v20  ;;  %v8024_v18 = vadd.f32 %v14740_v26, %v7951_v23  ;;  %v15101_v32 = vld [vmem:[#allocation44_spill] sm:$0xff] }
 0x554   :  { %v8141_v9 = vpop.f32.mrf.mxu1  ;;  %v8096_v62 = vpop.f32.mrf.mxu0  ;;  %v8075_v48 = vadd.f32 %v15101_v32, %v8002_v31  ;;  %v15105_v52 = vmax.f32 %v14594_v29, 0.0 }
 0x555   :  { %v8208_v22 = vmax.f32 %v15098_v63, %v8178_v45  ;;  %v8179_v17 = vmax.f32 %v8140_v35, 0.0  ;;  %v8142_v16 = vadd.f32 %v8141_v9, %v8069_v47  ;;  %v14818_v45 = vadd.f32 %v8088_v21, %v8016_v53 }
 0x556   :  { %v8143_v33 = vpop.f32.mrf.mxu1  ;;  %v8098_v47 = vpop.f32.mrf.mxu0  ;;  %v14824_v14 = vadd.f32 %v8094_v3, %v8022_v25  ;;  %v15104_v53 = vmax.f32 %v14592_v44, 0.0 }
 0x557   :  { %v8240_v10 = vrot.slane %v8208_v22, 1  ;;  %v8209_v57 = vmax.f32 %v15100_v7, %v8179_v17  ;;  %v8182_v13 = vmax.f32 %v8142_v16, 0.0  ;;  %v8144_v30 = vadd.f32 %v8143_v33, %v8071_v56 }
 0x558   :  { %v8147_v20 = vpop.f32.mrf.mxu1  ;;  %v8100_v46 = vpop.f32.mrf.mxu0  ;;  %v14828_v56 = vadd.f32 %v8096_v62, %v8024_v18  ;;  %v14832_v61 = vadd.f32 %v8098_v47, %v8026_v12 }
 0x559   :  { %v8272_v26 = vmax.f32 %v8208_v22, %v8240_v10  ;;  %v8241_v5 = vrot.slane %v8209_v57, 1  ;;  %v8210_v23 = vmax.f32 %v15102_v50, %v8182_v13  ;;  %v8183_v15 = vmax.f32 %v8144_v30, 0.0 }
 0x55a   :  { %v8148_v31 = vadd.f32 %v8147_v20, %v8075_v48  ;;  %v8149_v41 = vpop.f32.mrf.mxu1  ;;  %v14834_v3 = vadd.f32 %v8100_v46, %v8028_v55  ;;  %v15106_v55 = vmax.f32 %v14597_v4, 0.0 }
 0x55b   :  { %v8288_v1 = vpack.c.bf16 %v8272_v26, %v8272_v26  ;;  %v8273_v43 = vmax.f32 %v8209_v57, %v8241_v5  ;;  %v8242_v39 = vrot.slane %v8210_v23, 1  ;;  %v8211_v37 = vmax.f32 %v15103_v2, %v8183_v15 }
 0x55c   :  { %v8186_v35 = vmax.f32 %v8148_v31, 0.0  ;;  %v8150_v34 = vadd.f32 %v8149_v41, %v8077_v11  ;;  %v8151_v58 = vpop.f32.mrf.mxu1 }
 0x55d   :  { %v8449_v40 = vunpack.c.l.b16 %v8288_v1  ;;  %v8289_v6 = vpack.c.bf16 %v8273_v43, %v8273_v43  ;;  %v8274_v21 = vmax.f32 %v8210_v23, %v8242_v39  ;;  %v8243_v38 = vrot.slane %v8211_v37, 1 }
 0x55e   :  { %v8212_v0 = vmax.f32 %v15104_v53, %v8186_v35  ;;  %v8187_v9 = vmax.f32 %v8150_v34, 0.0  ;;  %v8152_v27 = vadd.f32 %v8151_v58, %v8079_v19  ;;  %v8153_v36 = vpop.f32.mrf.mxu1 }
 0x55f   :  { %v8465_v63 = vrot.slane %v8449_v40, 2  ;;  %v14830_v51 = vunpack.c.l.b16 %v8289_v6  ;;  %v8290_v22 = vpack.c.bf16 %v8274_v21, %v8274_v21  ;;  %v8275_v17 = vmax.f32 %v8211_v37, %v8243_v38 }
 0x560   :  { %v8244_v16 = vrot.slane %v8212_v0, 1  ;;  %v8213_v25 = vmax.f32 %v15105_v52, %v8187_v9  ;;  %v8157_v44 = vpop.f32.mrf.mxu1  ;;  %v9398_v33 = vrot.slane %v8449_v40, 4  ;;  %v9901_v10 = vrot.slane %v8449_v40, 6 }
 0x561   :  { %v8479_v62 = vrot.slane %v14830_v51, 2  ;;  %v8190_v18 = vmax.f32 %v8152_v27, 0.0  ;;  %v8451_v7 = vunpack.c.l.b16 %v8290_v22  ;;  %v8291_v57 = vpack.c.bf16 %v8275_v17, %v8275_v17 }
 0x562   :  { %v8276_v13 = vmax.f32 %v8212_v0, %v8244_v16  ;;  %v8245_v30 = vrot.slane %v8213_v25, 1  ;;  %v8159_v12 = vpop.f32.mrf.mxu1  ;;  %v8154_v48 = vadd.f32 %v8153_v36, %v8081_v60  ;;  %v8158_v11 = vadd.f32 %v8157_v44, %v8085_v24  ;;  %v15108_v16 = vld [vmem:[#allocation25_spill] sm:$0xff] }
 0x563   :  { %v8214_v32 = vmax.f32 %v15106_v55, %v8190_v18  ;;  %v8160_v19 = vadd.f32 %v8159_v12, %v8087_v8  ;;  %v8466_v20 = vrot.slane %v8451_v7, 1  ;;  %v8899_v29 = vrot.slane %v8451_v7, 7 }
 0x564   :  { %v9399_v47 = vrot.slane %v8451_v7, 3  ;;  %v9902_v26 = vrot.slane %v8451_v7, 5  ;;  %v8161_v5 = vpop.f32.mrf.mxu1  ;;  %v14841_v50 = vunpack.c.l.b16 %v8291_v57  ;;  %v8292_v23 = vpack.c.bf16 %v8276_v13, %v8276_v13 }
 0x565   :  { %v8277_v15 = vmax.f32 %v8213_v25, %v8245_v30  ;;  %v8246_v31 = vrot.slane %v8214_v32, 1  ;;  %v8900_v41 = vsel %vm4649_vm3, %v8899_v29, %v8449_v40  ;;  %v8467_v60 = vsel %vm4649_vm3, %v8466_v20, %v8465_v63 }
 0x566   :  { %v9400_v1 = vsel %vm4649_vm3, %v9399_v47, %v9398_v33  ;;  %v9903_v4 = vsel %vm4649_vm3, %v9902_v26, %v9901_v10  ;;  %v8163_v24 = vpop.f32.mrf.mxu1  ;;  %v9412_v8 = vrot.slane %v14830_v51, 4  ;;  %v9915_v43 = vrot.slane %v14830_v51, 6  ;;  %v15110_v10 = vld [vmem:[#allocation28_spill] sm:$0xff] }
 0x567   :  { %v8480_v39 = vrot.slane %v14841_v50, 1  ;;  %v8913_v2 = vrot.slane %v14841_v50, 7  ;;  %v8453_v37 = vunpack.c.l.b16 %v8292_v23  ;;  %v8293_v35 = vpack.c.bf16 %v8277_v15, %v8277_v15 }
 0x568   :  { %v8278_v34 = vmax.f32 %v8214_v32, %v8246_v31  ;;  %v8191_v58 = vmax.f32 %v8154_v48, 0.0  ;;  %v8167_v46 = vpop.f32.mrf.mxu1  ;;  %v8194_v6 = vmax.f32 %v8158_v11, 0.0  ;;  %v8195_v21 = vmax.f32 %v8160_v19, 0.0 }
 0x569   :  { %v8481_v40 = vsel %vm4649_vm3, %v8480_v39, %v8479_v62  ;;  %v8162_v38 = vadd.f32 %v8161_v5, %v14818_v45  ;;  %v8468_v53 = vsel %vm4651_vm4, %v8453_v37, %v8467_v60  ;;  %v8901_v0 = vrot.slane %v8453_v37, 6 }
 0x56a   :  { %v9401_v9 = vrot.slane %v8453_v37, 2  ;;  %v9904_v27 = vrot.slane %v8453_v37, 4  ;;  %v14854_v36 = vunpack.c.l.b16 %v8293_v35  ;;  %v8294_v63 = vpack.c.bf16 %v8278_v34, %v8278_v34  ;;  %v8169_v7 = vpop.f32.mrf.mxu1 }
 0x56b   :  { %v15107_v22 = vmax.f32 %v14600_v54, 0.0  ;;  %v15109_v52 = vmax.f32 %v15108_v16, 0.0  ;;  %v8902_v44 = vsel %vm4651_vm4, %v8901_v0, %v8900_v41  ;;  %v15111_v62 = vmax.f32 %v15110_v10, 0.0 }
 0x56c   :  { %v9905_v33 = vsel %vm4651_vm4, %v9904_v27, %v9903_v4  ;;  %v9402_v45 = vsel %vm4651_vm4, %v9401_v9, %v9400_v1  ;;  %v9413_v57 = vrot.slane %v14841_v50, 3  ;;  %v9916_v13 = vrot.slane %v14841_v50, 5  ;;  %v8171_v60 = vpop.f32.mrf.mxu1 }
 0x56d   :  { %v8215_v17 = vmax.f32 %v15107_v22, %v8191_v58  ;;  %v8216_v25 = vmax.f32 %v15109_v52, %v8194_v6  ;;  %v8217_v18 = vmax.f32 %v15111_v62, %v8195_v21  ;;  %v14869_v54 = vsel %vm4651_vm4, %v14854_v36, %v8481_v40  ;;  %v15114_v22 = vld [vmem:[#allocation31_spill] sm:$0xff] }
 0x56e   :  { %v8915_v30 = vrot.slane %v14854_v36, 6  ;;  %v8455_v12 = vunpack.c.l.b16 %v8294_v63  ;;  %v8198_v11 = vmax.f32 %v8162_v38, 0.0  ;;  %v8164_v19 = vadd.f32 %v8163_v24, %v14822_v49 }
 0x56f   :  { %v8247_v55 = vrot.slane %v8215_v17, 1  ;;  %v8248_v32 = vrot.slane %v8216_v25, 1  ;;  %v8249_v48 = vrot.slane %v8217_v18, 1  ;;  %v8168_v20 = vadd.f32 %v8167_v46, %v14824_v14 }
 0x570   :  { %v8170_v29 = vadd.f32 %v8169_v7, %v14828_v56  ;;  %v8469_v47 = vrot.slane %v8455_v12, 7  ;;  %v8903_v26 = vrot.slane %v8455_v12, 5  ;;  %v9403_v5 = vrot.slane %v8455_v12, 1 }
 0x571   :  { %v9906_v23 = vrot.slane %v8455_v12, 3  ;;  %v8279_v15 = vmax.f32 %v8215_v17, %v8247_v55  ;;  %v8280_v31 = vmax.f32 %v8216_v25, %v8248_v32  ;;  %v8281_v41 = vmax.f32 %v8217_v18, %v8249_v48  ;;  %v15116_v25 = vld [vmem:[#allocation26_spill] sm:$0xff]  ;;  %v8173_v48 = vpop.f32.mrf.mxu1 }
 0x572   :  { %v15112_v1 = vmax.f32 %v14609_v59, 0.0  ;;  %v8470_v39 = vsel %vm4653_vm5, %v8469_v47, %v8468_v53  ;;  %v8904_v37 = vsel %vm4653_vm5, %v8903_v26, %v8902_v44  ;;  %v9404_v14 = vsel %vm4653_vm5, %v9403_v5, %v9402_v45 }
 0x573   :  { %v9907_v49 = vsel %vm4653_vm5, %v9906_v23, %v9905_v33  ;;  %v8295_v56 = vpack.c.bf16 %v8279_v15, %v8279_v15  ;;  %v8296_v24 = vpack.c.bf16 %v8280_v31, %v8280_v31  ;;  %v8297_v35 = vpack.c.bf16 %v8281_v41, %v8281_v41 }
 0x574   :  { %v8218_v4 = vmax.f32 %v15112_v1, %v8198_v11  ;;  %v8199_v58 = vmax.f32 %v8164_v19, 0.0  ;;  %v8202_v46 = vmax.f32 %v8168_v20, 0.0  ;;  %v8203_v40 = vmax.f32 %v8170_v29, 0.0 }
 0x575   :  { %v8172_v6 = vadd.f32 %v8171_v60, %v14832_v61  ;;  %v14882_v59 = vunpack.c.l.b16 %v8295_v56  ;;  %v8457_v21 = vunpack.c.l.b16 %v8296_v24  ;;  %v14884_v38 = vunpack.c.l.b16 %v8297_v35 }
 0x576   :  { %v8250_v34 = vrot.slane %v8218_v4, 1  ;;  %v9415_v0 = vrot.slane %v14854_v36, 2  ;;  %v9918_v9 = vrot.slane %v14854_v36, 4  ;;  %v15113_v27 = vmax.f32 %v14612_v42, 0.0 }
 0x577   :  { %v15115_v17 = vmax.f32 %v15114_v22, 0.0  ;;  %v8483_v52 = vrot.slane %v14882_v59, 7  ;;  %v8917_v61 = vrot.slane %v14882_v59, 5  ;;  %v15117_v44 = vmax.f32 %v15116_v25, 0.0 }
 0x578   :  { %v8282_v53 = vmax.f32 %v8218_v4, %v8250_v34  ;;  %v8219_v63 = vmax.f32 %v15113_v27, %v8199_v58  ;;  %v8206_v45 = vmax.f32 %v8172_v6, 0.0  ;;  %v8471_v10 = vrot.slane %v8457_v21, 6 }
 0x579   :  { %v8220_v16 = vmax.f32 %v15115_v17, %v8202_v46  ;;  %v8221_v33 = vmax.f32 %v15117_v44, %v8203_v40  ;;  %v8905_v62 = vrot.slane %v8457_v21, 4  ;;  %v14897_v18 = vsel %vm4655_vm6, %v8457_v21, %v9404_v14 }
 0x57a   :  { %v9908_v7 = vrot.slane %v8457_v21, 2  ;;  %v9417_v42 = vrot.slane %v14882_v59, 1  ;;  %v8485_v12 = vrot.slane %v14884_v38, 6  ;;  %v8919_v55 = vrot.slane %v14884_v38, 4  ;;  %v15119_v21 = vld [vmem:[#allocation27_spill] sm:$0xff] }
 0x57b   :  { %v8298_v32 = vpack.c.bf16 %v8282_v53, %v8282_v53  ;;  %v8472_v11 = vsel %vm4655_vm6, %v8471_v10, %v8470_v39  ;;  %v8906_v19 = vsel %vm4655_vm6, %v8905_v62, %v8904_v37  ;;  %v8251_v20 = vrot.slane %v8219_v63, 1 }
 0x57c   :  { %v8252_v29 = vrot.slane %v8220_v16, 1  ;;  %v9909_v26 = vsel %vm4655_vm6, %v9908_v7, %v9907_v49  ;;  %v8253_v5 = vrot.slane %v8221_v33, 1  ;;  %v15118_v23 = vmax.f32 %v14623_v28, 0.0 }
 0x57d   :  { %v14904_v47 = vunpack.c.l.b16 %v8298_v32  ;;  %v8283_v31 = vmax.f32 %v8219_v63, %v8251_v20  ;;  %v8174_v1 = vadd.f32 %v8173_v48, %v14834_v3  ;;  %v8484_v4 = vsel %vm4653_vm5, %v8483_v52, %v14869_v54 }
 0x57e   :  { %v8222_v15 = vmax.f32 %v15118_v23, %v8206_v45  ;;  %v8284_v41 = vmax.f32 %v8220_v16, %v8252_v29  ;;  %v8285_v24 = vmax.f32 %v8221_v33, %v8253_v5  ;;  %v8486_v58 = vsel %vm4655_vm6, %v8485_v12, %v8484_v4 }
 0x57f   :  { %v8473_v60 = vrot.slane %v14904_v47, 5  ;;  %v8907_v39 = vrot.slane %v14904_v47, 3  ;;  %v9406_v37 = vrot.slane %v14904_v47, 7  ;;  %v9910_v14 = vrot.slane %v14904_v47, 1 }
 0x580   :  { %v8299_v49 = vpack.c.bf16 %v8283_v31, %v8283_v31  ;;  %v8300_v56 = vpack.c.bf16 %v8284_v41, %v8284_v41  ;;  %v8254_v28 = vrot.slane %v8222_v15, 1  ;;  %v8207_v3 = vmax.f32 %v8174_v1, 0.0 }
 0x581   :  { %v8474_v35 = vsel %vm4657_vm7, %v8473_v60, %v8472_v11  ;;  %v9911_v34 = vsel %vm4657_vm7, %v9910_v14, %v9909_v26  ;;  %v8301_v40 = vpack.c.bf16 %v8285_v24, %v8285_v24  ;;  %v15120_v53 = vmax.f32 %v15119_v21, 0.0 }
 0x582   :  { %v14919_v54 = vunpack.c.l.b16 %v8299_v49  ;;  %v8461_v46 = vunpack.c.l.b16 %v8300_v56  ;;  %v8286_v6 = vmax.f32 %v8222_v15, %v8254_v28  ;;  %v8914_v63 = vsel %vm4649_vm3, %v8913_v2, %v14830_v51 }
 0x583   :  { %v8223_v27 = vmax.f32 %v15120_v53, %v8207_v3  ;;  %v8908_v22 = vsel %vm4657_vm7, %v8907_v39, %v8906_v19  ;;  %v9414_v17 = vsel %vm4649_vm3, %v9413_v57, %v9412_v8  ;;  %v14934_v33 = vunpack.c.l.b16 %v8301_v40  ;;  %v12498_v40 = vld [vmem:[#allocation10 + $0xe8] ss:$16 sps:$4 sm:$0xff]  }
 0x584   :  { %v8475_v16 = vrot.slane %v8461_v46, 4  ;;  %v8909_v52 = vrot.slane %v8461_v46, 2  ;;  %v9408_v25 = vrot.slane %v8461_v46, 6  ;;  %v9912_v44 = vsel %vm4659_vm8, %v8461_v46, %v9911_v34  ;;  %v12495_v46 = vld [vmem:[#allocation10 + $0xe0] ss:$16 sps:$4 sm:$0xff]  }
 0x585   :  { %v8302_v45 = vpack.c.bf16 %v8286_v6, %v8286_v6  ;;  %v8255_v10 = vrot.slane %v8223_v27, 1  ;;  %v8487_v62 = vrot.slane %v14919_v54, 5  ;;  %v8916_v7 = vsel %vm4651_vm4, %v8915_v30, %v8914_v63  ;;  %v12506_v63 = vld [vmem:[#allocation10 + $0xcc] ss:$16 sps:$4 sm:$0xff]  }
 0x586   :  { %v8476_v2 = vsel %vm4659_vm8, %v8475_v16, %v8474_v35  ;;  %v8921_v12 = vrot.slane %v14919_v54, 3  ;;  %v8910_v8 = vsel %vm4659_vm8, %v8909_v52, %v8908_v22  ;;  %v8489_v11 = vrot.slane %v14934_v33, 4  ;;  %v12501_v16 = vld [vmem:[#allocation10 + $0xc0] ss:$16 sps:$4 sm:$0xff]   ;;  %v12504_v52 = vld [vmem:[#allocation10 + $0xc8] ss:$16 sps:$4 sm:$0xff]  }
 0x587   :  { %v8463_v57 = vunpack.c.l.b16 %v8302_v45  ;;  %v8287_v32 = vmax.f32 %v8223_v27, %v8255_v10  ;;  %v8488_v48 = vsel %vm4657_vm7, %v8487_v62, %v8486_v58  ;;  %v8918_v19 = vsel %vm4653_vm5, %v8917_v61, %v8916_v7  ;;  %v12503_v27 = vld [vmem:[#allocation10 + $0xc4] ss:$16 sps:$4 sm:$0xff]   ;;  %v12507_v10 = vld [vmem:[#allocation10 + $0xa0] ss:$16 sps:$4 sm:$0xff]   ;;  %v12510_v62 = vld [vmem:[#allocation10 + $0xa8] ss:$16 sps:$4 sm:$0xff]  }
 0x588   :  { %v8923_v20 = vrot.slane %v14934_v33, 2  ;;  %v9416_v29 = vsel %vm4651_vm4, %v9415_v0, %v9414_v17  ;;  %v9420_v30 = vrot.slane %v14919_v54, 7  ;;  %v8490_v31 = vsel %vm4659_vm8, %v8489_v11, %v8488_v48  ;;  %v12518_v7 = vld [vmem:[#allocation10 + $0x8c] ss:$16 sps:$4 sm:$0xff]   ;;  %v12522_v48 = vld [vmem:[#allocation10 + $0x68] ss:$16 sps:$4 sm:$0xff]  }
 0x589   :  { %v8477_v47 = vrot.slane %v8463_v57, 3  ;;  %v8911_v26 = vrot.slane %v8463_v57, 1  ;;  %v9410_v5 = vrot.slane %v8463_v57, 5  ;;  %v9913_v23 = vrot.slane %v8463_v57, 7  ;;  %v12524_v57 = vld [vmem:[#allocation10 + $0x6c] ss:$16 sps:$4 sm:$0xff]  }
 0x58a   :  { %v8303_v15 = vpack.c.bf16 %v8287_v32, %v8287_v32  ;;  %v8920_v41 = vsel %vm4655_vm6, %v8919_v55, %v8918_v19  ;;  %v9418_v61 = vsel %vm4653_vm5, %v9417_v42, %v9416_v29  ;;  %v9920_v39 = vrot.slane %v14882_v59, 3  ;;  %v12519_v32 = vld [vmem:[#allocation10 + $0x60] ss:$16 sps:$4 sm:$0xff]   ;;  %v12527_v11 = vld [vmem:[#allocation10 + $0x44] ss:$16 sps:$4 sm:$0xff]  }
 0x58b   :  { %v8478_v1 = vsel %vm4661_vm9, %v8477_v47, %v8476_v2  ;;  %v8922_v4 = vsel %vm4657_vm7, %v8921_v12, %v8920_v41  ;;  %v14959_v0 = vsel %vm4661_vm9, %v8911_v26, %v8910_v8  ;;  %v9419_v60 = vsel %vm4655_vm6, %v14884_v38, %v9418_v61  ;;  %v12515_v2 = vld [vmem:[#allocation10 + $0x84] ss:$16 sps:$4 sm:$0xff]   ;;  %v12516_v12 = vld [vmem:[#allocation10 + $0x88] ss:$16 sps:$4 sm:$0xff]   ;;  %v12530_v19 = vld [vmem:[#allocation10 + $0x4c] ss:$16 sps:$4 sm:$0xff]  }
 0x58c   :  { %v9922_v14 = vrot.slane %v14884_v38, 2  ;;  %v8464_v49 = vunpack.c.l.b16 %v8303_v15  ;;  %v8924_v55 = vsel %vm4659_vm8, %v8923_v20, %v8922_v4  ;;  %v9421_v56 = vsel %vm4657_vm7, %v9420_v30, %v9419_v60  ;;  %v12521_v8 = vld [vmem:[#allocation10 + $0x64] ss:$16 sps:$4 sm:$0xff]   ;;  %v12525_v20 = vld [vmem:[#allocation10 + $0x40] ss:$16 sps:$4 sm:$0xff]  }
 0x58d   :  { %v9422_v42 = vrot.slane %v14934_v33, 6  ;;  %v9407_v24 = vsel %vm4657_vm7, %v9406_v37, %v14897_v18  ;;  %v9917_v28 = vsel %vm4649_vm3, %v9916_v13, %v9915_v43  ;;  %v14984_v51 = vsel %vm4661_vm9, %v9913_v23, %v9912_v44  ;;  %v12512_v44 = vld [vmem:[#allocation10 + $0xac] ss:$16 sps:$4 sm:$0xff]   ;;  %v12528_v29 = vld [vmem:[#allocation10 + $0x48] ss:$16 sps:$4 sm:$0xff]  }
 0x58e   :  { %v8491_v35 = vrot.slane %v8464_v49, 3  ;;  %v8925_v59 = vrot.slane %v8464_v49, 1  ;;  %v9424_v34 = vrot.slane %v8464_v49, 5  ;;  %v9409_v38 = vsel %vm4659_vm8, %v9408_v25, %v9407_v24  ;;  %v12533_v30 = vld [vmem:[#allocation10 + $0x24] ss:$16 sps:$4 sm:$0xff]  }
 0x58f   :  { %v9423_v3 = vsel %vm4659_vm8, %v9422_v42, %v9421_v56  ;;  %v14978_v58 = vsel %vm4661_vm9, %v9410_v5, %v9409_v38  ;;  %v9919_v18 = vsel %vm4651_vm4, %v9918_v9, %v9917_v28  ;;  %v8493_v21 = vpack.c.b16 %v8478_v1, %v8478_v1  ;;  %v12536_v47 = vld [vmem:[#allocation10 + $0x2c] ss:$16 sps:$4 sm:$0xff]   ;;  %v12531_v26 = vld [vmem:[#allocation10 + $0x20] ss:$16 sps:$4 sm:$0xff]   ;;  %v12534_v5 = vld [vmem:[#allocation10 + $0x28] ss:$16 sps:$4 sm:$0xff]  }
 0x590   :  { %v8492_v50 = vsel %vm4661_vm9, %v8491_v35, %v8490_v31  ;;  %v8926_v43 = vsel %vm4661_vm9, %v8925_v59, %v8924_v55  ;;  %v14989_v13 = vsel %vm4661_vm9, %v9424_v34, %v9423_v3  ;;  %v9921_v6 = vsel %vm4653_vm5, %v9920_v39, %v9919_v18  ;;  %v12539_v23 = vld [vmem:[#allocation10 + $0x4] ss:$16 sps:$4 sm:$0xff]   ;;  %v12542_v15 = vld [vmem:[#allocation10 + $0xc] ss:$16 sps:$4 sm:$0xff]   ;;  %v12537_v31 = vld [vmem:[#allocation10] ss:$16 sps:$4 sm:$0xff]  }
 0x591   :  { %v8494_v37 = vpack.c.b16 %v8492_v50, %v8492_v50  ;;  %v9923_v36 = vsel %vm4655_vm6, %v9922_v14, %v9921_v6  ;;  %v9924_v9 = vrot.slane %v14919_v54, 1  ;;  %v9927_v53 = vrot.slane %v8464_v49, 7  ;;  %v12509_v54 = vld [vmem:[#allocation10 + $0xa4] ss:$16 sps:$4 sm:$0xff]   ;;  %v12540_v41 = vld [vmem:[#allocation10 + $0x8] ss:$16 sps:$4 sm:$0xff]  }
 0x592   :  { %v8928_v22 = vpack.c.b16 %v8926_v43, %v8926_v43  ;;  %v12545_v61 = vld [vmem:[#allocation10 + $0x1e4] ss:$16 sps:$4 sm:$0xff]   ;;  %v12548_v1 = vld [vmem:[#allocation10 + $0x1ec] ss:$16 sps:$4 sm:$0xff]   ;;  %v12543_v4 = vld [vmem:[#allocation10 + $0x1e0] ss:$16 sps:$4 sm:$0xff]  }
 0x593   :  { %8849 = vmatprep.mubr.bf16.mxu0 %v8494_v37  ;;  %8890 = vmatprep.mubr.bf16.mxu1 %v8494_v37  ;;  %v9925_v17 = vsel %vm4657_vm7, %v9924_v9, %v9923_v36  ;;  %v12546_v60 = vld [vmem:[#allocation10 + $0x1e8] ss:$16 sps:$4 sm:$0xff]   ;;  %v12551_v39 = vld [vmem:[#allocation10 + $0x1c4] ss:$16 sps:$4 sm:$0xff]   ;;  %v12554_v14 = vld [vmem:[#allocation10 + $0x1cc] ss:$16 sps:$4 sm:$0xff]  }
 0x594   :  { %8850 = vmatmul.mubr.bf16.vlgmr.msra.gmra.mxu0 %v8493_v21  ;;  %8891 = vmatmul.mubr.bf16.vlgmr.msra.gmra.mxu1 %v8493_v21  ;;  %v9926_v25 = vsel %vm4659_vm8, %v14934_v33, %v9925_v17  ;;  %v12513_v33 = vld [vmem:[#allocation10 + $0x80] ss:$16 sps:$4 sm:$0xff]   ;;  %v12552_v55 = vld [vmem:[#allocation10 + $0x1c8] ss:$16 sps:$4 sm:$0xff]   ;;  %v12557_v56 = vld [vmem:[#allocation10 + $0x1a4] ss:$16 sps:$4 sm:$0xff]  }
 0x595   :  { %9252 = vmatpush1.bf16.msra.mxu0 %v12495_v46  ;;  %9293 = vmatpush1.bf16.msra.mxu1 %v12498_v40  ;;  %v14998_v45 = vsel %vm4661_vm9, %v9927_v53, %v9926_v25  ;;  %v12549_v49 = vld [vmem:[#allocation10 + $0x1c0] ss:$16 sps:$4 sm:$0xff]   ;;  %v12560_v42 = vld [vmem:[#allocation10 + $0x1ac] ss:$16 sps:$4 sm:$0xff]   ;;  %v12558_v28 = vld [vmem:[#allocation10 + $0x1a8] ss:$16 sps:$4 sm:$0xff]  }
 0x596   :  { %9283 = vmatprep.mubr.bf16.mxu0 %v8928_v22  ;;  %9324 = vmatprep.mubr.bf16.mxu1 %v8928_v22  ;;  %v12555_v24 = vld [vmem:[#allocation10 + $0x1a0] ss:$16 sps:$4 sm:$0xff]   ;;  %v12563_v35 = vld [vmem:[#allocation10 + $0x184] ss:$16 sps:$4 sm:$0xff]   ;;  %v12566_v59 = vld [vmem:[#allocation10 + $0x18c] ss:$16 sps:$4 sm:$0xff]  }
 0x597   :  { %9253 = vmatprep.subr.bf16.mxu0 %v12503_v27  ;;  %9294 = vmatprep.subr.bf16.mxu1 %v12506_v63  ;;  %v12561_v34 = vld [vmem:[#allocation10 + $0x180] ss:$16 sps:$4 sm:$0xff]   ;;  %v12564_v38 = vld [vmem:[#allocation10 + $0x188] ss:$16 sps:$4 sm:$0xff]   ;;  %v12569_v3 = vld [vmem:[#allocation10 + $0x164] ss:$16 sps:$4 sm:$0xff]  }
 0x598   :  { %v12572_v18 = vld [vmem:[#allocation10 + $0x16c] ss:$16 sps:$4 sm:$0xff]   ;;  %v12567_v50 = vld [vmem:[#allocation10 + $0x160] ss:$16 sps:$4 sm:$0xff]   ;;  %v12570_v43 = vld [vmem:[#allocation10 + $0x168] ss:$16 sps:$4 sm:$0xff]  }
 0x599   :  { %9254 = vmatpush1.bf16.msra.mxu0 %v12501_v16  ;;  %9295 = vmatpush1.bf16.msra.mxu1 %v12504_v52  ;;  %v12575_v37 = vld [vmem:[#allocation10 + $0x144] ss:$16 sps:$4 sm:$0xff]   ;;  %v12578_v46 = vld [vmem:[#allocation10 + $0x14c] ss:$16 sps:$4 sm:$0xff]   ;;  %v12573_v40 = vld [vmem:[#allocation10 + $0x140] ss:$16 sps:$4 sm:$0xff]  }
 0x59a   :  { %9255 = vmatprep.subr.bf16.mxu0 %v12509_v54  ;;  %9296 = vmatprep.subr.bf16.mxu1 %v12512_v44  ;;  %v12576_v6 = vld [vmem:[#allocation10 + $0x148] ss:$16 sps:$4 sm:$0xff]   ;;  %v12581_v21 = vld [vmem:[#allocation10 + $0x124] ss:$16 sps:$4 sm:$0xff]   ;;  %v12584_v36 = vld [vmem:[#allocation10 + $0x12c] ss:$16 sps:$4 sm:$0xff]   ;;  %v8927_v54 = vpack.c.b16 %v14959_v0, %v14959_v0 }
 0x59b   :  { %v12579_v9 = vld [vmem:[#allocation10 + $0x120] ss:$16 sps:$4 sm:$0xff]   ;;  %v12582_v53 = vld [vmem:[#allocation10 + $0x128] ss:$16 sps:$4 sm:$0xff]   ;;  %v12587_v27 = vld [vmem:[#allocation10 + $0x104] ss:$16 sps:$4 sm:$0xff]  }
 0x59c   :  { %v12590_v63 = vld [vmem:[#allocation10 + $0x10c] ss:$16 sps:$4 sm:$0xff]   ;;  %v12585_v22 = vld [vmem:[#allocation10 + $0x100] ss:$16 sps:$4 sm:$0xff]   ;;  %v12588_v17 = vld [vmem:[#allocation10 + $0x108] ss:$16 sps:$4 sm:$0xff]  }
 0x59d   :  { %9256 = vmatpush1.bf16.msra.mxu0 %v12507_v10  ;;  %9297 = vmatpush1.bf16.msra.mxu1 %v12510_v62  ;;  %v12593_v16 = vld [vmem:[#allocation10 + $0x4e4] ss:$16 sps:$4 sm:$0xff]   ;;  %v12596_v52 = vld [vmem:[#allocation10 + $0x4ec] ss:$16 sps:$4 sm:$0xff]   ;;  %v12591_v25 = vld [vmem:[#allocation10 + $0x4e0] ss:$16 sps:$4 sm:$0xff]   ;;  %v9427_v10 = vpack.c.b16 %v14989_v13, %v14989_v13 }
 0x59e   :  { %9257 = vmatprep.subr.bf16.mxu0 %v12515_v2  ;;  %9298 = vmatprep.subr.bf16.mxu1 %v12518_v7  ;;  %v12594_v44 = vld [vmem:[#allocation10 + $0x4e8] ss:$16 sps:$4 sm:$0xff]   ;;  %v12599_v62 = vld [vmem:[#allocation10 + $0x4c4] ss:$16 sps:$4 sm:$0xff]   ;;  %v12602_v2 = vld [vmem:[#allocation10 + $0x4cc] ss:$16 sps:$4 sm:$0xff]  }
 0x59f   :  { %v12597_v7 = vld [vmem:[#allocation10 + $0x4c0] ss:$16 sps:$4 sm:$0xff]   ;;  %v12608_v0 = vld [vmem:[#allocation10 + $0x4ac] ss:$16 sps:$4 sm:$0xff]   ;;  %v12611_v13 = vld [vmem:[#allocation10 + $0x484] ss:$16 sps:$4 sm:$0xff]  }
 0x5a1   :  { %9258 = vmatpush1.bf16.msra.mxu0 %v12513_v33  ;;  %9299 = vmatpush1.bf16.msra.mxu1 %v12516_v12  ;;  %v12600_v33 = vld [vmem:[#allocation10 + $0x4c8] ss:$16 sps:$4 sm:$0xff]   ;;  %v12605_v12 = vld [vmem:[#allocation10 + $0x4a4] ss:$16 sps:$4 sm:$0xff]  }
 0x5a2   :  { %9259 = vmatprep.subr.bf16.mxu0 %v12521_v8  ;;  %9300 = vmatprep.subr.bf16.mxu1 %v12524_v57  ;;  %v12603_v8 = vld [vmem:[#allocation10 + $0x4a0] ss:$16 sps:$4 sm:$0xff]   ;;  %v12606_v57 = vld [vmem:[#allocation10 + $0x4a8] ss:$16 sps:$4 sm:$0xff]  }
 0x5a5   :  { %9260 = vmatpush1.bf16.msra.mxu0 %v12519_v32  ;;  %9301 = vmatpush1.bf16.msra.mxu1 %v12522_v48  ;;  %v12614_v32 = vld [vmem:[#allocation10 + $0x48c] ss:$16 sps:$4 sm:$0xff]   ;;  %v12609_v48 = vld [vmem:[#allocation10 + $0x480] ss:$16 sps:$4 sm:$0xff]  }
 0x5a6   :  { %9261 = vmatprep.subr.bf16.mxu0 %v12527_v11  ;;  %9302 = vmatprep.subr.bf16.mxu1 %v12530_v19  ;;  %v12612_v11 = vld [vmem:[#allocation10 + $0x488] ss:$16 sps:$4 sm:$0xff]   ;;  %v12617_v19 = vld [vmem:[#allocation10 + $0x464] ss:$16 sps:$4 sm:$0xff]  }
 0x5a9   :  { %9262 = vmatpush1.bf16.msra.mxu0 %v12525_v20  ;;  %9303 = vmatpush1.bf16.msra.mxu1 %v12528_v29  ;;  %v12620_v20 = vld [vmem:[#allocation10 + $0x46c] ss:$16 sps:$4 sm:$0xff]   ;;  %v12615_v29 = vld [vmem:[#allocation10 + $0x460] ss:$16 sps:$4 sm:$0xff]  }
 0x5aa   :  { %9263 = vmatprep.subr.bf16.mxu0 %v12533_v30  ;;  %9304 = vmatprep.subr.bf16.mxu1 %v12536_v47  ;;  %v12618_v30 = vld [vmem:[#allocation10 + $0x468] ss:$16 sps:$4 sm:$0xff]   ;;  %v12623_v47 = vld [vmem:[#allocation10 + $0x444] ss:$16 sps:$4 sm:$0xff]  }
 0x5ad   :  { %9264 = vmatpush1.bf16.msra.mxu0 %v12531_v26  ;;  %9305 = vmatpush1.bf16.msra.mxu1 %v12534_v5  ;;  %v12626_v26 = vld [vmem:[#allocation10 + $0x44c] ss:$16 sps:$4 sm:$0xff]   ;;  %v12621_v5 = vld [vmem:[#allocation10 + $0x440] ss:$16 sps:$4 sm:$0xff]  }
 0x5ae   :  { %9265 = vmatprep.subr.bf16.mxu0 %v12539_v23  ;;  %9306 = vmatprep.subr.bf16.mxu1 %v12542_v15  ;;  %v12624_v23 = vld [vmem:[#allocation10 + $0x448] ss:$16 sps:$4 sm:$0xff]   ;;  %v12629_v15 = vld [vmem:[#allocation10 + $0x424] ss:$16 sps:$4 sm:$0xff]  }
 0x5b1   :  { %9266 = vmatpush1.bf16.msra.mxu0 %v12537_v31  ;;  %9307 = vmatpush1.bf16.msra.mxu1 %v12540_v41  ;;  %v12632_v31 = vld [vmem:[#allocation10 + $0x42c] ss:$16 sps:$4 sm:$0xff]   ;;  %v12627_v41 = vld [vmem:[#allocation10 + $0x420] ss:$16 sps:$4 sm:$0xff]  }
 0x5b2   :  { %9267 = vmatprep.subr.bf16.mxu0 %v12545_v61  ;;  %9308 = vmatprep.subr.bf16.mxu1 %v12548_v1  ;;  %v12630_v61 = vld [vmem:[#allocation10 + $0x428] ss:$16 sps:$4 sm:$0xff]   ;;  %v12635_v1 = vld [vmem:[#allocation10 + $0x404] ss:$16 sps:$4 sm:$0xff]  }
 0x5b5   :  { %9268 = vmatpush2.bf16.msra.mxu0 %v12543_v4  ;;  %9309 = vmatpush2.bf16.msra.mxu1 %v12546_v60  ;;  %v12638_v4 = vld [vmem:[#allocation10 + $0x40c] ss:$16 sps:$4 sm:$0xff]   ;;  %v12633_v60 = vld [vmem:[#allocation10 + $0x400] ss:$16 sps:$4 sm:$0xff]  }
 0x5b6   :  { %9269 = vmatprep.subr.bf16.mxu0 %v12551_v39  ;;  %9310 = vmatprep.subr.bf16.mxu1 %v12554_v14  ;;  %v12636_v39 = vld [vmem:[#allocation10 + $0x408] ss:$16 sps:$4 sm:$0xff]   ;;  %v12641_v14 = vld [vmem:[#allocation10 + $0x5e4] ss:$16 sps:$4 sm:$0xff]  }
 0x5b9   :  { %9270 = vmatpush2.bf16.msra.mxu0 %v12549_v49  ;;  %9311 = vmatpush2.bf16.msra.mxu1 %v12552_v55  ;;  %v12644_v49 = vld [vmem:[#allocation10 + $0x5ec] ss:$16 sps:$4 sm:$0xff]   ;;  %v12639_v55 = vld [vmem:[#allocation10 + $0x5e0] ss:$16 sps:$4 sm:$0xff]  }
 0x5ba   :  { %9271 = vmatprep.subr.bf16.mxu0 %v12557_v56  ;;  %9312 = vmatprep.subr.bf16.mxu1 %v12560_v42  ;;  %v12642_v56 = vld [vmem:[#allocation10 + $0x5e8] ss:$16 sps:$4 sm:$0xff]   ;;  %v12647_v42 = vld [vmem:[#allocation10 + $0x5c4] ss:$16 sps:$4 sm:$0xff]  }
 0x5bd   :  { %9272 = vmatpush2.bf16.msra.mxu0 %v12555_v24  ;;  %9313 = vmatpush2.bf16.msra.mxu1 %v12558_v28  ;;  %v12650_v24 = vld [vmem:[#allocation10 + $0x5cc] ss:$16 sps:$4 sm:$0xff]   ;;  %v12645_v28 = vld [vmem:[#allocation10 + $0x5c0] ss:$16 sps:$4 sm:$0xff]  }
 0x5be   :  { %9273 = vmatprep.subr.bf16.mxu0 %v12563_v35  ;;  %9314 = vmatprep.subr.bf16.mxu1 %v12566_v59  ;;  %v12648_v35 = vld [vmem:[#allocation10 + $0x5c8] ss:$16 sps:$4 sm:$0xff]   ;;  %v12653_v59 = vld [vmem:[#allocation10 + $0x5a4] ss:$16 sps:$4 sm:$0xff]  }
 0x5c1   :  { %9274 = vmatpush2.bf16.msra.mxu0 %v12561_v34  ;;  %9315 = vmatpush2.bf16.msra.mxu1 %v12564_v38  ;;  %v12656_v34 = vld [vmem:[#allocation10 + $0x5ac] ss:$16 sps:$4 sm:$0xff]   ;;  %v12651_v38 = vld [vmem:[#allocation10 + $0x5a0] ss:$16 sps:$4 sm:$0xff]  }
 0x5c2   :  { %9275 = vmatprep.subr.bf16.mxu0 %v12569_v3  ;;  %9316 = vmatprep.subr.bf16.mxu1 %v12572_v18  ;;  %v12654_v3 = vld [vmem:[#allocation10 + $0x5a8] ss:$16 sps:$4 sm:$0xff]   ;;  %v12659_v18 = vld [vmem:[#allocation10 + $0x584] ss:$16 sps:$4 sm:$0xff]  }
 0x5c5   :  { %9276 = vmatpush2.bf16.msra.mxu0 %v12567_v50  ;;  %9317 = vmatpush2.bf16.msra.mxu1 %v12570_v43  ;;  %v12662_v50 = vld [vmem:[#allocation10 + $0x58c] ss:$16 sps:$4 sm:$0xff]   ;;  %v12657_v43 = vld [vmem:[#allocation10 + $0x580] ss:$16 sps:$4 sm:$0xff]  }
 0x5c6   :  { %9277 = vmatprep.subr.bf16.mxu0 %v12575_v37  ;;  %9318 = vmatprep.subr.bf16.mxu1 %v12578_v46  ;;  %v12660_v37 = vld [vmem:[#allocation10 + $0x588] ss:$16 sps:$4 sm:$0xff]   ;;  %v12665_v46 = vld [vmem:[#allocation10 + $0x564] ss:$16 sps:$4 sm:$0xff]  }
 0x5c9   :  { %9278 = vmatpush2.bf16.msra.mxu0 %v12573_v40  ;;  %9319 = vmatpush2.bf16.msra.mxu1 %v12576_v6  ;;  %v12668_v40 = vld [vmem:[#allocation10 + $0x56c] ss:$16 sps:$4 sm:$0xff]   ;;  %v12663_v6 = vld [vmem:[#allocation10 + $0x560] ss:$16 sps:$4 sm:$0xff]  }
 0x5ca   :  { %9279 = vmatprep.subr.bf16.mxu0 %v12581_v21  ;;  %9320 = vmatprep.subr.bf16.mxu1 %v12584_v36  ;;  %v12666_v21 = vld [vmem:[#allocation10 + $0x568] ss:$16 sps:$4 sm:$0xff]   ;;  %v12671_v36 = vld [vmem:[#allocation10 + $0x544] ss:$16 sps:$4 sm:$0xff]  }
 0x5cd   :  { %9280 = vmatpush2.bf16.msra.mxu0 %v12579_v9  ;;  %9321 = vmatpush2.bf16.msra.mxu1 %v12582_v53  ;;  %v12674_v9 = vld [vmem:[#allocation10 + $0x54c] ss:$16 sps:$4 sm:$0xff]   ;;  %v12669_v53 = vld [vmem:[#allocation10 + $0x540] ss:$16 sps:$4 sm:$0xff]  }
 0x5ce   :  { %9281 = vmatprep.subr.bf16.mxu0 %v12587_v27  ;;  %9322 = vmatprep.subr.bf16.mxu1 %v12590_v63  ;;  %v12672_v27 = vld [vmem:[#allocation10 + $0x548] ss:$16 sps:$4 sm:$0xff]   ;;  %v12677_v63 = vld [vmem:[#allocation10 + $0x524] ss:$16 sps:$4 sm:$0xff]  }
 0x5d1   :  { %9282 = vmatpush2.bf16.msra.mxu0 %v12585_v22  ;;  %9323 = vmatpush2.bf16.msra.mxu1 %v12588_v17  ;;  %v12680_v22 = vld [vmem:[#allocation10 + $0x52c] ss:$16 sps:$4 sm:$0xff]   ;;  %v12675_v17 = vld [vmem:[#allocation10 + $0x520] ss:$16 sps:$4 sm:$0xff]  }
 0x5d2   :  { %9750 = vmatprep.subr.bf16.mxu0 %v12593_v16  ;;  %9791 = vmatprep.subr.bf16.mxu1 %v12596_v52  ;;  %v12678_v16 = vld [vmem:[#allocation10 + $0x528] ss:$16 sps:$4 sm:$0xff]   ;;  %v12683_v52 = vld [vmem:[#allocation10 + $0x504] ss:$16 sps:$4 sm:$0xff]  }
 0x5d4   :  { %9284 = vmatmul.mubr.bf16.vlgmr.msra.gmra.mxu0 %v8927_v54  ;;  %9325 = vmatmul.mubr.bf16.vlgmr.msra.gmra.mxu1 %v8927_v54  ;;  %v12681_v54 = vld [vmem:[#allocation10 + $0x500] ss:$16 sps:$4 sm:$0xff]  }
 0x5d5   :  { %9751 = vmatpush1.bf16.msra.mxu0 %v12591_v25  ;;  %9782 = vmatprep.mubr.bf16.mxu0 %v9427_v10  ;;  %v12686_v25 = vld [vmem:[#allocation10 + $0x50c] ss:$16 sps:$4 sm:$0xff]  }
 0x5d6   :  { %9792 = vmatpush1.bf16.msra.mxu1 %v12594_v44  ;;  %9823 = vmatprep.mubr.bf16.mxu1 %v9427_v10  ;;  %v12684_v44 = vld [vmem:[#allocation10 + $0x508] ss:$16 sps:$4 sm:$0xff]   ;;  %v12689_v10 = vld [vmem:[#allocation10 + $0x6e4] ss:$16 sps:$4 sm:$0xff]  }
 0x5d7   :  { %9752 = vmatprep.subr.bf16.mxu0 %v12599_v62  ;;  %9793 = vmatprep.subr.bf16.mxu1 %v12602_v2  ;;  %v12692_v62 = vld [vmem:[#allocation10 + $0x6ec] ss:$16 sps:$4 sm:$0xff]   ;;  %v12687_v2 = vld [vmem:[#allocation10 + $0x6e0] ss:$16 sps:$4 sm:$0xff]  }
 0x5d9   :  { %9753 = vmatpush1.bf16.msra.mxu0 %v12597_v7  ;;  %v9426_v7 = vpack.c.b16 %v14978_v58, %v14978_v58  ;;  %v12699_v58 = vld [vmem:[#allocation10 + $0x6a0] ss:$16 sps:$4 sm:$0xff]  }
 0x5da   :  { %9794 = vmatpush1.bf16.msra.mxu1 %v12600_v33  ;;  %9754 = vmatprep.subr.bf16.mxu0 %v12605_v12  ;;  %v12690_v33 = vld [vmem:[#allocation10 + $0x6e8] ss:$16 sps:$4 sm:$0xff]   ;;  %v12695_v12 = vld [vmem:[#allocation10 + $0x6c4] ss:$16 sps:$4 sm:$0xff]  }
 0x5db   :  { %9795 = vmatprep.subr.bf16.mxu1 %v12608_v0  ;;  %v9930_v0 = vpack.c.b16 %v14998_v45, %v14998_v45  ;;  %v12710_v45 = vld [vmem:[#allocation10 + $0x68c] ss:$16 sps:$4 sm:$0xff]  }
 0x5dd   :  { %9755 = vmatpush1.bf16.msra.mxu0 %v12603_v8  ;;  %v12698_v8 = vld [vmem:[#allocation10 + $0x6cc] ss:$16 sps:$4 sm:$0xff]  }
 0x5de   :  { %9796 = vmatpush1.bf16.msra.mxu1 %v12606_v57  ;;  %9756 = vmatprep.subr.bf16.mxu0 %v12611_v13  ;;  %v12693_v57 = vld [vmem:[#allocation10 + $0x6c0] ss:$16 sps:$4 sm:$0xff]   ;;  %v12696_v13 = vld [vmem:[#allocation10 + $0x6c8] ss:$16 sps:$4 sm:$0xff]  }
 0x5df   :  { %9797 = vmatprep.subr.bf16.mxu1 %v12614_v32  ;;  %v12701_v32 = vld [vmem:[#allocation10 + $0x6a4] ss:$16 sps:$4 sm:$0xff]  }
 0x5e1   :  { %9757 = vmatpush1.bf16.msra.mxu0 %v12609_v48  ;;  %v12704_v48 = vld [vmem:[#allocation10 + $0x6ac] ss:$16 sps:$4 sm:$0xff]  }
 0x5e2   :  { %9798 = vmatpush1.bf16.msra.mxu1 %v12612_v11  ;;  %9758 = vmatprep.subr.bf16.mxu0 %v12617_v19  ;;  %v12702_v11 = vld [vmem:[#allocation10 + $0x6a8] ss:$16 sps:$4 sm:$0xff]   ;;  %v12707_v19 = vld [vmem:[#allocation10 + $0x684] ss:$16 sps:$4 sm:$0xff]  }
 0x5e3   :  { %9799 = vmatprep.subr.bf16.mxu1 %v12620_v20  ;;  %v12705_v20 = vld [vmem:[#allocation10 + $0x680] ss:$16 sps:$4 sm:$0xff]  }
 0x5e5   :  { %9759 = vmatpush1.bf16.msra.mxu0 %v12615_v29  ;;  %v12708_v29 = vld [vmem:[#allocation10 + $0x688] ss:$16 sps:$4 sm:$0xff]  }
 0x5e6   :  { %9800 = vmatpush1.bf16.msra.mxu1 %v12618_v30  ;;  %9760 = vmatprep.subr.bf16.mxu0 %v12623_v47  ;;  %v12713_v30 = vld [vmem:[#allocation10 + $0x664] ss:$16 sps:$4 sm:$0xff]   ;;  %v12716_v47 = vld [vmem:[#allocation10 + $0x66c] ss:$16 sps:$4 sm:$0xff]  }
 0x5e7   :  { %9801 = vmatprep.subr.bf16.mxu1 %v12626_v26  ;;  %v12711_v26 = vld [vmem:[#allocation10 + $0x660] ss:$16 sps:$4 sm:$0xff]  }
 0x5e9   :  { %9761 = vmatpush1.bf16.msra.mxu0 %v12621_v5  ;;  %v12714_v5 = vld [vmem:[#allocation10 + $0x668] ss:$16 sps:$4 sm:$0xff]  }
 0x5ea   :  { %9802 = vmatpush1.bf16.msra.mxu1 %v12624_v23  ;;  %9762 = vmatprep.subr.bf16.mxu0 %v12629_v15  ;;  %v12719_v23 = vld [vmem:[#allocation10 + $0x644] ss:$16 sps:$4 sm:$0xff]   ;;  %v12722_v15 = vld [vmem:[#allocation10 + $0x64c] ss:$16 sps:$4 sm:$0xff]  }
 0x5eb   :  { %9803 = vmatprep.subr.bf16.mxu1 %v12632_v31  ;;  %v12717_v31 = vld [vmem:[#allocation10 + $0x640] ss:$16 sps:$4 sm:$0xff]  }
 0x5ed   :  { %9763 = vmatpush1.bf16.msra.mxu0 %v12627_v41  ;;  %v12720_v41 = vld [vmem:[#allocation10 + $0x648] ss:$16 sps:$4 sm:$0xff]  }
 0x5ee   :  { %9804 = vmatpush1.bf16.msra.mxu1 %v12630_v61  ;;  %9764 = vmatprep.subr.bf16.mxu0 %v12635_v1  ;;  %v12725_v61 = vld [vmem:[#allocation10 + $0x624] ss:$16 sps:$4 sm:$0xff]   ;;  %v12728_v1 = vld [vmem:[#allocation10 + $0x62c] ss:$16 sps:$4 sm:$0xff]  }
 0x5ef   :  { %9805 = vmatprep.subr.bf16.mxu1 %v12638_v4  ;;  %v12723_v4 = vld [vmem:[#allocation10 + $0x620] ss:$16 sps:$4 sm:$0xff]  }
 0x5f1   :  { %9765 = vmatpush1.bf16.msra.mxu0 %v12633_v60  ;;  %v12726_v60 = vld [vmem:[#allocation10 + $0x628] ss:$16 sps:$4 sm:$0xff]  }
 0x5f2   :  { %9806 = vmatpush1.bf16.msra.mxu1 %v12636_v39  ;;  %9766 = vmatprep.subr.bf16.mxu0 %v12641_v14  ;;  %v12731_v39 = vld [vmem:[#allocation10 + $0x604] ss:$16 sps:$4 sm:$0xff]   ;;  %v12734_v14 = vld [vmem:[#allocation10 + $0x60c] ss:$16 sps:$4 sm:$0xff]  }
 0x5f3   :  { %9807 = vmatprep.subr.bf16.mxu1 %v12644_v49  ;;  %v12729_v49 = vld [vmem:[#allocation10 + $0x600] ss:$16 sps:$4 sm:$0xff]  }
 0x5f5   :  { %9767 = vmatpush2.bf16.msra.mxu0 %v12639_v55  ;;  %v12732_v55 = vld [vmem:[#allocation10 + $0x608] ss:$16 sps:$4 sm:$0xff]  }
 0x5f6   :  { %9808 = vmatpush2.bf16.msra.mxu1 %v12642_v56  ;;  %9768 = vmatprep.subr.bf16.mxu0 %v12647_v42  ;;  %v12737_v56 = vld [vmem:[#allocation10 + $0x7e4] ss:$16 sps:$4 sm:$0xff]   ;;  %v12740_v42 = vld [vmem:[#allocation10 + $0x7ec] ss:$16 sps:$4 sm:$0xff]  }
 0x5f7   :  { %9809 = vmatprep.subr.bf16.mxu1 %v12650_v24  ;;  %v12735_v24 = vld [vmem:[#allocation10 + $0x7e0] ss:$16 sps:$4 sm:$0xff]  }
 0x5f9   :  { %9769 = vmatpush2.bf16.msra.mxu0 %v12645_v28  ;;  %v12738_v28 = vld [vmem:[#allocation10 + $0x7e8] ss:$16 sps:$4 sm:$0xff]  }
 0x5fa   :  { %9810 = vmatpush2.bf16.msra.mxu1 %v12648_v35  ;;  %9770 = vmatprep.subr.bf16.mxu0 %v12653_v59  ;;  %v12743_v35 = vld [vmem:[#allocation10 + $0x7c4] ss:$16 sps:$4 sm:$0xff]   ;;  %v12746_v59 = vld [vmem:[#allocation10 + $0x7cc] ss:$16 sps:$4 sm:$0xff]  }
 0x5fb   :  { %9811 = vmatprep.subr.bf16.mxu1 %v12656_v34  ;;  %v12741_v34 = vld [vmem:[#allocation10 + $0x7c0] ss:$16 sps:$4 sm:$0xff]  }
 0x5fd   :  { %9771 = vmatpush2.bf16.msra.mxu0 %v12651_v38  ;;  %v12744_v38 = vld [vmem:[#allocation10 + $0x7c8] ss:$16 sps:$4 sm:$0xff]  }
 0x5fe   :  { %9812 = vmatpush2.bf16.msra.mxu1 %v12654_v3  ;;  %9772 = vmatprep.subr.bf16.mxu0 %v12659_v18  ;;  %v12749_v3 = vld [vmem:[#allocation10 + $0x7a4] ss:$16 sps:$4 sm:$0xff]   ;;  %v12752_v18 = vld [vmem:[#allocation10 + $0x7ac] ss:$16 sps:$4 sm:$0xff]  }
 0x5ff   :  { %9813 = vmatprep.subr.bf16.mxu1 %v12662_v50  ;;  %v12747_v50 = vld [vmem:[#allocation10 + $0x7a0] ss:$16 sps:$4 sm:$0xff]  }
 0x601   :  { %9773 = vmatpush2.bf16.msra.mxu0 %v12657_v43  ;;  %v12750_v43 = vld [vmem:[#allocation10 + $0x7a8] ss:$16 sps:$4 sm:$0xff]  }
 0x602   :  { %9814 = vmatpush2.bf16.msra.mxu1 %v12660_v37  ;;  %9774 = vmatprep.subr.bf16.mxu0 %v12665_v46  ;;  %v12755_v37 = vld [vmem:[#allocation10 + $0x784] ss:$16 sps:$4 sm:$0xff]   ;;  %v12758_v46 = vld [vmem:[#allocation10 + $0x78c] ss:$16 sps:$4 sm:$0xff]  }
 0x603   :  { %9815 = vmatprep.subr.bf16.mxu1 %v12668_v40  ;;  %v12753_v40 = vld [vmem:[#allocation10 + $0x780] ss:$16 sps:$4 sm:$0xff]  }
 0x605   :  { %9775 = vmatpush2.bf16.msra.mxu0 %v12663_v6  ;;  %v12756_v6 = vld [vmem:[#allocation10 + $0x788] ss:$16 sps:$4 sm:$0xff]  }
 0x606   :  { %9816 = vmatpush2.bf16.msra.mxu1 %v12666_v21  ;;  %9776 = vmatprep.subr.bf16.mxu0 %v12671_v36  ;;  %v12761_v21 = vld [vmem:[#allocation10 + $0x764] ss:$16 sps:$4 sm:$0xff]   ;;  %v12764_v36 = vld [vmem:[#allocation10 + $0x76c] ss:$16 sps:$4 sm:$0xff]  }
 0x607   :  { %9817 = vmatprep.subr.bf16.mxu1 %v12674_v9  ;;  %v12759_v9 = vld [vmem:[#allocation10 + $0x760] ss:$16 sps:$4 sm:$0xff]  }
 0x609   :  { %9777 = vmatpush2.bf16.msra.mxu0 %v12669_v53  ;;  %v12762_v53 = vld [vmem:[#allocation10 + $0x768] ss:$16 sps:$4 sm:$0xff]  }
 0x60a   :  { %9818 = vmatpush2.bf16.msra.mxu1 %v12672_v27  ;;  %9778 = vmatprep.subr.bf16.mxu0 %v12677_v63  ;;  %v12767_v27 = vld [vmem:[#allocation10 + $0x744] ss:$16 sps:$4 sm:$0xff]   ;;  %v12770_v63 = vld [vmem:[#allocation10 + $0x74c] ss:$16 sps:$4 sm:$0xff]  }
 0x60b   :  { %9819 = vmatprep.subr.bf16.mxu1 %v12680_v22  ;;  %v12765_v22 = vld [vmem:[#allocation10 + $0x740] ss:$16 sps:$4 sm:$0xff]  }
 0x60d   :  { %9779 = vmatpush2.bf16.msra.mxu0 %v12675_v17  ;;  %v12768_v17 = vld [vmem:[#allocation10 + $0x748] ss:$16 sps:$4 sm:$0xff]  }
 0x60e   :  { %9820 = vmatpush2.bf16.msra.mxu1 %v12678_v16  ;;  %9780 = vmatprep.subr.bf16.mxu0 %v12683_v52  ;;  %v12773_v16 = vld [vmem:[#allocation10 + $0x724] ss:$16 sps:$4 sm:$0xff]   ;;  %v12776_v52 = vld [vmem:[#allocation10 + $0x72c] ss:$16 sps:$4 sm:$0xff]  }
 0x60f   :  { %9821 = vmatprep.subr.bf16.mxu1 %v12686_v25  ;;  %v12771_v25 = vld [vmem:[#allocation10 + $0x720] ss:$16 sps:$4 sm:$0xff]  }
 0x611   :  { %9781 = vmatpush2.bf16.msra.mxu0 %v12681_v54  ;;  %v12774_v54 = vld [vmem:[#allocation10 + $0x728] ss:$16 sps:$4 sm:$0xff]  }
 0x612   :  { %9822 = vmatpush2.bf16.msra.mxu1 %v12684_v44  ;;  %10253 = vmatprep.subr.bf16.mxu0 %v12689_v10  ;;  %v12779_v44 = vld [vmem:[#allocation10 + $0x704] ss:$16 sps:$4 sm:$0xff]   ;;  %v12782_v10 = vld [vmem:[#allocation10 + $0x70c] ss:$16 sps:$4 sm:$0xff]  }
 0x613   :  { %10294 = vmatprep.subr.bf16.mxu1 %v12692_v62  ;;  %v12777_v62 = vld [vmem:[#allocation10 + $0x700] ss:$16 sps:$4 sm:$0xff]  }
 0x614   :  { %9783 = vmatmul.mubr.bf16.vlgmr.msra.gmra.mxu0 %v9426_v7 }
 0x615   :  { %9824 = vmatmul.mubr.bf16.vlgmr.msra.gmra.mxu1 %v9426_v7  ;;  %10254 = vmatpush1.bf16.msra.mxu0 %v12687_v2  ;;  %v12780_v2 = vld [vmem:[#allocation10 + $0x708] ss:$16 sps:$4 sm:$0xff]   ;;  %v9929_v7 = vpack.c.b16 %v14984_v51, %v14984_v51 }
 0x616   :  { %10285 = vmatprep.mubr.bf16.mxu0 %v9930_v0  ;;  %10295 = vmatpush1.bf16.msra.mxu1 %v12690_v33  ;;  %v12789_v51 = vld [vmem:[#allocation13 + $0x30] sm:$0xff]  }
 0x617   :  { %10326 = vmatprep.mubr.bf16.mxu1 %v9930_v0  ;;  %10255 = vmatprep.subr.bf16.mxu0 %v12695_v12 }
 0x618   :  { %10296 = vmatprep.subr.bf16.mxu1 %v12698_v8 }
 0x619   :  { %10256 = vmatpush1.bf16.msra.mxu0 %v12693_v57 }
 0x61a   :  { %10297 = vmatpush1.bf16.msra.mxu1 %v12696_v13  ;;  %10257 = vmatprep.subr.bf16.mxu0 %v12701_v32 }
 0x61b   :  { %10298 = vmatprep.subr.bf16.mxu1 %v12704_v48 }
 0x61d   :  { %10258 = vmatpush1.bf16.msra.mxu0 %v12699_v58  ;;  %v12783_v58 = vld [vmem:[#allocation13 + $0x78] sm:$0xff]  }
 0x61e   :  { %10299 = vmatpush1.bf16.msra.mxu1 %v12702_v11  ;;  %10259 = vmatprep.subr.bf16.mxu0 %v12707_v19  ;;  %v12784_v11 = vld [vmem:[#allocation13 + $0xf8] sm:$0xff]  }
 0x61f   :  { %10300 = vmatprep.subr.bf16.mxu1 %v12710_v45  ;;  %v12785_v19 = vld [vmem:[#allocation13 + $0x38] sm:$0xff]  }
 0x620   :  { %v12786_v45 = vld [vmem:[#allocation13 + $0xb8] sm:$0xff]  }
 0x621   :  { %10260 = vmatpush1.bf16.msra.mxu0 %v12705_v20  ;;  %v12787_v20 = vld [vmem:[#allocation13 + $0x70] sm:$0xff]  }
 0x622   :  { %10301 = vmatpush1.bf16.msra.mxu1 %v12708_v29  ;;  %10261 = vmatprep.subr.bf16.mxu0 %v12713_v30  ;;  %v12788_v29 = vld [vmem:[#allocation13 + $0xf0] sm:$0xff]  }
 0x623   :  { %10302 = vmatprep.subr.bf16.mxu1 %v12716_v47  ;;  %v12790_v30 = vld [vmem:[#allocation13 + $0xb0] sm:$0xff]   ;;  %v12791_v47 = vld [vmem:[#allocation13 + $0x68] sm:$0xff]  }
 0x625   :  { %10262 = vmatpush1.bf16.msra.mxu0 %v12711_v26  ;;  %v12792_v26 = vld [vmem:[#allocation13 + $0xe8] sm:$0xff]  }
 0x626   :  { %10303 = vmatpush1.bf16.msra.mxu1 %v12714_v5  ;;  %10263 = vmatprep.subr.bf16.mxu0 %v12719_v23  ;;  %v12793_v5 = vld [vmem:[#allocation13 + $0x28] sm:$0xff]  }
 0x627   :  { %10304 = vmatprep.subr.bf16.mxu1 %v12722_v15  ;;  %v12794_v23 = vld [vmem:[#allocation13 + $0xa8] sm:$0xff]   ;;  %v12795_v15 = vld [vmem:[#allocation13 + $0x60] sm:$0xff]  }
 0x629   :  { %10264 = vmatpush1.bf16.msra.mxu0 %v12717_v31  ;;  %v12796_v31 = vld [vmem:[#allocation13 + $0xe0] sm:$0xff]  }
 0x62a   :  { %10305 = vmatpush1.bf16.msra.mxu1 %v12720_v41  ;;  %10265 = vmatprep.subr.bf16.mxu0 %v12725_v61  ;;  %v12797_v41 = vld [vmem:[#allocation13 + $0x20] sm:$0xff]  }
 0x62b   :  { %10306 = vmatprep.subr.bf16.mxu1 %v12728_v1  ;;  %v12798_v61 = vld [vmem:[#allocation13 + $0xa0] sm:$0xff]   ;;  %v12799_v1 = vld [vmem:[#allocation13 + $0x58] sm:$0xff]  }
 0x62d   :  { %10266 = vmatpush1.bf16.msra.mxu0 %v12723_v4  ;;  %v12800_v4 = vld [vmem:[#allocation13 + $0xd8] sm:$0xff]  }
 0x62e   :  { %10307 = vmatpush1.bf16.msra.mxu1 %v12726_v60  ;;  %10267 = vmatprep.subr.bf16.mxu0 %v12731_v39  ;;  %v12801_v60 = vld [vmem:[#allocation13 + $0x18] sm:$0xff]  }
 0x62f   :  { %10308 = vmatprep.subr.bf16.mxu1 %v12734_v14  ;;  %v12802_v39 = vld [vmem:[#allocation13 + $0x98] sm:$0xff]  }
 0x631   :  { %10268 = vmatpush1.bf16.msra.mxu0 %v12729_v49 }
 0x632   :  { %10309 = vmatpush1.bf16.msra.mxu1 %v12732_v55  ;;  %10269 = vmatprep.subr.bf16.mxu0 %v12737_v56 }
 0x633   :  { %10310 = vmatprep.subr.bf16.mxu1 %v12740_v42 }
 0x635   :  { %10270 = vmatpush2.bf16.msra.mxu0 %v12735_v24 }
 0x636   :  { %10311 = vmatpush2.bf16.msra.mxu1 %v12738_v28  ;;  %10271 = vmatprep.subr.bf16.mxu0 %v12743_v35 }
 0x637   :  { %10312 = vmatprep.subr.bf16.mxu1 %v12746_v59 }
 0x639   :  { %10272 = vmatpush2.bf16.msra.mxu0 %v12741_v34 }
 0x63a   :  { %10313 = vmatpush2.bf16.msra.mxu1 %v12744_v38  ;;  %10273 = vmatprep.subr.bf16.mxu0 %v12749_v3 }
 0x63b   :  { %10314 = vmatprep.subr.bf16.mxu1 %v12752_v18  ;;  %v12803_v18 = vld [vmem:[#allocation13 + $0x50] sm:$0xff]  }
 0x63d   :  { %10274 = vmatpush2.bf16.msra.mxu0 %v12747_v50  ;;  %v12804_v50 = vld [vmem:[#allocation13 + $0xd0] sm:$0xff]  }
 0x63e   :  { %10315 = vmatpush2.bf16.msra.mxu1 %v12750_v43  ;;  %10275 = vmatprep.subr.bf16.mxu0 %v12755_v37  ;;  %v12805_v43 = vld [vmem:[#allocation13 + $0x10] sm:$0xff]  }
 0x63f   :  { %10316 = vmatprep.subr.bf16.mxu1 %v12758_v46  ;;  %v12806_v37 = vld [vmem:[#allocation13 + $0x90] sm:$0xff]   ;;  %v12807_v46 = vld [vmem:[#allocation13 + $0x48] sm:$0xff]  }
 0x641   :  { %10276 = vmatpush2.bf16.msra.mxu0 %v12753_v40  ;;  %v12808_v40 = vld [vmem:[#allocation13 + $0xc8] sm:$0xff]  }
 0x642   :  { %10317 = vmatpush2.bf16.msra.mxu1 %v12756_v6  ;;  %10277 = vmatprep.subr.bf16.mxu0 %v12761_v21  ;;  %v12809_v6 = vld [vmem:[#allocation13 + $0x8] sm:$0xff]  }
 0x643   :  { %10318 = vmatprep.subr.bf16.mxu1 %v12764_v36  ;;  %v12810_v21 = vld [vmem:[#allocation13 + $0x88] sm:$0xff]   ;;  %v12811_v36 = vld [vmem:[#allocation13 + $0x40] sm:$0xff]  }
 0x645   :  { %10278 = vmatpush2.bf16.msra.mxu0 %v12759_v9  ;;  %v12812_v9 = vld [vmem:[#allocation13 + $0xc0] sm:$0xff]  }
 0x646   :  { %10319 = vmatpush2.bf16.msra.mxu1 %v12762_v53  ;;  %10279 = vmatprep.subr.bf16.mxu0 %v12767_v27  ;;  %v12813_v53 = vld [vmem:[#allocation13] sm:$0xff]  }
 0x647   :  { %10320 = vmatprep.subr.bf16.mxu1 %v12770_v63  ;;  %v12814_v27 = vld [vmem:[#allocation13 + $0x80] sm:$0xff]  }
 0x649   :  { %10280 = vmatpush2.bf16.msra.mxu0 %v12765_v22 }
 0x64a   :  { %10321 = vmatpush2.bf16.msra.mxu1 %v12768_v17  ;;  %10281 = vmatprep.subr.bf16.mxu0 %v12773_v16 }
 0x64b   :  { %10322 = vmatprep.subr.bf16.mxu1 %v12776_v52 }
 0x64d   :  { %10282 = vmatpush2.bf16.msra.mxu0 %v12771_v25 }
 0x64e   :  { %10323 = vmatpush2.bf16.msra.mxu1 %v12774_v54  ;;  %10283 = vmatprep.subr.bf16.mxu0 %v12779_v44 }
 0x64f   :  { %10324 = vmatprep.subr.bf16.mxu1 %v12782_v10 }
 0x651   :  { %10284 = vmatpush2.bf16.msra.mxu0 %v12777_v62 }
 0x652   :  { %10325 = vmatpush2.bf16.msra.mxu1 %v12780_v2  ;;  %11728 = vmatprep.subr.bf16.mxu0 %v12783_v58  ;;  %v10339_v2 = vld [vmem:[#allocation11] sm:$0xf] }
 0x653   :  { %11750 = vmatprep.subr.bf16.mxu1 %v12784_v11 }
 0x654   :  { %10286 = vmatmul.mubr.bf16.vlgmr.msra.gmra.mxu0 %v9929_v7  ;;  %v8851_v33 = vpop.f32.mrf.mxu0  ;;  %v8892_v12 = vpop.f32.mrf.mxu1 }
 0x655   :  { %10327 = vmatmul.mubr.bf16.vlgmr.msra.gmra.mxu1 %v9929_v7  ;;  %11729 = vmatpush3.bf16.msra.mxu0 %v12785_v19  ;;  %v15121_v7 = vld [vmem:[#allocation21_spill] sm:$0xff] }
 0x656   :  { %v8853_v0 = vpop.f32.mrf.mxu0  ;;  %v8894_v8 = vpop.f32.mrf.mxu1  ;;  %11751 = vmatpush3.bf16.msra.mxu1 %v12786_v45  ;;  %11730 = vmatprep.subr.bf16.mxu0 %v12787_v20  ;;  %v15124_v20 = vld [vmem:[#allocation24_spill] sm:$0xff] }
 0x657   :  { %11752 = vmatprep.subr.bf16.mxu1 %v12788_v29  ;;  %v10356_v29 = vrot.slane %v10339_v2, %v15124_v20 }
 0x658   :  { %v8855_v57 = vpop.f32.mrf.mxu0  ;;  %v8896_v13 = vpop.f32.mrf.mxu1 }
 0x659   :  { %11731 = vmatpush3.bf16.msra.mxu0 %v12789_v51 }
 0x65a   :  { %v8856_v32 = vpop.f32.mrf.mxu0  ;;  %v8897_v48 = vpop.f32.mrf.mxu1  ;;  %11753 = vmatpush3.bf16.msra.mxu1 %v12790_v30  ;;  %11732 = vmatprep.subr.bf16.mxu0 %v12791_v47 }
 0x65b   :  { %11754 = vmatprep.subr.bf16.mxu1 %v12792_v26  ;;  %v15123_v48 = vld [vmem:[#allocation23_spill] sm:$0xff] }
 0x65c   :  { %v10348_v58 = vrot.slane %v10339_v2, %v15123_v48 }
 0x65d   :  { %11733 = vmatpush3.bf16.msra.mxu0 %v12793_v5 }
 0x65e   :  { %11755 = vmatpush3.bf16.msra.mxu1 %v12794_v23  ;;  %11734 = vmatprep.subr.bf16.mxu0 %v12795_v15 }
 0x65f   :  { %11756 = vmatprep.subr.bf16.mxu1 %v12796_v31 }
 0x661   :  { %11735 = vmatpush3.bf16.msra.mxu0 %v12797_v41 }
 0x662   :  { %11757 = vmatpush3.bf16.msra.mxu1 %v12798_v61  ;;  %11736 = vmatprep.subr.bf16.mxu0 %v12799_v1 }
 0x663   :  { %11758 = vmatprep.subr.bf16.mxu1 %v12800_v4 }
 0x665   :  { %11737 = vmatpush3.bf16.msra.mxu0 %v12801_v60 }
 0x666   :  { %11759 = vmatpush3.bf16.msra.mxu1 %v12802_v39  ;;  %11738 = vmatprep.subr.bf16.mxu0 %v12803_v18 }
 0x667   :  { %11760 = vmatprep.subr.bf16.mxu1 %v12804_v50 }
 0x669   :  { %11739 = vmatpush3.bf16.msra.mxu0 %v12805_v43 }
 0x66a   :  { %11761 = vmatpush3.bf16.msra.mxu1 %v12806_v37  ;;  %11740 = vmatprep.subr.bf16.mxu0 %v12807_v46 }
 0x66b   :  { %11762 = vmatprep.subr.bf16.mxu1 %v12808_v40 }
 0x66d   :  { %11741 = vmatpush3.bf16.msra.mxu0 %v12809_v6 }
 0x66e   :  { %11763 = vmatpush3.bf16.msra.mxu1 %v12810_v21  ;;  %11742 = vmatprep.subr.bf16.mxu0 %v12811_v36 }
 0x66f   :  { %11764 = vmatprep.subr.bf16.mxu1 %v12812_v9 }
 0x671   :  { %11743 = vmatpush3.bf16.msra.mxu0 %v12813_v53 }
 0x672   :  { %11765 = vmatpush3.bf16.msra.mxu1 %v12814_v27 }
 0x694   :  { %v9285_v14 = vpop.f32.mrf.mxu0  ;;  %v9326_v49 = vpop.f32.mrf.mxu1 }
 0x695   :  { %v9286_v55 = vadd.f32 %v9285_v14, %v8851_v33  ;;  %v9327_v56 = vadd.f32 %v9326_v49, %v8892_v12  ;;  %v10344_v33 = vrot.slane %v10339_v2, %v15121_v7 }
 0x696   :  { %v9287_v42 = vpop.f32.mrf.mxu0  ;;  %v9328_v24 = vpop.f32.mrf.mxu1 }
 0x697   :  { %v9288_v28 = vadd.f32 %v9287_v42, %v8853_v0  ;;  %v9329_v35 = vadd.f32 %v9328_v24, %v8894_v8  ;;  %v15122_v0 = vld [vmem:[#allocation22_spill] sm:$0xff] }
 0x698   :  { %v9289_v59 = vpop.f32.mrf.mxu0  ;;  %v9330_v34 = vpop.f32.mrf.mxu1  ;;  %v10352_v8 = vrot.slane %v10339_v2, %v15122_v0 }
 0x69a   :  { %v9290_v38 = vpop.f32.mrf.mxu0  ;;  %v9331_v3 = vpop.f32.mrf.mxu1 }
 0x6d4   :  { %v9784_v63 = vpop.f32.mrf.mxu0 }
 0x6d5   :  { %v9832_v22 = vadd.f32 %v9784_v63, %v9286_v55  ;;  %v9825_v17 = vpop.f32.mrf.mxu1 }
 0x6d6   :  { %v9834_v16 = vadd.f32 %v9825_v17, %v9327_v56  ;;  %v9786_v52 = vpop.f32.mrf.mxu0 }
 0x6d7   :  { %v9827_v25 = vpop.f32.mrf.mxu1  ;;  %v9833_v57 = vadd.f32 %v9786_v52, %v9288_v28 }
 0x6d8   :  { %v9788_v54 = vpop.f32.mrf.mxu0  ;;  %v9835_v11 = vadd.f32 %v9827_v25, %v9329_v35  ;;  %v11599_v35 = vld [vmem:[#allocation14] ss:$0 sm:$0xff] }
 0x6d9   :  { %v9829_v44 = vpop.f32.mrf.mxu1 }
 0x6da   :  { %v9789_v10 = vpop.f32.mrf.mxu0 }
 0x6db   :  { %v9830_v62 = vpop.f32.mrf.mxu1 }
 0x714   :  { %v10287_v12 = vpop.f32.mrf.mxu0 }
 0x715   :  { %v10335_v13 = vadd.f32 %v10287_v12, %v9832_v22  ;;  %v10328_v32 = vpop.f32.mrf.mxu1 }
 0x716   :  { %v10337_v19 = vadd.f32 %v10328_v32, %v9834_v16  ;;  %v10289_v45 = vpop.f32.mrf.mxu0 }
 0x717   :  { %v10361_v51 = vadd.f32 %v10344_v33, %v10335_v13  ;;  %v10336_v30 = vadd.f32 %v10289_v45, %v9833_v57  ;;  %v10330_v47 = vpop.f32.mrf.mxu1 }
 0x718   :  { %v10363_v26 = vadd.f32 %v10352_v8, %v10337_v19  ;;  %v10338_v5 = vadd.f32 %v10330_v47, %v9835_v11  ;;  %v10291_v23 = vpop.f32.mrf.mxu0 }
 0x719   :  { %v10362_v15 = vadd.f32 %v10348_v58, %v10336_v30  ;;  %v10332_v31 = vpop.f32.mrf.mxu1  ;;  %v10365_v41 = vmax.f32 %v10361_v51, 0.0 }
 0x71a   :  { %v10364_v61 = vadd.f32 %v10356_v29, %v10338_v5  ;;  %v10292_v1 = vpop.f32.mrf.mxu0  ;;  %v10367_v4 = vmax.f32 %v10363_v26, 0.0 }
 0x71b   :  { %v10366_v60 = vmax.f32 %v10362_v15, 0.0  ;;  %v10333_v39 = vpop.f32.mrf.mxu1  ;;  %v10369_v55 = vpack.c.bf16 %v10365_v41, %v10365_v41 }
 0x71c   :  { %v10368_v14 = vmax.f32 %v10364_v61, 0.0  ;;  %v10371_v42 = vpack.c.bf16 %v10367_v4, %v10367_v4 }
 0x71d   :  { %v10370_v49 = vpack.c.bf16 %v10366_v60, %v10366_v60 }
 0x71e   :  { %v10372_v56 = vpack.c.bf16 %v10368_v14, %v10368_v14 }
 0x71f   :  { %10668 = vmatprep.mubr.bf16.mxu0 %v10370_v49 }
 0x720   :  { %10708 = vmatprep.mubr.bf16.mxu1 %v10372_v56  ;;  %10669 = vmatmul.mubr.bf16.vlgmr.msra.gmra.mxu0 %v10369_v55 }
 0x721   :  { %10709 = vmatmul.mubr.bf16.vlgmr.msra.gmra.mxu1 %v10371_v42 }
 0x7e0   :  { %v11744_v24 = vpop.f32.mrf.mxu0 }
 0x7e1   :  { %v11766_v28 = vpop.f32.mrf.mxu1 }
 0x7e2   :  { %v11745_v59 = vpop.f32.mrf.mxu0 }
 0x7e3   :  { %v11746_v34 = vadd.f32 %v11745_v59, %v11744_v24  ;;  %v11767_v38 = vpop.f32.mrf.mxu1 }
 0x7e4   :  { %v11747_v3 = vpop.f32.mrf.mxu0  ;;  %v11768_v50 = vadd.f32 %v11767_v38, %v11766_v28 }
 0x7e5   :  { %v10671_v18 = vadd.f32 %v11746_v34, %v11599_v35  ;;  %v11769_v43 = vpop.f32.mrf.mxu1 }
 0x7e6   :  { %v11748_v37 = vpop.f32.mrf.mxu0 }
 0x7e7   :  { %v10711_v46 = vadd.f32 %v11768_v50, %v10671_v18  ;;  %v11770_v40 = vpop.f32.mrf.mxu1 }
 0x7e9   :  { %10716 = vmax.xlane.f32.xlu0 %v10711_v46 }
 0x872   :  { %v10717_v6 = vpop.xlane.xlu0 %10716 }
 0x873   :  { %v10718_v21 = vsub.f32 %v10711_v46, %v10717_v6 }
 0x875   :  { %v10719_v36 = vmul.f32 1.442695, %v10718_v21 }
 0x877   :  { %12815 = vpow2.f32 %v10719_v36 }
 0x884   :  { %v12816_v9 = vpop.eup %12815 }
 0x885   :  { %10721 = vadd.xlane.f32.xlu0 %v12816_v9 }
 0x90e   :  { %v10722_v53 = vpop.xlane.xlu0 %10721 }
 0x90f   :  { %12817 = vlog2.f32 %v10722_v53 }
 0x91c   :  { %v12818_v27 = vpop.eup %12817 }
 0x91d   :  { %v10724_v63 = vmul.f32 0.6931472, %v12818_v27 }
 0x91f   :  { %v10725_v22 = vadd.f32 %v10724_v63, %v10717_v6 }
 0x921   :  { %v10726_v17 = vsub.f32 %v10711_v46, %v10725_v22 }
 0x923   :  { %10727 = vst [vmem:[%s15026_s9] sm:$0xff] %v10726_v17 }
 0x924   :  { %10732 = vsyncpa [#allocation4], 1 }
 0x925   :  { %10733 = vsyncpa [#allocation6], 1 }
 0x926   :  { %10734 = vsyncpa [#allocation9], 1 }
 0x927   :  { %10735 = vsyncpa [#allocation12], 1 }
 0x928   :  { %10736 = vsyncpa [#allocation15], 1 }

</bundles_post_ra>
